<compile_context>
chip_gen: v6e
topology: v6e:2x2x1
jax: 0.10.0
libtpu: 0.0.40
codegen_flags: <defaults>
</compile_context>

<pallas_src>
import functools
import math

import jax
import jax.numpy as jnp
from jax import lax
from jax.experimental import pallas as pl
from jax.experimental.pallas import tpu as pltpu


_SEQ_ALIGN = 128
_VMEM_LIMIT = 64 * 1024 * 1024   # explicit scoped-VMEM limit (fits v7x physical)


# ----------------------------------------------------------------------------
# helpers
# ----------------------------------------------------------------------------

def _round_up(x, m):
    return ((x + m - 1) // m) * m


def _tile(n, target, align=8):
    """Largest divisor of n that is <= target and a multiple of `align`
    (falls back to n itself, which is always legal as the full extent)."""
    if n <= target:
        return n
    t = (target // align) * align
    while t >= align:
        if n % t == 0:
            return t
        t -= align
    return n


def _heads_per_group(n_heads, d_kv):
    """Smallest head-group so the packed lane width hg*d_kv is 128-aligned."""
    for hg in range(1, n_heads + 1):
        if n_heads % hg == 0 and (hg * d_kv) % 128 == 0:
            return hg
    # TODO(synk): lane-sparse fallback when n_heads*d_kv is not a multiple of 128.
    return n_heads


_GELU_C = 0.7978845608028654  # sqrt(2/pi)


def _gelu_new(x):
    # HF gelu_new (tanh approximation), computed in f32.
    return 0.5 * x * (1.0 + jnp.tanh(_GELU_C * (x + 0.044715 * x * x * x)))


def _rmsnorm_f32(x_f32, gain_f32):
    # T5LayerNorm: x * rsqrt(mean(x^2) + eps) * weight   (no mean subtraction)
    var = jnp.mean(x_f32 * x_f32, axis=-1, keepdims=True)
    return x_f32 * lax.rsqrt(var + 1e-6) * gain_f32


# ----------------------------------------------------------------------------
# kernel 1: fused RMSNorm + matmul (packed QKV projection), N-tiled weights
# ----------------------------------------------------------------------------

def _rmsnorm_matmul_kernel(x_ref, g_ref, w_ref, o_ref, normed_sc):
    @pl.when(pl.program_id(1) == 0)
    def _():
        x = x_ref[...].astype(jnp.float32)
        normed_sc[...] = _rmsnorm_f32(
            x, g_ref[...].astype(jnp.float32)).astype(jnp.bfloat16)

    o_ref[...] = jnp.dot(normed_sc[...], w_ref[...],
                         preferred_element_type=jnp.float32).astype(o_ref.dtype)


def fused_rmsnorm_matmul(x, gain, w):
    M, D = x.shape
    N = w.shape[1]
    tm = _tile(M, 256)
    tn = _tile(N, 512, align=128)
    return pl.pallas_call(
        _rmsnorm_matmul_kernel,
        grid=(M // tm, N // tn),
        in_specs=[
            pl.BlockSpec((tm, D), lambda i, n: (i, 0)),
            pl.BlockSpec((1, D), lambda i, n: (0, 0)),
            pl.BlockSpec((D, tn), lambda i, n: (0, n)),
        ],
        out_specs=pl.BlockSpec((tm, tn), lambda i, n: (i, n)),
        out_shape=jax.ShapeDtypeStruct((M, N), jnp.bfloat16),
        scratch_shapes=[pltpu.VMEM((tm, D), jnp.bfloat16)],
        compiler_params=pltpu.CompilerParams(
            dimension_semantics=("parallel", "arbitrary"),
            vmem_limit_bytes=_VMEM_LIMIT),
    )(x, gain.reshape(1, D), w)


# ----------------------------------------------------------------------------
# kernel 2: flash-style attention, lane-dense head groups, packed QKV input
# ----------------------------------------------------------------------------

def _flash_attn_kernel(q_ref, k_ref, v_ref, pb_ref, mb_ref, o_ref,
                       m_sc, l_sc, acc_sc, *, hg, dk):
    ki = pl.program_id(3)

    @pl.when(ki == 0)
    def _():
        m_sc[...] = jnp.full_like(m_sc, -jnp.inf)
        l_sc[...] = jnp.zeros_like(l_sc)
        acc_sc[...] = jnp.zeros_like(acc_sc)

    q = q_ref[...]                                  # (tq, hg*dk) bf16
    k = k_ref[...]                                  # (tk, hg*dk) bf16
    v = v_ref[...]                                  # (tk, hg*dk) bf16
    mb = mb_ref[0].astype(jnp.float32)              # (1, tk) padding-mask bias

    for j in range(hg):                             # static unroll over packed heads
        sl = slice(j * dk, (j + 1) * dk)
        # T5 attention: no 1/sqrt(d_k) scaling; contract d_kv directly
        # (avoids an XLU transpose of K).
        s = lax.dot_general(q[:, sl], k[:, sl], (((1,), (1,)), ((), ())),
                            preferred_element_type=jnp.float32)      # (tq, tk)
        s = s + pb_ref[j].astype(jnp.float32) + mb

        m_prev = m_sc[j]                            # (tq, 1)
        m_new = jnp.maximum(m_prev, jnp.max(s, axis=-1, keepdims=True))
        alpha = jnp.exp(m_prev - m_new)
        p = jnp.exp(s - m_new)
        l_sc[j] = alpha * l_sc[j] + jnp.sum(p, axis=-1, keepdims=True)
        acc_sc[j] = alpha * acc_sc[j] + jnp.dot(
            p.astype(v.dtype), v[:, sl], preferred_element_type=jnp.float32)
        m_sc[j] = m_new

    @pl.when(ki == pl.num_programs(3) - 1)
    def _():
        for j in range(hg):
            inv = pl.reciprocal(l_sc[j], approx=True)                # (tq, 1)
            o_ref[:, j * dk:(j + 1) * dk] = (acc_sc[j] * inv).astype(o_ref.dtype)


def flash_attention(qkv, pos_bias, mask_bias, *, batch, seq, n_heads, d_kv, hg):
    """qkv: (M, 3*inner) packed [Q|K|V] head-major.  Returns (M, inner) bf16."""
    M = qkv.shape[0]
    inner = n_heads * d_kv
    Gd = hg * d_kv                     # lane width per head group
    G = n_heads // hg
    tq = _tile(seq, 256, align=128)
    tk = _tile(seq, 256, align=128)
    nq = seq // tq
    nk = seq // tk
    kcol0 = inner // Gd                # column-block offset of the K section
    vcol0 = 2 * inner // Gd            # column-block offset of the V section

    q_spec = pl.BlockSpec((tq, Gd), lambda b, g, qi, ki: (b * nq + qi, g))
    k_spec = pl.BlockSpec((tk, Gd), lambda b, g, qi, ki: (b * nk + ki, kcol0 + g))
    v_spec = pl.BlockSpec((tk, Gd), lambda b, g, qi, ki: (b * nk + ki, vcol0 + g))
    pb_spec = pl.BlockSpec((hg, tq, tk), lambda b, g, qi, ki: (g, qi, ki))
    mb_spec = pl.BlockSpec((1, 1, tk), lambda b, g, qi, ki: (b, 0, ki))
    o_spec = pl.BlockSpec((tq, Gd), lambda b, g, qi, ki: (b * nq + qi, g))

    kernel = functools.partial(_flash_attn_kernel, hg=hg, dk=d_kv)
    return pl.pallas_call(
        kernel,
        grid=(batch, G, nq, nk),
        in_specs=[q_spec, k_spec, v_spec, pb_spec, mb_spec],
        out_specs=o_spec,
        out_shape=jax.ShapeDtypeStruct((M, inner), jnp.bfloat16),
        scratch_shapes=[
            pltpu.VMEM((hg, tq, 1), jnp.float32),    # running max (per head)
            pltpu.VMEM((hg, tq, 1), jnp.float32),    # running denom (per head)
            pltpu.VMEM((hg, tq, d_kv), jnp.float32), # output accumulator
        ],
        compiler_params=pltpu.CompilerParams(
            dimension_semantics=("parallel", "parallel", "parallel",
                                 "arbitrary"),
            vmem_limit_bytes=_VMEM_LIMIT),
    )(qkv, qkv, qkv, pos_bias, mask_bias)


# ----------------------------------------------------------------------------
# kernel 3: matmul + residual add (attention output projection), N-tiled
# ----------------------------------------------------------------------------

def _matmul_residual_kernel(a_ref, w_ref, r_ref, o_ref):
    y = jnp.dot(a_ref[...], w_ref[...], preferred_element_type=jnp.float32)
    o_ref[...] = (r_ref[...].astype(jnp.float32) + y).astype(o_ref.dtype)


def matmul_residual(a, w, resid):
    M, K = a.shape
    N = w.shape[1]
    tm = _tile(M, 256)
    tn = _tile(N, 512, align=128)
    return pl.pallas_call(
        _matmul_residual_kernel,
        grid=(M // tm, N // tn),
        in_specs=[
            pl.BlockSpec((tm, K), lambda i, n: (i, 0)),
            pl.BlockSpec((K, tn), lambda i, n: (0, n)),
            pl.BlockSpec((tm, tn), lambda i, n: (i, n)),
        ],
        out_specs=pl.BlockSpec((tm, tn), lambda i, n: (i, n)),
        out_shape=jax.ShapeDtypeStruct((M, N), jnp.bfloat16),
        input_output_aliases={2: 0},   # reuse the residual-stream HBM buffer
        compiler_params=pltpu.CompilerParams(
            dimension_semantics=("parallel", "parallel"),
            vmem_limit_bytes=_VMEM_LIMIT),
    )(a, w, resid)


# ----------------------------------------------------------------------------
# kernel 4: fused RMSNorm + gated-GELU FFN (d_ff reduction) + residual
# ----------------------------------------------------------------------------

def _rmsnorm_ffn_kernel(x_ref, g_ref, wi_ref, wo_ref, o_ref, normed_sc, acc_sc):
    fi = pl.program_id(1)

    @pl.when(fi == 0)
    def _():
        x = x_ref[...].astype(jnp.float32)
        normed_sc[...] = _rmsnorm_f32(
            x, g_ref[...].astype(jnp.float32)).astype(jnp.bfloat16)
        acc_sc[...] = jnp.zeros_like(acc_sc)

    n = normed_sc[...]                                            # (tm, D) bf16
    h_gate = jnp.dot(n, wi_ref[0], preferred_element_type=jnp.float32)
    h_lin = jnp.dot(n, wi_ref[1], preferred_element_type=jnp.float32)
    h = (_gelu_new(h_gate) * h_lin).astype(jnp.bfloat16)          # (tm, tf)
    acc_sc[...] += jnp.dot(h, wo_ref[...], preferred_element_type=jnp.float32)

    @pl.when(fi == pl.num_programs(1) - 1)
    def _():
        o_ref[...] = (x_ref[...].astype(jnp.float32)
                      + acc_sc[...]).astype(o_ref.dtype)


def rmsnorm_ffn_residual(x, gain, wi, wo):
    M, D = x.shape
    F = wi.shape[2]
    tm = _tile(M, 512)
    tf = _tile(F, 512, align=128)
    return pl.pallas_call(
        _rmsnorm_ffn_kernel,
        grid=(M // tm, F // tf),
        in_specs=[
            pl.BlockSpec((tm, D), lambda i, f: (i, 0)),
            pl.BlockSpec((1, D), lambda i, f: (0, 0)),
            pl.BlockSpec((2, D, tf), lambda i, f: (0, 0, f)),   # stacked wi0/wi1
            pl.BlockSpec((tf, D), lambda i, f: (f, 0)),
        ],
        out_specs=pl.BlockSpec((tm, D), lambda i, f: (i, 0)),
        out_shape=jax.ShapeDtypeStruct((M, D), jnp.bfloat16),
        scratch_shapes=[
            pltpu.VMEM((tm, D), jnp.bfloat16),   # RMSNorm(x) (computed once)
            pltpu.VMEM((tm, D), jnp.float32),    # output accumulator
        ],
        input_output_aliases={0: 0},             # reuse the residual-stream buffer
        compiler_params=pltpu.CompilerParams(
            dimension_semantics=("parallel", "arbitrary"),
            vmem_limit_bytes=_VMEM_LIMIT),
    )(x, gain.reshape(1, D), wi, wo)


# ----------------------------------------------------------------------------
# kernel 5: final RMSNorm (outputs f32)
# ----------------------------------------------------------------------------

def _rmsnorm_kernel(x_ref, g_ref, o_ref):
    x = x_ref[...].astype(jnp.float32)
    o_ref[...] = _rmsnorm_f32(x, g_ref[...].astype(jnp.float32)).astype(o_ref.dtype)


def final_rmsnorm(x, gain):
    M, D = x.shape
    tm = _tile(M, 512)
    return pl.pallas_call(
        _rmsnorm_kernel,
        grid=(M // tm,),
        in_specs=[pl.BlockSpec((tm, D), lambda i: (i, 0)),
                  pl.BlockSpec((1, D), lambda i: (0, 0))],
        out_specs=pl.BlockSpec((tm, D), lambda i: (i, 0)),
        out_shape=jax.ShapeDtypeStruct((M, D), jnp.float32),
        compiler_params=pltpu.CompilerParams(
            dimension_semantics=("parallel",),
            vmem_limit_bytes=_VMEM_LIMIT),
    )(x, gain.reshape(1, D))


# ----------------------------------------------------------------------------
# glue: relative position bias, parameter init, encoder driver
# ----------------------------------------------------------------------------

def relative_position_bias(rel_emb, seq_len, num_buckets=32, max_distance=128):
    # HF T5Attention._relative_position_bucket, bidirectional (encoder).
    ctx = jnp.arange(seq_len)[:, None]
    mem = jnp.arange(seq_len)[None, :]
    rel = mem - ctx                                    # (S, S)
    nb = num_buckets // 2
    buckets = (rel > 0).astype(jnp.int32) * nb
    rel_abs = jnp.abs(rel)
    max_exact = nb // 2
    is_small = rel_abs < max_exact
    # clamp before the log so the small-distance branch never produces NaN/neg
    rel_safe = jnp.maximum(rel_abs, max_exact).astype(jnp.float32)
    rel_large = max_exact + (
        jnp.log(rel_safe / max_exact)
        / math.log(max_distance / max_exact) * (nb - max_exact)
    ).astype(jnp.int32)
    rel_large = jnp.minimum(rel_large, nb - 1)
    buckets = buckets + jnp.where(is_small, rel_abs, rel_large)
    values = rel_emb[buckets]                          # (S, S, H) gather (glue)
    return jnp.transpose(values, (2, 0, 1))            # (H, S, S) f32


def init_params(key, vocab, d_model, n_heads, d_kv, d_ff, n_layers,
                num_buckets=32):
    inner = n_heads * d_kv
    keys = jax.random.split(key, 2 + 7 * n_layers)
    p = {
        "embed": jax.random.normal(keys[0], (vocab, d_model), jnp.float32) * 0.02,
        "rel_emb": jax.random.normal(keys[1], (num_buckets, n_heads),
                                     jnp.float32) * 0.02,
        "final_ln": jnp.ones((d_model,), jnp.float32),
        "layers": [],
    }
    for li in range(n_layers):
        k = keys[2 + 7 * li: 2 + 7 * (li + 1)]
        wq = jax.random.normal(k[0], (d_model, inner), jnp.float32) * 0.02
        wk = jax.random.normal(k[1], (d_model, inner), jnp.float32) * 0.02
        wv = jax.random.normal(k[2], (d_model, inner), jnp.float32) * 0.02
        wi0 = jax.random.normal(k[4], (d_model, d_ff), jnp.float32) * 0.02
        wi1 = jax.random.normal(k[5], (d_model, d_ff), jnp.float32) * 0.02
        p["layers"].append({
            "ln1": jnp.ones((d_model,), jnp.float32),
            # packed QKV projection: normed activation is read once, wide N
            "wqkv": jnp.concatenate([wq, wk, wv], axis=1).astype(jnp.bfloat16),
            "wo_attn": (jax.random.normal(k[3], (inner, d_model), jnp.float32)
                        * 0.02).astype(jnp.bfloat16),
            "ln2": jnp.ones((d_model,), jnp.float32),
            # gate/linear FFN weights stacked -> single DMA stream per f-tile
            "wi": jnp.stack([wi0, wi1], axis=0).astype(jnp.bfloat16),   # (2,D,F)
            "wo_ff": (jax.random.normal(k[6], (d_ff, d_model), jnp.float32)
                      * 0.02).astype(jnp.bfloat16),
        })
    return p


def mt5_encoder_forward(params, input_ids, padding_idx, n_heads, d_kv):
    """ParlaimT5Encoder.forward: returns (hidden_states[B,S,D] f32, mask[B,S])."""
    B, S0 = input_ids.shape
    D = params["embed"].shape[1]

    mask = input_ids != padding_idx                     # (B, S0) bool — returned

    # Pad the sequence so every kernel sees clean 128-aligned tiles; padded
    # positions use padding_idx and are masked out of attention, then sliced
    # off the output.
    S = _round_up(S0, _SEQ_ALIGN)
    if S != S0:
        pad = jnp.full((B, S - S0), padding_idx, dtype=input_ids.dtype)
        ids = jnp.concatenate([input_ids, pad], axis=1)
    else:
        ids = input_ids

    key_mask = ids != padding_idx
    # un-broadcast padding-mask bias (B,1,S), bf16 stream, added in f32 in-kernel
    mask_bias = jnp.where(key_mask, 0.0, -1e9).astype(jnp.bfloat16).reshape(B, 1, S)
    # shared relative-position bias (H,S,S) bf16 — added in-kernel, never
    # broadcast to (B,H,S,S) in HBM.
    pos_bias = relative_position_bias(params["rel_emb"], S).astype(jnp.bfloat16)

    M = B * S
    hidden = params["embed"][ids]                        # (B,S,D) gather (glue)
    x = hidden.astype(jnp.bfloat16).reshape(M, D)        # bf16 residual stream

    hg = _heads_per_group(n_heads, d_kv)                 # lane-dense head group

    for layer in params["layers"]:
        # --- T5LayerSelfAttention (RMSNorm fused into packed QKV matmul) ---
        qkv = fused_rmsnorm_matmul(x, layer["ln1"], layer["wqkv"])   # (M, 3*inner)
        attn = flash_attention(qkv, pos_bias, mask_bias,
                               batch=B, seq=S, n_heads=n_heads,
                               d_kv=d_kv, hg=hg)                      # (M, inner)
        x = matmul_residual(attn, layer["wo_attn"], x)                # (M, D)
        # --- T5LayerFF (RMSNorm + gated gelu + residual, d_ff streamed) ---
        x = rmsnorm_ffn_residual(x, layer["ln2"], layer["wi"],
                                 layer["wo_ff"])                      # (M, D)

    out = final_rmsnorm(x, params["final_ln"])                        # (M,D) f32
    out = out.reshape(B, S, D)[:, :S0, :]
    return out, mask


# ----------------------------------------------------------------------------
# Main
# ----------------------------------------------------------------------------

if __name__ == "__main__":
    # Small mT5-like config (inner = n_heads*d_kv = 128 -> lane-dense groups)
    VOCAB, D_MODEL, N_HEADS, D_KV, D_FF, N_LAYERS = 256, 128, 2, 64, 256, 2
    BATCH, SEQ, PAD_IDX = 2, 16, 0

    key = jax.random.PRNGKey(0)
    pkey, ikey = jax.random.split(key)
    params = init_params(pkey, VOCAB, D_MODEL, N_HEADS, D_KV, D_FF, N_LAYERS)

    input_ids = jax.random.randint(ikey, (BATCH, SEQ), 1, VOCAB, dtype=jnp.int32)
    # put some padding tokens at the end of the second sequence
    input_ids = input_ids.at[1, 12:].set(PAD_IDX)

    fwd = jax.jit(functools.partial(mt5_encoder_forward,
                                    padding_idx=PAD_IDX,
                                    n_heads=N_HEADS, d_kv=D_KV))
    hidden, mask = fwd(params, input_ids)
    hidden = jax.block_until_ready(hidden)
    mask = jax.block_until_ready(mask)

    assert hidden.shape == (BATCH, SEQ, D_MODEL) and hidden.dtype == jnp.float32
    assert mask.shape == (BATCH, SEQ) and mask.dtype == jnp.bool_
    assert bool(jnp.all(jnp.isfinite(hidden)))

    # TODO(synk): model-parallel path (stack.parallelize()) has no Pallas
    # equivalent here; single-core execution only.
    print("KERNEL_OK")
</pallas_src>

<mosaic_0001>
module attributes {stable_mosaic.version = 11 : i64} {
  func.func @_rmsnorm_matmul_kernel(%arg0: i32, %arg1: i32, %arg2: memref<256x128xbf16, #tpu.memory_space<vmem>>, %arg3: memref<1x128xf32, #tpu.memory_space<vmem>>, %arg4: memref<128x384xbf16, #tpu.memory_space<vmem>>, %arg5: memref<256x384xbf16, #tpu.memory_space<vmem>>, %arg6: memref<256x128xbf16, #tpu.memory_space<vmem>>) attributes {dimension_semantics = [#tpu.dimension_semantics<parallel>, #tpu.dimension_semantics<arbitrary>], iteration_bounds = array<i64: 1, 1>, scalar_prefetch = 0 : i64, scratch_operands = 1 : i64, tpu.core_type = #tpu.core_type<tc>, window_params = [{transform_indices = @transform_0, window_bounds = array<i64: 256, 128>}, {pipeline_mode = #tpu.pipeline_mode<synchronous>, transform_indices = @transform_1, window_bounds = array<i64: 1, 128>}, {transform_indices = @transform_2, window_bounds = array<i64: 128, 384>}, {transform_indices = @transform_3, window_bounds = array<i64: 256, 384>}]} {
    %c0_i32 = arith.constant 0 : i32
    %0 = arith.cmpi eq, %arg1, %c0_i32 : i32
    %1 = arith.extui %0 : i1 to i32
    %c0_i32_0 = arith.constant 0 : i32
    %2 = arith.cmpi ne, %1, %c0_i32_0 : i32
    scf.if %2 {
      %c0_6 = arith.constant 0 : index
      %c0_7 = arith.constant 0 : index
      %8 = vector.load %arg2[%c0_6, %c0_7] : memref<256x128xbf16, #tpu.memory_space<vmem>>, vector<256x128xbf16>
      %9 = arith.extf %8 : vector<256x128xbf16> to vector<256x128xf32>
      %c0_8 = arith.constant 0 : index
      %c0_9 = arith.constant 0 : index
      %10 = vector.load %arg3[%c0_8, %c0_9] : memref<1x128xf32, #tpu.memory_space<vmem>>, vector<1x128xf32>
      %11 = arith.mulf %9, %9 : vector<256x128xf32>
      %cst_10 = arith.constant dense<0.000000e+00> : vector<256xf32>
      %12 = vector.multi_reduction <add>, %11, %cst_10 [1] : vector<256x128xf32> to vector<256xf32>
      %13 = vector.shape_cast %12 : vector<256xf32> to vector<256x1xf32>
      %cst_11 = arith.constant 1.280000e+02 : f32
      %14 = vector.broadcast %cst_11 : f32 to vector<256x1xf32>
      %15 = arith.divf %13, %14 : vector<256x1xf32>
      %cst_12 = arith.constant 9.99999997E-7 : f32
      %16 = vector.broadcast %cst_12 : f32 to vector<256x1xf32>
      %17 = arith.addf %15, %16 : vector<256x1xf32>
      %18 = math.rsqrt %17 : vector<256x1xf32>
      %19 = vector.broadcast %18 : vector<256x1xf32> to vector<256x128xf32>
      %20 = arith.mulf %9, %19 : vector<256x128xf32>
      %21 = vector.broadcast %10 : vector<1x128xf32> to vector<256x128xf32>
      %22 = arith.mulf %20, %21 : vector<256x128xf32>
      %23 = arith.truncf %22 : vector<256x128xf32> to vector<256x128xbf16>
      %c0_13 = arith.constant 0 : index
      %c0_14 = arith.constant 0 : index
      %24 = vector.load %arg6[%c0_13, %c0_14] : memref<256x128xbf16, #tpu.memory_space<vmem>>, vector<256x128xbf16>
      tpu.vector_store %arg6[%c0_13, %c0_14], %23 {strides = array<i32>} : memref<256x128xbf16, #tpu.memory_space<vmem>>, vector<256x128xbf16>,
    } else {
    }
    %c0 = arith.constant 0 : index
    %c0_1 = arith.constant 0 : index
    %3 = vector.load %arg6[%c0, %c0_1] : memref<256x128xbf16, #tpu.memory_space<vmem>>, vector<256x128xbf16>
    %c0_2 = arith.constant 0 : index
    %c0_3 = arith.constant 0 : index
    %4 = vector.load %arg4[%c0_2, %c0_3] : memref<128x384xbf16, #tpu.memory_space<vmem>>, vector<128x384xbf16>
    %cst = arith.constant dense<0.000000e+00> : vector<256x384xf32>
    %5 = tpu.matmul %3, %4, %cst {dimension_numbers = #tpu.dot_dimension_numbers<[1], [0], [0], [1], [0, 0, 1, 1], [], []>} : vector<256x128xbf16>, vector<128x384xbf16>, vector<256x384xf32> -> vector<256x384xf32>
    %6 = arith.truncf %5 : vector<256x384xf32> to vector<256x384xbf16>
    %c0_4 = arith.constant 0 : index
    %c0_5 = arith.constant 0 : index
    %7 = vector.load %arg5[%c0_4, %c0_5] : memref<256x384xbf16, #tpu.memory_space<vmem>>, vector<256x384xbf16>
    tpu.vector_store %arg5[%c0_4, %c0_5], %6 {strides = array<i32>} : memref<256x384xbf16, #tpu.memory_space<vmem>>, vector<256x384xbf16>,
    return
  }
  func.func @transform_0(%arg0: i32, %arg1: i32) -> (i32, i32) {
    %c0_i32 = arith.constant 0 : i32
    %c0_i32_0 = arith.constant 0 : i32
    return %arg0, %c0_i32 : i32, i32
  }
  func.func @transform_1(%arg0: i32, %arg1: i32) -> (i32, i32) {
    %c0_i32 = arith.constant 0 : i32
    %c0_i32_0 = arith.constant 0 : i32
    %c0_i32_1 = arith.constant 0 : i32
    return %c0_i32, %c0_i32_0 : i32, i32
  }
  func.func @transform_2(%arg0: i32, %arg1: i32) -> (i32, i32) {
    %c0_i32 = arith.constant 0 : i32
    %c0_i32_0 = arith.constant 0 : i32
    return %c0_i32, %arg1 : i32, i32
  }
  func.func @transform_3(%arg0: i32, %arg1: i32) -> (i32, i32) {
    %c0_i32 = arith.constant 0 : i32
    return %arg0, %arg1 : i32, i32
  }
}

module attributes {stable_mosaic.version = 11 : i64} {
  func.func @_flash_attn_kernel(%arg0: i32, %arg1: i32, %arg2: i32, %arg3: i32, %arg4: memref<128x128xbf16, #tpu.memory_space<vmem>>, %arg5: memref<128x128xbf16, #tpu.memory_space<vmem>>, %arg6: memref<128x128xbf16, #tpu.memory_space<vmem>>, %arg7: memref<2x128x128xbf16, #tpu.memory_space<vmem>>, %arg8: memref<1x1x128xbf16, #tpu.memory_space<vmem>>, %arg9: memref<128x128xbf16, #tpu.memory_space<vmem>>, %arg10: memref<2x128x1xf32, #tpu.memory_space<vmem>>, %arg11: memref<2x128x1xf32, #tpu.memory_space<vmem>>, %arg12: memref<2x128x64xf32, #tpu.memory_space<vmem>>) attributes {dimension_semantics = [#tpu.dimension_semantics<parallel>, #tpu.dimension_semantics<parallel>, #tpu.dimension_semantics<parallel>, #tpu.dimension_semantics<arbitrary>], iteration_bounds = array<i64: 2, 1, 1, 1>, scalar_prefetch = 0 : i64, scratch_operands = 3 : i64, tpu.core_type = #tpu.core_type<tc>, window_params = [{transform_indices = @transform_0, window_bounds = array<i64: 128, 128>}, {transform_indices = @transform_1, window_bounds = array<i64: 128, 128>}, {transform_indices = @transform_2, window_bounds = array<i64: 128, 128>}, {transform_indices = @transform_3, window_bounds = array<i64: 2, 128, 128>}, {transform_indices = @transform_4, window_bounds = array<i64: 1, 1, 128>}, {transform_indices = @transform_5, window_bounds = array<i64: 128, 128>}]} {
    %c0_i32 = arith.constant 0 : i32
    %0 = arith.cmpi eq, %arg3, %c0_i32 : i32
    %1 = arith.extui %0 : i1 to i32
    %c0_i32_0 = arith.constant 0 : i32
    %2 = arith.cmpi ne, %1, %c0_i32_0 : i32
    scf.if %2 {
      %cst_59 = arith.constant 0xFF800000 : f32
      %96 = vector.broadcast %cst_59 : f32 to vector<2x128x1xf32>
      %c0_60 = arith.constant 0 : index
      %c0_61 = arith.constant 0 : index
      %c0_62 = arith.constant 0 : index
      %97 = vector.load %arg10[%c0_60, %c0_61, %c0_62] : memref<2x128x1xf32, #tpu.memory_space<vmem>>, vector<2x128x1xf32>
      tpu.vector_store %arg10[%c0_60, %c0_61, %c0_62], %96 {strides = array<i32>} : memref<2x128x1xf32, #tpu.memory_space<vmem>>, vector<2x128x1xf32>,
      %cst_63 = arith.constant 0.000000e+00 : f32
      %98 = vector.broadcast %cst_63 : f32 to vector<2x128x1xf32>
      %c0_64 = arith.constant 0 : index
      %c0_65 = arith.constant 0 : index
      %c0_66 = arith.constant 0 : index
      %99 = vector.load %arg11[%c0_64, %c0_65, %c0_66] : memref<2x128x1xf32, #tpu.memory_space<vmem>>, vector<2x128x1xf32>
      tpu.vector_store %arg11[%c0_64, %c0_65, %c0_66], %98 {strides = array<i32>} : memref<2x128x1xf32, #tpu.memory_space<vmem>>, vector<2x128x1xf32>,
      %cst_67 = arith.constant 0.000000e+00 : f32
      %100 = vector.broadcast %cst_67 : f32 to vector<2x128x64xf32>
      %c0_68 = arith.constant 0 : index
      %c0_69 = arith.constant 0 : index
      %c0_70 = arith.constant 0 : index
      %101 = vector.load %arg12[%c0_68, %c0_69, %c0_70] : memref<2x128x64xf32, #tpu.memory_space<vmem>>, vector<2x128x64xf32>
      tpu.vector_store %arg12[%c0_68, %c0_69, %c0_70], %100 {strides = array<i32>} : memref<2x128x64xf32, #tpu.memory_space<vmem>>, vector<2x128x64xf32>,
    } else {
    }
    %c0 = arith.constant 0 : index
    %c0_1 = arith.constant 0 : index
    %3 = vector.load %arg4[%c0, %c0_1] : memref<128x128xbf16, #tpu.memory_space<vmem>>, vector<128x128xbf16>
    %c0_2 = arith.constant 0 : index
    %c0_3 = arith.constant 0 : index
    %4 = vector.load %arg5[%c0_2, %c0_3] : memref<128x128xbf16, #tpu.memory_space<vmem>>, vector<128x128xbf16>
    %c0_4 = arith.constant 0 : index
    %c0_5 = arith.constant 0 : index
    %5 = vector.load %arg6[%c0_4, %c0_5] : memref<128x128xbf16, #tpu.memory_space<vmem>>, vector<128x128xbf16>
    %c0_6 = arith.constant 0 : index
    %c0_7 = arith.constant 0 : index
    %c0_8 = arith.constant 0 : index
    %6 = vector.load %arg8[%c0_6, %c0_7, %c0_8] : memref<1x1x128xbf16, #tpu.memory_space<vmem>>, vector<1x1x128xbf16>
    %7 = vector.shape_cast %6 : vector<1x1x128xbf16> to vector<1x128xbf16>
    %8 = arith.extf %7 : vector<1x128xbf16> to vector<1x128xf32>
    %9 = vector.extract_strided_slice %3 {offsets = [0, 0], sizes = [128, 64], strides = [1, 1]} : vector<128x128xbf16> to vector<128x64xbf16>
    %10 = vector.extract_strided_slice %4 {offsets = [0, 0], sizes = [128, 64], strides = [1, 1]} : vector<128x128xbf16> to vector<128x64xbf16>
    %cst = arith.constant dense<0.000000e+00> : vector<128x128xf32>
    %11 = tpu.matmul %9, %10, %cst {dimension_numbers = #tpu.dot_dimension_numbers<[1], [1], [0], [0], [0, 0, 1, 0], [], []>} : vector<128x64xbf16>, vector<128x64xbf16>, vector<128x128xf32> -> vector<128x128xf32>
    %c0_9 = arith.constant 0 : index
    %c0_10 = arith.constant 0 : index
    %c0_11 = arith.constant 0 : index
    %12 = vector.load %arg7[%c0_9, %c0_10, %c0_11] : memref<2x128x128xbf16, #tpu.memory_space<vmem>>, vector<1x128x128xbf16>
    %13 = vector.shape_cast %12 : vector<1x128x128xbf16> to vector<128x128xbf16>
    %14 = arith.extf %13 : vector<128x128xbf16> to vector<128x128xf32>
    %15 = arith.addf %11, %14 : vector<128x128xf32>
    %16 = vector.broadcast %8 : vector<1x128xf32> to vector<128x128xf32>
    %17 = arith.addf %15, %16 : vector<128x128xf32>
    %c0_12 = arith.constant 0 : index
    %c0_13 = arith.constant 0 : index
    %c0_14 = arith.constant 0 : index
    %18 = vector.load %arg10[%c0_12, %c0_13, %c0_14] : memref<2x128x1xf32, #tpu.memory_space<vmem>>, vector<1x128x1xf32>
    %19 = vector.shape_cast %18 : vector<1x128x1xf32> to vector<128x1xf32>
    %cst_15 = arith.constant dense<0xFF800000> : vector<128xf32>
    %20 = vector.multi_reduction <maximumf>, %17, %cst_15 [1] : vector<128x128xf32> to vector<128xf32>
    %21 = vector.shape_cast %20 : vector<128xf32> to vector<128x1xf32>
    %22 = arith.maximumf %19, %21 : vector<128x1xf32>
    %23 = arith.subf %19, %22 : vector<128x1xf32>
    %24 = math.exp %23 : vector<128x1xf32>
    %25 = vector.broadcast %22 : vector<128x1xf32> to vector<128x128xf32>
    %26 = arith.subf %17, %25 : vector<128x128xf32>
    %27 = math.exp %26 : vector<128x128xf32>
    %c0_16 = arith.constant 0 : index
    %c0_17 = arith.constant 0 : index
    %c0_18 = arith.constant 0 : index
    %28 = vector.load %arg11[%c0_16, %c0_17, %c0_18] : memref<2x128x1xf32, #tpu.memory_space<vmem>>, vector<1x128x1xf32>
    %29 = vector.shape_cast %28 : vector<1x128x1xf32> to vector<128x1xf32>
    %30 = arith.mulf %24, %29 : vector<128x1xf32>
    %cst_19 = arith.constant dense<0.000000e+00> : vector<128xf32>
    %31 = vector.multi_reduction <add>, %27, %cst_19 [1] : vector<128x128xf32> to vector<128xf32>
    %32 = vector.shape_cast %31 : vector<128xf32> to vector<128x1xf32>
    %33 = arith.addf %30, %32 : vector<128x1xf32>
    %c0_20 = arith.constant 0 : index
    %c0_21 = arith.constant 0 : index
    %c0_22 = arith.constant 0 : index
    %34 = vector.load %arg11[%c0_20, %c0_21, %c0_22] : memref<2x128x1xf32, #tpu.memory_space<vmem>>, vector<1x128x1xf32>
    %35 = vector.shape_cast %34 : vector<1x128x1xf32> to vector<128x1xf32>
    %36 = vector.shape_cast %33 : vector<128x1xf32> to vector<1x128x1xf32>
    tpu.vector_store %arg11[%c0_20, %c0_21, %c0_22], %36 {strides = array<i32>} : memref<2x128x1xf32, #tpu.memory_space<vmem>>, vector<1x128x1xf32>,
    %c0_23 = arith.constant 0 : index
    %c0_24 = arith.constant 0 : index
    %c0_25 = arith.constant 0 : index
    %37 = vector.load %arg12[%c0_23, %c0_24, %c0_25] : memref<2x128x64xf32, #tpu.memory_space<vmem>>, vector<1x128x64xf32>
    %38 = vector.shape_cast %37 : vector<1x128x64xf32> to vector<128x64xf32>
    %39 = vector.broadcast %24 : vector<128x1xf32> to vector<128x64xf32>
    %40 = arith.mulf %39, %38 : vector<128x64xf32>
    %41 = arith.truncf %27 : vector<128x128xf32> to vector<128x128xbf16>
    %42 = vector.extract_strided_slice %5 {offsets = [0, 0], sizes = [128, 64], strides = [1, 1]} : vector<128x128xbf16> to vector<128x64xbf16>
    %cst_26 = arith.constant dense<0.000000e+00> : vector<128x64xf32>
    %43 = tpu.matmul %41, %42, %cst_26 {dimension_numbers = #tpu.dot_dimension_numbers<[1], [0], [0], [1], [0, 0, 1, 1], [], []>} : vector<128x128xbf16>, vector<128x64xbf16>, vector<128x64xf32> -> vector<128x64xf32>
    %44 = arith.addf %40, %43 : vector<128x64xf32>
    %c0_27 = arith.constant 0 : index
    %c0_28 = arith.constant 0 : index
    %c0_29 = arith.constant 0 : index
    %45 = vector.load %arg12[%c0_27, %c0_28, %c0_29] : memref<2x128x64xf32, #tpu.memory_space<vmem>>, vector<1x128x64xf32>
    %46 = vector.shape_cast %45 : vector<1x128x64xf32> to vector<128x64xf32>
    %47 = vector.shape_cast %44 : vector<128x64xf32> to vector<1x128x64xf32>
    tpu.vector_store %arg12[%c0_27, %c0_28, %c0_29], %47 {strides = array<i32>} : memref<2x128x64xf32, #tpu.memory_space<vmem>>, vector<1x128x64xf32>,
    %c0_30 = arith.constant 0 : index
    %c0_31 = arith.constant 0 : index
    %c0_32 = arith.constant 0 : index
    %48 = vector.load %arg10[%c0_30, %c0_31, %c0_32] : memref<2x128x1xf32, #tpu.memory_space<vmem>>, vector<1x128x1xf32>
    %49 = vector.shape_cast %48 : vector<1x128x1xf32> to vector<128x1xf32>
    %50 = vector.shape_cast %22 : vector<128x1xf32> to vector<1x128x1xf32>
    tpu.vector_store %arg10[%c0_30, %c0_31, %c0_32], %50 {strides = array<i32>} : memref<2x128x1xf32, #tpu.memory_space<vmem>>, vector<1x128x1xf32>,
    %51 = vector.extract_strided_slice %3 {offsets = [0, 64], sizes = [128, 64], strides = [1, 1]} : vector<128x128xbf16> to vector<128x64xbf16>
    %52 = vector.extract_strided_slice %4 {offsets = [0, 64], sizes = [128, 64], strides = [1, 1]} : vector<128x128xbf16> to vector<128x64xbf16>
    %cst_33 = arith.constant dense<0.000000e+00> : vector<128x128xf32>
    %53 = tpu.matmul %51, %52, %cst_33 {dimension_numbers = #tpu.dot_dimension_numbers<[1], [1], [0], [0], [0, 0, 1, 0], [], []>} : vector<128x64xbf16>, vector<128x64xbf16>, vector<128x128xf32> -> vector<128x128xf32>
    %c1 = arith.constant 1 : index
    %c0_34 = arith.constant 0 : index
    %c0_35 = arith.constant 0 : index
    %54 = vector.load %arg7[%c1, %c0_34, %c0_35] : memref<2x128x128xbf16, #tpu.memory_space<vmem>>, vector<1x128x128xbf16>
    %55 = vector.shape_cast %54 : vector<1x128x128xbf16> to vector<128x128xbf16>
    %56 = arith.extf %55 : vector<128x128xbf16> to vector<128x128xf32>
    %57 = arith.addf %53, %56 : vector<128x128xf32>
    %58 = vector.broadcast %8 : vector<1x128xf32> to vector<128x128xf32>
    %59 = arith.addf %57, %58 : vector<128x128xf32>
    %c1_36 = arith.constant 1 : index
    %c0_37 = arith.constant 0 : index
    %c0_38 = arith.constant 0 : index
    %60 = vector.load %arg10[%c1_36, %c0_37, %c0_38] : memref<2x128x1xf32, #tpu.memory_space<vmem>>, vector<1x128x1xf32>
    %61 = vector.shape_cast %60 : vector<1x128x1xf32> to vector<128x1xf32>
    %cst_39 = arith.constant dense<0xFF800000> : vector<128xf32>
    %62 = vector.multi_reduction <maximumf>, %59, %cst_39 [1] : vector<128x128xf32> to vector<128xf32>
    %63 = vector.shape_cast %62 : vector<128xf32> to vector<128x1xf32>
    %64 = arith.maximumf %61, %63 : vector<128x1xf32>
    %65 = arith.subf %61, %64 : vector<128x1xf32>
    %66 = math.exp %65 : vector<128x1xf32>
    %67 = vector.broadcast %64 : vector<128x1xf32> to vector<128x128xf32>
    %68 = arith.subf %59, %67 : vector<128x128xf32>
    %69 = math.exp %68 : vector<128x128xf32>
    %c1_40 = arith.constant 1 : index
    %c0_41 = arith.constant 0 : index
    %c0_42 = arith.constant 0 : index
    %70 = vector.load %arg11[%c1_40, %c0_41, %c0_42] : memref<2x128x1xf32, #tpu.memory_space<vmem>>, vector<1x128x1xf32>
    %71 = vector.shape_cast %70 : vector<1x128x1xf32> to vector<128x1xf32>
    %72 = arith.mulf %66, %71 : vector<128x1xf32>
    %cst_43 = arith.constant dense<0.000000e+00> : vector<128xf32>
    %73 = vector.multi_reduction <add>, %69, %cst_43 [1] : vector<128x128xf32> to vector<128xf32>
    %74 = vector.shape_cast %73 : vector<128xf32> to vector<128x1xf32>
    %75 = arith.addf %72, %74 : vector<128x1xf32>
    %c1_44 = arith.constant 1 : index
    %c0_45 = arith.constant 0 : index
    %c0_46 = arith.constant 0 : index
    %76 = vector.load %arg11[%c1_44, %c0_45, %c0_46] : memref<2x128x1xf32, #tpu.memory_space<vmem>>, vector<1x128x1xf32>
    %77 = vector.shape_cast %76 : vector<1x128x1xf32> to vector<128x1xf32>
    %78 = vector.shape_cast %75 : vector<128x1xf32> to vector<1x128x1xf32>
    tpu.vector_store %arg11[%c1_44, %c0_45, %c0_46], %78 {strides = array<i32>} : memref<2x128x1xf32, #tpu.memory_space<vmem>>, vector<1x128x1xf32>,
    %c1_47 = arith.constant 1 : index
    %c0_48 = arith.constant 0 : index
    %c0_49 = arith.constant 0 : index
    %79 = vector.load %arg12[%c1_47, %c0_48, %c0_49] : memref<2x128x64xf32, #tpu.memory_space<vmem>>, vector<1x128x64xf32>
    %80 = vector.shape_cast %79 : vector<1x128x64xf32> to vector<128x64xf32>
    %81 = vector.broadcast %66 : vector<128x1xf32> to vector<128x64xf32>
    %82 = arith.mulf %81, %80 : vector<128x64xf32>
    %83 = arith.truncf %69 : vector<128x128xf32> to vector<128x128xbf16>
    %84 = vector.extract_strided_slice %5 {offsets = [0, 64], sizes = [128, 64], strides = [1, 1]} : vector<128x128xbf16> to vector<128x64xbf16>
    %cst_50 = arith.constant dense<0.000000e+00> : vector<128x64xf32>
    %85 = tpu.matmul %83, %84, %cst_50 {dimension_numbers = #tpu.dot_dimension_numbers<[1], [0], [0], [1], [0, 0, 1, 1], [], []>} : vector<128x128xbf16>, vector<128x64xbf16>, vector<128x64xf32> -> vector<128x64xf32>
    %86 = arith.addf %82, %85 : vector<128x64xf32>
    %c1_51 = arith.constant 1 : index
    %c0_52 = arith.constant 0 : index
    %c0_53 = arith.constant 0 : index
    %87 = vector.load %arg12[%c1_51, %c0_52, %c0_53] : memref<2x128x64xf32, #tpu.memory_space<vmem>>, vector<1x128x64xf32>
    %88 = vector.shape_cast %87 : vector<1x128x64xf32> to vector<128x64xf32>
    %89 = vector.shape_cast %86 : vector<128x64xf32> to vector<1x128x64xf32>
    tpu.vector_store %arg12[%c1_51, %c0_52, %c0_53], %89 {strides = array<i32>} : memref<2x128x64xf32, #tpu.memory_space<vmem>>, vector<1x128x64xf32>,
    %c1_54 = arith.constant 1 : index
    %c0_55 = arith.constant 0 : index
    %c0_56 = arith.constant 0 : index
    %90 = vector.load %arg10[%c1_54, %c0_55, %c0_56] : memref<2x128x1xf32, #tpu.memory_space<vmem>>, vector<1x128x1xf32>
    %91 = vector.shape_cast %90 : vector<1x128x1xf32> to vector<128x1xf32>
    %92 = vector.shape_cast %64 : vector<128x1xf32> to vector<1x128x1xf32>
    tpu.vector_store %arg10[%c1_54, %c0_55, %c0_56], %92 {strides = array<i32>} : memref<2x128x1xf32, #tpu.memory_space<vmem>>, vector<1x128x1xf32>,
    %c0_i32_57 = arith.constant 0 : i32
    %93 = arith.cmpi eq, %arg3, %c0_i32_57 : i32
    %94 = arith.extui %93 : i1 to i32
    %c0_i32_58 = arith.constant 0 : i32
    %95 = arith.cmpi ne, %94, %c0_i32_58 : i32
    scf.if %95 {
      %c0_59 = arith.constant 0 : index
      %c0_60 = arith.constant 0 : index
      %c0_61 = arith.constant 0 : index
      %96 = vector.load %arg11[%c0_59, %c0_60, %c0_61] : memref<2x128x1xf32, #tpu.memory_space<vmem>>, vector<1x128x1xf32>
      %97 = vector.shape_cast %96 : vector<1x128x1xf32> to vector<128x1xf32>
      %98 = tpu.reciprocal %97 {approx = true} : vector<128x1xf32> -> vector<128x1xf32>
      %c0_62 = arith.constant 0 : index
      %c0_63 = arith.constant 0 : index
      %c0_64 = arith.constant 0 : index
      %99 = vector.load %arg12[%c0_62, %c0_63, %c0_64] : memref<2x128x64xf32, #tpu.memory_space<vmem>>, vector<1x128x64xf32>
      %100 = vector.shape_cast %99 : vector<1x128x64xf32> to vector<128x64xf32>
      %101 = vector.broadcast %98 : vector<128x1xf32> to vector<128x64xf32>
      %102 = arith.mulf %100, %101 : vector<128x64xf32>
      %103 = arith.truncf %102 : vector<128x64xf32> to vector<128x64xbf16>
      %c0_65 = arith.constant 0 : index
      %c0_66 = arith.constant 0 : index
      %104 = vector.load %arg9[%c0_65, %c0_66] : memref<128x128xbf16, #tpu.memory_space<vmem>>, vector<128x64xbf16>
      tpu.vector_store %arg9[%c0_65, %c0_66], %103 {strides = array<i32>} : memref<128x128xbf16, #tpu.memory_space<vmem>>, vector<128x64xbf16>,
      %c1_67 = arith.constant 1 : index
      %c0_68 = arith.constant 0 : index
      %c0_69 = arith.constant 0 : index
      %105 = vector.load %arg11[%c1_67, %c0_68, %c0_69] : memref<2x128x1xf32, #tpu.memory_space<vmem>>, vector<1x128x1xf32>
      %106 = vector.shape_cast %105 : vector<1x128x1xf32> to vector<128x1xf32>
      %107 = tpu.reciprocal %106 {approx = true} : vector<128x1xf32> -> vector<128x1xf32>
      %c1_70 = arith.constant 1 : index
      %c0_71 = arith.constant 0 : index
      %c0_72 = arith.constant 0 : index
      %108 = vector.load %arg12[%c1_70, %c0_71, %c0_72] : memref<2x128x64xf32, #tpu.memory_space<vmem>>, vector<1x128x64xf32>
      %109 = vector.shape_cast %108 : vector<1x128x64xf32> to vector<128x64xf32>
      %110 = vector.broadcast %107 : vector<128x1xf32> to vector<128x64xf32>
      %111 = arith.mulf %109, %110 : vector<128x64xf32>
      %112 = arith.truncf %111 : vector<128x64xf32> to vector<128x64xbf16>
      %c0_73 = arith.constant 0 : index
      %c64 = arith.constant 64 : index
      %113 = vector.load %arg9[%c0_73, %c64] : memref<128x128xbf16, #tpu.memory_space<vmem>>, vector<128x64xbf16>
      tpu.vector_store %arg9[%c0_73, %c64], %112 {strides = array<i32>} : memref<128x128xbf16, #tpu.memory_space<vmem>>, vector<128x64xbf16>,
    } else {
    }
    return
  }
  func.func @transform_0(%arg0: i32, %arg1: i32, %arg2: i32, %arg3: i32) -> (i32, i32) {
    %c1_i32 = arith.constant 1 : i32
    %0 = arith.muli %arg0, %c1_i32 : i32
    %1 = arith.addi %0, %arg2 : i32
    %c0_i32 = arith.constant 0 : i32
    return %1, %arg1 : i32, i32
  }
  func.func @transform_1(%arg0: i32, %arg1: i32, %arg2: i32, %arg3: i32) -> (i32, i32) {
    %c1_i32 = arith.constant 1 : i32
    %0 = arith.muli %arg0, %c1_i32 : i32
    %1 = arith.addi %0, %arg3 : i32
    %c1_i32_0 = arith.constant 1 : i32
    %2 = arith.addi %c1_i32_0, %arg1 : i32
    %c0_i32 = arith.constant 0 : i32
    return %1, %2 : i32, i32
  }
  func.func @transform_2(%arg0: i32, %arg1: i32, %arg2: i32, %arg3: i32) -> (i32, i32) {
    %c1_i32 = arith.constant 1 : i32
    %0 = arith.muli %arg0, %c1_i32 : i32
    %1 = arith.addi %0, %arg3 : i32
    %c2_i32 = arith.constant 2 : i32
    %2 = arith.addi %c2_i32, %arg1 : i32
    %c0_i32 = arith.constant 0 : i32
    return %1, %2 : i32, i32
  }
  func.func @transform_3(%arg0: i32, %arg1: i32, %arg2: i32, %arg3: i32) -> (i32, i32, i32) {
    %c0_i32 = arith.constant 0 : i32
    return %arg1, %arg2, %arg3 : i32, i32, i32
  }
  func.func @transform_4(%arg0: i32, %arg1: i32, %arg2: i32, %arg3: i32) -> (i32, i32, i32) {
    %c0_i32 = arith.constant 0 : i32
    %c0_i32_0 = arith.constant 0 : i32
    return %arg0, %c0_i32, %arg3 : i32, i32, i32
  }
  func.func @transform_5(%arg0: i32, %arg1: i32, %arg2: i32, %arg3: i32) -> (i32, i32) {
    %c1_i32 = arith.constant 1 : i32
    %0 = arith.muli %arg0, %c1_i32 : i32
    %1 = arith.addi %0, %arg2 : i32
    %c0_i32 = arith.constant 0 : i32
    return %1, %arg1 : i32, i32
  }
}

module attributes {stable_mosaic.version = 11 : i64} {
  func.func @_matmul_residual_kernel(%arg0: i32, %arg1: i32, %arg2: memref<256x128xbf16, #tpu.memory_space<vmem>>, %arg3: memref<128x128xbf16, #tpu.memory_space<vmem>>, %arg4: memref<256x128xbf16, #tpu.memory_space<vmem>>, %arg5: memref<256x128xbf16, #tpu.memory_space<vmem>>) attributes {dimension_semantics = [#tpu.dimension_semantics<parallel>, #tpu.dimension_semantics<parallel>], iteration_bounds = array<i64: 1, 1>, scalar_prefetch = 0 : i64, scratch_operands = 0 : i64, tpu.core_type = #tpu.core_type<tc>, window_params = [{transform_indices = @transform_0, window_bounds = array<i64: 256, 128>}, {transform_indices = @transform_1, window_bounds = array<i64: 128, 128>}, {transform_indices = @transform_2, window_bounds = array<i64: 256, 128>}, {transform_indices = @transform_3, window_bounds = array<i64: 256, 128>}]} {
    %c0 = arith.constant 0 : index
    %c0_0 = arith.constant 0 : index
    %0 = vector.load %arg2[%c0, %c0_0] : memref<256x128xbf16, #tpu.memory_space<vmem>>, vector<256x128xbf16>
    %c0_1 = arith.constant 0 : index
    %c0_2 = arith.constant 0 : index
    %1 = vector.load %arg3[%c0_1, %c0_2] : memref<128x128xbf16, #tpu.memory_space<vmem>>, vector<128x128xbf16>
    %cst = arith.constant dense<0.000000e+00> : vector<256x128xf32>
    %2 = tpu.matmul %0, %1, %cst {dimension_numbers = #tpu.dot_dimension_numbers<[1], [0], [0], [1], [0, 0, 1, 1], [], []>} : vector<256x128xbf16>, vector<128x128xbf16>, vector<256x128xf32> -> vector<256x128xf32>
    %c0_3 = arith.constant 0 : index
    %c0_4 = arith.constant 0 : index
    %3 = vector.load %arg4[%c0_3, %c0_4] : memref<256x128xbf16, #tpu.memory_space<vmem>>, vector<256x128xbf16>
    %4 = arith.extf %3 : vector<256x128xbf16> to vector<256x128xf32>
    %5 = arith.addf %4, %2 : vector<256x128xf32>
    %6 = arith.truncf %5 : vector<256x128xf32> to vector<256x128xbf16>
    %c0_5 = arith.constant 0 : index
    %c0_6 = arith.constant 0 : index
    %7 = vector.load %arg5[%c0_5, %c0_6] : memref<256x128xbf16, #tpu.memory_space<vmem>>, vector<256x128xbf16>
    tpu.vector_store %arg5[%c0_5, %c0_6], %6 {strides = array<i32>} : memref<256x128xbf16, #tpu.memory_space<vmem>>, vector<256x128xbf16>,
    return
  }
  func.func @transform_0(%arg0: i32, %arg1: i32) -> (i32, i32) {
    %c0_i32 = arith.constant 0 : i32
    %c0_i32_0 = arith.constant 0 : i32
    return %arg0, %c0_i32 : i32, i32
  }
  func.func @transform_1(%arg0: i32, %arg1: i32) -> (i32, i32) {
    %c0_i32 = arith.constant 0 : i32
    %c0_i32_0 = arith.constant 0 : i32
    return %c0_i32, %arg1 : i32, i32
  }
  func.func @transform_2(%arg0: i32, %arg1: i32) -> (i32, i32) {
    %c0_i32 = arith.constant 0 : i32
    return %arg0, %arg1 : i32, i32
  }
  func.func @transform_3(%arg0: i32, %arg1: i32) -> (i32, i32) {
    %c0_i32 = arith.constant 0 : i32
    return %arg0, %arg1 : i32, i32
  }
}

module attributes {stable_mosaic.version = 11 : i64} {
  func.func @_rmsnorm_ffn_kernel(%arg0: i32, %arg1: i32, %arg2: memref<256x128xbf16, #tpu.memory_space<vmem>>, %arg3: memref<1x128xf32, #tpu.memory_space<vmem>>, %arg4: memref<2x128x256xbf16, #tpu.memory_space<vmem>>, %arg5: memref<256x128xbf16, #tpu.memory_space<vmem>>, %arg6: memref<256x128xbf16, #tpu.memory_space<vmem>>, %arg7: memref<256x128xbf16, #tpu.memory_space<vmem>>, %arg8: memref<256x128xf32, #tpu.memory_space<vmem>>) attributes {dimension_semantics = [#tpu.dimension_semantics<parallel>, #tpu.dimension_semantics<arbitrary>], iteration_bounds = array<i64: 1, 1>, scalar_prefetch = 0 : i64, scratch_operands = 2 : i64, tpu.core_type = #tpu.core_type<tc>, window_params = [{transform_indices = @transform_0, window_bounds = array<i64: 256, 128>}, {pipeline_mode = #tpu.pipeline_mode<synchronous>, transform_indices = @transform_1, window_bounds = array<i64: 1, 128>}, {transform_indices = @transform_2, window_bounds = array<i64: 2, 128, 256>}, {transform_indices = @transform_3, window_bounds = array<i64: 256, 128>}, {transform_indices = @transform_4, window_bounds = array<i64: 256, 128>}]} {
    %c0_i32 = arith.constant 0 : i32
    %0 = arith.cmpi eq, %arg1, %c0_i32 : i32
    %1 = arith.extui %0 : i1 to i32
    %c0_i32_0 = arith.constant 0 : i32
    %2 = arith.cmpi ne, %1, %c0_i32_0 : i32
    scf.if %2 {
      %c0_21 = arith.constant 0 : index
      %c0_22 = arith.constant 0 : index
      %33 = vector.load %arg2[%c0_21, %c0_22] : memref<256x128xbf16, #tpu.memory_space<vmem>>, vector<256x128xbf16>
      %34 = arith.extf %33 : vector<256x128xbf16> to vector<256x128xf32>
      %c0_23 = arith.constant 0 : index
      %c0_24 = arith.constant 0 : index
      %35 = vector.load %arg3[%c0_23, %c0_24] : memref<1x128xf32, #tpu.memory_space<vmem>>, vector<1x128xf32>
      %36 = arith.mulf %34, %34 : vector<256x128xf32>
      %cst_25 = arith.constant dense<0.000000e+00> : vector<256xf32>
      %37 = vector.multi_reduction <add>, %36, %cst_25 [1] : vector<256x128xf32> to vector<256xf32>
      %38 = vector.shape_cast %37 : vector<256xf32> to vector<256x1xf32>
      %cst_26 = arith.constant 1.280000e+02 : f32
      %39 = vector.broadcast %cst_26 : f32 to vector<256x1xf32>
      %40 = arith.divf %38, %39 : vector<256x1xf32>
      %cst_27 = arith.constant 9.99999997E-7 : f32
      %41 = vector.broadcast %cst_27 : f32 to vector<256x1xf32>
      %42 = arith.addf %40, %41 : vector<256x1xf32>
      %43 = math.rsqrt %42 : vector<256x1xf32>
      %44 = vector.broadcast %43 : vector<256x1xf32> to vector<256x128xf32>
      %45 = arith.mulf %34, %44 : vector<256x128xf32>
      %46 = vector.broadcast %35 : vector<1x128xf32> to vector<256x128xf32>
      %47 = arith.mulf %45, %46 : vector<256x128xf32>
      %48 = arith.truncf %47 : vector<256x128xf32> to vector<256x128xbf16>
      %c0_28 = arith.constant 0 : index
      %c0_29 = arith.constant 0 : index
      %49 = vector.load %arg7[%c0_28, %c0_29] : memref<256x128xbf16, #tpu.memory_space<vmem>>, vector<256x128xbf16>
      tpu.vector_store %arg7[%c0_28, %c0_29], %48 {strides = array<i32>} : memref<256x128xbf16, #tpu.memory_space<vmem>>, vector<256x128xbf16>,
      %cst_30 = arith.constant 0.000000e+00 : f32
      %50 = vector.broadcast %cst_30 : f32 to vector<256x128xf32>
      %c0_31 = arith.constant 0 : index
      %c0_32 = arith.constant 0 : index
      %51 = vector.load %arg8[%c0_31, %c0_32] : memref<256x128xf32, #tpu.memory_space<vmem>>, vector<256x128xf32>
      tpu.vector_store %arg8[%c0_31, %c0_32], %50 {strides = array<i32>} : memref<256x128xf32, #tpu.memory_space<vmem>>, vector<256x128xf32>,
    } else {
    }
    %c0 = arith.constant 0 : index
    %c0_1 = arith.constant 0 : index
    %3 = vector.load %arg7[%c0, %c0_1] : memref<256x128xbf16, #tpu.memory_space<vmem>>, vector<256x128xbf16>
    %c0_2 = arith.constant 0 : index
    %c0_3 = arith.constant 0 : index
    %c0_4 = arith.constant 0 : index
    %4 = vector.load %arg4[%c0_2, %c0_3, %c0_4] : memref<2x128x256xbf16, #tpu.memory_space<vmem>>, vector<1x128x256xbf16>
    %5 = vector.shape_cast %4 : vector<1x128x256xbf16> to vector<128x256xbf16>
    %cst = arith.constant dense<0.000000e+00> : vector<256x256xf32>
    %6 = tpu.matmul %3, %5, %cst {dimension_numbers = #tpu.dot_dimension_numbers<[1], [0], [0], [1], [0, 0, 1, 1], [], []>} : vector<256x128xbf16>, vector<128x256xbf16>, vector<256x256xf32> -> vector<256x256xf32>
    %c1 = arith.constant 1 : index
    %c0_5 = arith.constant 0 : index
    %c0_6 = arith.constant 0 : index
    %7 = vector.load %arg4[%c1, %c0_5, %c0_6] : memref<2x128x256xbf16, #tpu.memory_space<vmem>>, vector<1x128x256xbf16>
    %8 = vector.shape_cast %7 : vector<1x128x256xbf16> to vector<128x256xbf16>
    %cst_7 = arith.constant dense<0.000000e+00> : vector<256x256xf32>
    %9 = tpu.matmul %3, %8, %cst_7 {dimension_numbers = #tpu.dot_dimension_numbers<[1], [0], [0], [1], [0, 0, 1, 1], [], []>} : vector<256x128xbf16>, vector<128x256xbf16>, vector<256x256xf32> -> vector<256x256xf32>
    %cst_8 = arith.constant 5.000000e-01 : f32
    %10 = vector.broadcast %cst_8 : f32 to vector<256x256xf32>
    %11 = arith.mulf %10, %6 : vector<256x256xf32>
    %cst_9 = arith.constant 4.471500e-02 : f32
    %12 = vector.broadcast %cst_9 : f32 to vector<256x256xf32>
    %13 = arith.mulf %12, %6 : vector<256x256xf32>
    %14 = arith.mulf %13, %6 : vector<256x256xf32>
    %15 = arith.mulf %14, %6 : vector<256x256xf32>
    %16 = arith.addf %6, %15 : vector<256x256xf32>
    %cst_10 = arith.constant 0.797884583 : f32
    %17 = vector.broadcast %cst_10 : f32 to vector<256x256xf32>
    %18 = arith.mulf %17, %16 : vector<256x256xf32>
    %19 = math.tanh %18 : vector<256x256xf32>
    %cst_11 = arith.constant 1.000000e+00 : f32
    %20 = vector.broadcast %cst_11 : f32 to vector<256x256xf32>
    %21 = arith.addf %20, %19 : vector<256x256xf32>
    %22 = arith.mulf %11, %21 : vector<256x256xf32>
    %23 = arith.mulf %22, %9 : vector<256x256xf32>
    %24 = arith.truncf %23 : vector<256x256xf32> to vector<256x256xbf16>
    %c0_12 = arith.constant 0 : index
    %c0_13 = arith.constant 0 : index
    %25 = vector.load %arg8[%c0_12, %c0_13] : memref<256x128xf32, #tpu.memory_space<vmem>>, vector<256x128xf32>
    %c0_14 = arith.constant 0 : index
    %c0_15 = arith.constant 0 : index
    %26 = vector.load %arg5[%c0_14, %c0_15] : memref<256x128xbf16, #tpu.memory_space<vmem>>, vector<256x128xbf16>
    %cst_16 = arith.constant dense<0.000000e+00> : vector<256x128xf32>
    %27 = tpu.matmul %24, %26, %cst_16 {dimension_numbers = #tpu.dot_dimension_numbers<[1], [0], [0], [1], [0, 0, 1, 1], [], []>} : vector<256x256xbf16>, vector<256x128xbf16>, vector<256x128xf32> -> vector<256x128xf32>
    %28 = arith.addf %25, %27 : vector<256x128xf32>
    %c0_17 = arith.constant 0 : index
    %c0_18 = arith.constant 0 : index
    %29 = vector.load %arg8[%c0_17, %c0_18] : memref<256x128xf32, #tpu.memory_space<vmem>>, vector<256x128xf32>
    tpu.vector_store %arg8[%c0_17, %c0_18], %28 {strides = array<i32>} : memref<256x128xf32, #tpu.memory_space<vmem>>, vector<256x128xf32>,
    %c0_i32_19 = arith.constant 0 : i32
    %30 = arith.cmpi eq, %arg1, %c0_i32_19 : i32
    %31 = arith.extui %30 : i1 to i32
    %c0_i32_20 = arith.constant 0 : i32
    %32 = arith.cmpi ne, %31, %c0_i32_20 : i32
    scf.if %32 {
      %c0_21 = arith.constant 0 : index
      %c0_22 = arith.constant 0 : index
      %33 = vector.load %arg2[%c0_21, %c0_22] : memref<256x128xbf16, #tpu.memory_space<vmem>>, vector<256x128xbf16>
      %34 = arith.extf %33 : vector<256x128xbf16> to vector<256x128xf32>
      %c0_23 = arith.constant 0 : index
      %c0_24 = arith.constant 0 : index
      %35 = vector.load %arg8[%c0_23, %c0_24] : memref<256x128xf32, #tpu.memory_space<vmem>>, vector<256x128xf32>
      %36 = arith.addf %34, %35 : vector<256x128xf32>
      %37 = arith.truncf %36 : vector<256x128xf32> to vector<256x128xbf16>
      %c0_25 = arith.constant 0 : index
      %c0_26 = arith.constant 0 : index
      %38 = vector.load %arg6[%c0_25, %c0_26] : memref<256x128xbf16, #tpu.memory_space<vmem>>, vector<256x128xbf16>
      tpu.vector_store %arg6[%c0_25, %c0_26], %37 {strides = array<i32>} : memref<256x128xbf16, #tpu.memory_space<vmem>>, vector<256x128xbf16>,
    } else {
    }
    return
  }
  func.func @transform_0(%arg0: i32, %arg1: i32) -> (i32, i32) {
    %c0_i32 = arith.constant 0 : i32
    %c0_i32_0 = arith.constant 0 : i32
    return %arg0, %c0_i32 : i32, i32
  }
  func.func @transform_1(%arg0: i32, %arg1: i32) -> (i32, i32) {
    %c0_i32 = arith.constant 0 : i32
    %c0_i32_0 = arith.constant 0 : i32
    %c0_i32_1 = arith.constant 0 : i32
    return %c0_i32, %c0_i32_0 : i32, i32
  }
  func.func @transform_2(%arg0: i32, %arg1: i32) -> (i32, i32, i32) {
    %c0_i32 = arith.constant 0 : i32
    %c0_i32_0 = arith.constant 0 : i32
    %c0_i32_1 = arith.constant 0 : i32
    return %c0_i32, %c0_i32_0, %arg1 : i32, i32, i32
  }
  func.func @transform_3(%arg0: i32, %arg1: i32) -> (i32, i32) {
    %c0_i32 = arith.constant 0 : i32
    %c0_i32_0 = arith.constant 0 : i32
    return %arg1, %c0_i32 : i32, i32
  }
  func.func @transform_4(%arg0: i32, %arg1: i32) -> (i32, i32) {
    %c0_i32 = arith.constant 0 : i32
    %c0_i32_0 = arith.constant 0 : i32
    return %arg0, %c0_i32 : i32, i32
  }
}

module attributes {stable_mosaic.version = 11 : i64} {
  func.func @_rmsnorm_kernel(%arg0: i32, %arg1: memref<256x128xbf16, #tpu.memory_space<vmem>>, %arg2: memref<1x128xf32, #tpu.memory_space<vmem>>, %arg3: memref<256x128xf32, #tpu.memory_space<vmem>>) attributes {dimension_semantics = [#tpu.dimension_semantics<parallel>], iteration_bounds = array<i64: 1>, scalar_prefetch = 0 : i64, scratch_operands = 0 : i64, tpu.core_type = #tpu.core_type<tc>, window_params = [{transform_indices = @transform_0, window_bounds = array<i64: 256, 128>}, {pipeline_mode = #tpu.pipeline_mode<synchronous>, transform_indices = @transform_1, window_bounds = array<i64: 1, 128>}, {transform_indices = @transform_2, window_bounds = array<i64: 256, 128>}]} {
    %c0 = arith.constant 0 : index
    %c0_0 = arith.constant 0 : index
    %0 = vector.load %arg1[%c0, %c0_0] : memref<256x128xbf16, #tpu.memory_space<vmem>>, vector<256x128xbf16>
    %1 = arith.extf %0 : vector<256x128xbf16> to vector<256x128xf32>
    %c0_1 = arith.constant 0 : index
    %c0_2 = arith.constant 0 : index
    %2 = vector.load %arg2[%c0_1, %c0_2] : memref<1x128xf32, #tpu.memory_space<vmem>>, vector<1x128xf32>
    %3 = arith.mulf %1, %1 : vector<256x128xf32>
    %cst = arith.constant dense<0.000000e+00> : vector<256xf32>
    %4 = vector.multi_reduction <add>, %3, %cst [1] : vector<256x128xf32> to vector<256xf32>
    %5 = vector.shape_cast %4 : vector<256xf32> to vector<256x1xf32>
    %cst_3 = arith.constant 1.280000e+02 : f32
    %6 = vector.broadcast %cst_3 : f32 to vector<256x1xf32>
    %7 = arith.divf %5, %6 : vector<256x1xf32>
    %cst_4 = arith.constant 9.99999997E-7 : f32
    %8 = vector.broadcast %cst_4 : f32 to vector<256x1xf32>
    %9 = arith.addf %7, %8 : vector<256x1xf32>
    %10 = math.rsqrt %9 : vector<256x1xf32>
    %11 = vector.broadcast %10 : vector<256x1xf32> to vector<256x128xf32>
    %12 = arith.mulf %1, %11 : vector<256x128xf32>
    %13 = vector.broadcast %2 : vector<1x128xf32> to vector<256x128xf32>
    %14 = arith.mulf %12, %13 : vector<256x128xf32>
    %c0_5 = arith.constant 0 : index
    %c0_6 = arith.constant 0 : index
    %15 = vector.load %arg3[%c0_5, %c0_6] : memref<256x128xf32, #tpu.memory_space<vmem>>, vector<256x128xf32>
    tpu.vector_store %arg3[%c0_5, %c0_6], %14 {strides = array<i32>} : memref<256x128xf32, #tpu.memory_space<vmem>>, vector<256x128xf32>,
    return
  }
  func.func @transform_0(%arg0: i32) -> (i32, i32) {
    %c0_i32 = arith.constant 0 : i32
    %c0_i32_0 = arith.constant 0 : i32
    return %arg0, %c0_i32 : i32, i32
  }
  func.func @transform_1(%arg0: i32) -> (i32, i32) {
    %c0_i32 = arith.constant 0 : i32
    %c0_i32_0 = arith.constant 0 : i32
    %c0_i32_1 = arith.constant 0 : i32
    return %c0_i32, %c0_i32_0 : i32, i32
  }
  func.func @transform_2(%arg0: i32) -> (i32, i32) {
    %c0_i32 = arith.constant 0 : i32
    %c0_i32_0 = arith.constant 0 : i32
    return %arg0, %c0_i32 : i32, i32
  }
}

</mosaic_0001>

<bundles_post_ra>
// kernel: mt5_encoder_forward.11
= control target key start
LH: loop header
LB: loop body
LE: loop exit
PB: predicated region body
PF: predicated region fallthrough
CT: control target
= control target key end

     0   :  { %s1190_s1 = inlined_call_operand.vmem [shape: bf16[128,128], index: 1, kind: input, shape index: {}]   ;;  %s1191_s0 = inlined_call_operand.vmem [shape: bf16[256,128], index: 0, kind: input, shape index: {}]   ;;  %s1192_s2 = inlined_call_operand.vmem [shape: bf16[256,128], index: 2, kind: input, shape index: {}, may-alias: {2,3}]   ;;  %s1193_s3 = inlined_call_operand.vmem [shape: bf16[256,128], index: 3, kind: output, shape index: {}, may-alias: {2,3}]  }
   0x1   :  { %v978_v0 = vld [vmem:[%s1190_s1 + $0x38] sm:$0xff]   ;;  %v979_v1 = vld [vmem:[%s1190_s1 + $0x30] sm:$0xff]   ;;  %v980_v2 = vld [vmem:[%s1190_s1 + $0x28] sm:$0xff]  }
   0x2   :  { %914 = vmatprep.subr.bf16.mxu0 %v978_v0  ;;  %962 = vmatprep.subr.bf16.mxu1 %v978_v0  ;;  %v981_v3 = vld [vmem:[%s1190_s1 + $0x20] sm:$0xff]   ;;  %v982_v6 = vld [vmem:[%s1190_s1 + $0x18] sm:$0xff]   ;;  %v983_v7 = vld [vmem:[%s1190_s1 + $0x10] sm:$0xff]  }
   0x3   :  { %915 = vmatpush3.bf16.msra.mxu0 %v978_v0  ;;  %970 = vmatpush3.bf16.msra.mxu1 %v978_v0  ;;  %v986_v4 = vld [vmem:[%s1191_s0] sm:$0xff]   ;;  %v984_v8 = vld [vmem:[%s1190_s1 + $0x8] sm:$0xff]   ;;  %v990_v12 = vld [vmem:[%s1191_s0 + $0x10] sm:$0xff]  }
   0x4   :  { %916 = vmatprep.subr.bf16.mxu0 %v979_v1  ;;  %963 = vmatprep.subr.bf16.mxu1 %v979_v1  ;;  %v987_v5 = vld [vmem:[%s1191_s0 + $0x40] sm:$0xff]   ;;  %v988_v10 = vld [vmem:[%s1191_s0 + $0x8] sm:$0xff]   ;;  %v991_v13 = vld [vmem:[%s1191_s0 + $0x50] sm:$0xff]  }
   0x5   :  { %930 = vmatprep.mubr.bf16.mxu0 %v986_v4  ;;  %946 = vmatprep.mubr.bf16.mxu1 %v987_v5  ;;  %v985_v9 = vld [vmem:[%s1190_s1] sm:$0xff]   ;;  %v989_v11 = vld [vmem:[%s1191_s0 + $0x48] sm:$0xff]   ;;  %v992_v14 = vld [vmem:[%s1191_s0 + $0x18] sm:$0xff]  }
   0x6   :  { %v993_v15 = vld [vmem:[%s1191_s0 + $0x58] sm:$0xff]   ;;  %v994_v16 = vld [vmem:[%s1191_s0 + $0x20] sm:$0xff]   ;;  %v996_v18 = vld [vmem:[%s1191_s0 + $0x28] sm:$0xff]  }
   0x7   :  { %917 = vmatpush3.bf16.msra.mxu0 %v979_v1  ;;  %971 = vmatpush3.bf16.msra.mxu1 %v979_v1  ;;  %v995_v17 = vld [vmem:[%s1191_s0 + $0x60] sm:$0xff]   ;;  %v997_v19 = vld [vmem:[%s1191_s0 + $0x68] sm:$0xff]   ;;  %v998_v20 = vld [vmem:[%s1191_s0 + $0x30] sm:$0xff]  }
   0x8   :  { %918 = vmatprep.subr.bf16.mxu0 %v980_v2  ;;  %964 = vmatprep.subr.bf16.mxu1 %v980_v2  ;;  %v999_v21 = vld [vmem:[%s1191_s0 + $0x70] sm:$0xff]   ;;  %v1000_v22 = vld [vmem:[%s1191_s0 + $0x38] sm:$0xff]   ;;  %v860_v24 = vld [vmem:[%s1192_s2 + $0x8] sm:$0xff]  }
   0x9   :  { %v1001_v23 = vld [vmem:[%s1191_s0 + $0x78] sm:$0xff]   ;;  %v868_v25 = vld [vmem:[%s1192_s2 + $0x48] sm:$0xff]   ;;  %v717_v26 = vld [vmem:[%s1192_s2] sm:$0xff]   ;;  %v722_v30 = vunpack.c.l.bf16 %v860_v24  ;;  %v723_v32 = vunpack.c.h.bf16 %v860_v24 }
   0xa   :  { %v867_v27 = vld [vmem:[%s1192_s2 + $0x40] sm:$0xff]   ;;  %v754_v31 = vunpack.c.l.bf16 %v868_v25  ;;  %v755_v33 = vunpack.c.h.bf16 %v868_v25  ;;  %v718_v35 = vunpack.c.l.bf16 %v717_v26  ;;  %v719_v38 = vunpack.c.h.bf16 %v717_v26  ;;  %v862_v46 = vld [vmem:[%s1192_s2 + $0x18] sm:$0xff]   ;;  %v861_v56 = vld [vmem:[%s1192_s2 + $0x10] sm:$0xff]  }
   0xb   :  { %919 = vmatpush3.bf16.msra.mxu0 %v980_v2  ;;  %972 = vmatpush3.bf16.msra.mxu1 %v980_v2  ;;  %v750_v37 = vunpack.c.l.bf16 %v867_v27  ;;  %v751_v39 = vunpack.c.h.bf16 %v867_v27  ;;  %v870_v47 = vld [vmem:[%s1192_s2 + $0x58] sm:$0xff]   ;;  %v869_v57 = vld [vmem:[%s1192_s2 + $0x50] sm:$0xff]   ;;  %v730_v59 = vunpack.c.l.bf16 %v862_v46  ;;  %v731_v0 = vunpack.c.h.bf16 %v862_v46 }
   0xc   :  { %920 = vmatprep.subr.bf16.mxu0 %v981_v3  ;;  %965 = vmatprep.subr.bf16.mxu1 %v981_v3  ;;  %v762_v61 = vunpack.c.l.bf16 %v870_v47  ;;  %v763_v1 = vunpack.c.h.bf16 %v870_v47  ;;  %v758_v5 = vunpack.c.l.bf16 %v869_v57 }
   0xf   :  { %921 = vmatpush3.bf16.msra.mxu0 %v981_v3  ;;  %973 = vmatpush3.bf16.msra.mxu1 %v981_v3  ;;  %v726_v3 = vunpack.c.l.bf16 %v861_v56 }
  0x10   :  { %922 = vmatprep.subr.bf16.mxu0 %v982_v6  ;;  %966 = vmatprep.subr.bf16.mxu1 %v982_v6 }
  0x13   :  { %923 = vmatpush3.bf16.msra.mxu0 %v982_v6  ;;  %974 = vmatpush3.bf16.msra.mxu1 %v982_v6  ;;  %v727_v6 = vunpack.c.h.bf16 %v861_v56 }
  0x14   :  { %924 = vmatprep.subr.bf16.mxu0 %v983_v7  ;;  %967 = vmatprep.subr.bf16.mxu1 %v983_v7 }
  0x17   :  { %925 = vmatpush3.bf16.msra.mxu0 %v983_v7  ;;  %975 = vmatpush3.bf16.msra.mxu1 %v983_v7  ;;  %v759_v7 = vunpack.c.h.bf16 %v869_v57 }
  0x18   :  { %926 = vmatprep.subr.bf16.mxu0 %v984_v8  ;;  %968 = vmatprep.subr.bf16.mxu1 %v984_v8 }
  0x1b   :  { %927 = vmatpush3.bf16.msra.mxu0 %v984_v8  ;;  %976 = vmatpush3.bf16.msra.mxu1 %v984_v8 }
  0x1c   :  { %928 = vmatprep.subr.bf16.mxu0 %v985_v9  ;;  %969 = vmatprep.subr.bf16.mxu1 %v985_v9 }
  0x1f   :  { %929 = vmatpush3.bf16.msra.mxu0 %v985_v9  ;;  %977 = vmatpush3.bf16.msra.mxu1 %v985_v9 }
  0x22   :  { %931 = vmatmul.mubr.bf16.vlgmr.msra.gmra.mxu0 %v988_v10  ;;  %947 = vmatmul.mubr.bf16.vlgmr.msra.gmra.mxu1 %v989_v11 }
  0x23   :  { %934 = vmatprep.mubr.bf16.mxu0 %v990_v12  ;;  %950 = vmatprep.mubr.bf16.mxu1 %v991_v13 }
  0x2a   :  { %935 = vmatmul.mubr.bf16.gmra.mxu0 %v992_v14  ;;  %951 = vmatmul.mubr.bf16.gmra.mxu1 %v993_v15 }
  0x2b   :  { %938 = vmatprep.mubr.bf16.mxu0 %v994_v16  ;;  %954 = vmatprep.mubr.bf16.mxu1 %v995_v17 }
  0x32   :  { %939 = vmatmul.mubr.bf16.gmra.mxu0 %v996_v18  ;;  %955 = vmatmul.mubr.bf16.gmra.mxu1 %v997_v19 }
  0x33   :  { %942 = vmatprep.mubr.bf16.mxu0 %v998_v20  ;;  %958 = vmatprep.mubr.bf16.mxu1 %v999_v21 }
  0x3a   :  { %943 = vmatmul.mubr.bf16.gmra.mxu0 %v1000_v22  ;;  %959 = vmatmul.mubr.bf16.gmra.mxu1 %v1001_v23 }
  0xe2   :  { %v932_v28 = vpop.f32.mrf.mxu0  ;;  %v948_v29 = vpop.f32.mrf.mxu1 }
  0xe3   :  { %v434_v42 = vadd.f32 %v932_v28, %v722_v30  ;;  %v450_v43 = vadd.f32 %v948_v29, %v754_v31 }
  0xe4   :  { %v241_v34 = vpop.f32.mrf.mxu0  ;;  %v305_v36 = vpop.f32.mrf.mxu1 }
  0xe5   :  { %v432_v48 = vadd.f32 %v718_v35, %v241_v34  ;;  %v448_v49 = vadd.f32 %v750_v37, %v305_v36 }
  0xe6   :  { %v933_v40 = vpop.f32.mrf.mxu0  ;;  %v949_v41 = vpop.f32.mrf.mxu1 }
  0xe7   :  { %v435_v44 = vadd.f32 %v933_v40, %v723_v32  ;;  %v451_v45 = vadd.f32 %v949_v41, %v755_v33 }
  0xe8   :  { %v244_v50 = vpop.f32.mrf.mxu0  ;;  %v308_v51 = vpop.f32.mrf.mxu1 }
  0xe9   :  { %v788_v52 = vpack.c.bf16 %v435_v44, %v434_v42  ;;  %v828_v53 = vpack.c.bf16 %v451_v45, %v450_v43  ;;  %v433_v54 = vadd.f32 %v719_v38, %v244_v50  ;;  %v449_v55 = vadd.f32 %v751_v39, %v308_v51 }
  0xea   :  { %v936_v58 = vpop.f32.mrf.mxu0  ;;  %v952_v60 = vpop.f32.mrf.mxu1 }
  0xeb   :  { %875 = vst [vmem:[%s1193_s3 + $0x8] sm:$0xff] %v788_v52   ;;  %883 = vst [vmem:[%s1193_s3 + $0x48] sm:$0xff] %v828_v53   ;;  %v783_v62 = vpack.c.bf16 %v433_v54, %v432_v48  ;;  %v823_v63 = vpack.c.bf16 %v449_v55, %v448_v49  ;;  %v438_v10 = vadd.f32 %v936_v58, %v730_v59 }
  0xec   :  { %v257_v2 = vpop.f32.mrf.mxu0  ;;  %v321_v4 = vpop.f32.mrf.mxu1  ;;  %v454_v11 = vadd.f32 %v952_v60, %v762_v61 }
  0xed   :  { %784 = vst [vmem:[%s1193_s3] sm:$0xff] %v783_v62   ;;  %882 = vst [vmem:[%s1193_s3 + $0x40] sm:$0xff] %v823_v63   ;;  %v436_v16 = vadd.f32 %v726_v3, %v257_v2  ;;  %v452_v17 = vadd.f32 %v758_v5, %v321_v4 }
  0xee   :  { %v937_v8 = vpop.f32.mrf.mxu0  ;;  %v953_v9 = vpop.f32.mrf.mxu1 }
  0xef   :  { %v439_v12 = vadd.f32 %v937_v8, %v731_v0  ;;  %v455_v13 = vadd.f32 %v953_v9, %v763_v1 }
  0xf0   :  { %v260_v18 = vpop.f32.mrf.mxu0  ;;  %v324_v19 = vpop.f32.mrf.mxu1 }
  0xf1   :  { %v798_v20 = vpack.c.bf16 %v439_v12, %v438_v10  ;;  %v838_v21 = vpack.c.bf16 %v455_v13, %v454_v11  ;;  %v437_v22 = vadd.f32 %v727_v6, %v260_v18  ;;  %v453_v23 = vadd.f32 %v759_v7, %v324_v19 }
  0xf2   :  { %v940_v26 = vpop.f32.mrf.mxu0  ;;  %v956_v28 = vpop.f32.mrf.mxu1 }
  0xf3   :  { %v793_v30 = vpack.c.bf16 %v437_v22, %v436_v16  ;;  %v833_v31 = vpack.c.bf16 %v453_v23, %v452_v17 }
  0xf4   :  { %v864_v14 = vld [vmem:[%s1192_s2 + $0x28] sm:$0xff]   ;;  %v863_v24 = vld [vmem:[%s1192_s2 + $0x20] sm:$0xff]   ;;  %v273_v34 = vpop.f32.mrf.mxu0  ;;  %v337_v36 = vpop.f32.mrf.mxu1 }
  0xf5   :  { %v872_v15 = vld [vmem:[%s1192_s2 + $0x68] sm:$0xff]   ;;  %v871_v25 = vld [vmem:[%s1192_s2 + $0x60] sm:$0xff]   ;;  %v738_v27 = vunpack.c.l.bf16 %v864_v14  ;;  %v739_v32 = vunpack.c.h.bf16 %v864_v14  ;;  %v734_v35 = vunpack.c.l.bf16 %v863_v24  ;;  %v735_v38 = vunpack.c.h.bf16 %v863_v24 }
  0xf6   :  { %v770_v29 = vunpack.c.l.bf16 %v872_v15  ;;  %877 = vst [vmem:[%s1193_s3 + $0x18] sm:$0xff] %v798_v20   ;;  %885 = vst [vmem:[%s1193_s3 + $0x58] sm:$0xff] %v838_v21   ;;  %v771_v33 = vunpack.c.h.bf16 %v872_v15  ;;  %v766_v37 = vunpack.c.l.bf16 %v871_v25  ;;  %v767_v39 = vunpack.c.h.bf16 %v871_v25  ;;  %v941_v40 = vpop.f32.mrf.mxu0  ;;  %v957_v41 = vpop.f32.mrf.mxu1 }
  0xf7   :  { %876 = vst [vmem:[%s1193_s3 + $0x10] sm:$0xff] %v793_v30   ;;  %884 = vst [vmem:[%s1193_s3 + $0x50] sm:$0xff] %v833_v31   ;;  %v442_v42 = vadd.f32 %v940_v26, %v738_v27  ;;  %v443_v44 = vadd.f32 %v941_v40, %v739_v32  ;;  %v440_v48 = vadd.f32 %v734_v35, %v273_v34 }
  0xf8   :  { %v458_v43 = vadd.f32 %v956_v28, %v770_v29  ;;  %v459_v45 = vadd.f32 %v957_v41, %v771_v33  ;;  %v456_v49 = vadd.f32 %v766_v37, %v337_v36  ;;  %v276_v50 = vpop.f32.mrf.mxu0  ;;  %v340_v51 = vpop.f32.mrf.mxu1 }
  0xf9   :  { %v808_v52 = vpack.c.bf16 %v443_v44, %v442_v42  ;;  %v441_v54 = vadd.f32 %v735_v38, %v276_v50  ;;  %v457_v55 = vadd.f32 %v767_v39, %v340_v51 }
  0xfa   :  { %v848_v53 = vpack.c.bf16 %v459_v45, %v458_v43  ;;  %v944_v58 = vpop.f32.mrf.mxu0  ;;  %v960_v60 = vpop.f32.mrf.mxu1 }
  0xfb   :  { %v803_v62 = vpack.c.bf16 %v441_v54, %v440_v48  ;;  %v843_v63 = vpack.c.bf16 %v457_v55, %v456_v49 }
  0xfc   :  { %v289_v2 = vpop.f32.mrf.mxu0  ;;  %v353_v4 = vpop.f32.mrf.mxu1 }
  0xfe   :  { %v866_v46 = vld [vmem:[%s1192_s2 + $0x38] sm:$0xff]   ;;  %v865_v56 = vld [vmem:[%s1192_s2 + $0x30] sm:$0xff]   ;;  %v945_v8 = vpop.f32.mrf.mxu0  ;;  %v961_v9 = vpop.f32.mrf.mxu1 }
  0xff   :  { %v874_v47 = vld [vmem:[%s1192_s2 + $0x78] sm:$0xff]   ;;  %v873_v57 = vld [vmem:[%s1192_s2 + $0x70] sm:$0xff]   ;;  %v746_v59 = vunpack.c.l.bf16 %v866_v46  ;;  %v747_v0 = vunpack.c.h.bf16 %v866_v46  ;;  %v742_v3 = vunpack.c.l.bf16 %v865_v56  ;;  %v743_v6 = vunpack.c.h.bf16 %v865_v56 }
 0x100   :  { %v778_v61 = vunpack.c.l.bf16 %v874_v47  ;;  %879 = vst [vmem:[%s1193_s3 + $0x28] sm:$0xff] %v808_v52   ;;  %887 = vst [vmem:[%s1193_s3 + $0x68] sm:$0xff] %v848_v53   ;;  %v779_v1 = vunpack.c.h.bf16 %v874_v47  ;;  %v774_v5 = vunpack.c.l.bf16 %v873_v57  ;;  %v775_v7 = vunpack.c.h.bf16 %v873_v57  ;;  %v292_v16 = vpop.f32.mrf.mxu0  ;;  %v356_v17 = vpop.f32.mrf.mxu1 }
 0x101   :  { %878 = vst [vmem:[%s1193_s3 + $0x20] sm:$0xff] %v803_v62   ;;  %886 = vst [vmem:[%s1193_s3 + $0x60] sm:$0xff] %v843_v63   ;;  %v446_v10 = vadd.f32 %v944_v58, %v746_v59  ;;  %v447_v12 = vadd.f32 %v945_v8, %v747_v0  ;;  %v444_v14 = vadd.f32 %v742_v3, %v289_v2 }
 0x102   :  { %v462_v11 = vadd.f32 %v960_v60, %v778_v61  ;;  %v463_v13 = vadd.f32 %v961_v9, %v779_v1  ;;  %v460_v15 = vadd.f32 %v774_v5, %v353_v4  ;;  %v445_v20 = vadd.f32 %v743_v6, %v292_v16 }
 0x103   :  { %v818_v18 = vpack.c.bf16 %v447_v12, %v446_v10  ;;  %v461_v21 = vadd.f32 %v775_v7, %v356_v17 }
 0x104   :  { %v858_v19 = vpack.c.bf16 %v463_v13, %v462_v11  ;;  %v813_v22 = vpack.c.bf16 %v445_v20, %v444_v14 }
 0x105   :  { %881 = vst [vmem:[%s1193_s3 + $0x38] sm:$0xff] %v818_v18   ;;  %v853_v23 = vpack.c.bf16 %v461_v21, %v460_v15 }
 0x106   :  { %889 = vst [vmem:[%s1193_s3 + $0x78] sm:$0xff] %v858_v19   ;;  %880 = vst [vmem:[%s1193_s3 + $0x30] sm:$0xff] %v813_v22  }
 0x107   :  { %888 = vst [vmem:[%s1193_s3 + $0x70] sm:$0xff] %v853_v23  }

// kernel: mt5_encoder_forward.9
= control target key start
LH: loop header
LB: loop body
LE: loop exit
PB: predicated region body
PF: predicated region fallthrough
CT: control target
= control target key end

     0   :  { %s2727_s0 = inlined_call_operand.vmem [shape: bf16[256,128], index: 0, kind: input, shape index: {}]   ;;  %s2728_s2 = inlined_call_operand.vmem [shape: bf16[128,384], index: 2, kind: input, shape index: {}]   ;;  %s2729_s1 = inlined_call_operand.vmem [shape: f32[1,128], index: 1, kind: input, shape index: {}]   ;;  %s2730_s3 = inlined_call_operand.vmem [shape: bf16[256,384], index: 3, kind: output, shape index: {}]  }
   0x1   :  { %v1925_v0 = vld [vmem:[%s2727_s0 + $0x60] sm:$0xff]   ;;  %v1914_v6 = vld [vmem:[%s2727_s0 + $0x8] sm:$0xff]   ;;  %v1915_v18 = vld [vmem:[%s2727_s0 + $0x10] sm:$0xff]  }
   0x2   :  { %v1771_v1 = vld [vmem:[%s2727_s0] sm:$0xff]   ;;  %v2172_v2 = vunpack.c.l.bf16 %v1925_v0  ;;  %v2176_v4 = vunpack.c.h.bf16 %v1925_v0  ;;  %v2191_v11 = vunpack.c.h.bf16 %v1914_v6  ;;  %v2193_v12 = vunpack.c.l.bf16 %v1914_v6  ;;  %v1926_v13 = vld [vmem:[%s2727_s0 + $0x68] sm:$0xff]   ;;  %v1927_v23 = vld [vmem:[%s2727_s0 + $0x70] sm:$0xff]  }
   0x3   :  { %v2174_v3 = vunpack.c.l.bf16 %v1771_v1  ;;  %v2178_v5 = vunpack.c.h.bf16 %v1771_v1  ;;  %v2202_v16 = vunpack.c.h.bf16 %v1926_v13  ;;  %v2204_v17 = vunpack.c.l.bf16 %v1926_v13  ;;  %v1916_v28 = vld [vmem:[%s2727_s0 + $0x18] sm:$0xff]   ;;  %v2035_v31 = vld [vmem:[%s2728_s2 + $0xa8] ss:$12 sps:$4 sm:$0xff]   ;;  %v1917_v37 = vld [vmem:[%s2727_s0 + $0x20] sm:$0xff]  }
   0x4   :  { %v108_v7 = vmul.f32 %v2172_v2, %v2172_v2  ;;  %v109_v9 = vmul.f32 %v2176_v4, %v2176_v4  ;;  %v87_v14 = vmul.f32 %v2191_v11, %v2191_v11  ;;  %v86_v15 = vmul.f32 %v2193_v12, %v2193_v12  ;;  %v2033_v29 = vld [vmem:[%s2728_s2 + $0xac] ss:$12 sps:$4 sm:$0xff]   ;;  %v2036_v36 = vld [vmem:[%s2728_s2 + $0x94] ss:$12 sps:$4 sm:$0xff]   ;;  %v2038_v38 = vld [vmem:[%s2728_s2 + $0x90] ss:$12 sps:$4 sm:$0xff]  }
   0x5   :  { %v84_v8 = vmul.f32 %v2174_v3, %v2174_v3  ;;  %v85_v10 = vmul.f32 %v2178_v5, %v2178_v5  ;;  %v111_v19 = vmul.f32 %v2202_v16, %v2202_v16  ;;  %v110_v20 = vmul.f32 %v2204_v17, %v2204_v17  ;;  %v1928_v30 = vld [vmem:[%s2727_s0 + $0x78] sm:$0xff]   ;;  %2016 = vmatprep.subr.bf16.mxu1 %v2033_v29  ;;  %v1918_v44 = vld [vmem:[%s2727_s0 + $0x28] sm:$0xff]   ;;  %v2042_v50 = vld [vmem:[%s2728_s2 + $0x64] ss:$12 sps:$4 sm:$0xff]  }
   0x6   :  { %164 = vadd.xlane.f32.xlu1 %v108_v7  ;;  %v2213_v21 = vunpack.c.h.bf16 %v1915_v18  ;;  %v2215_v22 = vunpack.c.l.bf16 %v1915_v18  ;;  %v2224_v26 = vunpack.c.h.bf16 %v1927_v23  ;;  %v2226_v27 = vunpack.c.l.bf16 %v1927_v23  ;;  %795 = vmatprep.subr.bf16.mxu0 %v2033_v29  ;;  %v2039_v43 = vld [vmem:[%s2728_s2 + $0x7c] ss:$12 sps:$4 sm:$0xff]   ;;  %v2041_v45 = vld [vmem:[%s2728_s2 + $0x78] ss:$12 sps:$4 sm:$0xff]   ;;  %v2044_v51 = vld [vmem:[%s2728_s2 + $0x60] ss:$12 sps:$4 sm:$0xff]  }
   0x7   :  { %116 = vadd.xlane.f32.xlu0 %v84_v8  ;;  %v2244_v34 = vunpack.c.h.bf16 %v1916_v28  ;;  %v2246_v35 = vunpack.c.l.bf16 %v1916_v28  ;;  %2024 = vmatpush1.bf16.msra.mxu1 %v2035_v31  ;;  %v2261_v41 = vunpack.c.h.bf16 %v1928_v30  ;;  %v2263_v42 = vunpack.c.l.bf16 %v1928_v30  ;;  %v1919_v56 = vld [vmem:[%s2727_s0 + $0x30] sm:$0xff]   ;;  %v2045_v57 = vld [vmem:[%s2728_s2 + $0x4c] ss:$12 sps:$4 sm:$0xff]   ;;  %v2051_v13 = vld [vmem:[%s2728_s2 + $0x1c] ss:$12 sps:$4 sm:$0xff]  }
   0x8   :  { %v89_v24 = vmul.f32 %v2213_v21, %v2213_v21  ;;  %v88_v25 = vmul.f32 %v2215_v22, %v2215_v22  ;;  %v113_v32 = vmul.f32 %v2224_v26, %v2224_v26  ;;  %v112_v33 = vmul.f32 %v2226_v27, %v2226_v27  ;;  %796 = vmatpush1.bf16.msra.mxu0 %v2035_v31  ;;  %v2047_v58 = vld [vmem:[%s2728_s2 + $0x48] ss:$12 sps:$4 sm:$0xff]   ;;  %v1920_v63 = vld [vmem:[%s2727_s0 + $0x38] sm:$0xff]  }
   0x9   :  { %v91_v39 = vmul.f32 %v2244_v34, %v2244_v34  ;;  %v90_v40 = vmul.f32 %v2246_v35, %v2246_v35  ;;  %2017 = vmatprep.subr.bf16.mxu1 %v2036_v36  ;;  %797 = vmatprep.subr.bf16.mxu0 %v2036_v36  ;;  %v115_v46 = vmul.f32 %v2261_v41, %v2261_v41  ;;  %v2278_v48 = vunpack.c.h.bf16 %v1917_v37  ;;  %v2048_v0 = vld [vmem:[%s2728_s2 + $0x34] ss:$12 sps:$4 sm:$0xff]   ;;  %v2050_v1 = vld [vmem:[%s2728_s2 + $0x30] ss:$12 sps:$4 sm:$0xff]   ;;  %v1922_v23 = vld [vmem:[%s2727_s0 + $0x48] sm:$0xff]  }
   0xa   :  { %166 = vadd.xlane.f32.xlu1 %v109_v9  ;;  %v114_v47 = vmul.f32 %v2263_v42, %v2263_v42  ;;  %v2280_v49 = vunpack.c.l.bf16 %v1917_v37  ;;  %v2292_v54 = vunpack.c.h.bf16 %v1918_v44  ;;  %v2294_v55 = vunpack.c.l.bf16 %v1918_v44 }
   0xb   :  { %118 = vadd.xlane.f32.xlu0 %v85_v10  ;;  %2025 = vmatpush1.bf16.msra.mxu1 %v2038_v38  ;;  %v93_v52 = vmul.f32 %v2278_v48, %v2278_v48  ;;  %v2309_v61 = vunpack.c.h.bf16 %v1919_v56  ;;  %v2311_v62 = vunpack.c.l.bf16 %v1919_v56  ;;  %v2326_v8 = vunpack.c.h.bf16 %v1920_v63  ;;  %v1921_v10 = vld [vmem:[%s2727_s0 + $0x40] sm:$0xff]  }
   0xc   :  { %798 = vmatpush1.bf16.msra.mxu0 %v2038_v38  ;;  %2018 = vmatprep.subr.bf16.mxu1 %v2039_v43  ;;  %v92_v53 = vmul.f32 %v2280_v49, %v2280_v49  ;;  %v95_v59 = vmul.f32 %v2292_v54, %v2292_v54  ;;  %v94_v60 = vmul.f32 %v2294_v55, %v2294_v55  ;;  %v2328_v9 = vunpack.c.l.bf16 %v1920_v63 }
   0xd   :  { %799 = vmatprep.subr.bf16.mxu0 %v2039_v43  ;;  %v97_v6 = vmul.f32 %v2309_v61, %v2309_v61  ;;  %v96_v7 = vmul.f32 %v2311_v62, %v2311_v62  ;;  %v2360_v30 = vunpack.c.h.bf16 %v1922_v23  ;;  %v2362_v31 = vunpack.c.l.bf16 %v1922_v23  ;;  %v1924_v43 = vld [vmem:[%s2727_s0 + $0x58] sm:$0xff]  }
   0xe   :  { %122 = vadd.xlane.f32.xlu1 %v87_v14  ;;  %v2053_v14 = vld [vmem:[%s2728_s2 + $0x18] ss:$12 sps:$4 sm:$0xff]   ;;  %v98_v18 = vmul.f32 %v2328_v9, %v2328_v9  ;;  %v2145_v36 = vmov 0  }
   0xf   :  { %120 = vadd.xlane.f32.xlu0 %v86_v15  ;;  %2026 = vmatpush1.bf16.msra.mxu1 %v2041_v45  ;;  %v99_v15 = vmul.f32 %v2326_v8, %v2326_v8  ;;  %v103_v37 = vmul.f32 %v2360_v30, %v2360_v30  ;;  %v102_v38 = vmul.f32 %v2362_v31, %v2362_v31 }
  0x10   :  { %800 = vmatpush1.bf16.msra.mxu0 %v2041_v45  ;;  %2019 = vmatprep.subr.bf16.mxu1 %v2042_v50 }
  0x11   :  { %801 = vmatprep.subr.bf16.mxu0 %v2042_v50  ;;  %827 = vmatprep.mubr.bf16.mxu0 %v2145_v36 }
  0x12   :  { %170 = vadd.xlane.f32.xlu1 %v111_v19  ;;  %v2343_v19 = vunpack.c.h.bf16 %v1921_v10  ;;  %947 = vmatprep.mubr.bf16.mxu1 %v2145_v36 }
  0x13   :  { %168 = vadd.xlane.f32.xlu0 %v110_v20  ;;  %2027 = vmatpush1.bf16.msra.mxu1 %v2044_v51  ;;  %v2345_v20 = vunpack.c.l.bf16 %v1921_v10 }
  0x14   :  { %802 = vmatpush1.bf16.msra.mxu0 %v2044_v51  ;;  %2020 = vmatprep.subr.bf16.mxu1 %v2045_v57  ;;  %v101_v28 = vmul.f32 %v2343_v19, %v2343_v19 }
  0x15   :  { %803 = vmatprep.subr.bf16.mxu0 %v2045_v57  ;;  %v100_v29 = vmul.f32 %v2345_v20, %v2345_v20 }
  0x16   :  { %126 = vadd.xlane.f32.xlu1 %v89_v24  ;;  %v2054_v24 = vld [vmem:[%s2728_s2 + $0x4] ss:$12 sps:$4 sm:$0xff]  }
  0x17   :  { %124 = vadd.xlane.f32.xlu0 %v88_v25  ;;  %2028 = vmatpush1.bf16.msra.mxu1 %v2047_v58  ;;  %v2056_v25 = vld [vmem:[%s2728_s2] ss:$12 sps:$4 sm:$0xff]  }
  0x18   :  { %804 = vmatpush1.bf16.msra.mxu0 %v2047_v58  ;;  %2021 = vmatprep.subr.bf16.mxu1 %v2048_v0 }
  0x19   :  { %805 = vmatprep.subr.bf16.mxu0 %v2048_v0 }
  0x1a   :  { %174 = vadd.xlane.f32.xlu1 %v113_v32  ;;  %v1923_v32 = vld [vmem:[%s2727_s0 + $0x50] sm:$0xff]  }
  0x1b   :  { %172 = vadd.xlane.f32.xlu0 %v112_v33  ;;  %2029 = vmatpush1.bf16.msra.mxu1 %v2050_v1  ;;  %v2370_v33 = vld [vmem:[%s2728_s2 + $0xb0] ss:$12 sps:$4 sm:$0xff]  }
  0x1c   :  { %806 = vmatpush1.bf16.msra.mxu0 %v2050_v1  ;;  %2022 = vmatprep.subr.bf16.mxu1 %v2051_v13 }
  0x1d   :  { %807 = vmatprep.subr.bf16.mxu0 %v2051_v13 }
  0x1e   :  { %130 = vadd.xlane.f32.xlu1 %v91_v39  ;;  %v2378_v39 = vunpack.c.h.bf16 %v1923_v32 }
  0x1f   :  { %128 = vadd.xlane.f32.xlu0 %v90_v40  ;;  %2030 = vmatpush1.bf16.msra.mxu1 %v2053_v14  ;;  %v2380_v40 = vunpack.c.l.bf16 %v1923_v32 }
  0x20   :  { %808 = vmatpush1.bf16.msra.mxu0 %v2053_v14  ;;  %2023 = vmatprep.subr.bf16.mxu1 %v2054_v24  ;;  %v105_v44 = vmul.f32 %v2378_v39, %v2378_v39 }
  0x21   :  { %809 = vmatprep.subr.bf16.mxu0 %v2054_v24  ;;  %v104_v45 = vmul.f32 %v2380_v40, %v2380_v40 }
  0x22   :  { %178 = vadd.xlane.f32.xlu1 %v115_v46  ;;  %v2390_v46 = vunpack.c.h.bf16 %v1924_v43 }
  0x23   :  { %176 = vadd.xlane.f32.xlu0 %v114_v47  ;;  %2031 = vmatpush1.bf16.msra.mxu1 %v2056_v25  ;;  %v2392_v47 = vunpack.c.l.bf16 %v1924_v43 }
  0x24   :  { %810 = vmatpush1.bf16.msra.mxu0 %v2056_v25  ;;  %1968 = vmatprep.subr.bf16.mxu1 %v2370_v33  ;;  %v107_v50 = vmul.f32 %v2390_v46, %v2390_v46 }
  0x25   :  { %v106_v51 = vmul.f32 %v2392_v47, %v2392_v47 }
  0x26   :  { %134 = vadd.xlane.f32.xlu1 %v93_v52 }
  0x27   :  { %132 = vadd.xlane.f32.xlu0 %v92_v53 }
  0x2a   :  { %138 = vadd.xlane.f32.xlu1 %v95_v59 }
  0x2b   :  { %136 = vadd.xlane.f32.xlu0 %v94_v60 }
  0x2e   :  { %142 = vadd.xlane.f32.xlu1 %v97_v6 }
  0x2f   :  { %140 = vadd.xlane.f32.xlu0 %v96_v7 }
  0x32   :  { %146 = vadd.xlane.f32.xlu1 %v99_v15 }
  0x33   :  { %144 = vadd.xlane.f32.xlu0 %v98_v18 }
  0x36   :  { %150 = vadd.xlane.f32.xlu1 %v101_v28 }
  0x37   :  { %148 = vadd.xlane.f32.xlu0 %v100_v29 }
  0x3a   :  { %154 = vadd.xlane.f32.xlu1 %v103_v37 }
  0x3b   :  { %152 = vadd.xlane.f32.xlu0 %v102_v38 }
  0x3e   :  { %158 = vadd.xlane.f32.xlu1 %v105_v44 }
  0x3f   :  { %156 = vadd.xlane.f32.xlu0 %v104_v45 }
  0x42   :  { %162 = vadd.xlane.f32.xlu1 %v107_v50 }
  0x43   :  { %160 = vadd.xlane.f32.xlu0 %v106_v51 }
  0x8f   :  { %v165_v52 = vpop.xlane.xlu1 %164 }
  0x90   :  { %v117_v53 = vpop.xlane.xlu0 %116  ;;  %v205_v56 = vmul.f32 0.0078125, %v165_v52 }
  0x91   :  { %v181_v57 = vmul.f32 0.0078125, %v117_v53 }
  0x92   :  { %v237_v58 = vadd.f32 1e-06, %v205_v56 }
  0x93   :  { %v213_v59 = vadd.f32 1e-06, %v181_v57  ;;  %v167_v60 = vpop.xlane.xlu1 %166 }
  0x94   :  { %v119_v63 = vpop.xlane.xlu0 %118  ;;  %2081 = vrsqrt.f32 %v237_v58  ;;  %v206_v0 = vmul.f32 0.0078125, %v167_v60 }
  0x95   :  { %v182_v1 = vmul.f32 0.0078125, %v119_v63  ;;  %2083 = vrsqrt.f32 %v213_v59  ;;  %v2402_v59 = vld [vmem:[%s2729_s1] ss:$0 sm:$0xff] }
  0x96   :  { %v238_v6 = vadd.f32 1e-06, %v206_v0 }
  0x97   :  { %v214_v7 = vadd.f32 1e-06, %v182_v1  ;;  %v123_v10 = vpop.xlane.xlu1 %122 }
  0x98   :  { %v121_v13 = vpop.xlane.xlu0 %120  ;;  %2085 = vrsqrt.f32 %v238_v6  ;;  %v184_v14 = vmul.f32 0.0078125, %v123_v10 }
  0x99   :  { %v183_v15 = vmul.f32 0.0078125, %v121_v13  ;;  %2087 = vrsqrt.f32 %v214_v7 }
  0x9a   :  { %v216_v18 = vadd.f32 1e-06, %v184_v14 }
  0x9b   :  { %v215_v23 = vadd.f32 1e-06, %v183_v15  ;;  %v171_v24 = vpop.xlane.xlu1 %170 }
  0x9c   :  { %v169_v25 = vpop.xlane.xlu0 %168  ;;  %2089 = vrsqrt.f32 %v216_v18  ;;  %v208_v28 = vmul.f32 0.0078125, %v171_v24 }
  0x9d   :  { %v207_v29 = vmul.f32 0.0078125, %v169_v25  ;;  %2091 = vrsqrt.f32 %v215_v23 }
  0x9e   :  { %v240_v32 = vadd.f32 1e-06, %v208_v28 }
  0x9f   :  { %v239_v37 = vadd.f32 1e-06, %v207_v29  ;;  %v127_v38 = vpop.xlane.xlu1 %126 }
  0xa0   :  { %v125_v43 = vpop.xlane.xlu0 %124  ;;  %2093 = vrsqrt.f32 %v240_v32  ;;  %v186_v44 = vmul.f32 0.0078125, %v127_v38 }
  0xa1   :  { %v185_v45 = vmul.f32 0.0078125, %v125_v43  ;;  %v2082_v50 = vpop.eup %2081  ;;  %2095 = vrsqrt.f32 %v239_v37 }
  0xa2   :  { %v2084_v51 = vpop.eup %2083  ;;  %v218_v52 = vadd.f32 1e-06, %v186_v44  ;;  %v301_v56 = vmul.f32 %v2082_v50, %v2172_v2 }
  0xa3   :  { %v217_v53 = vadd.f32 1e-06, %v185_v45  ;;  %v175_v57 = vpop.xlane.xlu1 %174  ;;  %v277_v1 = vmul.f32 %v2084_v51, %v2174_v3 }
  0xa4   :  { %v173_v58 = vpop.xlane.xlu0 %172  ;;  %2097 = vrsqrt.f32 %v218_v52  ;;  %v210_v60 = vmul.f32 0.0078125, %v175_v57  ;;  %v339_v2 = vmul.f32 %v2402_v59, %v301_v56 }
  0xa5   :  { %v209_v63 = vmul.f32 0.0078125, %v173_v58  ;;  %v2086_v0 = vpop.eup %2085  ;;  %2099 = vrsqrt.f32 %v217_v53  ;;  %v315_v3 = vmul.f32 %v2402_v59, %v277_v1 }
  0xa6   :  { %v2088_v6 = vpop.eup %2087  ;;  %v302_v7 = vmul.f32 %v2086_v0, %v2176_v4  ;;  %v242_v10 = vadd.f32 1e-06, %v210_v60 }
  0xa7   :  { %v241_v13 = vadd.f32 1e-06, %v209_v63  ;;  %v278_v14 = vmul.f32 %v2088_v6, %v2178_v5  ;;  %v131_v15 = vpop.xlane.xlu1 %130 }
  0xa8   :  { %v129_v18 = vpop.xlane.xlu0 %128  ;;  %v340_v23 = vmul.f32 %v2402_v59, %v302_v7  ;;  %2101 = vrsqrt.f32 %v242_v10  ;;  %v188_v24 = vmul.f32 0.0078125, %v131_v15 }
  0xa9   :  { %v187_v25 = vmul.f32 0.0078125, %v129_v18  ;;  %v2090_v28 = vpop.eup %2089  ;;  %v316_v29 = vmul.f32 %v2402_v59, %v278_v14  ;;  %2103 = vrsqrt.f32 %v241_v13 }
  0xaa   :  { %v2092_v4 = vpop.eup %2091  ;;  %v1897_v32 = vpack.c.bf16 %v340_v23, %v339_v2  ;;  %v280_v37 = vmul.f32 %v2090_v28, %v2191_v11  ;;  %v220_v38 = vadd.f32 1e-06, %v188_v24 }
  0xab   :  { %v219_v43 = vadd.f32 1e-06, %v187_v25  ;;  %v1837_v5 = vpack.c.bf16 %v316_v29, %v315_v3  ;;  %v279_v44 = vmul.f32 %v2092_v4, %v2193_v12  ;;  %v179_v45 = vpop.xlane.xlu1 %178 }
  0xac   :  { %v177_v50 = vpop.xlane.xlu0 %176  ;;  %1940 = vst [vmem:[#allocation2 + $0x60] sm:$0xff] %v1897_v32   ;;  %v318_v51 = vmul.f32 %v2402_v59, %v280_v37  ;;  %2105 = vrsqrt.f32 %v220_v38  ;;  %v212_v52 = vmul.f32 0.0078125, %v179_v45 }
  0xad   :  { %v211_v53 = vmul.f32 0.0078125, %v177_v50  ;;  %v2094_v56 = vpop.eup %2093  ;;  %1838 = vst [vmem:[#allocation2] sm:$0xff] %v1837_v5   ;;  %v317_v57 = vmul.f32 %v2402_v59, %v279_v44  ;;  %2107 = vrsqrt.f32 %v219_v43 }
  0xae   :  { %v2096_v58 = vpop.eup %2095  ;;  %v304_v11 = vmul.f32 %v2094_v56, %v2202_v16  ;;  %v244_v60 = vadd.f32 1e-06, %v212_v52  ;;  %v2061_v52 = vld [vmem:[%s2728_s2 + $0x80] ss:$12 sps:$4 sm:$0xff]  }
  0xaf   :  { %v243_v63 = vadd.f32 1e-06, %v211_v53  ;;  %v1842_v0 = vpack.c.bf16 %v318_v51, %v317_v57  ;;  %v303_v12 = vmul.f32 %v2096_v58, %v2204_v17  ;;  %v135_v1 = vpop.xlane.xlu1 %134  ;;  %v2060_v17 = vld [vmem:[%s2728_s2 + $0x98] ss:$12 sps:$4 sm:$0xff]  }
  0xb0   :  { %v133_v6 = vpop.xlane.xlu0 %132  ;;  %v342_v7 = vmul.f32 %v2402_v59, %v304_v11  ;;  %2109 = vrsqrt.f32 %v244_v60  ;;  %v190_v10 = vmul.f32 0.0078125, %v135_v1 }
  0xb1   :  { %v189_v13 = vmul.f32 0.0078125, %v133_v6  ;;  %v2098_v2 = vpop.eup %2097  ;;  %1929 = vst [vmem:[#allocation2 + $0x8] sm:$0xff] %v1842_v0   ;;  %v341_v14 = vmul.f32 %v2402_v59, %v303_v12  ;;  %2111 = vrsqrt.f32 %v243_v63  ;;  %v2064_v6 = vld [vmem:[%s2728_s2 + $0x68] ss:$12 sps:$4 sm:$0xff]  }
  0xb2   :  { %v2100_v15 = vpop.eup %2099  ;;  %v282_v16 = vmul.f32 %v2098_v2, %v2213_v21  ;;  %v222_v18 = vadd.f32 1e-06, %v190_v10 }
  0xb3   :  { %v221_v23 = vadd.f32 1e-06, %v189_v13  ;;  %v1902_v24 = vpack.c.bf16 %v342_v7, %v341_v14  ;;  %v281_v25 = vmul.f32 %v2100_v15, %v2215_v22  ;;  %v2424_v28 = vld [vmem:[#allocation2 + $0x60] sm:$0xff]   ;;  %v139_v3 = vpop.xlane.xlu1 %138 }
  0xb4   :  { %v137_v29 = vpop.xlane.xlu0 %136  ;;  %v320_v4 = vmul.f32 %v2402_v59, %v282_v16  ;;  %2113 = vrsqrt.f32 %v222_v18  ;;  %v2427_v32 = vld [vmem:[#allocation2] sm:$0xff]   ;;  %v192_v37 = vmul.f32 0.0078125, %v139_v3  ;;  %948 = vmatmul.mubr.bf16.vlgmr.msra.gmra.mxu1 %v2424_v28  ;;  %v2065_v3 = vld [vmem:[%s2728_s2 + $0x50] ss:$12 sps:$4 sm:$0xff]  }
  0xb5   :  { %v2102_v21 = vpop.eup %2101  ;;  %1941 = vst [vmem:[#allocation2 + $0x68] sm:$0xff] %v1902_v24   ;;  %v319_v38 = vmul.f32 %v2402_v59, %v281_v25  ;;  %2115 = vrsqrt.f32 %v221_v23  ;;  %v191_v43 = vmul.f32 0.0078125, %v137_v29  ;;  %828 = vmatmul.mubr.bf16.vlgmr.msra.gmra.mxu0 %v2427_v32  ;;  %1969 = vmatpush3.bf16.msra.mxu1 %v2370_v33 }
  0xb6   :  { %v2104_v5 = vpop.eup %2103  ;;  %v306_v22 = vmul.f32 %v2102_v21, %v2224_v26  ;;  %v224_v44 = vadd.f32 1e-06, %v192_v37  ;;  %1970 = vmatprep.subr.bf16.mxu1 %v2060_v17  ;;  %837 = vmatprep.mubr.bf16.mxu0 %v2145_v36 }
  0xb7   :  { %v1847_v45 = vpack.c.bf16 %v320_v4, %v319_v38  ;;  %v305_v50 = vmul.f32 %v2104_v5, %v2226_v27  ;;  %v223_v51 = vadd.f32 1e-06, %v191_v43  ;;  %v143_v53 = vpop.xlane.xlu1 %142  ;;  %957 = vmatprep.mubr.bf16.mxu1 %v2145_v36 }
  0xb8   :  { %v141_v56 = vpop.xlane.xlu0 %140  ;;  %v344_v26 = vmul.f32 %v2402_v59, %v306_v22  ;;  %2117 = vrsqrt.f32 %v224_v44  ;;  %v194_v33 = vmul.f32 0.0078125, %v143_v53  ;;  %v2444_v1 = vld [vmem:[#allocation2 + $0x8] sm:$0xff]  }
  0xb9   :  { %v2106_v57 = vpop.eup %2105  ;;  %1930 = vst [vmem:[#allocation2 + $0x10] sm:$0xff] %v1847_v45   ;;  %v343_v27 = vmul.f32 %v2402_v59, %v305_v50  ;;  %2119 = vrsqrt.f32 %v223_v51  ;;  %v193_v58 = vmul.f32 0.0078125, %v141_v56  ;;  %1971 = vmatpush3.bf16.msra.mxu1 %v2060_v17 }
  0xba   :  { %v2108_v11 = vpop.eup %2107  ;;  %v284_v60 = vmul.f32 %v2106_v57, %v2244_v34  ;;  %v226_v63 = vadd.f32 1e-06, %v194_v33  ;;  %1972 = vmatprep.subr.bf16.mxu1 %v2061_v52 }
  0xbb   :  { %v1907_v0 = vpack.c.bf16 %v344_v26, %v343_v27  ;;  %v283_v12 = vmul.f32 %v2108_v11, %v2246_v35  ;;  %v225_v7 = vadd.f32 1e-06, %v193_v58  ;;  %v147_v10 = vpop.xlane.xlu1 %146 }
  0xbc   :  { %v145_v13 = vpop.xlane.xlu0 %144  ;;  %v322_v2 = vmul.f32 %v2402_v59, %v284_v60  ;;  %v2450_v14 = vld [vmem:[#allocation2 + $0x68] sm:$0xff]   ;;  %2121 = vrsqrt.f32 %v226_v63  ;;  %v196_v34 = vmul.f32 0.0078125, %v147_v10 }
  0xbd   :  { %v2110_v15 = vpop.eup %2109  ;;  %1942 = vst [vmem:[#allocation2 + $0x70] sm:$0xff] %v1907_v0   ;;  %v321_v35 = vmul.f32 %v2402_v59, %v283_v12  ;;  %2123 = vrsqrt.f32 %v225_v7  ;;  %v195_v16 = vmul.f32 0.0078125, %v145_v13  ;;  %838 = vmatmul.mubr.bf16.gmra.mxu0 %v2444_v1  ;;  %958 = vmatmul.mubr.bf16.gmra.mxu1 %v2450_v14 }
  0xbe   :  { %v2112_v18 = vpop.eup %2111  ;;  %v308_v23 = vmul.f32 %v2110_v15, %v2261_v41  ;;  %v228_v17 = vadd.f32 1e-06, %v196_v34  ;;  %1973 = vmatpush3.bf16.msra.mxu1 %v2061_v52  ;;  %847 = vmatprep.mubr.bf16.mxu0 %v2145_v36  ;;  %v2068_v52 = vld [vmem:[%s2728_s2 + $0x38] ss:$12 sps:$4 sm:$0xff]  }
  0xbf   :  { %v1852_v24 = vpack.c.bf16 %v322_v2, %v321_v35  ;;  %v307_v25 = vmul.f32 %v2112_v18, %v2263_v42  ;;  %v227_v29 = vadd.f32 1e-06, %v195_v16  ;;  %v151_v4 = vpop.xlane.xlu1 %150  ;;  %1974 = vmatprep.subr.bf16.mxu1 %v2064_v6  ;;  %967 = vmatprep.mubr.bf16.mxu1 %v2145_v36 }
  0xc0   :  { %v149_v37 = vpop.xlane.xlu0 %148  ;;  %v346_v41 = vmul.f32 %v2402_v59, %v308_v23  ;;  %2125 = vrsqrt.f32 %v228_v17  ;;  %v198_v21 = vmul.f32 0.0078125, %v151_v4  ;;  %v2466_v51 = vld [vmem:[#allocation2 + $0x10] sm:$0xff]  }
  0xc1   :  { %v2114_v38 = vpop.eup %2113  ;;  %1931 = vst [vmem:[#allocation2 + $0x18] sm:$0xff] %v1852_v24   ;;  %v345_v42 = vmul.f32 %v2402_v59, %v307_v25  ;;  %2127 = vrsqrt.f32 %v227_v29  ;;  %v197_v43 = vmul.f32 0.0078125, %v149_v37  ;;  %v2072_v25 = vld [vmem:[%s2728_s2 + $0x8] ss:$12 sps:$4 sm:$0xff]  }
  0xc2   :  { %v2116_v5 = vpop.eup %2115  ;;  %v286_v22 = vmul.f32 %v2114_v38, %v2278_v48  ;;  %v230_v44 = vadd.f32 1e-06, %v198_v21  ;;  %1975 = vmatpush3.bf16.msra.mxu1 %v2064_v6  ;;  %v2069_v6 = vld [vmem:[%s2728_s2 + $0x20] ss:$12 sps:$4 sm:$0xff]  }
  0xc3   :  { %v1912_v45 = vpack.c.bf16 %v346_v41, %v345_v42  ;;  %v285_v50 = vmul.f32 %v2116_v5, %v2280_v49  ;;  %v229_v53 = vadd.f32 1e-06, %v197_v43  ;;  %v155_v56 = vpop.xlane.xlu1 %154  ;;  %1976 = vmatprep.subr.bf16.mxu1 %v2065_v3 }
  0xc4   :  { %v153_v26 = vpop.xlane.xlu0 %152  ;;  %v324_v33 = vmul.f32 %v2402_v59, %v286_v22  ;;  %v2472_v57 = vld [vmem:[#allocation2 + $0x70] sm:$0xff]   ;;  %2129 = vrsqrt.f32 %v230_v44  ;;  %v200_v48 = vmul.f32 0.0078125, %v155_v56 }
  0xc5   :  { %v2118_v27 = vpop.eup %2117  ;;  %1943 = vst [vmem:[#allocation2 + $0x78] sm:$0xff] %v1912_v45   ;;  %v323_v49 = vmul.f32 %v2402_v59, %v285_v50  ;;  %2131 = vrsqrt.f32 %v229_v53  ;;  %v199_v58 = vmul.f32 0.0078125, %v153_v26  ;;  %848 = vmatmul.mubr.bf16.gmra.mxu0 %v2466_v51  ;;  %968 = vmatmul.mubr.bf16.gmra.mxu1 %v2472_v57 }
  0xc6   :  { %v2120_v11 = vpop.eup %2119  ;;  %v288_v60 = vmul.f32 %v2118_v27, %v2292_v54  ;;  %v232_v63 = vadd.f32 1e-06, %v200_v48  ;;  %1977 = vmatpush3.bf16.msra.mxu1 %v2065_v3  ;;  %857 = vmatprep.mubr.bf16.mxu0 %v2145_v36 }
  0xc7   :  { %v1857_v0 = vpack.c.bf16 %v324_v33, %v323_v49  ;;  %v287_v12 = vmul.f32 %v2120_v11, %v2294_v55  ;;  %v231_v7 = vadd.f32 1e-06, %v199_v58  ;;  %v159_v10 = vpop.xlane.xlu1 %158  ;;  %1978 = vmatprep.subr.bf16.mxu1 %v2068_v52  ;;  %977 = vmatprep.mubr.bf16.mxu1 %v2145_v36 }
  0xc8   :  { %v157_v13 = vpop.xlane.xlu0 %156  ;;  %v326_v54 = vmul.f32 %v2402_v59, %v288_v60  ;;  %2133 = vrsqrt.f32 %v232_v63  ;;  %v202_v2 = vmul.f32 0.0078125, %v159_v10  ;;  %v2488_v24 = vld [vmem:[#allocation2 + $0x18] sm:$0xff]  }
  0xc9   :  { %v2122_v34 = vpop.eup %2121  ;;  %1932 = vst [vmem:[#allocation2 + $0x20] sm:$0xff] %v1857_v0   ;;  %v325_v55 = vmul.f32 %v2402_v59, %v287_v12  ;;  %2135 = vrsqrt.f32 %v231_v7  ;;  %v201_v15 = vmul.f32 0.0078125, %v157_v13 }
  0xca   :  { %v2124_v35 = vpop.eup %2123  ;;  %v290_v16 = vmul.f32 %v2122_v34, %v2309_v61  ;;  %v234_v18 = vadd.f32 1e-06, %v202_v2  ;;  %1979 = vmatpush3.bf16.msra.mxu1 %v2068_v52 }
  0xcb   :  { %v1862_v23 = vpack.c.bf16 %v326_v54, %v325_v55  ;;  %v289_v17 = vmul.f32 %v2124_v35, %v2311_v62  ;;  %v233_v3 = vadd.f32 1e-06, %v201_v15  ;;  %v163_v29 = vpop.xlane.xlu1 %162  ;;  %1980 = vmatprep.subr.bf16.mxu1 %v2069_v6 }
  0xcc   :  { %v161_v4 = vpop.xlane.xlu0 %160  ;;  %v328_v37 = vmul.f32 %v2402_v59, %v290_v16  ;;  %v2494_v41 = vld [vmem:[#allocation2 + $0x78] sm:$0xff]   ;;  %2137 = vrsqrt.f32 %v234_v18  ;;  %v204_v61 = vmul.f32 0.0078125, %v163_v29 }
  0xcd   :  { %v2126_v21 = vpop.eup %2125  ;;  %1933 = vst [vmem:[#allocation2 + $0x28] sm:$0xff] %v1862_v23   ;;  %v327_v62 = vmul.f32 %v2402_v59, %v289_v17  ;;  %2139 = vrsqrt.f32 %v233_v3  ;;  %v203_v38 = vmul.f32 0.0078125, %v161_v4  ;;  %858 = vmatmul.mubr.bf16.gmra.mxu0 %v2488_v24  ;;  %978 = vmatmul.mubr.bf16.gmra.mxu1 %v2494_v41 }
  0xce   :  { %v2128_v42 = vpop.eup %2127  ;;  %v292_v43 = vmul.f32 %v2126_v21, %v2326_v8  ;;  %v236_v5 = vadd.f32 1e-06, %v204_v61  ;;  %1981 = vmatpush3.bf16.msra.mxu1 %v2069_v6  ;;  %1984 = vmatprep.mubr.bf16.mxu1 %v2427_v32 }
  0xcf   :  { %v1867_v22 = vpack.c.bf16 %v328_v37, %v327_v62  ;;  %v291_v44 = vmul.f32 %v2128_v42, %v2328_v9  ;;  %v235_v45 = vadd.f32 1e-06, %v203_v38  ;;  %1982 = vmatprep.subr.bf16.mxu1 %v2072_v25  ;;  %867 = vmatprep.mubr.bf16.mxu0 %v2145_v36 }
  0xd0   :  { %v330_v50 = vmul.f32 %v2402_v59, %v292_v43  ;;  %2141 = vrsqrt.f32 %v236_v5  ;;  %v2073_v26 = vld [vmem:[#allocation2 + $0x20] sm:$0xff]  }
  0xd1   :  { %v2130_v52 = vpop.eup %2129  ;;  %1934 = vst [vmem:[#allocation2 + $0x30] sm:$0xff] %v1867_v22   ;;  %v329_v8 = vmul.f32 %v2402_v59, %v291_v44  ;;  %2143 = vrsqrt.f32 %v235_v45 }
  0xd2   :  { %v2132_v53 = vpop.eup %2131  ;;  %v294_v56 = vmul.f32 %v2130_v52, %v2343_v19  ;;  %1983 = vmatpush3.bf16.msra.mxu1 %v2072_v25 }
  0xd3   :  { %v1872_v9 = vpack.c.bf16 %v330_v50, %v329_v8  ;;  %v293_v33 = vmul.f32 %v2132_v53, %v2345_v20 }
  0xd4   :  { %v332_v32 = vmul.f32 %v2402_v59, %v294_v56 }
  0xd5   :  { %v2134_v48 = vpop.eup %2133  ;;  %1935 = vst [vmem:[#allocation2 + $0x38] sm:$0xff] %v1872_v9   ;;  %v331_v27 = vmul.f32 %v2402_v59, %v293_v33  ;;  %868 = vmatmul.mubr.bf16.gmra.mxu0 %v2073_v26  ;;  %1985 = vmatmul.mubr.bf16.vlgmr.msra.gmra.mxu1 %v2444_v1 }
  0xd6   :  { %v2136_v49 = vpop.eup %2135  ;;  %v296_v58 = vmul.f32 %v2134_v48, %v2360_v30  ;;  %1988 = vmatprep.mubr.bf16.mxu1 %v2466_v51  ;;  %877 = vmatprep.mubr.bf16.mxu0 %v2145_v36  ;;  %v2074_v30 = vld [vmem:[#allocation2 + $0x28] sm:$0xff]  }
  0xd7   :  { %v1877_v11 = vpack.c.bf16 %v332_v32, %v331_v27  ;;  %v295_v19 = vmul.f32 %v2136_v49, %v2362_v31 }
  0xd8   :  { %v334_v20 = vmul.f32 %v2402_v59, %v296_v58  ;;  %v2075_v34 = vld [vmem:[#allocation2 + $0x30] sm:$0xff]  }
  0xd9   :  { %v2138_v60 = vpop.eup %2137  ;;  %1936 = vst [vmem:[#allocation2 + $0x40] sm:$0xff] %v1877_v11   ;;  %v333_v63 = vmul.f32 %v2402_v59, %v295_v19 }
  0xda   :  { %v2140_v0 = vpop.eup %2139  ;;  %v298_v12 = vmul.f32 %v2138_v60, %v2378_v39 }
  0xdb   :  { %v1882_v6 = vpack.c.bf16 %v334_v20, %v333_v63  ;;  %v297_v1 = vmul.f32 %v2140_v0, %v2380_v40 }
  0xdc   :  { %v336_v7 = vmul.f32 %v2402_v59, %v298_v12 }
  0xdd   :  { %v2142_v31 = vpop.eup %2141  ;;  %1937 = vst [vmem:[#allocation2 + $0x48] sm:$0xff] %v1882_v6   ;;  %v335_v51 = vmul.f32 %v2402_v59, %v297_v1  ;;  %878 = vmatmul.mubr.bf16.gmra.mxu0 %v2074_v30  ;;  %1989 = vmatmul.mubr.bf16.gmra.mxu1 %v2488_v24 }
  0xde   :  { %v2144_v10 = vpop.eup %2143  ;;  %v300_v13 = vmul.f32 %v2142_v31, %v2390_v46  ;;  %1992 = vmatprep.mubr.bf16.mxu1 %v2073_v26  ;;  %887 = vmatprep.mubr.bf16.mxu0 %v2145_v36  ;;  %v2076_v46 = vld [vmem:[#allocation2 + $0x38] sm:$0xff]  }
  0xdf   :  { %v1887_v54 = vpack.c.bf16 %v336_v7, %v335_v51  ;;  %v299_v2 = vmul.f32 %v2144_v10, %v2392_v47 }
  0xe0   :  { %v338_v39 = vmul.f32 %v2402_v59, %v300_v13  ;;  %v2077_v15 = vld [vmem:[#allocation2 + $0x40] sm:$0xff]  }
  0xe1   :  { %1938 = vst [vmem:[#allocation2 + $0x50] sm:$0xff] %v1887_v54   ;;  %v337_v40 = vmul.f32 %v2402_v59, %v299_v2 }
  0xe3   :  { %v1892_v55 = vpack.c.bf16 %v338_v39, %v337_v40 }
  0xe4   :  { %v2078_v47 = vld [vmem:[#allocation2 + $0x48] sm:$0xff]  }
  0xe5   :  { %1939 = vst [vmem:[#allocation2 + $0x58] sm:$0xff] %v1892_v55   ;;  %888 = vmatmul.mubr.bf16.gmra.mxu0 %v2075_v34  ;;  %1993 = vmatmul.mubr.bf16.gmra.mxu1 %v2074_v30 }
  0xe6   :  { %1996 = vmatprep.mubr.bf16.mxu1 %v2075_v34  ;;  %897 = vmatprep.mubr.bf16.mxu0 %v2145_v36 }
  0xe8   :  { %v2079_v35 = vld [vmem:[#allocation2 + $0x50] sm:$0xff]  }
  0xec   :  { %v2080_v59 = vld [vmem:[#allocation2 + $0x58] sm:$0xff]  }
  0xed   :  { %898 = vmatmul.mubr.bf16.gmra.mxu0 %v2076_v46  ;;  %1997 = vmatmul.mubr.bf16.gmra.mxu1 %v2076_v46 }
  0xee   :  { %2000 = vmatprep.mubr.bf16.mxu1 %v2077_v15  ;;  %907 = vmatprep.mubr.bf16.mxu0 %v2145_v36 }
  0xf5   :  { %908 = vmatmul.mubr.bf16.gmra.mxu0 %v2077_v15  ;;  %2001 = vmatmul.mubr.bf16.gmra.mxu1 %v2078_v47 }
  0xf6   :  { %2004 = vmatprep.mubr.bf16.mxu1 %v2079_v35  ;;  %917 = vmatprep.mubr.bf16.mxu0 %v2145_v36 }
  0xfd   :  { %918 = vmatmul.mubr.bf16.gmra.mxu0 %v2078_v47  ;;  %2005 = vmatmul.mubr.bf16.gmra.mxu1 %v2080_v59 }
  0xfe   :  { %2008 = vmatprep.mubr.bf16.mxu1 %v2424_v28  ;;  %927 = vmatprep.mubr.bf16.mxu0 %v2145_v36 }
 0x105   :  { %928 = vmatmul.mubr.bf16.gmra.mxu0 %v2079_v35  ;;  %2009 = vmatmul.mubr.bf16.gmra.mxu1 %v2450_v14 }
 0x106   :  { %2012 = vmatprep.mubr.bf16.mxu1 %v2472_v57  ;;  %937 = vmatprep.mubr.bf16.mxu0 %v2145_v36 }
 0x10d   :  { %938 = vmatmul.mubr.bf16.gmra.mxu0 %v2080_v59  ;;  %2013 = vmatmul.mubr.bf16.gmra.mxu1 %v2494_v41 }
 0x174   :  { %v949_v16 = vpop.f32.mrf.mxu1 }
 0x175   :  { %v829_v18 = vpop.f32.mrf.mxu0 }
 0x176   :  { %v951_v23 = vpop.f32.mrf.mxu1 }
 0x177   :  { %v831_v17 = vpop.f32.mrf.mxu0  ;;  %v1754_v24 = vpack.c.bf16 %v951_v23, %v949_v16 }
 0x178   :  { %v1706_v25 = vpack.c.bf16 %v831_v17, %v829_v18  ;;  %v953_v3 = vpop.f32.mrf.mxu1 }
 0x179   :  { %1517 = vst [vmem:[%s2730_s3 + $0x120] sm:$0xff] %v1754_v24  ;;  %v833_v28 = vpop.f32.mrf.mxu0 }
 0x17a   :  { %1469 = vst [vmem:[%s2730_s3] sm:$0xff] %v1706_v25  ;;  %v955_v36 = vpop.f32.mrf.mxu1 }
 0x17b   :  { %v835_v14 = vpop.f32.mrf.mxu0  ;;  %v1756_v57 = vpack.c.bf16 %v955_v36, %v953_v3 }
 0x17c   :  { %v1708_v29 = vpack.c.bf16 %v835_v14, %v833_v28 }
 0x17d   :  { %1519 = vst [vmem:[%s2730_s3 + $0x12c] sm:$0xff] %v1756_v57  ;;  %v839_v4 = vpop.f32.mrf.mxu0  ;;  %v959_v37 = vpop.f32.mrf.mxu1 }
 0x17e   :  { %1471 = vst [vmem:[%s2730_s3 + $0xc] sm:$0xff] %v1708_v29 }
 0x17f   :  { %v841_v41 = vpop.f32.mrf.mxu0  ;;  %v961_v61 = vpop.f32.mrf.mxu1 }
 0x180   :  { %v1710_v21 = vpack.c.bf16 %v841_v41, %v839_v4  ;;  %v1758_v62 = vpack.c.bf16 %v961_v61, %v959_v37 }
 0x181   :  { %v843_v38 = vpop.f32.mrf.mxu0  ;;  %v963_v42 = vpop.f32.mrf.mxu1 }
 0x182   :  { %1473 = vst [vmem:[%s2730_s3 + $0x18] sm:$0xff] %v1710_v21  ;;  %1521 = vst [vmem:[%s2730_s3 + $0x138] sm:$0xff] %v1758_v62 }
 0x183   :  { %v845_v43 = vpop.f32.mrf.mxu0  ;;  %v965_v5 = vpop.f32.mrf.mxu1 }
 0x184   :  { %v1712_v22 = vpack.c.bf16 %v845_v43, %v843_v38  ;;  %v1760_v44 = vpack.c.bf16 %v965_v5, %v963_v42 }
 0x185   :  { %v849_v45 = vpop.f32.mrf.mxu0  ;;  %v969_v50 = vpop.f32.mrf.mxu1 }
 0x186   :  { %1475 = vst [vmem:[%s2730_s3 + $0x24] sm:$0xff] %v1712_v22  ;;  %1523 = vst [vmem:[%s2730_s3 + $0x144] sm:$0xff] %v1760_v44 }
 0x187   :  { %v851_v52 = vpop.f32.mrf.mxu0  ;;  %v971_v8 = vpop.f32.mrf.mxu1 }
 0x188   :  { %v1714_v53 = vpack.c.bf16 %v851_v52, %v849_v45  ;;  %v1762_v56 = vpack.c.bf16 %v971_v8, %v969_v50 }
 0x189   :  { %v853_v26 = vpop.f32.mrf.mxu0  ;;  %v973_v9 = vpop.f32.mrf.mxu1 }
 0x18a   :  { %1477 = vst [vmem:[%s2730_s3 + $0x30] sm:$0xff] %v1714_v53  ;;  %1525 = vst [vmem:[%s2730_s3 + $0x150] sm:$0xff] %v1762_v56 }
 0x18b   :  { %v855_v33 = vpop.f32.mrf.mxu0  ;;  %v975_v32 = vpop.f32.mrf.mxu1 }
 0x18c   :  { %v1716_v48 = vpack.c.bf16 %v855_v33, %v853_v26  ;;  %v1764_v27 = vpack.c.bf16 %v975_v32, %v973_v9 }
 0x18d   :  { %v859_v49 = vpop.f32.mrf.mxu0  ;;  %v979_v58 = vpop.f32.mrf.mxu1 }
 0x18e   :  { %1479 = vst [vmem:[%s2730_s3 + $0x3c] sm:$0xff] %v1716_v48  ;;  %1527 = vst [vmem:[%s2730_s3 + $0x15c] sm:$0xff] %v1764_v27 }
 0x18f   :  { %v861_v11 = vpop.f32.mrf.mxu0  ;;  %v981_v19 = vpop.f32.mrf.mxu1 }
 0x190   :  { %v1718_v20 = vpack.c.bf16 %v861_v11, %v859_v49  ;;  %v1766_v60 = vpack.c.bf16 %v981_v19, %v979_v58 }
 0x191   :  { %v863_v63 = vpop.f32.mrf.mxu0  ;;  %v983_v0 = vpop.f32.mrf.mxu1 }
 0x192   :  { %1481 = vst [vmem:[%s2730_s3 + $0x48] sm:$0xff] %v1718_v20  ;;  %1529 = vst [vmem:[%s2730_s3 + $0x168] sm:$0xff] %v1766_v60 }
 0x193   :  { %v865_v12 = vpop.f32.mrf.mxu0  ;;  %v985_v30 = vpop.f32.mrf.mxu1 }
 0x194   :  { %v1720_v6 = vpack.c.bf16 %v865_v12, %v863_v63  ;;  %v1768_v1 = vpack.c.bf16 %v985_v30, %v983_v0 }
 0x195   :  { %v869_v7 = vpop.f32.mrf.mxu0  ;;  %v1986_v31 = vpop.f32.mrf.mxu1 }
 0x196   :  { %1483 = vst [vmem:[%s2730_s3 + $0x54] sm:$0xff] %v1720_v6  ;;  %1531 = vst [vmem:[%s2730_s3 + $0x174] sm:$0xff] %v1768_v1  ;;  %v1711_v51 = vpack.c.bf16 %v1986_v31, %v1986_v31 }
 0x197   :  { %v871_v10 = vpop.f32.mrf.mxu0  ;;  %v1022_v13 = vpop.f32.mrf.mxu1 }
 0x198   :  { %1474 = vst [vmem:[%s2730_s3 + $0x20] sm:$0xf] %v1711_v51  ;;  %v1722_v54 = vpack.c.bf16 %v871_v10, %v869_v7  ;;  %v1707_v2 = vpack.c.bf16 %v1022_v13, %v1022_v13 }
 0x199   :  { %v873_v39 = vpop.f32.mrf.mxu0  ;;  %v1987_v40 = vpop.f32.mrf.mxu1 }
 0x19a   :  { %1485 = vst [vmem:[%s2730_s3 + $0x60] sm:$0xff] %v1722_v54  ;;  %1470 = vst [vmem:[%s2730_s3 + $0x8] sm:$0xf] %v1707_v2  ;;  %v1713_v34 = vpack.c.bf16 %v1987_v40, %v1987_v40 }
 0x19b   :  { %v875_v55 = vpop.f32.mrf.mxu0  ;;  %v1025_v46 = vpop.f32.mrf.mxu1 }
 0x19c   :  { %1476 = vst [vmem:[%s2730_s3 + $0x2c] sm:$0xf] %v1713_v34  ;;  %v1724_v15 = vpack.c.bf16 %v875_v55, %v873_v39  ;;  %v1709_v47 = vpack.c.bf16 %v1025_v46, %v1025_v46 }
 0x19d   :  { %v879_v35 = vpop.f32.mrf.mxu0  ;;  %v1990_v59 = vpop.f32.mrf.mxu1 }
 0x19e   :  { %1487 = vst [vmem:[%s2730_s3 + $0x6c] sm:$0xff] %v1724_v15  ;;  %1472 = vst [vmem:[%s2730_s3 + $0x14] sm:$0xf] %v1709_v47  ;;  %v1719_v16 = vpack.c.bf16 %v1990_v59, %v1990_v59 }
 0x19f   :  { %v881_v18 = vpop.f32.mrf.mxu0  ;;  %v1038_v23 = vpop.f32.mrf.mxu1 }
 0x1a0   :  { %1482 = vst [vmem:[%s2730_s3 + $0x50] sm:$0xf] %v1719_v16  ;;  %v1726_v17 = vpack.c.bf16 %v881_v18, %v879_v35  ;;  %v1715_v24 = vpack.c.bf16 %v1038_v23, %v1038_v23 }
 0x1a1   :  { %v883_v25 = vpop.f32.mrf.mxu0  ;;  %v1991_v3 = vpop.f32.mrf.mxu1 }
 0x1a2   :  { %1489 = vst [vmem:[%s2730_s3 + $0x78] sm:$0xff] %v1726_v17  ;;  %1478 = vst [vmem:[%s2730_s3 + $0x38] sm:$0xf] %v1715_v24  ;;  %v1721_v28 = vpack.c.bf16 %v1991_v3, %v1991_v3 }
 0x1a3   :  { %v885_v36 = vpop.f32.mrf.mxu0  ;;  %v1041_v14 = vpop.f32.mrf.mxu1 }
 0x1a4   :  { %1484 = vst [vmem:[%s2730_s3 + $0x5c] sm:$0xf] %v1721_v28  ;;  %v1728_v57 = vpack.c.bf16 %v885_v36, %v883_v25  ;;  %v1717_v29 = vpack.c.bf16 %v1041_v14, %v1041_v14 }
 0x1a5   :  { %v889_v4 = vpop.f32.mrf.mxu0  ;;  %v1994_v37 = vpop.f32.mrf.mxu1 }
 0x1a6   :  { %1491 = vst [vmem:[%s2730_s3 + $0x84] sm:$0xff] %v1728_v57  ;;  %1480 = vst [vmem:[%s2730_s3 + $0x44] sm:$0xf] %v1717_v29  ;;  %v1727_v41 = vpack.c.bf16 %v1994_v37, %v1994_v37 }
 0x1a7   :  { %v891_v61 = vpop.f32.mrf.mxu0  ;;  %v1054_v21 = vpop.f32.mrf.mxu1 }
 0x1a8   :  { %1490 = vst [vmem:[%s2730_s3 + $0x80] sm:$0xf] %v1727_v41  ;;  %v1730_v62 = vpack.c.bf16 %v891_v61, %v889_v4  ;;  %v1723_v38 = vpack.c.bf16 %v1054_v21, %v1054_v21 }
 0x1a9   :  { %v893_v42 = vpop.f32.mrf.mxu0  ;;  %v1995_v43 = vpop.f32.mrf.mxu1 }
 0x1aa   :  { %1493 = vst [vmem:[%s2730_s3 + $0x90] sm:$0xff] %v1730_v62  ;;  %1486 = vst [vmem:[%s2730_s3 + $0x68] sm:$0xf] %v1723_v38  ;;  %v1729_v5 = vpack.c.bf16 %v1995_v43, %v1995_v43 }
 0x1ab   :  { %v895_v22 = vpop.f32.mrf.mxu0  ;;  %v1057_v44 = vpop.f32.mrf.mxu1 }
 0x1ac   :  { %1492 = vst [vmem:[%s2730_s3 + $0x8c] sm:$0xf] %v1729_v5  ;;  %v1732_v45 = vpack.c.bf16 %v895_v22, %v893_v42  ;;  %v1725_v50 = vpack.c.bf16 %v1057_v44, %v1057_v44 }
 0x1ad   :  { %v899_v52 = vpop.f32.mrf.mxu0  ;;  %v1998_v8 = vpop.f32.mrf.mxu1 }
 0x1ae   :  { %1495 = vst [vmem:[%s2730_s3 + $0x9c] sm:$0xff] %v1732_v45  ;;  %1488 = vst [vmem:[%s2730_s3 + $0x74] sm:$0xf] %v1725_v50  ;;  %v1735_v53 = vpack.c.bf16 %v1998_v8, %v1998_v8 }
 0x1af   :  { %v901_v56 = vpop.f32.mrf.mxu0  ;;  %v1070_v26 = vpop.f32.mrf.mxu1 }
 0x1b0   :  { %1498 = vst [vmem:[%s2730_s3 + $0xb0] sm:$0xf] %v1735_v53  ;;  %v1734_v9 = vpack.c.bf16 %v901_v56, %v899_v52  ;;  %v1731_v33 = vpack.c.bf16 %v1070_v26, %v1070_v26 }
 0x1b1   :  { %v903_v32 = vpop.f32.mrf.mxu0  ;;  %v1999_v48 = vpop.f32.mrf.mxu1 }
 0x1b2   :  { %1497 = vst [vmem:[%s2730_s3 + $0xa8] sm:$0xff] %v1734_v9  ;;  %1494 = vst [vmem:[%s2730_s3 + $0x98] sm:$0xf] %v1731_v33  ;;  %v1737_v27 = vpack.c.bf16 %v1999_v48, %v1999_v48 }
 0x1b3   :  { %v905_v49 = vpop.f32.mrf.mxu0  ;;  %v1073_v58 = vpop.f32.mrf.mxu1 }
 0x1b4   :  { %1500 = vst [vmem:[%s2730_s3 + $0xbc] sm:$0xf] %v1737_v27  ;;  %v1736_v11 = vpack.c.bf16 %v905_v49, %v903_v32  ;;  %v1733_v19 = vpack.c.bf16 %v1073_v58, %v1073_v58 }
 0x1b5   :  { %v909_v20 = vpop.f32.mrf.mxu0  ;;  %v2002_v60 = vpop.f32.mrf.mxu1 }
 0x1b6   :  { %1499 = vst [vmem:[%s2730_s3 + $0xb4] sm:$0xff] %v1736_v11  ;;  %1496 = vst [vmem:[%s2730_s3 + $0xa4] sm:$0xf] %v1733_v19  ;;  %v1743_v63 = vpack.c.bf16 %v2002_v60, %v2002_v60 }
 0x1b7   :  { %v911_v0 = vpop.f32.mrf.mxu0  ;;  %v1086_v12 = vpop.f32.mrf.mxu1 }
 0x1b8   :  { %1506 = vst [vmem:[%s2730_s3 + $0xe0] sm:$0xf] %v1743_v63  ;;  %v1738_v30 = vpack.c.bf16 %v911_v0, %v909_v20  ;;  %v1739_v6 = vpack.c.bf16 %v1086_v12, %v1086_v12 }
 0x1b9   :  { %v913_v1 = vpop.f32.mrf.mxu0  ;;  %v2003_v7 = vpop.f32.mrf.mxu1 }
 0x1ba   :  { %1501 = vst [vmem:[%s2730_s3 + $0xc0] sm:$0xff] %v1738_v30  ;;  %1502 = vst [vmem:[%s2730_s3 + $0xc8] sm:$0xf] %v1739_v6  ;;  %v1745_v31 = vpack.c.bf16 %v2003_v7, %v2003_v7 }
 0x1bb   :  { %v915_v51 = vpop.f32.mrf.mxu0  ;;  %v1089_v10 = vpop.f32.mrf.mxu1 }
 0x1bc   :  { %1508 = vst [vmem:[%s2730_s3 + $0xec] sm:$0xf] %v1745_v31  ;;  %v1740_v13 = vpack.c.bf16 %v915_v51, %v913_v1  ;;  %v1741_v54 = vpack.c.bf16 %v1089_v10, %v1089_v10 }
 0x1bd   :  { %v919_v2 = vpop.f32.mrf.mxu0  ;;  %v2006_v39 = vpop.f32.mrf.mxu1 }
 0x1be   :  { %1503 = vst [vmem:[%s2730_s3 + $0xcc] sm:$0xff] %v1740_v13  ;;  %1504 = vst [vmem:[%s2730_s3 + $0xd4] sm:$0xf] %v1741_v54  ;;  %v1751_v40 = vpack.c.bf16 %v2006_v39, %v2006_v39 }
 0x1bf   :  { %v921_v34 = vpop.f32.mrf.mxu0  ;;  %v1102_v55 = vpop.f32.mrf.mxu1 }
 0x1c0   :  { %1514 = vst [vmem:[%s2730_s3 + $0x110] sm:$0xf] %v1751_v40  ;;  %v1742_v46 = vpack.c.bf16 %v921_v34, %v919_v2  ;;  %v1747_v15 = vpack.c.bf16 %v1102_v55, %v1102_v55 }
 0x1c1   :  { %v923_v47 = vpop.f32.mrf.mxu0  ;;  %v2007_v35 = vpop.f32.mrf.mxu1 }
 0x1c2   :  { %1505 = vst [vmem:[%s2730_s3 + $0xd8] sm:$0xff] %v1742_v46  ;;  %1510 = vst [vmem:[%s2730_s3 + $0xf8] sm:$0xf] %v1747_v15  ;;  %v1753_v59 = vpack.c.bf16 %v2007_v35, %v2007_v35 }
 0x1c3   :  { %v925_v16 = vpop.f32.mrf.mxu0  ;;  %v1105_v18 = vpop.f32.mrf.mxu1 }
 0x1c4   :  { %1516 = vst [vmem:[%s2730_s3 + $0x11c] sm:$0xf] %v1753_v59  ;;  %v1744_v23 = vpack.c.bf16 %v925_v16, %v923_v47  ;;  %v1749_v17 = vpack.c.bf16 %v1105_v18, %v1105_v18 }
 0x1c5   :  { %v929_v24 = vpop.f32.mrf.mxu0  ;;  %v2010_v25 = vpop.f32.mrf.mxu1 }
 0x1c6   :  { %1507 = vst [vmem:[%s2730_s3 + $0xe4] sm:$0xff] %v1744_v23  ;;  %1512 = vst [vmem:[%s2730_s3 + $0x104] sm:$0xf] %v1749_v17  ;;  %v1759_v3 = vpack.c.bf16 %v2010_v25, %v2010_v25 }
 0x1c7   :  { %v931_v28 = vpop.f32.mrf.mxu0  ;;  %v1118_v36 = vpop.f32.mrf.mxu1 }
 0x1c8   :  { %1522 = vst [vmem:[%s2730_s3 + $0x140] sm:$0xf] %v1759_v3  ;;  %v1746_v14 = vpack.c.bf16 %v931_v28, %v929_v24  ;;  %v1755_v57 = vpack.c.bf16 %v1118_v36, %v1118_v36 }
 0x1c9   :  { %v933_v29 = vpop.f32.mrf.mxu0  ;;  %v2011_v4 = vpop.f32.mrf.mxu1 }
 0x1ca   :  { %1509 = vst [vmem:[%s2730_s3 + $0xf0] sm:$0xff] %v1746_v14  ;;  %1518 = vst [vmem:[%s2730_s3 + $0x128] sm:$0xf] %v1755_v57  ;;  %v1761_v37 = vpack.c.bf16 %v2011_v4, %v2011_v4 }
 0x1cb   :  { %v935_v41 = vpop.f32.mrf.mxu0  ;;  %v1121_v61 = vpop.f32.mrf.mxu1 }
 0x1cc   :  { %1524 = vst [vmem:[%s2730_s3 + $0x14c] sm:$0xf] %v1761_v37  ;;  %v1748_v21 = vpack.c.bf16 %v935_v41, %v933_v29  ;;  %v1757_v62 = vpack.c.bf16 %v1121_v61, %v1121_v61 }
 0x1cd   :  { %v939_v38 = vpop.f32.mrf.mxu0  ;;  %v2014_v42 = vpop.f32.mrf.mxu1 }
 0x1ce   :  { %1511 = vst [vmem:[%s2730_s3 + $0xfc] sm:$0xff] %v1748_v21  ;;  %1520 = vst [vmem:[%s2730_s3 + $0x134] sm:$0xf] %v1757_v62  ;;  %v1767_v43 = vpack.c.bf16 %v2014_v42, %v2014_v42 }
 0x1cf   :  { %v941_v5 = vpop.f32.mrf.mxu0  ;;  %v1134_v22 = vpop.f32.mrf.mxu1 }
 0x1d0   :  { %1530 = vst [vmem:[%s2730_s3 + $0x170] sm:$0xf] %v1767_v43  ;;  %v1750_v44 = vpack.c.bf16 %v941_v5, %v939_v38  ;;  %v1763_v45 = vpack.c.bf16 %v1134_v22, %v1134_v22 }
 0x1d1   :  { %v943_v50 = vpop.f32.mrf.mxu0  ;;  %v2015_v52 = vpop.f32.mrf.mxu1 }
 0x1d2   :  { %1513 = vst [vmem:[%s2730_s3 + $0x108] sm:$0xff] %v1750_v44  ;;  %1526 = vst [vmem:[%s2730_s3 + $0x158] sm:$0xf] %v1763_v45  ;;  %v1769_v8 = vpack.c.bf16 %v2015_v52, %v2015_v52 }
 0x1d3   :  { %v945_v53 = vpop.f32.mrf.mxu0  ;;  %v1137_v56 = vpop.f32.mrf.mxu1 }
 0x1d4   :  { %1532 = vst [vmem:[%s2730_s3 + $0x17c] sm:$0xf] %v1769_v8  ;;  %v1752_v26 = vpack.c.bf16 %v945_v53, %v943_v50  ;;  %v1765_v9 = vpack.c.bf16 %v1137_v56, %v1137_v56 }
 0x1d6   :  { %1515 = vst [vmem:[%s2730_s3 + $0x114] sm:$0xff] %v1752_v26  ;;  %1528 = vst [vmem:[%s2730_s3 + $0x164] sm:$0xf] %v1765_v9 }

// kernel: mt5_encoder_forward.10
= control target key start
LH: loop header
LB: loop body
LE: loop exit
PB: predicated region body
PF: predicated region fallthrough
CT: control target
= control target key end

     0   :  { %s4127_s18 = smov 0   ;;  %s4129_s19 = smov 0   ;;  %s5577_s0 = inlined_call_operand.vmem [shape: bf16[256,384], index: 0, kind: input, shape index: {}, may-alias: {0,1,2}]   ;;  %s5578_s1 = inlined_call_operand.vmem [shape: bf16[256,384], index: 1, kind: input, shape index: {}, may-alias: {0,1,2}]   ;;  %s5579_s2 = inlined_call_operand.vmem [shape: bf16[256,384], index: 2, kind: input, shape index: {}, may-alias: {0,1,2}]   ;;  %s5580_s3 = inlined_call_operand.vmem [shape: bf16[2,128,128], index: 3, kind: input, shape index: {}]   ;;  %s5581_s4 = inlined_call_operand.vmem [shape: bf16[2,1,128], index: 4, kind: input, shape index: {}]   ;;  %s5582_s5 = inlined_call_operand.vmem [shape: bf16[256,128], index: 5, kind: output, shape index: {}]  }
   0x1   :  { %s4131_s20 = smov 0   ;;  %s4133_s21 = smov 0  }
   0x2   :  { %s4135_s22 = smov 0  }
   0x3 LB: > { %s41_s23 = sadd.s32 1, %s4087_s21  ;;  %p59_p1 = scmp.ne.s32.totalorder %s4079_s19, %s4075_s18  ;;  %s4091_s22 = sphi %s4135_s22, %s15_s22   ;;  %s4087_s21 = sphi %s4133_s21, %s5602_s21   ;;  %s4083_s20 = sphi %s4131_s20, %s5601_s20   ;;  %s4079_s19 = sphi %s4129_s19, %s5600_s19   ;;  %s4075_s18 = sphi %s4127_s18, %s5599_s18  }
   0x4   : > { %p43_p0 = scmp.ge.s32.totalorder %s41_s23, 2  ;;  %p60_p2 = scmp.eq.s32.totalorder %s4091_s22, 0 }
   0x5   : > { %s52_s26 = sadd.s32 1, %s4079_s19  ;;  %p3326_p5 = scmp.ge.s32.totalorder %s4091_s22, 2 }
   0x6   : > { %s5604_s23 = smov (%p43_p0, %s41_s23), 0  ;;  %p4158_p3 = por %p60_p2, %p59_p1 }
   0x7   : > { %s47_s25 = ssub.s32 %s4087_s21, %s5604_s23  ;;  %255 = sbr.rel (%p3326_p5) target bundleno = 57 (0x39), region = 20 }
   0x8   : > { %p50_p4 = scmp.eq.s32.totalorder %s47_s25, 0 }
   0xa   : > { %s4166_s27 = scalar_select %p50_p4, %s4079_s19, %s52_s26  }
   0xc   : > { %258 = sbr.rel (!%p4158_p3) target bundleno = 27 (0x1b), region = 24  ;;  %s260_s28 = sand.u32 (%p4158_p3), 1, %s4079_s19  }
   0xd   : > { %s3782_s29 = smul.u32 (%p4158_p3), 192, %s4087_s21  ;;  %s3327_s30 = sshll.u32 (%p4158_p3), %s260_s28, 6 }
   0xe   : > { %s262_s9 = scalar_lea.vmem (%p4158_p3), [#allocation5], %s3327_s30 }
   0xf   : > { %s4176_s8 = scalar_lea.vmem (%p4158_p3), %s5577_s0, %s3782_s29 }
  0x10   : > { %v285_v0 = vld [vmem:[%s4176_s8] sm:$0xf] (%p4158_p3)  ;;  %v287_v1 = vld [vmem:[%s4176_s8 + $0xc] sm:$0xf] (%p4158_p3)  ;;  %v289_v2 = vld [vmem:[%s4176_s8 + $0x18] sm:$0xf] (%p4158_p3) }
  0x11   : > { %286 = vst [vmem:[%s262_s9] sm:$0xf] %v285_v0  ;;  %288 = vst [vmem:[%s262_s9 + $0x4] sm:$0xf] %v287_v1  ;;  %v291_v3 = vld [vmem:[%s4176_s8 + $0x24] sm:$0xf] }
  0x12   : > { %290 = vst [vmem:[%s262_s9 + $0x8] sm:$0xf] %v289_v2  ;;  %v293_v4 = vld [vmem:[%s4176_s8 + $0x30] sm:$0xf]  ;;  %v295_v5 = vld [vmem:[%s4176_s8 + $0x3c] sm:$0xf] }
  0x13   : > { %292 = vst [vmem:[%s262_s9 + $0xc] sm:$0xf] %v291_v3  ;;  %294 = vst [vmem:[%s262_s9 + $0x10] sm:$0xf] %v293_v4  ;;  %v297_v6 = vld [vmem:[%s4176_s8 + $0x48] sm:$0xf] }
  0x14   : > { %296 = vst [vmem:[%s262_s9 + $0x14] sm:$0xf] %v295_v5  ;;  %v299_v7 = vld [vmem:[%s4176_s8 + $0x54] sm:$0xf]  ;;  %v301_v8 = vld [vmem:[%s4176_s8 + $0x60] sm:$0xf] }
  0x15   : > { %298 = vst [vmem:[%s262_s9 + $0x18] sm:$0xf] %v297_v6  ;;  %300 = vst [vmem:[%s262_s9 + $0x1c] sm:$0xf] %v299_v7  ;;  %v303_v9 = vld [vmem:[%s4176_s8 + $0x6c] sm:$0xf] }
  0x16   : > { %302 = vst [vmem:[%s262_s9 + $0x20] sm:$0xf] %v301_v8  ;;  %v305_v10 = vld [vmem:[%s4176_s8 + $0x78] sm:$0xf]  ;;  %v307_v11 = vld [vmem:[%s4176_s8 + $0x84] sm:$0xf] }
  0x17   : > { %304 = vst [vmem:[%s262_s9 + $0x24] sm:$0xf] %v303_v9  ;;  %306 = vst [vmem:[%s262_s9 + $0x28] sm:$0xf] %v305_v10  ;;  %v309_v12 = vld [vmem:[%s4176_s8 + $0x90] sm:$0xf] }
  0x18   : > { %308 = vst [vmem:[%s262_s9 + $0x2c] sm:$0xf] %v307_v11  ;;  %v311_v13 = vld [vmem:[%s4176_s8 + $0x9c] sm:$0xf]  ;;  %v313_v14 = vld [vmem:[%s4176_s8 + $0xa8] sm:$0xf] }
  0x19   : > { %310 = vst [vmem:[%s262_s9 + $0x30] sm:$0xf] %v309_v12  ;;  %312 = vst [vmem:[%s262_s9 + $0x34] sm:$0xf] %v311_v13  ;;  %v315_v15 = vld [vmem:[%s4176_s8 + $0xb4] sm:$0xf] }
  0x1a   : > { %314 = vst [vmem:[%s262_s9 + $0x38] sm:$0xf] %v313_v14  ;;  %316 = vst [vmem:[%s262_s9 + $0x3c] sm:$0xf] %v315_v15 }
  0x1b PF: > { %372 = sbr.rel (!%p4158_p3) target bundleno = 42 (0x2a), region = 65  ;;  %s374_s10 = sand.u32 (%p4158_p3), 1, %s4079_s19  }
  0x1c   : > { %s3332_s11 = smul.u32 (%p4158_p3), 192, %s4087_s21  ;;  %s3331_s12 = sshll.u32 (%p4158_p3), %s374_s10, 6 }
  0x1d   : > { %s376_s16 = scalar_lea.vmem (%p4158_p3), [#allocation6], %s3331_s12 }
  0x1e   : > { %s4201_s15 = scalar_lea.vmem (%p4158_p3), %s5578_s1, %s3332_s11 }
  0x1f   : > { %v3333_v16 = vld [vmem:[%s4201_s15 + $0x4] sm:$0xf] (%p4158_p3)  ;;  %v3334_v17 = vld [vmem:[%s4201_s15 + $0x10] sm:$0xf] (%p4158_p3)  ;;  %v3335_v18 = vld [vmem:[%s4201_s15 + $0x1c] sm:$0xf] (%p4158_p3) }
  0x20   : > { %401 = vst [vmem:[%s376_s16] sm:$0xf] %v3333_v16  ;;  %403 = vst [vmem:[%s376_s16 + $0x4] sm:$0xf] %v3334_v17  ;;  %v3336_v19 = vld [vmem:[%s4201_s15 + $0x28] sm:$0xf] }
  0x21   : > { %405 = vst [vmem:[%s376_s16 + $0x8] sm:$0xf] %v3335_v18  ;;  %v3337_v20 = vld [vmem:[%s4201_s15 + $0x34] sm:$0xf]  ;;  %v3338_v21 = vld [vmem:[%s4201_s15 + $0x40] sm:$0xf] }
  0x22   : > { %407 = vst [vmem:[%s376_s16 + $0xc] sm:$0xf] %v3336_v19  ;;  %409 = vst [vmem:[%s376_s16 + $0x10] sm:$0xf] %v3337_v20  ;;  %v3339_v22 = vld [vmem:[%s4201_s15 + $0x4c] sm:$0xf] }
  0x23   : > { %411 = vst [vmem:[%s376_s16 + $0x14] sm:$0xf] %v3338_v21  ;;  %v3340_v23 = vld [vmem:[%s4201_s15 + $0x58] sm:$0xf]  ;;  %v3341_v24 = vld [vmem:[%s4201_s15 + $0x64] sm:$0xf] }
  0x24   : > { %413 = vst [vmem:[%s376_s16 + $0x18] sm:$0xf] %v3339_v22  ;;  %415 = vst [vmem:[%s376_s16 + $0x1c] sm:$0xf] %v3340_v23  ;;  %v3342_v25 = vld [vmem:[%s4201_s15 + $0x70] sm:$0xf] }
  0x25   : > { %417 = vst [vmem:[%s376_s16 + $0x20] sm:$0xf] %v3341_v24  ;;  %v3343_v26 = vld [vmem:[%s4201_s15 + $0x7c] sm:$0xf]  ;;  %v3344_v27 = vld [vmem:[%s4201_s15 + $0x88] sm:$0xf] }
  0x26   : > { %419 = vst [vmem:[%s376_s16 + $0x24] sm:$0xf] %v3342_v25  ;;  %421 = vst [vmem:[%s376_s16 + $0x28] sm:$0xf] %v3343_v26  ;;  %v3345_v28 = vld [vmem:[%s4201_s15 + $0x94] sm:$0xf] }
  0x27   : > { %423 = vst [vmem:[%s376_s16 + $0x2c] sm:$0xf] %v3344_v27  ;;  %v3346_v29 = vld [vmem:[%s4201_s15 + $0xa0] sm:$0xf]  ;;  %v3347_v30 = vld [vmem:[%s4201_s15 + $0xac] sm:$0xf] }
  0x28   : > { %425 = vst [vmem:[%s376_s16 + $0x30] sm:$0xf] %v3345_v28  ;;  %427 = vst [vmem:[%s376_s16 + $0x34] sm:$0xf] %v3346_v29  ;;  %v3348_v31 = vld [vmem:[%s4201_s15 + $0xb8] sm:$0xf] }
  0x29   : > { %429 = vst [vmem:[%s376_s16 + $0x38] sm:$0xf] %v3347_v30  ;;  %431 = vst [vmem:[%s376_s16 + $0x3c] sm:$0xf] %v3348_v31 }
  0x2a PF: > { %487 = sbr.rel (!%p4158_p3) target bundleno = 57 (0x39), region = 106  ;;  %s489_s17 = sand.u32 (%p4158_p3), 1, %s4079_s19  }
  0x2b   : > { %s3350_s25 = smul.u32 (%p4158_p3), 192, %s4087_s21  ;;  %s3349_s26 = sshll.u32 (%p4158_p3), %s489_s17, 6 }
  0x2c   : > { %s491_s24 = scalar_lea.vmem (%p4158_p3), [#allocation7], %s3349_s26 }
  0x2d   : > { %s4226_s30 = scalar_lea.vmem (%p4158_p3), %s5579_s2, %s3350_s25 }
  0x2e   : > { %v3351_v32 = vld [vmem:[%s4226_s30 + $0x8] sm:$0xf] (%p4158_p3)  ;;  %v3352_v33 = vld [vmem:[%s4226_s30 + $0x14] sm:$0xf] (%p4158_p3)  ;;  %v3353_v34 = vld [vmem:[%s4226_s30 + $0x20] sm:$0xf] (%p4158_p3) }
  0x2f   : > { %516 = vst [vmem:[%s491_s24] sm:$0xf] %v3351_v32  ;;  %518 = vst [vmem:[%s491_s24 + $0x4] sm:$0xf] %v3352_v33  ;;  %v3354_v35 = vld [vmem:[%s4226_s30 + $0x2c] sm:$0xf] }
  0x30   : > { %520 = vst [vmem:[%s491_s24 + $0x8] sm:$0xf] %v3353_v34  ;;  %v3355_v36 = vld [vmem:[%s4226_s30 + $0x38] sm:$0xf]  ;;  %v3356_v37 = vld [vmem:[%s4226_s30 + $0x44] sm:$0xf] }
  0x31   : > { %522 = vst [vmem:[%s491_s24 + $0xc] sm:$0xf] %v3354_v35  ;;  %524 = vst [vmem:[%s491_s24 + $0x10] sm:$0xf] %v3355_v36  ;;  %v3357_v38 = vld [vmem:[%s4226_s30 + $0x50] sm:$0xf] }
  0x32   : > { %526 = vst [vmem:[%s491_s24 + $0x14] sm:$0xf] %v3356_v37  ;;  %v3358_v39 = vld [vmem:[%s4226_s30 + $0x5c] sm:$0xf]  ;;  %v3359_v40 = vld [vmem:[%s4226_s30 + $0x68] sm:$0xf] }
  0x33   : > { %528 = vst [vmem:[%s491_s24 + $0x18] sm:$0xf] %v3357_v38  ;;  %530 = vst [vmem:[%s491_s24 + $0x1c] sm:$0xf] %v3358_v39  ;;  %v3360_v41 = vld [vmem:[%s4226_s30 + $0x74] sm:$0xf] }
  0x34   : > { %532 = vst [vmem:[%s491_s24 + $0x20] sm:$0xf] %v3359_v40  ;;  %v3361_v42 = vld [vmem:[%s4226_s30 + $0x80] sm:$0xf]  ;;  %v3362_v43 = vld [vmem:[%s4226_s30 + $0x8c] sm:$0xf] }
  0x35   : > { %534 = vst [vmem:[%s491_s24 + $0x24] sm:$0xf] %v3360_v41  ;;  %536 = vst [vmem:[%s491_s24 + $0x28] sm:$0xf] %v3361_v42  ;;  %v3363_v44 = vld [vmem:[%s4226_s30 + $0x98] sm:$0xf] }
  0x36   : > { %538 = vst [vmem:[%s491_s24 + $0x2c] sm:$0xf] %v3362_v43  ;;  %v3364_v45 = vld [vmem:[%s4226_s30 + $0xa4] sm:$0xf]  ;;  %v3365_v46 = vld [vmem:[%s4226_s30 + $0xb0] sm:$0xf] }
  0x37   : > { %540 = vst [vmem:[%s491_s24 + $0x30] sm:$0xf] %v3363_v44  ;;  %542 = vst [vmem:[%s491_s24 + $0x34] sm:$0xf] %v3364_v45  ;;  %v3366_v47 = vld [vmem:[%s4226_s30 + $0xbc] sm:$0xf] }
  0x38   : > { %544 = vst [vmem:[%s491_s24 + $0x38] sm:$0xf] %v3365_v46  ;;  %546 = vst [vmem:[%s491_s24 + $0x3c] sm:$0xf] %v3366_v47 }
  0x39 PF: > { %p3367_p6 = scmp.ge.s32.totalorder %s4091_s22, 1  ;;  %p610_p7 = scmp.lt.s32.totalorder %s4091_s22, 3 }
  0x3b   : > { %p611_p8 = pnand %p3367_p6, %p610_p7 }
  0x3d   : > { %614 = sbr.rel (%p611_p8) target bundleno = 1671 (0x687), region = 151 }
  0x42   : > { %s617_s6 = sand.u32 1, %s4075_s18   ;;  %vm799_vm0 = vcmask 523264   ;;  %vm734_vm1 = vcmask 7168   ;;  %v4093_v8 = vmov -inf   ;;  %p712_p9 = scmp.lt.s32.totalorder %s4083_s20, 1  ;;  %v1140_v9 = vlaneseq  ;;  %v3559_v12 = vld [vmem:[%s5580_s3 + $0x8] sm:$0xff]  }
  0x43   : > { %s4247_s7 = sshll.u32 %s617_s6, 6  ;;  %737 = vst.msk [vmem:[#allocation2 + $0x10] sm:$0xff] %vm734_vm1, %v4093_v8  ;;  %735 = vst.msk [vmem:[#allocation2] sm:$0xff] %vm734_vm1, %v4093_v8  ;;  %v3496_v15 = vld [vmem:[%s5580_s3] sm:$0xff]   ;;  %v3501_v16 = vunpack.c.l.bf16 %v3559_v12  ;;  %v3502_v21 = vunpack.c.h.bf16 %v3559_v12  ;;  %v3561_v23 = vld [vmem:[%s5580_s3 + $0x18] sm:$0xff]   ;;  %s3371_s10 = sshll.u32 %s4083_s20, 4 }
  0x44   : > { %s4250_s8 = scalar_lea.vmem [#allocation6], %s4247_s7  ;;  %s4270_s18 = scalar_lea.vmem [#allocation5], %s4247_s7  ;;  %736 = vst.msk [vmem:[#allocation2 + $0x8] sm:$0xff] %vm734_vm1, %v4093_v8  ;;  %738 = vst.msk [vmem:[#allocation2 + $0x18] sm:$0xff] %vm734_vm1, %v4093_v8  ;;  %v1141_v10 = vshrl.u32 %v1140_v9, 7  ;;  %v3497_v17 = vunpack.c.l.bf16 %v3496_v15  ;;  %v3498_v26 = vunpack.c.h.bf16 %v3496_v15  ;;  %v3560_v28 = vld [vmem:[%s5580_s3 + $0x10] sm:$0xff]   ;;  %v3509_v31 = vunpack.c.l.bf16 %v3561_v23 }
  0x45   : > { %v4253_v48 = vld [vmem:[%s4250_s8 + $0x38] sm:$0xff]   ;;  %v4256_v49 = vld [vmem:[%s4250_s8 + $0x30] sm:$0xff]   ;;  %v4265_v51 = vld [vmem:[%s4250_s8 + $0x28] sm:$0xff]   ;;  %739 = vst.msk [vmem:[#allocation2 + $0x20] sm:$0xff] %vm734_vm1, %v4093_v8  ;;  %s713_s9 = scalar_select %p712_p9, %s4083_s20, 1  ;;  %v3505_v35 = vunpack.c.l.bf16 %v3560_v28  ;;  %v3510_v39 = vunpack.c.h.bf16 %v3561_v23  ;;  %v3506_v43 = vunpack.c.h.bf16 %v3560_v28  ;;  %vm2875_vm2 = vcmask 519168  }
  0x46   : > { %3766 = vmatprep.subr.msk.bf16.mxu0 %vm799_vm0, %v4253_v48  ;;  %v1041_v50 = vsel %vm799_vm0, %v4253_v48, 0  ;;  %v1038_v52 = vsel %vm799_vm0, %v4256_v49, 0  ;;  %v4273_v53 = vld [vmem:[%s4270_s18] sm:$0xff]   ;;  %v1035_v54 = vsel %vm799_vm0, %v4265_v51, 0  ;;  %v4289_v57 = vld [vmem:[%s4250_s8 + $0x18] sm:$0xff]   ;;  %v4296_v59 = vld [vmem:[%s4250_s8 + $0x10] sm:$0xff]  }
  0x47   : > { %3639 = vmatpush3.bf16.xpose.msra.mxu0 %v1041_v50  ;;  %3654 = vmatprep.mubr.msk.bf16.mxu0 %vm799_vm0, %v4273_v53  ;;  %v4282_v55 = vld [vmem:[%s4250_s8 + $0x20] sm:$0xff]   ;;  %v1029_v58 = vsel %vm799_vm0, %v4289_v57, 0  ;;  %v1026_v60 = vsel %vm799_vm0, %v4296_v59, 0  ;;  %v4303_v61 = vld [vmem:[%s4250_s8 + $0x8] sm:$0xff]   ;;  %v4320_v2 = vld [vmem:[%s4270_s18 + $0x10] sm:$0xff]   ;;  %740 = vst.msk [vmem:[#allocation2 + $0x28] sm:$0xff] %vm734_vm1, %v4093_v8  ;;  %s717_s12 = scalar_lea.vmem %s5581_s4, %s713_s9 }
  0x48   : > { %3767 = vmatprep.subr.msk.bf16.mxu0 %vm799_vm0, %v4256_v49  ;;  %v1032_v56 = vsel %vm799_vm0, %v4282_v55, 0  ;;  %v1023_v62 = vsel %vm799_vm0, %v4303_v61, 0  ;;  %v4310_v63 = vld [vmem:[%s4250_s8] sm:$0xff]   ;;  %v4317_v1 = vld [vmem:[%s4270_s18 + $0x8] sm:$0xff]   ;;  %v4327_v3 = vld [vmem:[%s4270_s18 + $0x18] sm:$0xff]   ;;  %741 = vst.msk [vmem:[#allocation2 + $0x30] sm:$0xff] %vm734_vm1, %v4093_v8 }
  0x49   : > { %v1020_v0 = vsel %vm799_vm0, %v4310_v63, 0  ;;  %v4330_v4 = vld [vmem:[%s4270_s18 + $0x20] sm:$0xff]   ;;  %v4337_v5 = vld [vmem:[%s4270_s18 + $0x28] sm:$0xff]   ;;  %v4340_v6 = vld [vmem:[%s4270_s18 + $0x30] sm:$0xff]   ;;  %742 = vst.msk [vmem:[#allocation2 + $0x38] sm:$0xff] %vm734_vm1, %v4093_v8  ;;  %v1142_v14 = vsub.s32 0, %v1141_v10 }
  0x4a   : > { %v4347_v7 = vld [vmem:[%s4270_s18 + $0x38] sm:$0xff]   ;;  %743 = vst.msk [vmem:[#allocation2 + $0x40] sm:$0xff] %vm734_vm1, %v4093_v8  ;;  %744 = vst.msk [vmem:[#allocation2 + $0x48] sm:$0xff] %vm734_vm1, %v4093_v8  ;;  %v880_v11 = vld [vmem:[%s717_s12] sm:$0x1]  ;;  %s4625_s11 = scalar_lea.vmem [#allocation7], %s4247_s7 }
  0x4b   : > { %745 = vst.msk [vmem:[#allocation2 + $0x50] sm:$0xff] %vm734_vm1, %v4093_v8  ;;  %746 = vst.msk [vmem:[#allocation2 + $0x58] sm:$0xff] %vm734_vm1, %v4093_v8  ;;  %v881_v13 = vunpack.c.l.bf16 %v880_v11  ;;  %v3563_v41 = vld [vmem:[%s5580_s3 + $0x28] sm:$0xff]   ;;  %v3562_v45 = vld [vmem:[%s5580_s3 + $0x20] sm:$0xff]   ;;  %s4096_s7 = smov 64   ;;  %p720_p10 = scmp.lt.s32.totalorder %s3371_s10, 31 }
  0x4c   : > { %747 = vst.msk [vmem:[#allocation2 + $0x60] sm:$0xff] %vm734_vm1, %v4093_v8  ;;  %748 = vst.msk [vmem:[#allocation2 + $0x68] sm:$0xff] %vm734_vm1, %v4093_v8  ;;  %v3517_v50 = vunpack.c.l.bf16 %v3563_v41  ;;  %v3518_v9 = vunpack.c.h.bf16 %v3563_v41  ;;  %vm3132_vm3 = vcmask 1043968  }
  0x4d   : > { %749 = vst.msk [vmem:[#allocation2 + $0x70] sm:$0xff] %vm734_vm1, %v4093_v8  ;;  %750 = vst.msk [vmem:[#allocation2 + $0x78] sm:$0xff] %vm734_vm1, %v4093_v8  ;;  %v4394_v18 = vrot.slane %v881_v13, %v1142_v14  ;;  %v3514_v13 = vunpack.c.h.bf16 %v3562_v45  ;;  %s5606_s10 = smov (!%p720_p10, %s3371_s10), 31 }
  0x4e   : > { %751 = vst.msk [vmem:[#allocation2 + $0x80] sm:$0xff] %vm734_vm1, %v4093_v8  ;;  %752 = vst.msk [vmem:[#allocation2 + $0x88] sm:$0xff] %vm734_vm1, %v4093_v8 }
  0x4f   : > { %3641 = vmatpush3.bf16.xpose.msra.mxu0 %v1038_v52  ;;  %753 = vst.msk [vmem:[#allocation2 + $0x90] sm:$0xff] %vm734_vm1, %v4093_v8  ;;  %754 = vst.msk [vmem:[#allocation2 + $0x98] sm:$0xff] %vm734_vm1, %v4093_v8 }
  0x50   : > { %3768 = vmatprep.subr.msk.bf16.mxu0 %vm799_vm0, %v4265_v51  ;;  %755 = vst.msk [vmem:[#allocation2 + $0xa0] sm:$0xff] %vm734_vm1, %v4093_v8  ;;  %756 = vst.msk [vmem:[#allocation2 + $0xa8] sm:$0xff] %vm734_vm1, %v4093_v8 }
  0x51   : > { %757 = vst.msk [vmem:[#allocation2 + $0xb0] sm:$0xff] %vm734_vm1, %v4093_v8  ;;  %758 = vst.msk [vmem:[#allocation2 + $0xb8] sm:$0xff] %vm734_vm1, %v4093_v8 }
  0x52   : > { %759 = vst.msk [vmem:[#allocation2 + $0xc0] sm:$0xff] %vm734_vm1, %v4093_v8  ;;  %760 = vst.msk [vmem:[#allocation2 + $0xc8] sm:$0xff] %vm734_vm1, %v4093_v8 }
  0x53   : > { %761 = vst.msk [vmem:[#allocation2 + $0xd0] sm:$0xff] %vm734_vm1, %v4093_v8  ;;  %762 = vst.msk [vmem:[#allocation2 + $0xd8] sm:$0xff] %vm734_vm1, %v4093_v8 }
  0x54   : > { %763 = vst.msk [vmem:[#allocation2 + $0xe0] sm:$0xff] %vm734_vm1, %v4093_v8  ;;  %764 = vst.msk [vmem:[#allocation2 + $0xe8] sm:$0xff] %vm734_vm1, %v4093_v8 }
  0x55   : > { %765 = vst.msk [vmem:[#allocation2 + $0xf0] sm:$0xff] %vm734_vm1, %v4093_v8  ;;  %766 = vst.msk [vmem:[#allocation2 + $0xf8] sm:$0xff] %vm734_vm1, %v4093_v8 }
  0x56   : > { %5586 = vst [vmem:[#allocation8_spill] sm:$0xff] %v4394_v18 }
  0x57   : > { %3643 = vmatpush3.bf16.xpose.msra.mxu0 %v1035_v54  ;;  %v3513_v54 = vunpack.c.l.bf16 %v3562_v45 }
  0x58   : > { %3769 = vmatprep.subr.msk.bf16.mxu0 %vm799_vm0, %v4282_v55 }
  0x5f   : > { %3645 = vmatpush3.bf16.xpose.msra.mxu0 %v1032_v56 }
  0x60   : > { %3770 = vmatprep.subr.msk.bf16.mxu0 %vm799_vm0, %v4289_v57 }
  0x67   : > { %3647 = vmatpush3.bf16.xpose.msra.mxu0 %v1029_v58 }
  0x68   : > { %3771 = vmatprep.subr.msk.bf16.mxu0 %vm799_vm0, %v4296_v59 }
  0x6f   : > { %3649 = vmatpush3.bf16.xpose.msra.mxu0 %v1026_v60 }
  0x70   : > { %3772 = vmatprep.subr.msk.bf16.mxu0 %vm799_vm0, %v4303_v61 }
  0x77   : > { %3651 = vmatpush3.bf16.xpose.msra.mxu0 %v1023_v62 }
  0x78   : > { %3773 = vmatprep.subr.msk.bf16.mxu0 %vm799_vm0, %v4310_v63 }
  0x7f   : > { %3653 = vmatpush3.bf16.xpose.msra.mxu0 %v1020_v0  ;;  %v4094_v0 = vmov 0  }
  0x80   : > { %3828 = vset.pattern.permute.xlu1 %v4094_v0  ;;  %3827 = vset.pattern.permute.xlu0 %v4094_v0 }
  0x86   : > { %3655 = vmatmul.mubr.msk.bf16.vlgmr.msra.gmra.mxu0 %vm799_vm0, %v4317_v1 }
  0x87   : > { %3658 = vmatprep.mubr.msk.bf16.mxu0 %vm799_vm0, %v4320_v2 }
  0x8e   : > { %3659 = vmatmul.mubr.msk.bf16.gmra.mxu0 %vm799_vm0, %v4327_v3 }
  0x8f   : > { %3662 = vmatprep.mubr.msk.bf16.mxu0 %vm799_vm0, %v4330_v4 }
  0x96   : > { %3663 = vmatmul.mubr.msk.bf16.gmra.mxu0 %vm799_vm0, %v4337_v5 }
  0x97   : > { %3666 = vmatprep.mubr.msk.bf16.mxu0 %vm799_vm0, %v4340_v6 }
  0x9e   : > { %3667 = vmatmul.mubr.msk.bf16.gmra.mxu0 %vm799_vm0, %v4347_v7 }
 0x146   : > { %v3656_v19 = vpop.f32.mrf.mxu0 }
 0x147   : > { %v1086_v20 = vadd.f32 %v3656_v19, %v3501_v16  ;;  %v4445_v16 = vld [vmem:[%s5580_s3 + $0x38] sm:$0xff]  }
 0x148   : > { %v1077_v22 = vpop.f32.mrf.mxu0  ;;  %v3525_v19 = vunpack.c.l.bf16 %v4445_v16 }
 0x149   : > { %v1078_v24 = vadd.f32 %v3497_v17, %v1077_v22  ;;  %v4400_v25 = vadd.f32 %v4394_v18, %v1086_v20 }
 0x14a   : > { %v3657_v27 = vpop.f32.mrf.mxu0 }
 0x14b   : > { %v1089_v29 = vadd.f32 %v3657_v27, %v3502_v21  ;;  %1180 = vmax.xlane.f32.xlu1 %v4400_v25  ;;  %v4407_v30 = vadd.f32 %v4394_v18, %v1078_v24  ;;  %v4452_v21 = vld [vmem:[%s5580_s3 + $0x30] sm:$0xff]  }
 0x14c   : > { %v1080_v32 = vpop.f32.mrf.mxu0  ;;  %v3521_v24 = vunpack.c.l.bf16 %v4452_v21 }
 0x14d   : > { %v1081_v33 = vadd.f32 %v3498_v26, %v1080_v32  ;;  %1176 = vmax.xlane.f32.xlu0 %v4407_v30  ;;  %v4411_v34 = vadd.f32 %v4394_v18, %v1089_v29  ;;  %v3526_v29 = vunpack.c.h.bf16 %v4445_v16 }
 0x14e   : > { %v3660_v36 = vpop.f32.mrf.mxu0 }
 0x14f   : > { %v1102_v37 = vadd.f32 %v3660_v36, %v3509_v31  ;;  %1182 = vmax.xlane.f32.xlu1 %v4411_v34  ;;  %v4415_v38 = vadd.f32 %v4394_v18, %v1081_v33 }
 0x150   : > { %v1093_v40 = vpop.f32.mrf.mxu0 }
 0x151   : > { %v1094_v42 = vadd.f32 %v3505_v35, %v1093_v40  ;;  %1178 = vmax.xlane.f32.xlu0 %v4415_v38  ;;  %v4422_v44 = vadd.f32 %v4394_v18, %v1102_v37  ;;  %v3522_v35 = vunpack.c.h.bf16 %v4452_v21  ;;  %v3851_v21 = vld [vmem:[%s4625_s11 + $0x8] sm:$0xff]  }
 0x152   : > { %v3661_v46 = vpop.f32.mrf.mxu0 }
 0x153   : > { %v1105_v47 = vadd.f32 %v3661_v46, %v3510_v39  ;;  %v4432_v60 = vadd.f32 %v4394_v18, %v1094_v42  ;;  %v4095_v39 = vmov 0.0  }
 0x154   : > { %v1096_v52 = vpop.f32.mrf.mxu0  ;;  %800 = vst.msk [vmem:[#allocation4] sm:$0xff] %vm799_vm0, %v4095_v39  ;;  %801 = vst.msk [vmem:[#allocation4 + $0x8] sm:$0xff] %vm799_vm0, %v4095_v39 }
 0x155   : > { %v1097_v56 = vadd.f32 %v3506_v43, %v1096_v52  ;;  %1188 = vmax.xlane.f32.xlu0 %v4422_v44  ;;  %v4429_v58 = vadd.f32 %v4394_v18, %v1105_v47  ;;  %767 = vst.msk [vmem:[#allocation3] sm:$0xff] %vm734_vm1, %v4095_v39  ;;  %768 = vst.msk [vmem:[#allocation3 + $0x8] sm:$0xff] %vm734_vm1, %v4095_v39  ;;  %v3845_v47 = vld [vmem:[%s4625_s11 + $0x38] sm:$0xff]   ;;  %v3847_v52 = vld [vmem:[%s4625_s11 + $0x28] sm:$0xff]  }
 0x156   : > { %v3664_v62 = vpop.f32.mrf.mxu0  ;;  %769 = vst.msk [vmem:[#allocation3 + $0x10] sm:$0xff] %vm734_vm1, %v4095_v39  ;;  %770 = vst.msk [vmem:[#allocation3 + $0x18] sm:$0xff] %vm734_vm1, %v4095_v39  ;;  %3670 = vmatprep.subr.bf16.mxu1 %v3845_v47 }
 0x157   : > { %v1118_v8 = vadd.f32 %v3664_v62, %v3517_v50  ;;  %1190 = vmax.xlane.f32.xlu1 %v4429_v58  ;;  %v4436_v10 = vadd.f32 %v4394_v18, %v1097_v56  ;;  %771 = vst.msk [vmem:[#allocation3 + $0x20] sm:$0xff] %vm734_vm1, %v4095_v39  ;;  %772 = vst.msk [vmem:[#allocation3 + $0x28] sm:$0xff] %vm734_vm1, %v4095_v39  ;;  %v3846_v50 = vld [vmem:[%s4625_s11 + $0x30] sm:$0xff]   ;;  %3671 = vmatpush3.bf16.msra.mxu1 %v3845_v47  ;;  %v3849_v56 = vld [vmem:[%s4625_s11 + $0x18] sm:$0xff]  }
 0x158   : > { %v1109_v11 = vpop.f32.mrf.mxu0  ;;  %773 = vst.msk [vmem:[#allocation3 + $0x30] sm:$0xff] %vm734_vm1, %v4095_v39  ;;  %774 = vst.msk [vmem:[#allocation3 + $0x38] sm:$0xff] %vm734_vm1, %v4095_v39  ;;  %3672 = vmatprep.subr.bf16.mxu1 %v3846_v50  ;;  %v4632_v62 = vld [vmem:[#allocation2 + $0x10] sm:$0xff] }
 0x159   : > { %v1110_v12 = vadd.f32 %v3513_v54, %v1109_v11  ;;  %1184 = vmax.xlane.f32.xlu0 %v4432_v60  ;;  %v4440_v14 = vadd.f32 %v4394_v18, %v1118_v8  ;;  %775 = vst.msk [vmem:[#allocation3 + $0x40] sm:$0xff] %vm734_vm1, %v4095_v39  ;;  %776 = vst.msk [vmem:[#allocation3 + $0x48] sm:$0xff] %vm734_vm1, %v4095_v39  ;;  %v3848_v54 = vld [vmem:[%s4625_s11 + $0x20] sm:$0xff]   ;;  %v3850_v11 = vld [vmem:[%s4625_s11 + $0x10] sm:$0xff]  }
 0x15a   : > { %v3665_v15 = vpop.f32.mrf.mxu0  ;;  %777 = vst.msk [vmem:[#allocation3 + $0x50] sm:$0xff] %vm734_vm1, %v4095_v39  ;;  %778 = vst.msk [vmem:[#allocation3 + $0x58] sm:$0xff] %vm734_vm1, %v4095_v39  ;;  %v4634_v8 = vld [vmem:[#allocation2] sm:$0xff] }
 0x15b   : > { %v1121_v17 = vadd.f32 %v3665_v15, %v3518_v9  ;;  %1186 = vmax.xlane.f32.xlu1 %v4436_v10  ;;  %v4460_v26 = vadd.f32 %v4394_v18, %v1110_v12  ;;  %779 = vst.msk [vmem:[#allocation3 + $0x60] sm:$0xff] %vm734_vm1, %v4095_v39  ;;  %780 = vst.msk [vmem:[#allocation3 + $0x68] sm:$0xff] %vm734_vm1, %v4095_v39  ;;  %3673 = vmatpush3.bf16.msra.mxu1 %v3846_v50  ;;  %v4691_v50 = vld [vmem:[#allocation2 + $0x50] sm:$0xff] }
 0x15c   : > { %v1112_v20 = vpop.f32.mrf.mxu0  ;;  %781 = vst.msk [vmem:[#allocation3 + $0x70] sm:$0xff] %vm734_vm1, %v4095_v39  ;;  %782 = vst.msk [vmem:[#allocation3 + $0x78] sm:$0xff] %vm734_vm1, %v4095_v39  ;;  %3674 = vmatprep.subr.bf16.mxu1 %v3847_v52 }
 0x15d   : > { %v1113_v22 = vadd.f32 %v3514_v13, %v1112_v20  ;;  %1196 = vmax.xlane.f32.xlu0 %v4440_v14  ;;  %v4456_v23 = vadd.f32 %v4394_v18, %v1121_v17  ;;  %783 = vst.msk [vmem:[#allocation3 + $0x80] sm:$0xff] %vm734_vm1, %v4095_v39  ;;  %784 = vst.msk [vmem:[#allocation3 + $0x88] sm:$0xff] %vm734_vm1, %v4095_v39  ;;  %v4640_v13 = vld [vmem:[#allocation2 + $0x18] sm:$0xff] }
 0x15e   : > { %v3668_v27 = vpop.f32.mrf.mxu0  ;;  %785 = vst.msk [vmem:[#allocation3 + $0x90] sm:$0xff] %vm734_vm1, %v4095_v39  ;;  %786 = vst.msk [vmem:[#allocation3 + $0x98] sm:$0xff] %vm734_vm1, %v4095_v39 }
 0x15f   : > { %v1134_v28 = vadd.f32 %v3668_v27, %v3525_v19  ;;  %1198 = vmax.xlane.f32.xlu1 %v4456_v23  ;;  %v4465_v31 = vadd.f32 %v4394_v18, %v1113_v22  ;;  %787 = vst.msk [vmem:[#allocation3 + $0xa0] sm:$0xff] %vm734_vm1, %v4095_v39  ;;  %788 = vst.msk [vmem:[#allocation3 + $0xa8] sm:$0xff] %vm734_vm1, %v4095_v39  ;;  %3675 = vmatpush3.bf16.msra.mxu1 %v3847_v52  ;;  %v4650_v19 = vld [vmem:[#allocation2 + $0x8] sm:$0xff]  ;;  %v4664_v27 = vld [vmem:[#allocation2 + $0x30] sm:$0xff] }
 0x160   : > { %v1125_v32 = vpop.f32.mrf.mxu0  ;;  %789 = vst.msk [vmem:[#allocation3 + $0xb0] sm:$0xff] %vm734_vm1, %v4095_v39  ;;  %790 = vst.msk [vmem:[#allocation3 + $0xb8] sm:$0xff] %vm734_vm1, %v4095_v39  ;;  %3676 = vmatprep.subr.bf16.mxu1 %v3848_v54 }
 0x161   : > { %v4467_v33 = vadd.f32 %v3521_v24, %v1125_v32  ;;  %1192 = vmax.xlane.f32.xlu0 %v4460_v26  ;;  %v4472_v36 = vadd.f32 %v4394_v18, %v1134_v28  ;;  %791 = vst.msk [vmem:[#allocation3 + $0xc0] sm:$0xff] %vm734_vm1, %v4095_v39  ;;  %792 = vst.msk [vmem:[#allocation3 + $0xc8] sm:$0xff] %vm734_vm1, %v4095_v39  ;;  %v3852_v28 = vld [vmem:[%s4625_s11] sm:$0xff]   ;;  %v4670_v32 = vld [vmem:[#allocation2 + $0x38] sm:$0xff] }
 0x162   : > { %v4474_v37 = vpop.f32.mrf.mxu0  ;;  %793 = vst.msk [vmem:[#allocation3 + $0xd0] sm:$0xff] %vm734_vm1, %v4095_v39  ;;  %794 = vst.msk [vmem:[#allocation3 + $0xd8] sm:$0xff] %vm734_vm1, %v4095_v39 }
 0x163   : > { %795 = vst.msk [vmem:[#allocation3 + $0xe0] sm:$0xff] %vm734_vm1, %v4095_v39  ;;  %796 = vst.msk [vmem:[#allocation3 + $0xe8] sm:$0xff] %vm734_vm1, %v4095_v39  ;;  %v1137_v40 = vadd.f32 %v4474_v37, %v3526_v29  ;;  %1194 = vmax.xlane.f32.xlu1 %v4465_v31  ;;  %v4616_v45 = vadd.f32 %v4394_v18, %v4467_v33  ;;  %3677 = vmatpush3.bf16.msra.mxu1 %v3848_v54  ;;  %v4675_v37 = vld [vmem:[#allocation2 + $0x20] sm:$0xff] }
 0x164   : > { %797 = vst.msk [vmem:[#allocation3 + $0xf0] sm:$0xff] %vm734_vm1, %v4095_v39  ;;  %798 = vst.msk [vmem:[#allocation3 + $0xf8] sm:$0xff] %vm734_vm1, %v4095_v39  ;;  %v1128_v41 = vpop.f32.mrf.mxu0  ;;  %3678 = vmatprep.subr.bf16.mxu1 %v3849_v56 }
 0x165   : > { %802 = vst.msk [vmem:[#allocation4 + $0x10] sm:$0xff] %vm799_vm0, %v4095_v39  ;;  %803 = vst.msk [vmem:[#allocation4 + $0x18] sm:$0xff] %vm799_vm0, %v4095_v39  ;;  %v1129_v42 = vadd.f32 %v3522_v35, %v1128_v41  ;;  %v4611_v43 = vadd.f32 %v4394_v18, %v1137_v40  ;;  %1204 = vmax.xlane.f32.xlu0 %v4472_v36  ;;  %v4683_v41 = vld [vmem:[#allocation2 + $0x28] sm:$0xff] }
 0x166   : > { %804 = vst.msk [vmem:[#allocation4 + $0x20] sm:$0xff] %vm799_vm0, %v4095_v39  ;;  %805 = vst.msk [vmem:[#allocation4 + $0x28] sm:$0xff] %vm799_vm0, %v4095_v39 }
 0x167   : > { %806 = vst.msk [vmem:[#allocation4 + $0x30] sm:$0xff] %vm799_vm0, %v4095_v39  ;;  %807 = vst.msk [vmem:[#allocation4 + $0x38] sm:$0xff] %vm799_vm0, %v4095_v39  ;;  %1206 = vmax.xlane.f32.xlu1 %v4611_v43  ;;  %v4620_v46 = vadd.f32 %v4394_v18, %v1129_v42  ;;  %3679 = vmatpush3.bf16.msra.mxu1 %v3849_v56  ;;  %v4700_v56 = vld [vmem:[#allocation2 + $0x58] sm:$0xff] }
 0x168   : > { %808 = vst.msk [vmem:[#allocation4 + $0x40] sm:$0xff] %vm799_vm0, %v4095_v39  ;;  %809 = vst.msk [vmem:[#allocation4 + $0x48] sm:$0xff] %vm799_vm0, %v4095_v39  ;;  %3680 = vmatprep.subr.bf16.mxu1 %v3850_v11 }
 0x169   : > { %810 = vst.msk [vmem:[#allocation4 + $0x50] sm:$0xff] %vm799_vm0, %v4095_v39  ;;  %811 = vst.msk [vmem:[#allocation4 + $0x58] sm:$0xff] %vm799_vm0, %v4095_v39  ;;  %1200 = vmax.xlane.f32.xlu0 %v4616_v45 }
 0x16a   : > { %812 = vst.msk [vmem:[#allocation4 + $0x60] sm:$0xff] %vm799_vm0, %v4095_v39  ;;  %813 = vst.msk [vmem:[#allocation4 + $0x68] sm:$0xff] %vm799_vm0, %v4095_v39 }
 0x16b   : > { %814 = vst.msk [vmem:[#allocation4 + $0x70] sm:$0xff] %vm799_vm0, %v4095_v39  ;;  %815 = vst.msk [vmem:[#allocation4 + $0x78] sm:$0xff] %vm799_vm0, %v4095_v39  ;;  %1202 = vmax.xlane.f32.xlu1 %v4620_v46  ;;  %3681 = vmatpush3.bf16.msra.mxu1 %v3850_v11 }
 0x16c   : > { %816 = vst.msk [vmem:[#allocation4 + $0x80] sm:$0xff] %vm799_vm0, %v4095_v39  ;;  %817 = vst.msk [vmem:[#allocation4 + $0x88] sm:$0xff] %vm799_vm0, %v4095_v39  ;;  %3682 = vmatprep.subr.bf16.mxu1 %v3851_v21 }
 0x16d   : > { %818 = vst.msk [vmem:[#allocation4 + $0x90] sm:$0xff] %vm799_vm0, %v4095_v39  ;;  %819 = vst.msk [vmem:[#allocation4 + $0x98] sm:$0xff] %vm799_vm0, %v4095_v39 }
 0x16e   : > { %820 = vst.msk [vmem:[#allocation4 + $0xa0] sm:$0xff] %vm799_vm0, %v4095_v39  ;;  %821 = vst.msk [vmem:[#allocation4 + $0xa8] sm:$0xff] %vm799_vm0, %v4095_v39 }
 0x16f   : > { %822 = vst.msk [vmem:[#allocation4 + $0xb0] sm:$0xff] %vm799_vm0, %v4095_v39  ;;  %823 = vst.msk [vmem:[#allocation4 + $0xb8] sm:$0xff] %vm799_vm0, %v4095_v39  ;;  %3683 = vmatpush3.bf16.msra.mxu1 %v3851_v21  ;;  %v4717_v21 = vld [vmem:[#allocation2 + $0x48] sm:$0xff] }
 0x170   : > { %824 = vst.msk [vmem:[#allocation4 + $0xc0] sm:$0xff] %vm799_vm0, %v4095_v39  ;;  %825 = vst.msk [vmem:[#allocation4 + $0xc8] sm:$0xff] %vm799_vm0, %v4095_v39  ;;  %3684 = vmatprep.subr.bf16.mxu1 %v3852_v28 }
 0x171   : > { %826 = vst.msk [vmem:[#allocation4 + $0xd0] sm:$0xff] %vm799_vm0, %v4095_v39  ;;  %827 = vst.msk [vmem:[#allocation4 + $0xd8] sm:$0xff] %vm799_vm0, %v4095_v39 }
 0x172   : > { %828 = vst.msk [vmem:[#allocation4 + $0xe0] sm:$0xff] %vm799_vm0, %v4095_v39  ;;  %829 = vst.msk [vmem:[#allocation4 + $0xe8] sm:$0xff] %vm799_vm0, %v4095_v39 }
 0x173   : > { %830 = vst.msk [vmem:[#allocation4 + $0xf0] sm:$0xff] %vm799_vm0, %v4095_v39  ;;  %831 = vst.msk [vmem:[#allocation4 + $0xf8] sm:$0xff] %vm799_vm0, %v4095_v39  ;;  %3685 = vmatpush3.bf16.msra.mxu1 %v3852_v28 }
 0x1d4   : > { %v1181_v0 = vpop.xlane.xlu1 %1180 }
 0x1d5   : > { %v4637_v9 = vmax.f32 %v4632_v62, %v1181_v0 }
 0x1d6   : > { %v1177_v12 = vpop.xlane.xlu0 %1176 }
 0x1d7   : > { %1796 = vst.msk [vmem:[#allocation2 + $0x10] sm:$0xff] %vm734_vm1, %v4637_v9  ;;  %v4647_v16 = vmax.f32 %v4634_v8, %v1177_v12  ;;  %1284 = vperm.xlu1 %3828, %v4637_v9   ;;  %v4707_v12 = vld [vmem:[#allocation2 + $0x40] sm:$0xff] }
 0x1d8   : > { %v1183_v17 = vpop.xlane.xlu1 %1182 }
 0x1d9   : > { %1794 = vst.msk [vmem:[#allocation2] sm:$0xff] %vm734_vm1, %v4647_v16  ;;  %v4655_v20 = vmax.f32 %v4640_v13, %v1183_v17  ;;  %1274 = vperm.xlu0 %3827, %v4647_v16  }
 0x1da   : > { %v1179_v22 = vpop.xlane.xlu0 %1178 }
 0x1db   : > { %1797 = vst.msk [vmem:[#allocation2 + $0x18] sm:$0xff] %vm734_vm1, %v4655_v20  ;;  %v4662_v24 = vmax.f32 %v4650_v19, %v1179_v22  ;;  %v1227_v15 = vsub.f32 %v4640_v13, %v4655_v20 }
 0x1dd   : > { %1795 = vst.msk [vmem:[#allocation2 + $0x8] sm:$0xff] %vm734_vm1, %v4662_v24  ;;  %1279 = vperm.xlu1 %3828, %v4662_v24  }
 0x1de   : > { %v1189_v29 = vpop.xlane.xlu0 %1188 }
 0x1df   : > { %v4673_v33 = vmax.f32 %v4664_v27, %v1189_v29  ;;  %v4724_v29 = vld [vmem:[#allocation2 + $0x70] sm:$0xff] }
 0x1e0   : > { %v1191_v35 = vpop.xlane.xlu1 %1190 }
 0x1e1   : > { %1800 = vst.msk [vmem:[#allocation2 + $0x30] sm:$0xff] %vm734_vm1, %v4673_v33  ;;  %v4680_v39 = vmax.f32 %v4670_v32, %v1191_v35  ;;  %1289 = vperm.xlu1 %3828, %v4655_v20  }
 0x1e2   : > { %v1185_v40 = vpop.xlane.xlu0 %1184 }
 0x1e3   : > { %1801 = vst.msk [vmem:[#allocation2 + $0x38] sm:$0xff] %vm734_vm1, %v4680_v39  ;;  %v4688_v42 = vmax.f32 %v4675_v37, %v1185_v40  ;;  %1309 = vperm.xlu0 %3827, %v4680_v39  }
 0x1e4   : > { %v1187_v47 = vpop.xlane.xlu1 %1186 }
 0x1e5   : > { %1798 = vst.msk [vmem:[#allocation2 + $0x20] sm:$0xff] %vm734_vm1, %v4688_v42  ;;  %v4696_v52 = vmax.f32 %v4683_v41, %v1187_v47  ;;  %1873 = vrot.lane.b32.xlu1 %v4253_v48, %s4096_s7 }
 0x1e6   : > { %v1197_v54 = vpop.xlane.xlu0 %1196 }
 0x1e7   : > { %1799 = vst.msk [vmem:[#allocation2 + $0x28] sm:$0xff] %vm734_vm1, %v4696_v52  ;;  %v4705_v0 = vmax.f32 %v4691_v50, %v1197_v54 }
 0x1e8   : > { %v1199_v11 = vpop.xlane.xlu1 %1198 }
 0x1e9   : > { %1804 = vst.msk [vmem:[#allocation2 + $0x50] sm:$0xff] %vm734_vm1, %v4705_v0  ;;  %v4712_v17 = vmax.f32 %v4700_v56, %v1199_v11  ;;  %1871 = vrot.lane.b32.xlu1 %v4256_v49, %s4096_s7  ;;  %1324 = vperm.xlu0 %3827, %v4705_v0   ;;  %v4734_v49 = vld [vmem:[#allocation2 + $0x78] sm:$0xff]  ;;  %v4741_v11 = vld [vmem:[#allocation2 + $0x60] sm:$0xff] }
 0x1ea   : > { %v1193_v48 = vpop.xlane.xlu0 %1192 }
 0x1eb   : > { %1805 = vst.msk [vmem:[#allocation2 + $0x58] sm:$0xff] %vm734_vm1, %v4712_v17  ;;  %v4722_v22 = vmax.f32 %v4707_v12, %v1193_v48 }
 0x1ec   : > { %v1195_v28 = vpop.xlane.xlu1 %1194 }
 0x1ed   : > { %1802 = vst.msk [vmem:[#allocation2 + $0x40] sm:$0xff] %vm734_vm1, %v4722_v22  ;;  %v4729_v35 = vmax.f32 %v4717_v21, %v1195_v28  ;;  %1869 = vrot.lane.b32.xlu1 %v4265_v51, %s4096_s7  ;;  %1314 = vperm.xlu0 %3827, %v4722_v22   ;;  %v4753_v28 = vld [vmem:[#allocation2 + $0x68] sm:$0xff]  ;;  %v1246_v51 = vmul.f32 1.442695, %v1227_v15  ;;  %v1235_v15 = vsub.f32 %v4700_v56, %v4712_v17 }
 0x1ee   : > { %v1205_v40 = vpop.xlane.xlu0 %1204 }
 0x1ef   : > { %1803 = vst.msk [vmem:[#allocation2 + $0x48] sm:$0xff] %vm734_vm1, %v4729_v35  ;;  %v4739_v47 = vmax.f32 %v4724_v29, %v1205_v40 }
 0x1f0   : > { %v1207_v54 = vpop.xlane.xlu1 %1206 }
 0x1f1   : > { %v4744_v48 = vmax.f32 %v4734_v49, %v1207_v54  ;;  %1304 = vperm.xlu1 %3828, %v4673_v33   ;;  %1867 = vrot.lane.b32.xlu0 %v4282_v55, %s4096_s7  ;;  %1808 = vst.msk [vmem:[#allocation2 + $0x70] sm:$0xff] %vm734_vm1, %v4739_v47 }
 0x1f2   : > { %v1201_v40 = vpop.xlane.xlu0 %1200 }
 0x1f3   : > { %1809 = vst.msk [vmem:[#allocation2 + $0x78] sm:$0xff] %vm734_vm1, %v4744_v48  ;;  %v4760_v54 = vmax.f32 %v4741_v11, %v1201_v40 }
 0x1f4   : > { %v1203_v18 = vpop.xlane.xlu1 %1202 }
 0x1f5   : > { %v4763_v55 = vmax.f32 %v4753_v28, %v1203_v18  ;;  %1294 = vperm.xlu1 %3828, %v4688_v42   ;;  %1806 = vst.msk [vmem:[#allocation2 + $0x60] sm:$0xff] %vm734_vm1, %v4760_v54  ;;  %v1224_v18 = vsub.f32 %v4634_v8, %v4647_v16  ;;  %v1229_v8 = vsub.f32 %v4683_v41, %v4696_v52 }
 0x1f6   : > { %v1233_v16 = vsub.f32 %v4717_v21, %v4729_v35 }
 0x1f7   : > { %1807 = vst.msk [vmem:[#allocation2 + $0x68] sm:$0xff] %vm734_vm1, %v4763_v55  ;;  %1339 = vperm.xlu0 %3827, %v4763_v55   ;;  %v1240_v40 = vmul.f32 1.442695, %v1224_v18  ;;  %v1250_v13 = vmul.f32 1.442695, %v1229_v8 }
 0x1f9   : > { %1299 = vperm.xlu1 %3828, %v4696_v52   ;;  %3853 = vpow2.f32 %v1240_v40 }
 0x1fa   : > { %3855 = vpow2.f32 %v1246_v51 }
 0x1fb   : > { %1349 = vperm.xlu0 %3827, %v4744_v48  }
 0x1fd   : > { %1329 = vperm.xlu1 %3828, %v4712_v17  }
 0x1ff   : > { %1863 = vrot.lane.b32.xlu0 %v4296_v59, %s4096_s7  ;;  %v1231_v59 = vsub.f32 %v4670_v32, %v4680_v39 }
 0x201   : > { %1319 = vperm.xlu1 %3828, %v4729_v35  }
 0x203   : > { %1859 = vrot.lane.b32.xlu0 %v4310_v63, %s4096_s7  ;;  %v1254_v63 = vmul.f32 1.442695, %v1231_v59 }
 0x205   : > { %1344 = vperm.xlu1 %3828, %v4739_v47   ;;  %3857 = vpow2.f32 %v1254_v63 }
 0x206   : > { %3859 = vpow2.f32 %v1250_v13 }
 0x207   : > { %1845 = vrot.lane.b32.xlu0 %v4317_v1, %s4096_s7  ;;  %v1225_v1 = vsub.f32 %v4650_v19, %v4662_v24  ;;  %v5587_v19 = vsub.f32 %v4632_v62, %v4637_v9 }
 0x209   : > { %1334 = vperm.xlu1 %3828, %v4760_v54   ;;  %v1244_v20 = vmul.f32 1.442695, %v5587_v19 }
 0x20b   : > { %1849 = vrot.lane.b32.xlu0 %v4327_v3, %s4096_s7  ;;  %v1242_v3 = vmul.f32 1.442695, %v1225_v1 }
 0x20d   : > { %1865 = vrot.lane.b32.xlu1 %v4289_v57, %s4096_s7  ;;  %v1262_v57 = vmul.f32 1.442695, %v1235_v15  ;;  %3861 = vpow2.f32 %v1242_v3 }
 0x20f   : > { %1853 = vrot.lane.b32.xlu0 %v4337_v5, %s4096_s7  ;;  %v4813_v5 = vpop.eup %3853  ;;  %3863 = vpow2.f32 %v1262_v57 }
 0x210   : > { %v4823_v24 = vpop.eup %3855  ;;  %3865 = vpow2.f32 %v1244_v20 }
 0x211   : > { %1861 = vrot.lane.b32.xlu1 %v4303_v61, %s4096_s7  ;;  %v1228_v61 = vsub.f32 %v4675_v37, %v4688_v42  ;;  %v1232_v37 = vsub.f32 %v4707_v12, %v4722_v22 }
 0x212   : > { %v4830_v62 = vpop.eup %3857 }
 0x213   : > { %1857 = vrot.lane.b32.xlu0 %v4347_v7, %s4096_s7  ;;  %v1258_v7 = vmul.f32 1.442695, %v1233_v16  ;;  %v1248_v32 = vmul.f32 1.442695, %v1228_v61  ;;  %v1256_v41 = vmul.f32 1.442695, %v1232_v37 }
 0x215   : > { %1843 = vrot.lane.b32.xlu1 %v4273_v53, %s4096_s7  ;;  %v1230_v53 = vsub.f32 %v4664_v27, %v4673_v33  ;;  %3867 = vpow2.f32 %v1258_v7  ;;  %v4837_v27 = vpop.eup %3859 }
 0x216   : > { %3869 = vpow2.f32 %v1248_v32 }
 0x217   : > { %1515 = vperm.xlu0 %3827, %v4813_v5   ;;  %v1252_v9 = vmul.f32 1.442695, %v1230_v53 }
 0x219   : > { %1847 = vrot.lane.b32.xlu1 %v4320_v2, %s4096_s7  ;;  %v1234_v2 = vsub.f32 %v4691_v50, %v4705_v0  ;;  %3871 = vpow2.f32 %v1252_v9 }
 0x21b   : > { %1530 = vperm.xlu0 %3827, %v4823_v24   ;;  %v1260_v33 = vmul.f32 1.442695, %v1234_v2 }
 0x21d   : > { %1851 = vrot.lane.b32.xlu1 %v4330_v4, %s4096_s7  ;;  %v4842_v4 = vpop.eup %3861  ;;  %3873 = vpow2.f32 %v1260_v33 }
 0x21e   : > { %v4845_v39 = vpop.eup %3863  ;;  %3875 = vpow2.f32 %v1256_v41 }
 0x21f   : > { %1550 = vperm.xlu0 %3827, %v4830_v62  }
 0x221   : > { %1855 = vrot.lane.b32.xlu1 %v4340_v6, %s4096_s7  ;;  %v4848_v6 = vpop.eup %3865 }
 0x222   : > { %v4851_v42 = vpop.eup %3867 }
 0x223   : > { %1540 = vperm.xlu0 %3827, %v4837_v27   ;;  %v4854_v50 = vpop.eup %3869 }
 0x225   : > { %1520 = vperm.xlu1 %3828, %v4842_v4  }
 0x226   : > { %v4857_v52 = vpop.eup %3871 }
 0x227   : > { %1570 = vperm.xlu0 %3827, %v4845_v39  }
 0x229   : > { %1525 = vperm.xlu1 %3828, %v4848_v6  }
 0x22a   : > { %v4860_v56 = vpop.eup %3873 }
 0x22b   : > { %1560 = vperm.xlu0 %3827, %v4851_v42   ;;  %v4863_v0 = vpop.eup %3875 }
 0x22d   : > { %1535 = vperm.xlu1 %3828, %v4854_v50  }
 0x231   : > { %1545 = vperm.xlu1 %3828, %v4857_v52  }
 0x235   : > { %1565 = vperm.xlu1 %3828, %v4860_v56  }
 0x239   : > { %1555 = vperm.xlu1 %3828, %v4863_v0  }
 0x252   : > { %v1285_v12 = vpop.permute.xlu1 %1284 }
 0x253   : > { %v1354_v17 = vsub.f32 %v4400_v25, %v1285_v12 }
 0x254   : > { %v1275_v21 = vpop.permute.xlu0 %1274 }
 0x255   : > { %v1372_v22 = vmul.f32 1.442695, %v1354_v17  ;;  %v1352_v35 = vsub.f32 %v4407_v30, %v1275_v21 }
 0x257   : > { %3877 = vpow2.f32 %v1372_v22  ;;  %v1368_v51 = vmul.f32 1.442695, %v1352_v35 }
 0x258   : > { %v1280_v18 = vpop.permute.xlu1 %1279 }
 0x259   : > { %3879 = vpow2.f32 %v1368_v51  ;;  %v1353_v40 = vsub.f32 %v4415_v38, %v1280_v18 }
 0x25b   : > { %v1370_v59 = vmul.f32 1.442695, %v1353_v40 }
 0x25c   : > { %v1290_v63 = vpop.permute.xlu1 %1289 }
 0x25d   : > { %3881 = vpow2.f32 %v1370_v59  ;;  %v1355_v8 = vsub.f32 %v4411_v34, %v1290_v63 }
 0x25e   : > { %v1310_v1 = vpop.permute.xlu0 %1309 }
 0x25f   : > { %v1374_v13 = vmul.f32 1.442695, %v1355_v8  ;;  %v1359_v15 = vsub.f32 %v4429_v58, %v1310_v1 }
 0x260   : > { %v1874_v25 = vpop.permute.xlu1 %1873 }
 0x261   : > { %3883 = vpow2.f32 %v1374_v13  ;;  %v1382_v3 = vmul.f32 1.442695, %v1359_v15  ;;  %3774 = vmatprep.subr.msk.bf16.mxu1 %vm799_vm0, %v1874_v25  ;;  %v1921_v12 = vsel %vm799_vm0, %v1874_v25, 0 }
 0x263   : > { %3885 = vpow2.f32 %v1382_v3 }
 0x264   : > { %v3878_v30 = vpop.eup %3877  ;;  %v1872_v57 = vpop.permute.xlu1 %1871 }
 0x265   : > { %v1325_v16 = vpop.permute.xlu0 %1324  ;;  %1436 = vadd.xlane.f32.xlu0 %v3878_v30  ;;  %v1918_v59 = vsel %vm799_vm0, %v1872_v57, 0 }
 0x266   : > { %v3880_v38 = vpop.eup %3879  ;;  %v1362_v33 = vsub.f32 %v4440_v14, %v1325_v16 }
 0x267   : > { %1432 = vadd.xlane.f32.xlu1 %v3880_v38 }
 0x268   : > { %v1870_v19 = vpop.permute.xlu1 %1869 }
 0x269   : > { %v1315_v61 = vpop.permute.xlu0 %1314 }
 0x26a   : > { %v3882_v20 = vpop.eup %3881  ;;  %v1360_v14 = vsub.f32 %v4460_v26, %v1315_v61 }
 0x26b   : > { %1434 = vadd.xlane.f32.xlu0 %v3882_v20  ;;  %v1609_v34 = vpack.c.bf16 %v3882_v20, %v3880_v38 }
 0x26c   : > { %v1305_v7 = vpop.permute.xlu1 %1304  ;;  %v1384_v63 = vmul.f32 1.442695, %v1360_v14 }
 0x26d   : > { %v1358_v58 = vsub.f32 %v4422_v44, %v1305_v7  ;;  %3686 = vmatprep.mubr.bf16.mxu1 %v1609_v34  ;;  %v4873_v9 = vpop.permute.xlu0 %1867  ;;  %v1388_v44 = vmul.f32 1.442695, %v1362_v33 }
 0x26e   : > { %v3884_v53 = vpop.eup %3883 }
 0x26f   : > { %v1380_v32 = vmul.f32 1.442695, %v1358_v58  ;;  %1438 = vadd.xlane.f32.xlu1 %v3884_v53  ;;  %v1610_v2 = vpack.c.bf16 %v3884_v53, %v3878_v30 }
 0x270   : > { %v1295_v37 = vpop.permute.xlu1 %1294  ;;  %v3886_v17 = vpop.eup %3885 }
 0x271   : > { %3887 = vpow2.f32 %v1380_v32  ;;  %v1356_v41 = vsub.f32 %v4432_v60, %v1295_v37  ;;  %3687 = vmatmul.mubr.bf16.vlgmr.msra.gmra.mxu1 %v1610_v2 }
 0x272   : > { %3703 = vmatpush3.bf16.xpose.msra.mxu1 %v1921_v12  ;;  %v1340_v35 = vpop.permute.xlu0 %1339 }
 0x273   : > { %v1376_v21 = vmul.f32 1.442695, %v1356_v41  ;;  %3775 = vmatprep.subr.msk.bf16.mxu1 %vm799_vm0, %v1872_v57  ;;  %1446 = vadd.xlane.f32.xlu1 %v3886_v17  ;;  %v1915_v57 = vsel %vm799_vm0, %v1870_v19, 0 }
 0x274   : > { %v1300_v22 = vpop.permute.xlu1 %1299 }
 0x275   : > { %3889 = vpow2.f32 %v1376_v21  ;;  %v1357_v51 = vsub.f32 %v4436_v10, %v1300_v22 }
 0x276   : > { %3891 = vpow2.f32 %v1388_v44  ;;  %v1350_v8 = vpop.permute.xlu0 %1349 }
 0x277   : > { %v1378_v18 = vmul.f32 1.442695, %v1357_v51  ;;  %v1367_v26 = vsub.f32 %v4611_v43, %v1350_v8 }
 0x278   : > { %v1330_v60 = vpop.permute.xlu1 %1329 }
 0x279   : > { %3893 = vpow2.f32 %v1378_v18  ;;  %v1363_v40 = vsub.f32 %v4456_v23, %v1330_v60  ;;  %v1365_v23 = vsub.f32 %v4620_v46, %v1340_v35  ;;  %v1398_v38 = vmul.f32 1.442695, %v1367_v26 }
 0x27a   : > { %3705 = vmatpush3.bf16.xpose.msra.mxu1 %v1918_v59 }
 0x27b   : > { %v1390_v1 = vmul.f32 1.442695, %v1363_v40  ;;  %3776 = vmatprep.subr.msk.bf16.mxu1 %vm799_vm0, %v1870_v19  ;;  %v1912_v19 = vsel %vm799_vm0, %v4873_v9, 0 }
 0x27c   : > { %v1320_v13 = vpop.permute.xlu1 %1319 }
 0x27d   : > { %3895 = vpow2.f32 %v1390_v1  ;;  %v1361_v10 = vsub.f32 %v4465_v31, %v1320_v13  ;;  %v1394_v31 = vmul.f32 1.442695, %v1365_v23 }
 0x27e   : > { %v3888_v15 = vpop.eup %3887  ;;  %3897 = vpow2.f32 %v1384_v63 }
 0x27f   : > { %v1386_v25 = vmul.f32 1.442695, %v1361_v10  ;;  %1444 = vadd.xlane.f32.xlu0 %v3888_v15  ;;  %v1612_v58 = vpack.c.bf16 %v3886_v17, %v3888_v15  ;;  %v1864_v17 = vpop.permute.xlu0 %1863 }
 0x280   : > { %v1345_v3 = vpop.permute.xlu1 %1344  ;;  %v1906_v51 = vsel %vm799_vm0, %v1864_v17, 0 }
 0x281   : > { %3899 = vpow2.f32 %v1386_v25  ;;  %v1366_v30 = vsub.f32 %v4472_v36, %v1345_v3 }
 0x282   : > { %v3890_v16 = vpop.eup %3889  ;;  %3707 = vmatpush3.bf16.xpose.msra.mxu1 %v1915_v57 }
 0x283   : > { %v1396_v20 = vmul.f32 1.442695, %v1366_v30  ;;  %1440 = vadd.xlane.f32.xlu0 %v3890_v16  ;;  %3777 = vmatprep.subr.msk.bf16.mxu1 %vm799_vm0, %v4873_v9  ;;  %v3892_v61 = vpop.eup %3891  ;;  %v1860_v40 = vpop.permute.xlu0 %1859 }
 0x284   : > { %v1335_v43 = vpop.permute.xlu1 %1334  ;;  %v1900_v59 = vsel %vm799_vm0, %v1860_v40, 0 }
 0x285   : > { %3901 = vpow2.f32 %v1396_v20  ;;  %v1364_v46 = vsub.f32 %v4616_v45, %v1335_v43 }
 0x286   : > { %v3894_v34 = vpop.eup %3893  ;;  %3903 = vpow2.f32 %v1398_v38 }
 0x287   : > { %v1392_v7 = vmul.f32 1.442695, %v1364_v46  ;;  %1442 = vadd.xlane.f32.xlu1 %v3894_v34  ;;  %1452 = vadd.xlane.f32.xlu0 %v3892_v61  ;;  %v1611_v36 = vpack.c.bf16 %v3894_v34, %v3890_v16  ;;  %3905 = vpow2.f32 %v1394_v31  ;;  %v1846_v63 = vpop.permute.xlu0 %1845  ;;  %v1402_v46 = vld [vmem:[#allocation3 + $0x10] sm:$0xff] }
 0x288   : > { %v1866_v2 = vpop.permute.xlu1 %1865 }
 0x289   : > { %3907 = vpow2.f32 %v1392_v7  ;;  %3690 = vmatprep.mubr.bf16.mxu1 %v1611_v36  ;;  %v1909_v37 = vsel %vm799_vm0, %v1866_v2, 0  ;;  %v1400_v7 = vld [vmem:[#allocation3] sm:$0xff]  ;;  %v1418_v36 = vmul.f32 %v4848_v6, %v1402_v46 }
 0x28a   : > { %v3896_v53 = vpop.eup %3895  ;;  %3709 = vmatpush3.bf16.xpose.msra.mxu1 %v1912_v19  ;;  %v1408_v46 = vld [vmem:[#allocation3 + $0x40] sm:$0xff] }
 0x28b   : > { %v3898_v32 = vpop.eup %3897  ;;  %3691 = vmatmul.mubr.bf16.gmra.mxu1 %v1612_v58  ;;  %1454 = vadd.xlane.f32.xlu1 %v3896_v53  ;;  %v1614_v41 = vpack.c.bf16 %v3896_v53, %v3892_v61  ;;  %v1850_v1 = vpop.permute.xlu0 %1849  ;;  %v1416_v53 = vmul.f32 %v4813_v5, %v1400_v7  ;;  %v1424_v7 = vmul.f32 %v4863_v0, %v1408_v46 }
 0x28c   : > { %1448 = vadd.xlane.f32.xlu0 %v3898_v32  ;;  %3778 = vmatprep.subr.msk.bf16.mxu1 %vm799_vm0, %v1866_v2  ;;  %v1862_v44 = vpop.permute.xlu1 %1861  ;;  %v1401_v2 = vld [vmem:[#allocation3 + $0x8] sm:$0xff] }
 0x28d   : > { %v1903_v60 = vsel %vm799_vm0, %v1862_v44, 0 }
 0x28e   : > { %v3900_v45 = vpop.eup %3899 }
 0x28f   : > { %1450 = vadd.xlane.f32.xlu1 %v3900_v45  ;;  %v1613_v33 = vpack.c.bf16 %v3900_v45, %v3898_v32  ;;  %v1854_v10 = vpop.permute.xlu0 %1853 }
 0x290   : > { %v1844_v18 = vpop.permute.xlu1 %1843 }
 0x291   : > { %3694 = vmatprep.mubr.bf16.mxu1 %v1613_v33  ;;  %v1417_v33 = vmul.f32 %v4842_v4, %v1401_v2  ;;  %v5588_v4 = vsub.f32 %v4724_v29, %v4739_v47  ;;  %v5591_v29 = vsub.f32 %v4753_v28, %v4763_v55  ;;  %v1414_v2 = vld [vmem:[#allocation3 + $0x70] sm:$0xff] }
 0x292   : > { %v3902_v12 = vpop.eup %3901  ;;  %3711 = vmatpush3.bf16.xpose.msra.mxu1 %v1909_v37 }
 0x293   : > { %v3904_v9 = vpop.eup %3903  ;;  %3695 = vmatmul.mubr.bf16.gmra.mxu1 %v1614_v41  ;;  %1460 = vadd.xlane.f32.xlu0 %v3902_v12  ;;  %v1858_v26 = vpop.permute.xlu0 %1857  ;;  %v1403_v41 = vld [vmem:[#allocation3 + $0x18] sm:$0xff]  ;;  %v1266_v47 = vmul.f32 1.442695, %v5591_v29 }
 0x294   : > { %1462 = vadd.xlane.f32.xlu1 %v3904_v9  ;;  %3779 = vmatprep.subr.msk.bf16.mxu1 %vm799_vm0, %v1864_v17  ;;  %v3906_v21 = vpop.eup %3905  ;;  %v1616_v14 = vpack.c.bf16 %v3904_v9, %v3902_v12  ;;  %v1848_v8 = vpop.permute.xlu1 %1847  ;;  %v1419_v6 = vmul.f32 %v4823_v24, %v1403_v41  ;;  %v1407_v17 = vld [vmem:[#allocation3 + $0x38] sm:$0xff]  ;;  %v5589_v24 = vsub.f32 %v4734_v49, %v4744_v48  ;;  %v1405_v49 = vld [vmem:[#allocation3 + $0x28] sm:$0xff]  ;;  %v1410_v48 = vld [vmem:[#allocation3 + $0x50] sm:$0xff] }
 0x295   : > { %v1423_v5 = vmul.f32 %v4830_v62, %v1407_v17  ;;  %v5590_v62 = vsub.f32 %v4741_v11, %v4760_v54  ;;  %v1426_v11 = vmul.f32 %v4860_v56, %v1410_v48 }
 0x296   : > { %v3908_v22 = vpop.eup %3907 }
 0x297   : > { %1456 = vadd.xlane.f32.xlu0 %v3908_v22  ;;  %v1615_v35 = vpack.c.bf16 %v3906_v21, %v3908_v22  ;;  %v4910_v25 = vpop.permute.xlu0 %1515 }
 0x298   : > { %1458 = vadd.xlane.f32.xlu1 %v3906_v21  ;;  %v1852_v13 = vpop.permute.xlu1 %1851 }
 0x299   : > { %3698 = vmatprep.mubr.bf16.mxu1 %v1615_v35  ;;  %v1406_v35 = vld [vmem:[#allocation3 + $0x30] sm:$0xff] }
 0x29a   : > { %3713 = vmatpush3.bf16.xpose.msra.mxu1 %v1906_v51  ;;  %v1268_v51 = vmul.f32 1.442695, %v5588_v4 }
 0x29b   : > { %3699 = vmatmul.mubr.bf16.gmra.mxu1 %v1616_v14  ;;  %3780 = vmatprep.subr.msk.bf16.mxu1 %vm799_vm0, %v1862_v44  ;;  %v4914_v3 = vpop.permute.xlu0 %1530  ;;  %v1422_v14 = vmul.f32 %v4857_v52, %v1406_v35 }
 0x29c   : > { %3718 = vmatprep.mubr.msk.bf16.mxu1 %vm799_vm0, %v1844_v18  ;;  %v1856_v15 = vpop.permute.xlu1 %1855  ;;  %v1270_v18 = vmul.f32 1.442695, %v5589_v24  ;;  %3909 = vpow2.f32 %v1268_v51  ;;  %v1499_v24 = vld [vmem:[#allocation4 + $0x10] sm:$0xff] }
 0x29e   : > { %3911 = vpow2.f32 %v1270_v18  ;;  %v1497_v18 = vld [vmem:[#allocation4] sm:$0xff] }
 0x29f   : > { %v4918_v57 = vpop.permute.xlu0 %1550 }
 0x2a0   : > { %v4912_v23 = vpop.permute.xlu1 %1520 }
 0x2a2   : > { %3715 = vmatpush3.bf16.xpose.msra.mxu1 %v1903_v60 }
 0x2a3   : > { %3781 = vmatprep.subr.msk.bf16.mxu1 %vm799_vm0, %v1860_v40  ;;  %v4922_v38 = vpop.permute.xlu0 %1540  ;;  %v1404_v40 = vld [vmem:[#allocation3 + $0x20] sm:$0xff] }
 0x2a4   : > { %v4916_v30 = vpop.permute.xlu1 %1525 }
 0x2a7   : > { %v4926_v31 = vpop.permute.xlu0 %1570 }
 0x2a8   : > { %v4920_v16 = vpop.permute.xlu1 %1535 }
 0x2aa   : > { %3717 = vmatpush3.bf16.xpose.msra.mxu1 %v1900_v59 }
 0x2ab   : > { %v4930_v61 = vpop.permute.xlu0 %1560 }
 0x2ac   : > { %v4924_v20 = vpop.permute.xlu1 %1545 }
 0x2b0   : > { %v4928_v43 = vpop.permute.xlu1 %1565 }
 0x2b1   : > { %3719 = vmatmul.mubr.msk.bf16.vlgmr.msra.gmra.mxu1 %vm799_vm0, %v1846_v63  ;;  %v1264_v63 = vmul.f32 1.442695, %v5590_v62  ;;  %v1593_v62 = vmul.f32 %v4910_v25, %v1497_v18  ;;  %v1503_v25 = vld [vmem:[#allocation4 + $0x30] sm:$0xff] }
 0x2b2   : > { %3722 = vmatprep.mubr.msk.bf16.mxu1 %vm799_vm0, %v1848_v8  ;;  %v1420_v8 = vmul.f32 %v4854_v50, %v1404_v40  ;;  %v1411_v50 = vld [vmem:[#allocation3 + $0x58] sm:$0xff] }
 0x2b3   : > { %3913 = vpow2.f32 %v1264_v63  ;;  %v1427_v28 = vmul.f32 %v4845_v39, %v1411_v50  ;;  %v1500_v40 = vld [vmem:[#allocation4 + $0x18] sm:$0xff] }
 0x2b4   : > { %v4932_v34 = vpop.permute.xlu1 %1555  ;;  %3915 = vpow2.f32 %v1266_v47  ;;  %v1596_v47 = vmul.f32 %v4914_v3, %v1500_v40  ;;  %v1504_v3 = vld [vmem:[#allocation4 + $0x38] sm:$0xff] }
 0x2b5   : > { %v1600_v46 = vmul.f32 %v4918_v57, %v1504_v3  ;;  %v3571_v3 = vld [vmem:[%s5580_s3 + $0x68] sm:$0xff]  }
 0x2b9   : > { %3723 = vmatmul.mubr.msk.bf16.gmra.mxu1 %vm799_vm0, %v1850_v1 }
 0x2ba   : > { %3726 = vmatprep.mubr.msk.bf16.mxu1 %vm799_vm0, %v1852_v13  ;;  %v1421_v13 = vmul.f32 %v4837_v27, %v1405_v49 }
 0x2c1   : > { %3727 = vmatmul.mubr.msk.bf16.gmra.mxu1 %vm799_vm0, %v1854_v10 }
 0x2c2   : > { %3730 = vmatprep.mubr.msk.bf16.mxu1 %vm799_vm0, %v1856_v15 }
 0x2c9   : > { %3731 = vmatmul.mubr.msk.bf16.gmra.mxu1 %vm799_vm0, %v1858_v26 }
 0x2ee   : > { %v1437_v19 = vpop.xlane.xlu0 %1436 }
 0x2ef   : > { %v1466_v58 = vadd.f32 %v1437_v19, %v1418_v36  ;;  %v1409_v36 = vld [vmem:[#allocation3 + $0x48] sm:$0xff] }
 0x2f0   : > { %v1433_v32 = vpop.xlane.xlu1 %1432 }
 0x2f1   : > { %1483 = vst.msk [vmem:[#allocation3 + $0x10] sm:$0xff] %vm734_vm1, %v1466_v58  ;;  %v1464_v45 = vadd.f32 %v1433_v32, %v1416_v53  ;;  %v1425_v58 = vmul.f32 %v4851_v42, %v1409_v36  ;;  %v4968_v53 = vpop.eup %3909  ;;  %v1412_v42 = vld [vmem:[#allocation3 + $0x60] sm:$0xff] }
 0x2f2   : > { %v1430_v0 = vmul.f32 %v4968_v53, %v1414_v2 }
 0x2f3   : > { %1481 = vst.msk [vmem:[#allocation3] sm:$0xff] %vm734_vm1, %v1464_v45  ;;  %v4971_v45 = vpop.eup %3911 }
 0x2f4   : > { %v1435_v37 = vpop.xlane.xlu0 %1434 }
 0x2f5   : > { %v1465_v12 = vadd.f32 %v1435_v37, %v1417_v33  ;;  %v1415_v33 = vld [vmem:[#allocation3 + $0x78] sm:$0xff]  ;;  %v4975_v37 = vpop.eup %3913 }
 0x2f6   : > { %v1431_v41 = vmul.f32 %v4971_v45, %v1415_v33 }
 0x2f7   : > { %1482 = vst.msk [vmem:[#allocation3 + $0x8] sm:$0xff] %vm734_vm1, %v1465_v12 }
 0x2f8   : > { %v1439_v9 = vpop.xlane.xlu1 %1438 }
 0x2f9   : > { %v1467_v21 = vadd.f32 %v1439_v9, %v1419_v6  ;;  %v4978_v6 = vpop.eup %3915 }
 0x2fb   : > { %1484 = vst.msk [vmem:[#allocation3 + $0x18] sm:$0xff] %vm734_vm1, %v1467_v21  ;;  %v1413_v21 = vld [vmem:[#allocation3 + $0x68] sm:$0xff] }
 0x2fc   : > { %v1447_v44 = vpop.xlane.xlu1 %1446 }
 0x2fd   : > { %v1471_v22 = vadd.f32 %v1447_v44, %v1423_v5  ;;  %v1428_v44 = vmul.f32 %v4975_v37, %v1412_v42 }
 0x2ff   : > { %1488 = vst.msk [vmem:[#allocation3 + $0x38] sm:$0xff] %vm734_vm1, %v1471_v22  ;;  %v1429_v22 = vmul.f32 %v4978_v6, %v1413_v21  ;;  %v3567_v21 = vld [vmem:[%s5580_s3 + $0x48] sm:$0xff]  }
 0x308   : > { %v1445_v60 = vpop.xlane.xlu0 %1444 }
 0x309   : > { %v1470_v59 = vadd.f32 %v1445_v60, %v1422_v14  ;;  %v1595_v60 = vmul.f32 %v4916_v30, %v1499_v24  ;;  %v3569_v24 = vld [vmem:[%s5580_s3 + $0x58] sm:$0xff]  }
 0x30b   : > { %1487 = vst.msk [vmem:[#allocation3 + $0x30] sm:$0xff] %vm734_vm1, %v1470_v59 }
 0x30c   : > { %v1441_v52 = vpop.xlane.xlu0 %1440 }
 0x30d   : > { %v1468_v1 = vadd.f32 %v1441_v52, %v1420_v8  ;;  %v1498_v8 = vld [vmem:[#allocation4 + $0x8] sm:$0xff] }
 0x30e   : > { %v1594_v48 = vmul.f32 %v4912_v23, %v1498_v8 }
 0x30f   : > { %1485 = vst.msk [vmem:[#allocation3 + $0x20] sm:$0xff] %vm734_vm1, %v1468_v1 }
 0x310   : > { %v1443_v54 = vpop.xlane.xlu1 %1442  ;;  %v1453_v10 = vpop.xlane.xlu0 %1452 }
 0x311   : > { %v1469_v15 = vadd.f32 %v1443_v54, %v1421_v13  ;;  %v1474_v26 = vadd.f32 %v1453_v10, %v1426_v11  ;;  %v1501_v11 = vld [vmem:[#allocation4 + $0x20] sm:$0xff]  ;;  %v1599_v54 = vmul.f32 %v4924_v20, %v1503_v25 }
 0x312   : > { %v1597_v50 = vmul.f32 %v4920_v16, %v1501_v11  ;;  %v1505_v20 = vld [vmem:[#allocation4 + $0x40] sm:$0xff]  ;;  %v3542_v11 = vunpack.c.h.bf16 %v3569_v24 }
 0x313   : > { %1486 = vst.msk [vmem:[#allocation3 + $0x28] sm:$0xff] %vm734_vm1, %v1469_v15  ;;  %1491 = vst.msk [vmem:[#allocation3 + $0x50] sm:$0xff] %vm734_vm1, %v1474_v26  ;;  %v1502_v26 = vld [vmem:[#allocation4 + $0x28] sm:$0xff]  ;;  %v1601_v57 = vmul.f32 %v4932_v34, %v1505_v20 }
 0x314   : > { %v1455_v55 = vpop.xlane.xlu1 %1454  ;;  %v1598_v36 = vmul.f32 %v4922_v38, %v1502_v26 }
 0x315   : > { %v1475_v27 = vadd.f32 %v1455_v55, %v1427_v28  ;;  %v1449_v19 = vpop.xlane.xlu0 %1448  ;;  %v1507_v55 = vld [vmem:[#allocation4 + $0x50] sm:$0xff] }
 0x316   : > { %v1472_v56 = vadd.f32 %v1449_v19, %v1424_v7 }
 0x317   : > { %1492 = vst.msk [vmem:[#allocation3 + $0x58] sm:$0xff] %vm734_vm1, %v1475_v27 }
 0x318   : > { %1489 = vst.msk [vmem:[#allocation3 + $0x40] sm:$0xff] %vm734_vm1, %v1472_v56  ;;  %v1451_v32 = vpop.xlane.xlu1 %1450  ;;  %v1603_v56 = vmul.f32 %v4928_v43, %v1507_v55  ;;  %v3570_v55 = vld [vmem:[%s5580_s3 + $0x60] sm:$0xff]  }
 0x319   : > { %v1473_v39 = vadd.f32 %v1451_v32, %v1425_v58  ;;  %v1508_v58 = vld [vmem:[#allocation4 + $0x58] sm:$0xff] }
 0x31a   : > { %v1604_v38 = vmul.f32 %v4926_v31, %v1508_v58 }
 0x31b   : > { %1490 = vst.msk [vmem:[#allocation3 + $0x48] sm:$0xff] %vm734_vm1, %v1473_v39  ;;  %v1506_v39 = vld [vmem:[#allocation4 + $0x48] sm:$0xff] }
 0x31c   : > { %v1461_v12 = vpop.xlane.xlu0 %1460  ;;  %v1602_v43 = vmul.f32 %v4930_v61, %v1506_v39  ;;  %v3566_v61 = vld [vmem:[%s5580_s3 + $0x40] sm:$0xff]  }
 0x31d   : > { %v1463_v9 = vpop.xlane.xlu1 %1462  ;;  %v1478_v17 = vadd.f32 %v1461_v12, %v1430_v0 }
 0x31e   : > { %v1479_v5 = vadd.f32 %v1463_v9, %v1431_v41 }
 0x31f   : > { %1495 = vst.msk [vmem:[#allocation3 + $0x70] sm:$0xff] %vm734_vm1, %v1478_v17 }
 0x320   : > { %1496 = vst.msk [vmem:[#allocation3 + $0x78] sm:$0xff] %vm734_vm1, %v1479_v5  ;;  %v1457_v35 = vpop.xlane.xlu0 %1456  ;;  %v3533_v5 = vunpack.c.l.bf16 %v3567_v21 }
 0x321   : > { %v1459_v4 = vpop.xlane.xlu1 %1458  ;;  %v1476_v51 = vadd.f32 %v1457_v35, %v1428_v44 }
 0x322   : > { %v1477_v14 = vadd.f32 %v1459_v4, %v1429_v22  ;;  %v3529_v22 = vunpack.c.l.bf16 %v3566_v61 }
 0x323   : > { %1493 = vst.msk [vmem:[#allocation3 + $0x60] sm:$0xff] %vm734_vm1, %v1476_v51  ;;  %v3534_v51 = vunpack.c.h.bf16 %v3567_v21 }
 0x324   : > { %1494 = vst.msk [vmem:[#allocation3 + $0x68] sm:$0xff] %vm734_vm1, %v1477_v14 }
 0x331   : > { %v3688_v59 = vpop.f32.mrf.mxu1 }
 0x332   : > { %v1764_v63 = vadd.f32 %v3688_v59, %v1595_v60  ;;  %v5592_v60 = vld [vmem:[#allocation8_spill] sm:$0xff]  ;;  %v3530_v59 = vunpack.c.h.bf16 %v3566_v61 }
 0x333   : > { %v1699_v29 = vpop.f32.mrf.mxu1 }
 0x334   : > { %1780 = vst.msk [vmem:[#allocation4 + $0x10] sm:$0xff] %vm799_vm0, %v1764_v63  ;;  %v1762_v52 = vadd.f32 %v1699_v29, %v1593_v62  ;;  %v3541_v29 = vunpack.c.l.bf16 %v3569_v24 }
 0x335   : > { %v3689_v49 = vpop.f32.mrf.mxu1 }
 0x336   : > { %1778 = vst.msk [vmem:[#allocation4] sm:$0xff] %vm799_vm0, %v1762_v52  ;;  %v1765_v1 = vadd.f32 %v3689_v49, %v1596_v47  ;;  %v3568_v47 = vld [vmem:[%s5580_s3 + $0x50] sm:$0xff]  }
 0x337   : > { %v1702_v13 = vpop.f32.mrf.mxu1 }
 0x338   : > { %1781 = vst.msk [vmem:[#allocation4 + $0x18] sm:$0xff] %vm799_vm0, %v1765_v1  ;;  %v1763_v30 = vadd.f32 %v1702_v13, %v1594_v48  ;;  %v3537_v1 = vunpack.c.l.bf16 %v3568_v47 }
 0x33a   : > { %1779 = vst.msk [vmem:[#allocation4 + $0x8] sm:$0xff] %vm799_vm0, %v1763_v30 }
 0x34b   : > { %v3692_v10 = vpop.f32.mrf.mxu1 }
 0x34c   : > { %v1768_v15 = vadd.f32 %v3692_v10, %v1599_v54  ;;  %v3538_v10 = vunpack.c.h.bf16 %v3568_v47 }
 0x34d   : > { %v1715_v23 = vpop.f32.mrf.mxu1 }
 0x34e   : > { %1784 = vst.msk [vmem:[#allocation4 + $0x30] sm:$0xff] %vm799_vm0, %v1768_v15  ;;  %v1766_v28 = vadd.f32 %v1715_v23, %v1597_v50 }
 0x34f   : > { %v3693_v7 = vpop.f32.mrf.mxu1 }
 0x350   : > { %1782 = vst.msk [vmem:[#allocation4 + $0x20] sm:$0xff] %vm799_vm0, %v1766_v28  ;;  %v1769_v27 = vadd.f32 %v3693_v7, %v1600_v46  ;;  %v3549_v46 = vunpack.c.l.bf16 %v3571_v3 }
 0x351   : > { %v1718_v19 = vpop.f32.mrf.mxu1 }
 0x352   : > { %1785 = vst.msk [vmem:[#allocation4 + $0x38] sm:$0xff] %vm799_vm0, %v1769_v27  ;;  %v1767_v16 = vadd.f32 %v1718_v19, %v1598_v36  ;;  %v3545_v19 = vunpack.c.l.bf16 %v3570_v55 }
 0x353   : > { %v3696_v32 = vpop.f32.mrf.mxu1 }
 0x354   : > { %1783 = vst.msk [vmem:[#allocation4 + $0x28] sm:$0xff] %vm799_vm0, %v1767_v16  ;;  %v1772_v2 = vadd.f32 %v3696_v32, %v1603_v56  ;;  %v3550_v16 = vunpack.c.h.bf16 %v3571_v3  ;;  %v3573_v32 = vld [vmem:[%s5580_s3 + $0x78] sm:$0xff]   ;;  %v5119_v3 = vld [vmem:[#allocation2 + $0x90] sm:$0xff] }
 0x355   : > { %v1731_v33 = vpop.f32.mrf.mxu1 }
 0x356   : > { %1788 = vst.msk [vmem:[#allocation4 + $0x50] sm:$0xff] %vm799_vm0, %v1772_v2  ;;  %v1770_v0 = vadd.f32 %v1731_v33, %v1601_v57  ;;  %v3546_v2 = vunpack.c.h.bf16 %v3570_v55  ;;  %v3572_v33 = vld [vmem:[%s5580_s3 + $0x70] sm:$0xff]   ;;  %v5136_v55 = vld [vmem:[#allocation2 + $0x88] sm:$0xff] }
 0x357   : > { %v3697_v41 = vpop.f32.mrf.mxu1  ;;  %v3553_v21 = vunpack.c.l.bf16 %v3572_v33 }
 0x358   : > { %1786 = vst.msk [vmem:[#allocation4 + $0x40] sm:$0xff] %vm799_vm0, %v1770_v0  ;;  %v1773_v12 = vadd.f32 %v3697_v41, %v1604_v38 }
 0x359   : > { %v1734_v42 = vpop.f32.mrf.mxu1 }
 0x35a   : > { %1789 = vst.msk [vmem:[#allocation4 + $0x58] sm:$0xff] %vm799_vm0, %v1773_v12  ;;  %v1771_v34 = vadd.f32 %v1734_v42, %v1602_v43  ;;  %v3557_v43 = vunpack.c.l.bf16 %v3573_v32 }
 0x35b   : > { %v5010_v9 = vpop.f32.mrf.mxu1 }
 0x35c   : > { %1787 = vst.msk [vmem:[#allocation4 + $0x48] sm:$0xff] %vm799_vm0, %v1771_v34 }
 0x35d   : > { %v5012_v17 = vpop.f32.mrf.mxu1 }
 0x35f   : > { %v5014_v31 = vpop.f32.mrf.mxu1 }
 0x361   : > { %v5022_v44 = vpop.f32.mrf.mxu1 }
 0x371   : > { %v3720_v35 = vpop.f32.mrf.mxu1 }
 0x372   : > { %v1966_v4 = vadd.f32 %v3720_v35, %v3533_v5 }
 0x373   : > { %v1957_v14 = vpop.f32.mrf.mxu1 }
 0x374   : > { %v1958_v18 = vadd.f32 %v3529_v22, %v1957_v14  ;;  %v5028_v40 = vadd.f32 %v1966_v4, %v5592_v60 }
 0x375   : > { %v3721_v62 = vpop.f32.mrf.mxu1 }
 0x376   : > { %v1969_v63 = vadd.f32 %v3721_v62, %v3534_v51  ;;  %2057 = vmax.xlane.f32.xlu0 %v5028_v40  ;;  %v5032_v8 = vadd.f32 %v1958_v18, %v5592_v60  ;;  %v4045_v18 = vld [vmem:[%s4625_s11 + $0x38] sm:$0xff]   ;;  %v4047_v62 = vld [vmem:[%s4625_s11 + $0x28] sm:$0xff]  }
 0x377   : > { %v1960_v52 = vpop.f32.mrf.mxu1 }
 0x378   : > { %v1961_v49 = vadd.f32 %v3530_v59, %v1960_v52  ;;  %2053 = vmax.xlane.f32.xlu1 %v5032_v8  ;;  %v5042_v25 = vadd.f32 %v1969_v63, %v5592_v60  ;;  %v4046_v59 = vld [vmem:[%s4625_s11 + $0x30] sm:$0xff]   ;;  %v4048_v63 = vld [vmem:[%s4625_s11 + $0x18] sm:$0xff]  }
 0x379   : > { %v3724_v48 = vpop.f32.mrf.mxu1 }
 0x37a   : > { %v1982_v13 = vadd.f32 %v3724_v48, %v3541_v29  ;;  %v5039_v30 = vadd.f32 %v1961_v49, %v5592_v60  ;;  %v3558_v29 = vunpack.c.h.bf16 %v3573_v32  ;;  %v3554_v49 = vunpack.c.h.bf16 %v3572_v33 }
 0x37b   : > { %v1973_v54 = vpop.f32.mrf.mxu1 }
 0x37c   : > { %2055 = vmax.xlane.f32.xlu0 %v5039_v30  ;;  %2059 = vmax.xlane.f32.xlu1 %v5042_v25  ;;  %v1974_v15 = vadd.f32 %v3537_v1, %v1973_v54  ;;  %v5050_v23 = vadd.f32 %v1982_v13, %v5592_v60  ;;  %v4050_v54 = vld [vmem:[%s4625_s11 + $0x10] sm:$0xff]  }
 0x37d   : > { %v3725_v50 = vpop.f32.mrf.mxu1 }
 0x37e   : > { %v1985_v26 = vadd.f32 %v3725_v50, %v3542_v11  ;;  %v5061_v56 = vadd.f32 %v1974_v15, %v5592_v60  ;;  %v4049_v11 = vld [vmem:[%s4625_s11 + $0x20] sm:$0xff]  }
 0x37f   : > { %v1976_v28 = vpop.f32.mrf.mxu1  ;;  %v5121_v50 = vld [vmem:[#allocation2 + $0x80] sm:$0xff] }
 0x380   : > { %v1977_v7 = vadd.f32 %v3538_v10, %v1976_v28  ;;  %2065 = vmax.xlane.f32.xlu0 %v5050_v23  ;;  %v5057_v36 = vadd.f32 %v1985_v26, %v5592_v60  ;;  %v5134_v28 = vld [vmem:[#allocation2 + $0x98] sm:$0xff] }
 0x381   : > { %v3728_v27 = vpop.f32.mrf.mxu1 }
 0x382   : > { %v1998_v20 = vadd.f32 %v3728_v27, %v3549_v46  ;;  %2067 = vmax.xlane.f32.xlu1 %v5057_v36  ;;  %v5068_v57 = vadd.f32 %v1977_v7, %v5592_v60 }
 0x383   : > { %v1989_v58 = vpop.f32.mrf.mxu1 }
 0x384   : > { %2061 = vmax.xlane.f32.xlu0 %v5061_v56  ;;  %v1990_v38 = vadd.f32 %v3545_v19, %v1989_v58  ;;  %v5075_v41 = vadd.f32 %v1998_v20, %v5592_v60 }
 0x385   : > { %v3729_v39 = vpop.f32.mrf.mxu1 }
 0x386   : > { %v2001_v0 = vadd.f32 %v3729_v39, %v3550_v16  ;;  %2063 = vmax.xlane.f32.xlu1 %v5068_v57  ;;  %v5083_v22 = vadd.f32 %v1990_v38, %v5592_v60  ;;  %v5147_v16 = vld [vmem:[#allocation2 + $0xb0] sm:$0xff]  ;;  %v5161_v38 = vld [vmem:[#allocation2 + $0xa0] sm:$0xff] }
 0x387   : > { %v1992_v12 = vpop.f32.mrf.mxu1 }
 0x388   : > { %v1993_v42 = vadd.f32 %v3546_v2, %v1992_v12  ;;  %2073 = vmax.xlane.f32.xlu0 %v5075_v41  ;;  %v5079_v34 = vadd.f32 %v2001_v0, %v5592_v60  ;;  %v5156_v2 = vld [vmem:[#allocation2 + $0xb8] sm:$0xff] }
 0x389   : > { %v3732_v61 = vpop.f32.mrf.mxu1 }
 0x38a   : > { %2075 = vmax.xlane.f32.xlu1 %v5079_v34  ;;  %v2014_v5 = vadd.f32 %v3732_v61, %v3557_v43  ;;  %v5087_v4 = vadd.f32 %v1993_v42, %v5592_v60  ;;  %v5172_v42 = vld [vmem:[#allocation2 + $0xa8] sm:$0xff] }
 0x38b   : > { %v2005_v35 = vpop.f32.mrf.mxu1 }
 0x38c   : > { %2069 = vmax.xlane.f32.xlu0 %v5083_v22  ;;  %v2006_v51 = vadd.f32 %v3553_v21, %v2005_v35  ;;  %v5090_v14 = vadd.f32 %v2014_v5, %v5592_v60  ;;  %v5181_v35 = vld [vmem:[#allocation2 + $0xd0] sm:$0xff] }
 0x38d   : > { %v3733_v47 = vpop.f32.mrf.mxu1 }
 0x38e   : > { %2071 = vmax.xlane.f32.xlu1 %v5087_v4  ;;  %v5095_v24 = vadd.f32 %v2006_v51, %v5592_v60  ;;  %v2017_v52 = vadd.f32 %v3733_v47, %v3558_v29  ;;  %v5196_v47 = vld [vmem:[#allocation2 + $0xc0] sm:$0xff] }
 0x38f   : > { %v2008_v48 = vpop.f32.mrf.mxu1 }
 0x390   : > { %2081 = vmax.xlane.f32.xlu0 %v5090_v14  ;;  %v5108_v1 = vadd.f32 %v2017_v52, %v5592_v60  ;;  %v2009_v13 = vadd.f32 %v3554_v49, %v2008_v48 }
 0x394   : > { %2077 = vmax.xlane.f32.xlu0 %v5095_v24 }
 0x39f   : > { %2509 = vrot.lane.b32.xlu1 %v4045_v18, %s4096_s7 }
 0x3a3   : > { %2507 = vrot.lane.b32.xlu1 %v4046_v59, %s4096_s7 }
 0x3aa   : > { %1575 = vperm.xlu0 %3827, %v4975_v37   ;;  %v5112_v37 = vadd.f32 %v2009_v13, %v5592_v60  ;;  %v5206_v13 = vld [vmem:[#allocation2 + $0xc8] sm:$0xff] }
 0x3ae   : > { %2505 = vrot.lane.b32.xlu0 %v4047_v62, %s4096_s7  ;;  %v5190_v62 = vld [vmem:[#allocation2 + $0xd8] sm:$0xff] }
 0x3b2   : > { %2501 = vrot.lane.b32.xlu0 %v4048_v63, %s4096_s7 }
 0x3c7   : > { %2083 = vmax.xlane.f32.xlu1 %v5108_v1 }
 0x3cb   : > { %2079 = vmax.xlane.f32.xlu1 %v5112_v37 }
 0x3dc   : > { %2503 = vrot.lane.b32.xlu1 %v4049_v11, %s4096_s7 }
 0x3e0   : > { %2499 = vrot.lane.b32.xlu1 %v4050_v54, %s4096_s7 }
 0x3ff   : > { %v2058_v10 = vpop.xlane.xlu0 %2057 }
 0x400   : > { %v5124_v15 = vmax.f32 %v5119_v3, %v2058_v10 }
 0x401   : > { %v2054_v26 = vpop.xlane.xlu1 %2053 }
 0x402   : > { %v2103_v60 = vsub.f32 %v5119_v3, %v5124_v15  ;;  %2650 = vst.msk [vmem:[#allocation2 + $0x90] sm:$0xff] %vm734_vm1, %v5124_v15  ;;  %v5131_v46 = vmax.f32 %v5121_v50, %v2054_v26  ;;  %2161 = vperm.xlu0 %3827, %v5124_v15   ;;  %v5215_v26 = vld [vmem:[#allocation2 + $0xf0] sm:$0xff] }
 0x404   : > { %2648 = vst.msk [vmem:[#allocation2 + $0x80] sm:$0xff] %vm734_vm1, %v5131_v46 }
 0x405   : > { %v2060_v7 = vpop.xlane.xlu1 %2059  ;;  %v2056_v27 = vpop.xlane.xlu0 %2055 }
 0x406   : > { %v5141_v20 = vmax.f32 %v5134_v28, %v2060_v7  ;;  %v5144_v19 = vmax.f32 %v5136_v55, %v2056_v27  ;;  %2151 = vperm.xlu0 %3827, %v5131_v46  }
 0x408   : > { %2651 = vst.msk [vmem:[#allocation2 + $0x98] sm:$0xff] %vm734_vm1, %v5141_v20  ;;  %v2102_v58 = vsub.f32 %v5136_v55, %v5144_v19  ;;  %2649 = vst.msk [vmem:[#allocation2 + $0x88] sm:$0xff] %vm734_vm1, %v5144_v19  ;;  %2166 = vperm.xlu1 %3828, %v5141_v20   ;;  %v2104_v52 = vsub.f32 %v5134_v28, %v5141_v20 }
 0x409   : > { %v2066_v32 = vpop.xlane.xlu0 %2065 }
 0x40a   : > { %v5159_v39 = vmax.f32 %v5147_v16, %v2066_v32 }
 0x40b   : > { %v2068_v33 = vpop.xlane.xlu1 %2067 }
 0x40c   : > { %v2107_v0 = vsub.f32 %v5147_v16, %v5159_v39  ;;  %2654 = vst.msk [vmem:[#allocation2 + $0xb0] sm:$0xff] %vm734_vm1, %v5159_v39  ;;  %v5168_v43 = vmax.f32 %v5156_v2, %v2068_v33  ;;  %2156 = vperm.xlu1 %3828, %v5144_v19   ;;  %2181 = vperm.xlu0 %3827, %v5159_v39   ;;  %v4052_v33 = vld [vmem:[%s4625_s11] sm:$0xff]  }
 0x40d   : > { %v2062_v12 = vpop.xlane.xlu0 %2061 }
 0x40e   : > { %2655 = vst.msk [vmem:[#allocation2 + $0xb8] sm:$0xff] %vm734_vm1, %v5168_v43  ;;  %v5179_v61 = vmax.f32 %v5161_v38, %v2062_v12 }
 0x40f   : > { %v2064_v5 = vpop.xlane.xlu1 %2063 }
 0x410   : > { %v2105_v51 = vsub.f32 %v5161_v38, %v5179_v61  ;;  %2652 = vst.msk [vmem:[#allocation2 + $0xa0] sm:$0xff] %vm734_vm1, %v5179_v61  ;;  %v2090_v18 = vmax.f32 %v5172_v42, %v2064_v5  ;;  %2186 = vperm.xlu1 %3828, %v5168_v43   ;;  %2171 = vperm.xlu0 %3827, %v5179_v61  }
 0x411   : > { %v2074_v59 = vpop.xlane.xlu0 %2073  ;;  %v2101_v5 = vsub.f32 %v5121_v50, %v5131_v46 }
 0x412   : > { %2653 = vst.msk [vmem:[#allocation2 + $0xa8] sm:$0xff] %vm734_vm1, %v2090_v18  ;;  %v5194_v63 = vmax.f32 %v5181_v35, %v2074_v59 }
 0x413   : > { %v2076_v29 = vpop.xlane.xlu1 %2075  ;;  %v2117_v46 = vmul.f32 1.442695, %v2101_v5  ;;  %v2106_v5 = vsub.f32 %v5172_v42, %v2090_v18 }
 0x414   : > { %2658 = vst.msk [vmem:[#allocation2 + $0xd0] sm:$0xff] %vm734_vm1, %v5194_v63  ;;  %v5203_v49 = vmax.f32 %v5190_v62, %v2076_v29  ;;  %2176 = vperm.xlu1 %3828, %v2090_v18   ;;  %2201 = vperm.xlu0 %3827, %v5194_v63   ;;  %v5235_v29 = vld [vmem:[#allocation2 + $0xe0] sm:$0xff] }
 0x415   : > { %v2070_v48 = vpop.xlane.xlu0 %2069  ;;  %3917 = vpow2.f32 %v2117_v46  ;;  %v2121_v46 = vmul.f32 1.442695, %v2103_v60  ;;  %v2129_v60 = vmul.f32 1.442695, %v2107_v0 }
 0x416   : > { %2659 = vst.msk [vmem:[#allocation2 + $0xd8] sm:$0xff] %vm734_vm1, %v5203_v49  ;;  %v5213_v54 = vmax.f32 %v5196_v47, %v2070_v48 }
 0x417   : > { %v2072_v10 = vpop.xlane.xlu1 %2071 }
 0x418   : > { %v2109_v7 = vsub.f32 %v5196_v47, %v5213_v54  ;;  %2656 = vst.msk [vmem:[#allocation2 + $0xc0] sm:$0xff] %vm734_vm1, %v5213_v54  ;;  %v5222_v27 = vmax.f32 %v5206_v13, %v2072_v10  ;;  %2206 = vperm.xlu1 %3828, %v5203_v49   ;;  %2191 = vperm.xlu0 %3827, %v5213_v54   ;;  %v4051_v10 = vld [vmem:[%s4625_s11 + $0x8] sm:$0xff]   ;;  %s3372_s11 = sshll.u32 %s5606_s10, 2 }
 0x419   : > { %v2082_v32 = vpop.xlane.xlu0 %2081  ;;  %v5593_v54 = vsub.f32 %v5156_v2, %v5168_v43  ;;  %s5448_s13 = scalar_lea.vmem %s5582_s5, %s3372_s11 }
 0x41a   : > { %2657 = vst.msk [vmem:[#allocation2 + $0xc8] sm:$0xff] %vm734_vm1, %v5222_v27  ;;  %v5231_v12 = vmax.f32 %v5215_v26, %v2082_v32 }
 0x41b   : > { %v2510_v59 = vpop.permute.xlu1 %2509 }
 0x41c   : > { %2662 = vst.msk [vmem:[#allocation2 + $0xf0] sm:$0xff] %vm734_vm1, %v5231_v12  ;;  %3734 = vmatprep.subr.bf16.mxu0 %v2510_v59  ;;  %2196 = vperm.xlu1 %3828, %v5222_v27  }
 0x41d   : > { %2497 = vrot.lane.b32.xlu0 %v4051_v10, %s4096_s7  ;;  %3735 = vmatpush3.bf16.msra.mxu0 %v2510_v59  ;;  %v2078_v32 = vpop.xlane.xlu0 %2077  ;;  %v2123_v59 = vmul.f32 1.442695, %v2104_v52  ;;  %v1509_v10 = vld [vmem:[#allocation4 + $0x60] sm:$0xff] }
 0x41e   : > { %v5245_v50 = vmax.f32 %v5235_v29, %v2078_v32  ;;  %v2127_v32 = vmul.f32 1.442695, %v2106_v5 }
 0x41f   : > { %v2508_v11 = vpop.permute.xlu1 %2507  ;;  %3919 = vpow2.f32 %v2123_v59  ;;  %v2125_v59 = vmul.f32 1.442695, %v2105_v51 }
 0x420   : > { %2660 = vst.msk [vmem:[#allocation2 + $0xe0] sm:$0xff] %vm734_vm1, %v5245_v50  ;;  %3736 = vmatprep.subr.bf16.mxu0 %v2508_v11  ;;  %2495 = vrot.lane.b32.xlu1 %v4052_v33, %s4096_s7  ;;  %3921 = vpow2.f32 %v2127_v32 }
 0x421   : > { %2211 = vperm.xlu0 %3827, %v5245_v50   ;;  %3737 = vmatpush3.bf16.msra.mxu0 %v2508_v11  ;;  %v5279_v11 = vld [vmem:[#allocation2 + $0xe8] sm:$0xff] }
 0x422   : > { %v5262_v42 = vpop.eup %3917 }
 0x425   : > { %2221 = vperm.xlu0 %3827, %v5231_v12   ;;  %v1576_v28 = vpop.permute.xlu0 %1575 }
 0x426   : > { %v1605_v20 = vmul.f32 %v1576_v28, %v1509_v10 }
 0x428   : > { %v1774_v48 = vadd.f32 %v5012_v17, %v1605_v20 }
 0x429   : > { %1580 = vperm.xlu0 %3827, %v4978_v6   ;;  %v2506_v21 = vpop.permute.xlu0 %2505  ;;  %v5271_v6 = vld [vmem:[#allocation2 + $0xf8] sm:$0xff] }
 0x42a   : > { %1790 = vst.msk [vmem:[#allocation4 + $0x60] sm:$0xff] %vm799_vm0, %v1774_v48  ;;  %3738 = vmatprep.subr.bf16.mxu0 %v2506_v21 }
 0x42b   : > { %3739 = vmatpush3.bf16.msra.mxu0 %v2506_v21  ;;  %v2119_v21 = vmul.f32 1.442695, %v2102_v58 }
 0x42c   : > { %v5265_v18 = vpop.eup %3919 }
 0x42d   : > { %1590 = vperm.xlu0 %3827, %v4971_v45   ;;  %v5268_v52 = vpop.eup %3921  ;;  %3923 = vpow2.f32 %v2119_v21  ;;  %v2502_v3 = vpop.permute.xlu0 %2501 }
 0x42e   : > { %3925 = vpow2.f32 %v2121_v46 }
 0x42f   : > { %3927 = vpow2.f32 %v2125_v59 }
 0x430   : > { %3929 = vpow2.f32 %v2129_v60 }
 0x431   : > { %2393 = vperm.xlu0 %3827, %v5262_v42  }
 0x435   : > { %2408 = vperm.xlu0 %3827, %v5265_v18  }
 0x439   : > { %2418 = vperm.xlu0 %3827, %v5268_v52  }
 0x43a   : > { %v5304_v5 = vpop.eup %3923 }
 0x43b   : > { %v5307_v38 = vpop.eup %3925 }
 0x43c   : > { %v5310_v61 = vpop.eup %3927 }
 0x43d   : > { %v5313_v16 = vpop.eup %3929 }
 0x450   : > { %v2084_v17 = vpop.xlane.xlu1 %2083 }
 0x451   : > { %v5277_v45 = vmax.f32 %v5271_v6, %v2084_v17 }
 0x453   : > { %v2116_v33 = vsub.f32 %v5271_v6, %v5277_v45  ;;  %2663 = vst.msk [vmem:[#allocation2 + $0xf8] sm:$0xff] %vm734_vm1, %v5277_v45 }
 0x454   : > { %v2080_v48 = vpop.xlane.xlu1 %2079 }
 0x455   : > { %v5289_v55 = vmax.f32 %v5279_v11, %v2080_v48  ;;  %v2147_v2 = vmul.f32 1.442695, %v2116_v33  ;;  %v2672_v33 = vld [vmem:[#allocation3 + $0x28] sm:$0xff] }
 0x457   : > { %v2114_v19 = vsub.f32 %v5279_v11, %v5289_v55  ;;  %2661 = vst.msk [vmem:[#allocation2 + $0xe8] sm:$0xff] %vm734_vm1, %v5289_v55  ;;  %2216 = vperm.xlu1 %3828, %v5289_v55  }
 0x458   : > { %v2504_v58 = vpop.permute.xlu1 %2503 }
 0x459   : > { %3740 = vmatprep.subr.bf16.mxu0 %v2504_v58 }
 0x45a   : > { %3741 = vmatpush3.bf16.msra.mxu0 %v2504_v58 }
 0x45b   : > { %2226 = vperm.xlu1 %3828, %v5277_v45   ;;  %3742 = vmatprep.subr.bf16.mxu0 %v2502_v3 }
 0x45c   : > { %v2500_v15 = vpop.permute.xlu1 %2499 }
 0x45e   : > { %3743 = vmatpush3.bf16.msra.mxu0 %v2502_v3 }
 0x45f   : > { %1585 = vperm.xlu1 %3828, %v4968_v53   ;;  %3744 = vmatprep.subr.bf16.mxu0 %v2500_v15 }
 0x462   : > { %3745 = vmatpush3.bf16.msra.mxu0 %v2500_v15 }
 0x463   : > { %2398 = vperm.xlu1 %3828, %v5304_v5  }
 0x467   : > { %2403 = vperm.xlu1 %3828, %v5307_v38  }
 0x46b   : > { %2413 = vperm.xlu1 %3828, %v5310_v61  }
 0x46f   : > { %2423 = vperm.xlu1 %3828, %v5313_v16  }
 0x47d   : > { %v2162_v53 = vpop.permute.xlu0 %2161 }
 0x47e   : > { %v2231_v39 = vsub.f32 %v5028_v40, %v2162_v53 }
 0x480   : > { %v2249_v0 = vmul.f32 1.442695, %v2231_v39 }
 0x481   : > { %v2152_v51 = vpop.permute.xlu0 %2151 }
 0x482   : > { %3931 = vpow2.f32 %v2249_v0  ;;  %v2229_v10 = vsub.f32 %v5032_v8, %v2152_v51 }
 0x483   : > { %v2167_v28 = vpop.permute.xlu1 %2166 }
 0x484   : > { %v2245_v20 = vmul.f32 1.442695, %v2229_v10  ;;  %v2232_v32 = vsub.f32 %v5042_v25, %v2167_v28 }
 0x486   : > { %3933 = vpow2.f32 %v2245_v20  ;;  %v2251_v17 = vmul.f32 1.442695, %v2232_v32 }
 0x487   : > { %v2157_v21 = vpop.permute.xlu1 %2156  ;;  %v2182_v48 = vpop.permute.xlu0 %2181 }
 0x488   : > { %v2230_v46 = vsub.f32 %v5039_v30, %v2157_v21  ;;  %v2235_v58 = vsub.f32 %v5050_v23, %v2182_v48  ;;  %3935 = vpow2.f32 %v2251_v17 }
 0x48a   : > { %v2247_v59 = vmul.f32 1.442695, %v2230_v46  ;;  %v2257_v40 = vmul.f32 1.442695, %v2235_v58 }
 0x48b   : > { %v2187_v3 = vpop.permute.xlu1 %2186  ;;  %v2172_v15 = vpop.permute.xlu0 %2171 }
 0x48c   : > { %3937 = vpow2.f32 %v2247_v59  ;;  %v2236_v8 = vsub.f32 %v5057_v36, %v2187_v3  ;;  %v2233_v60 = vsub.f32 %v5061_v56, %v2172_v15 }
 0x48d   : > { %3939 = vpow2.f32 %v2257_v40 }
 0x48e   : > { %v2259_v53 = vmul.f32 1.442695, %v2236_v8  ;;  %v2253_v39 = vmul.f32 1.442695, %v2233_v60 }
 0x48f   : > { %v3932_v25 = vpop.eup %3931  ;;  %v2177_v0 = vpop.permute.xlu1 %2176 }
 0x490   : > { %v2202_v51 = vpop.permute.xlu0 %2201  ;;  %3941 = vpow2.f32 %v2259_v53  ;;  %v2234_v30 = vsub.f32 %v5068_v57, %v2177_v0  ;;  %2314 = vadd.xlane.f32.xlu0 %v3932_v25 }
 0x491   : > { %v2239_v23 = vsub.f32 %v5075_v41, %v2202_v51  ;;  %3943 = vpow2.f32 %v2253_v39 }
 0x492   : > { %v2255_v10 = vmul.f32 1.442695, %v2234_v30  ;;  %v1510_v30 = vld [vmem:[#allocation4 + $0x68] sm:$0xff] }
 0x493   : > { %v3934_v28 = vpop.eup %3933  ;;  %v2265_v20 = vmul.f32 1.442695, %v2239_v23  ;;  %v2207_v32 = vpop.permute.xlu1 %2206 }
 0x494   : > { %v2192_v36 = vpop.permute.xlu0 %2191  ;;  %3945 = vpow2.f32 %v2255_v10  ;;  %v2240_v56 = vsub.f32 %v5079_v34, %v2207_v32  ;;  %2310 = vadd.xlane.f32.xlu1 %v3934_v28 }
 0x495   : > { %v2237_v17 = vsub.f32 %v5083_v22, %v2192_v36  ;;  %v3936_v48 = vpop.eup %3935  ;;  %3947 = vpow2.f32 %v2265_v20 }
 0x496   : > { %v2267_v21 = vmul.f32 1.442695, %v2240_v56  ;;  %v2488_v60 = vpack.c.bf16 %v3936_v48, %v3932_v25  ;;  %v1512_v56 = vld [vmem:[#allocation4 + $0x78] sm:$0xff] }
 0x497   : > { %v2261_v46 = vmul.f32 1.442695, %v2237_v17  ;;  %v2197_v57 = vpop.permute.xlu1 %2196 }
 0x498   : > { %v2498_v58 = vpop.permute.xlu0 %2497  ;;  %3949 = vpow2.f32 %v2267_v21  ;;  %v2238_v41 = vsub.f32 %v5087_v4, %v2197_v57  ;;  %2316 = vadd.xlane.f32.xlu1 %v3936_v48 }
 0x499   : > { %3746 = vmatprep.subr.bf16.mxu0 %v2498_v58  ;;  %v3938_v59 = vpop.eup %3937  ;;  %3951 = vpow2.f32 %v2261_v46  ;;  %v2133_v46 = vmul.f32 1.442695, %v2109_v7  ;;  %v2131_v7 = vmul.f32 1.442695, %v5593_v54 }
 0x49a   : > { %3747 = vmatpush3.bf16.msra.mxu0 %v2498_v58  ;;  %v2263_v40 = vmul.f32 1.442695, %v2238_v41  ;;  %2312 = vadd.xlane.f32.xlu0 %v3938_v59  ;;  %v2487_v3 = vpack.c.bf16 %v3938_v59, %v3934_v28  ;;  %v3940_v22 = vpop.eup %3939 }
 0x49b   : > { %v2496_v34 = vpop.permute.xlu1 %2495 }
 0x49c   : > { %3953 = vpow2.f32 %v2263_v40  ;;  %v2212_v15 = vpop.permute.xlu0 %2211  ;;  %3748 = vmatprep.subr.bf16.mxu0 %v2496_v34  ;;  %3750 = vmatprep.mubr.bf16.mxu0 %v2487_v3 }
 0x49d   : > { %v3942_v8 = vpop.eup %3941  ;;  %v2241_v0 = vsub.f32 %v5095_v24, %v2212_v15  ;;  %v2143_v15 = vmul.f32 1.442695, %v2114_v19 }
 0x49e   : > { %3749 = vmatpush3.bf16.msra.mxu0 %v2496_v34  ;;  %2324 = vadd.xlane.f32.xlu1 %v3942_v8  ;;  %v3944_v4 = vpop.eup %3943  ;;  %v2490_v17 = vpack.c.bf16 %v3942_v8, %v3940_v22  ;;  %v5595_v34 = vsub.f32 %v5190_v62, %v5203_v49  ;;  %v2668_v62 = vld [vmem:[#allocation3 + $0x8] sm:$0xff] }
 0x49f   : > { %2322 = vadd.xlane.f32.xlu0 %v3940_v22  ;;  %v2269_v36 = vmul.f32 1.442695, %v2241_v0  ;;  %v2674_v0 = vld [vmem:[#allocation3 + $0x38] sm:$0xff] }
 0x4a0   : > { %v2222_v53 = vpop.permute.xlu0 %2221  ;;  %v2139_v22 = vmul.f32 1.442695, %v5595_v34 }
 0x4a1   : > { %3751 = vmatmul.mubr.bf16.vlgmr.msra.gmra.mxu0 %v2488_v60  ;;  %v3946_v39 = vpop.eup %3945  ;;  %v2243_v51 = vsub.f32 %v5090_v14, %v2222_v53  ;;  %v1511_v60 = vld [vmem:[#allocation4 + $0x70] sm:$0xff] }
 0x4a2   : > { %2320 = vadd.xlane.f32.xlu1 %v3946_v39  ;;  %v2489_v23 = vpack.c.bf16 %v3946_v39, %v3944_v4  ;;  %v3948_v28 = vpop.eup %3947 }
 0x4a3   : > { %2318 = vadd.xlane.f32.xlu0 %v3944_v4  ;;  %v2273_v10 = vmul.f32 1.442695, %v2243_v51 }
 0x4a4   : > { %v1581_v20 = vpop.permute.xlu0 %1580  ;;  %3754 = vmatprep.mubr.bf16.mxu0 %v2489_v23 }
 0x4a5   : > { %v3950_v32 = vpop.eup %3949  ;;  %3955 = vpow2.f32 %v2273_v10  ;;  %v1606_v25 = vmul.f32 %v1581_v20, %v1510_v30 }
 0x4a6   : > { %2332 = vadd.xlane.f32.xlu1 %v3950_v32  ;;  %v3952_v21 = vpop.eup %3951  ;;  %3957 = vpow2.f32 %v2269_v36 }
 0x4a7   : > { %2330 = vadd.xlane.f32.xlu0 %v3948_v28  ;;  %v1775_v24 = vadd.f32 %v5022_v44, %v1606_v25  ;;  %3959 = vpow2.f32 %v2133_v46  ;;  %v2492_v44 = vpack.c.bf16 %v3950_v32, %v3948_v28  ;;  %v2669_v46 = vld [vmem:[#allocation3 + $0x10] sm:$0xff] }
 0x4a8   : > { %v1591_v14 = vpop.permute.xlu0 %1590  ;;  %3961 = vpow2.f32 %v2131_v7 }
 0x4a9   : > { %3755 = vmatmul.mubr.bf16.gmra.mxu0 %v2490_v17  ;;  %v3954_v48 = vpop.eup %3953  ;;  %1791 = vst.msk [vmem:[#allocation4 + $0x68] sm:$0xff] %vm799_vm0, %v1775_v24  ;;  %v1608_v57 = vmul.f32 %v1591_v14, %v1512_v56  ;;  %v5597_v56 = vsub.f32 %v5235_v29, %v5245_v50  ;;  %v5598_v24 = vsub.f32 %v5215_v26, %v5231_v12  ;;  %v2667_v14 = vld [vmem:[#allocation3] sm:$0xff]  ;;  %v2673_v26 = vld [vmem:[#allocation3 + $0x30] sm:$0xff] }
 0x4aa   : > { %2328 = vadd.xlane.f32.xlu1 %v3954_v48  ;;  %v2491_v58 = vpack.c.bf16 %v3954_v48, %v3952_v21 }
 0x4ab   : > { %2326 = vadd.xlane.f32.xlu0 %v3952_v21  ;;  %v1777_v41 = vadd.f32 %v5014_v31, %v1608_v57  ;;  %v5594_v31 = vsub.f32 %v5206_v13, %v5222_v27  ;;  %v2670_v27 = vld [vmem:[#allocation3 + $0x18] sm:$0xff]  ;;  %v2141_v17 = vmul.f32 1.442695, %v5597_v56  ;;  %v2145_v21 = vmul.f32 1.442695, %v5598_v24  ;;  %v2675_v57 = vld [vmem:[#allocation3 + $0x40] sm:$0xff] }
 0x4ac   : > { %3758 = vmatprep.mubr.bf16.mxu0 %v2491_v58  ;;  %v5394_v58 = vpop.permute.xlu0 %2393 }
 0x4ad   : > { %1793 = vst.msk [vmem:[#allocation4 + $0x78] sm:$0xff] %vm799_vm0, %v1777_v41  ;;  %v2135_v3 = vmul.f32 1.442695, %v5594_v31 }
 0x4af   : > { %3963 = vpow2.f32 %v2135_v3  ;;  %v2280_v3 = vld [vmem:[#allocation3 + $0x90] sm:$0xff] }
 0x4b0   : > { %3965 = vpow2.f32 %v2139_v22  ;;  %v2296_v34 = vmul.f32 %v5307_v38, %v2280_v3 }
 0x4b1   : > { %3759 = vmatmul.mubr.bf16.gmra.mxu0 %v2492_v44  ;;  %3967 = vpow2.f32 %v2143_v15 }
 0x4b2   : > { %v3956_v59 = vpop.eup %3955  ;;  %3969 = vpow2.f32 %v2147_v2 }
 0x4b3   : > { %2338 = vadd.xlane.f32.xlu0 %v3956_v59  ;;  %v3958_v40 = vpop.eup %3957  ;;  %3971 = vrcp.f32 %v2668_v62  ;;  %v2278_v62 = vld [vmem:[#allocation3 + $0x80] sm:$0xff] }
 0x4b4   : > { %v5337_v47 = vpop.eup %3959  ;;  %3973 = vrcp.f32 %v2670_v27  ;;  %v2294_v27 = vmul.f32 %v5262_v42, %v2278_v62 }
 0x4b5   : > { %v5355_v43 = vpop.eup %3961 }
 0x4b7   : > { %2334 = vadd.xlane.f32.xlu0 %v3958_v40 }
 0x4bb   : > { %2433 = vperm.xlu1 %3828, %v5337_v47  }
 0x4bc   : > { %v5358_v13 = vpop.eup %3963 }
 0x4bd   : > { %v5362_v55 = vpop.eup %3965 }
 0x4be   : > { %v5366_v8 = vpop.eup %3967 }
 0x4bf   : > { %v5369_v39 = vpop.eup %3969 }
 0x4cd   : > { %2428 = vperm.xlu0 %3827, %v5355_v43  }
 0x4d1   : > { %2438 = vperm.xlu0 %3827, %v5358_v13  }
 0x4d2   : > { %v2217_v49 = vpop.permute.xlu1 %2216 }
 0x4d3   : > { %v2242_v11 = vsub.f32 %v5112_v37, %v2217_v49 }
 0x4d5   : > { %v2271_v6 = vmul.f32 1.442695, %v2242_v11  ;;  %2448 = vperm.xlu0 %3827, %v5362_v55  }
 0x4d6   : > { %v2227_v45 = vpop.permute.xlu1 %2226 }
 0x4d7   : > { %3975 = vpow2.f32 %v2271_v6  ;;  %v2244_v19 = vsub.f32 %v5108_v1, %v2227_v45  ;;  %v3972_v1 = vpop.eup %3971  ;;  %v2281_v6 = vld [vmem:[#allocation3 + $0x98] sm:$0xff] }
 0x4d8   : > { %3977 = vrcp.f32 %v2672_v33  ;;  %v3974_v30 = vpop.eup %3973  ;;  %v2279_v33 = vld [vmem:[#allocation3 + $0x88] sm:$0xff] }
 0x4d9   : > { %v2275_v4 = vmul.f32 1.442695, %v2244_v19  ;;  %2458 = vperm.xlu0 %3827, %v5366_v8   ;;  %v2297_v19 = vmul.f32 %v5265_v18, %v2281_v6  ;;  %v2292_v6 = vld [vmem:[#allocation3 + $0xf0] sm:$0xff] }
 0x4da   : > { %v1586_v53 = vpop.permute.xlu1 %1585 }
 0x4db   : > { %3979 = vpow2.f32 %v2275_v4  ;;  %v1607_v37 = vmul.f32 %v1586_v53, %v1511_v60  ;;  %v2295_v4 = vmul.f32 %v5304_v5, %v2279_v33 }
 0x4dc   : > { %3981 = vrcp.f32 %v2674_v0  ;;  %v2285_v0 = vld [vmem:[#allocation3 + $0xb8] sm:$0xff] }
 0x4dd   : > { %v1776_v51 = vadd.f32 %v5010_v9, %v1607_v37  ;;  %2468 = vperm.xlu0 %3827, %v5369_v39   ;;  %v5596_v9 = vsub.f32 %v5181_v35, %v5194_v63  ;;  %v2671_v63 = vld [vmem:[#allocation3 + $0x20] sm:$0xff] }
 0x4de   : > { %v5392_v12 = vpop.permute.xlu1 %2398 }
 0x4df   : > { %1792 = vst.msk [vmem:[#allocation4 + $0x70] sm:$0xff] %vm799_vm0, %v1776_v51  ;;  %v2137_v25 = vmul.f32 1.442695, %v5596_v9  ;;  %v2284_v51 = vld [vmem:[#allocation3 + $0xb0] sm:$0xff] }
 0x4e1   : > { %2722 = vperm.xlu0 %3827, %v3972_v1   ;;  %3983 = vpow2.f32 %v2137_v25  ;;  %v2301_v1 = vmul.f32 %v5355_v43, %v2285_v0 }
 0x4e2   : > { %3985 = vpow2.f32 %v2141_v17  ;;  %v5396_v44 = vpop.permute.xlu1 %2403  ;;  %v2288_v17 = vld [vmem:[#allocation3 + $0xd0] sm:$0xff] }
 0x4e3   : > { %3987 = vpow2.f32 %v2145_v21 }
 0x4e4   : > { %v3976_v23 = vpop.eup %3975  ;;  %3989 = vrcp.f32 %v2667_v14 }
 0x4e5   : > { %2732 = vperm.xlu0 %3827, %v3974_v30   ;;  %v2493_v10 = vpack.c.bf16 %v3976_v23, %v3958_v40  ;;  %v3978_v28 = vpop.eup %3977  ;;  %3991 = vrcp.f32 %v2669_v46  ;;  %v2300_v30 = vmul.f32 %v5313_v16, %v2284_v51  ;;  %v2289_v16 = vld [vmem:[#allocation3 + $0xd8] sm:$0xff] }
 0x4e6   : > { %3993 = vrcp.f32 %v2671_v63  ;;  %v5400_v54 = vpop.permute.xlu1 %2413  ;;  %v2305_v46 = vmul.f32 %v5362_v55, %v2289_v16 }
 0x4e7   : > { %3762 = vmatprep.mubr.bf16.mxu0 %v2493_v10  ;;  %3995 = vrcp.f32 %v2673_v26 }
 0x4e8   : > { %v3980_v20 = vpop.eup %3979  ;;  %3997 = vrcp.f32 %v2675_v57 }
 0x4e9   : > { %2742 = vperm.xlu0 %3827, %v3978_v28   ;;  %2340 = vadd.xlane.f32.xlu1 %v3980_v20  ;;  %v2494_v32 = vpack.c.bf16 %v3980_v20, %v3956_v59  ;;  %v3982_v36 = vpop.eup %3981  ;;  %v5398_v59 = vpop.permute.xlu0 %2408  ;;  %v2283_v28 = vld [vmem:[#allocation3 + $0xa8] sm:$0xff]  ;;  %v2282_v20 = vld [vmem:[#allocation3 + $0xa0] sm:$0xff] }
 0x4ea   : > { %v5405_v15 = vpop.permute.xlu1 %2423  ;;  %v2298_v9 = vmul.f32 %v5310_v61, %v2282_v20  ;;  %v2287_v61 = vld [vmem:[#allocation3 + $0xc8] sm:$0xff] }
 0x4eb   : > { %3763 = vmatmul.mubr.bf16.gmra.mxu0 %v2494_v32 }
 0x4ed   : > { %2752 = vperm.xlu0 %3827, %v3982_v36   ;;  %2336 = vadd.xlane.f32.xlu1 %v3976_v23  ;;  %v5402_v31 = vpop.permute.xlu0 %2418  ;;  %v2299_v36 = vmul.f32 %v5268_v52, %v2283_v28 }
 0x4ee   : > { %v5383_v48 = vpop.eup %3983 }
 0x4ef   : > { %v5386_v35 = vpop.eup %3985  ;;  %v2304_v63 = vmul.f32 %v5383_v48, %v2288_v17  ;;  %v2680_v17 = vld [vmem:[#allocation3 + $0x68] sm:$0xff] }
 0x4f0   : > { %v5389_v29 = vpop.eup %3987 }
 0x4f1   : > { %v3990_v50 = vpop.eup %3989  ;;  %v2308_v33 = vmul.f32 %v5389_v29, %v2292_v6  ;;  %v2381_v6 = vld [vmem:[#allocation4 + $0xb0] sm:$0xff] }
 0x4f2   : > { %v3992_v41 = vpop.eup %3991 }
 0x4f3   : > { %v3994_v40 = vpop.eup %3993 }
 0x4f4   : > { %v3996_v7 = vpop.eup %3995 }
 0x4f5   : > { %v3998_v22 = vpop.eup %3997 }
 0x4fe   : > { %2443 = vperm.xlu1 %3828, %v5383_v48  }
 0x502   : > { %2453 = vperm.xlu1 %3828, %v5386_v35  }
 0x506   : > { %2463 = vperm.xlu1 %3828, %v5389_v29  }
 0x50a   : > { %2717 = vperm.xlu1 %3828, %v3990_v50   ;;  %v2286_v50 = vld [vmem:[#allocation3 + $0xc0] sm:$0xff] }
 0x50b   : > { %v2302_v55 = vmul.f32 %v5337_v47, %v2286_v50 }
 0x50e   : > { %2727 = vperm.xlu1 %3828, %v3992_v41  }
 0x512   : > { %2737 = vperm.xlu1 %3828, %v3994_v40  }
 0x516   : > { %2747 = vperm.xlu1 %3828, %v3996_v7  }
 0x519   : > { %v2315_v2 = vpop.xlane.xlu0 %2314 }
 0x51a   : > { %v2344_v49 = vadd.f32 %v2315_v2, %v2296_v34  ;;  %2757 = vperm.xlu1 %3828, %v3998_v22   ;;  %v2303_v34 = vmul.f32 %v5358_v13, %v2287_v61  ;;  %v2375_v61 = vld [vmem:[#allocation4 + $0x80] sm:$0xff] }
 0x51c   : > { %2360 = vst.msk [vmem:[#allocation3 + $0x90] sm:$0xff] %vm734_vm1, %v2344_v49 }
 0x51d   : > { %v2311_v11 = vpop.xlane.xlu1 %2310 }
 0x51e   : > { %v2342_v45 = vadd.f32 %v2311_v11, %v2294_v27 }
 0x520   : > { %2358 = vst.msk [vmem:[#allocation3 + $0x80] sm:$0xff] %vm734_vm1, %v2342_v45 }
 0x521   : > { %v2317_v38 = vpop.xlane.xlu1 %2316 }
 0x522   : > { %v2345_v60 = vadd.f32 %v2317_v38, %v2297_v19  ;;  %v2290_v38 = vld [vmem:[#allocation3 + $0xe0] sm:$0xff] }
 0x523   : > { %v2894_v53 = vld [vmem:[#allocation3 + $0x90] sm:$0xff]  ;;  %v2313_v37 = vpop.xlane.xlu0 %2312  ;;  %v2306_v0 = vmul.f32 %v5386_v35, %v2290_v38 }
 0x524   : > { %3999 = vrcp.f32 %v2894_v53  ;;  %2361 = vst.msk [vmem:[#allocation3 + $0x98] sm:$0xff] %vm734_vm1, %v2345_v60  ;;  %v2343_v42 = vadd.f32 %v2313_v37, %v2295_v4 }
 0x526   : > { %2359 = vst.msk [vmem:[#allocation3 + $0x88] sm:$0xff] %vm734_vm1, %v2343_v42 }
 0x527   : > { %v2892_v23 = vld [vmem:[#allocation3 + $0x80] sm:$0xff]  ;;  %v2325_v18 = vpop.xlane.xlu1 %2324 }
 0x528   : > { %v2323_v10 = vpop.xlane.xlu0 %2322  ;;  %4001 = vrcp.f32 %v2892_v23  ;;  %v2349_v5 = vadd.f32 %v2325_v18, %v2301_v1 }
 0x529   : > { %v2348_v32 = vadd.f32 %v2323_v10, %v2300_v30 }
 0x52a   : > { %2365 = vst.msk [vmem:[#allocation3 + $0xb8] sm:$0xff] %vm734_vm1, %v2349_v5 }
 0x52b   : > { %2364 = vst.msk [vmem:[#allocation3 + $0xb0] sm:$0xff] %vm734_vm1, %v2348_v32  ;;  %v2895_v25 = vld [vmem:[#allocation3 + $0x98] sm:$0xff]  ;;  %v2321_v43 = vpop.xlane.xlu1 %2320 }
 0x52c   : > { %v2319_v56 = vpop.xlane.xlu0 %2318  ;;  %4003 = vrcp.f32 %v2895_v25  ;;  %v2347_v24 = vadd.f32 %v2321_v43, %v2299_v36  ;;  %v2678_v43 = vld [vmem:[#allocation3 + $0x58] sm:$0xff] }
 0x52d   : > { %v2346_v21 = vadd.f32 %v2319_v56, %v2298_v9  ;;  %v2893_v14 = vld [vmem:[#allocation3 + $0x88] sm:$0xff] }
 0x52e   : > { %2363 = vst.msk [vmem:[#allocation3 + $0xa8] sm:$0xff] %vm734_vm1, %v2347_v24  ;;  %4005 = vrcp.f32 %v2893_v14  ;;  %v2676_v9 = vld [vmem:[#allocation3 + $0x48] sm:$0xff]  ;;  %v2682_v14 = vld [vmem:[#allocation3 + $0x78] sm:$0xff] }
 0x52f   : > { %2362 = vst.msk [vmem:[#allocation3 + $0xa0] sm:$0xff] %vm734_vm1, %v2346_v21  ;;  %v2333_v52 = vpop.xlane.xlu1 %2332 }
 0x530   : > { %v2331_v26 = vpop.xlane.xlu0 %2330  ;;  %v2353_v57 = vadd.f32 %v2333_v52, %v2305_v46  ;;  %v2377_v46 = vld [vmem:[#allocation4 + $0x90] sm:$0xff] }
 0x531   : > { %v2352_v41 = vadd.f32 %v2331_v26, %v2304_v63  ;;  %v4000_v40 = vpop.eup %3999  ;;  %v2899_v7 = vld [vmem:[#allocation3 + $0xb8] sm:$0xff]  ;;  %v2700_v63 = vld [vmem:[#allocation4 + $0x8] sm:$0xff]  ;;  %v2473_v50 = vmul.f32 %v5396_v44, %v2377_v46 }
 0x532   : > { %v2898_v3 = vld [vmem:[#allocation3 + $0xb0] sm:$0xff]  ;;  %2369 = vst.msk [vmem:[#allocation3 + $0xd8] sm:$0xff] %vm734_vm1, %v2353_v57  ;;  %2952 = vperm.xlu0 %3827, %v4000_v40   ;;  %v2378_v40 = vld [vmem:[#allocation4 + $0x98] sm:$0xff] }
 0x533   : > { %2368 = vst.msk [vmem:[#allocation3 + $0xd0] sm:$0xff] %vm734_vm1, %v2352_v41  ;;  %4007 = vrcp.f32 %v2898_v3  ;;  %v2329_v48 = vpop.xlane.xlu1 %2328 }
 0x534   : > { %v2327_v22 = vpop.xlane.xlu0 %2326  ;;  %4009 = vrcp.f32 %v2899_v7  ;;  %v2351_v2 = vadd.f32 %v2329_v48, %v2303_v34  ;;  %v2702_v7 = vld [vmem:[#allocation4 + $0x18] sm:$0xff] }
 0x535   : > { %v2350_v62 = vadd.f32 %v2327_v22, %v2302_v55  ;;  %v4002_v49 = vpop.eup %4001  ;;  %v2897_v27 = vld [vmem:[#allocation3 + $0xa8] sm:$0xff]  ;;  %v2471_v55 = vmul.f32 %v5394_v58, %v2375_v61 }
 0x536   : > { %v2896_v11 = vld [vmem:[#allocation3 + $0xa0] sm:$0xff]  ;;  %2367 = vst.msk [vmem:[#allocation3 + $0xc8] sm:$0xff] %vm734_vm1, %v2351_v2  ;;  %2942 = vperm.xlu0 %3827, %v4002_v49   ;;  %v2376_v2 = vld [vmem:[#allocation4 + $0x88] sm:$0xff]  ;;  %v2474_v49 = vmul.f32 %v5398_v59, %v2378_v40 }
 0x537   : > { %2366 = vst.msk [vmem:[#allocation3 + $0xc0] sm:$0xff] %vm734_vm1, %v2350_v62  ;;  %4011 = vrcp.f32 %v2896_v11  ;;  %v2472_v58 = vmul.f32 %v5392_v12, %v2376_v2  ;;  %v2379_v59 = vld [vmem:[#allocation4 + $0xa0] sm:$0xff]  ;;  %v2291_v61 = vld [vmem:[#allocation3 + $0xe8] sm:$0xff]  ;;  %v2385_v2 = vld [vmem:[#allocation4 + $0xd0] sm:$0xff] }
 0x538   : > { %4013 = vrcp.f32 %v2897_v27 }
 0x539   : > { %v4004_v13 = vpop.eup %4003  ;;  %v2903_v45 = vld [vmem:[#allocation3 + $0xd8] sm:$0xff] }
 0x53a   : > { %v2902_v47 = vld [vmem:[#allocation3 + $0xd0] sm:$0xff]  ;;  %2957 = vperm.xlu1 %3828, %v4004_v13   ;;  %v2704_v13 = vld [vmem:[#allocation4 + $0x28] sm:$0xff] }
 0x53b   : > { %4015 = vrcp.f32 %v2902_v47  ;;  %v4006_v60 = vpop.eup %4005 }
 0x53c   : > { %4017 = vrcp.f32 %v2903_v45  ;;  %v2339_v19 = vpop.xlane.xlu0 %2338 }
 0x53d   : > { %v2901_v4 = vld [vmem:[#allocation3 + $0xc8] sm:$0xff]  ;;  %v2356_v37 = vadd.f32 %v2339_v19, %v2308_v33 }
 0x53e   : > { %v2900_v53 = vld [vmem:[#allocation3 + $0xc0] sm:$0xff]  ;;  %2947 = vperm.xlu1 %3828, %v4006_v60   ;;  %v2477_v60 = vmul.f32 %v5405_v15, %v2381_v6  ;;  %v2380_v15 = vld [vmem:[#allocation4 + $0xa8] sm:$0xff] }
 0x53f   : > { %4019 = vrcp.f32 %v2900_v53  ;;  %2372 = vst.msk [vmem:[#allocation3 + $0xf0] sm:$0xff] %vm734_vm1, %v2356_v37  ;;  %v2699_v6 = vld [vmem:[#allocation4] sm:$0xff] }
 0x540   : > { %v4008_v51 = vpop.eup %4007  ;;  %4021 = vrcp.f32 %v2901_v4  ;;  %v2335_v42 = vpop.xlane.xlu0 %2334 }
 0x541   : > { %v4010_v1 = vpop.eup %4009  ;;  %v2354_v30 = vadd.f32 %v2335_v42, %v2306_v0  ;;  %2972 = vperm.xlu0 %3827, %v4008_v51   ;;  %v2382_v0 = vld [vmem:[#allocation4 + $0xb8] sm:$0xff] }
 0x542   : > { %2977 = vperm.xlu1 %3828, %v4010_v1   ;;  %v2706_v51 = vld [vmem:[#allocation4 + $0x38] sm:$0xff]  ;;  %v2475_v1 = vmul.f32 %v5400_v54, %v2379_v59 }
 0x543   : > { %2370 = vst.msk [vmem:[#allocation3 + $0xe0] sm:$0xff] %vm734_vm1, %v2354_v30 }
 0x544   : > { %v4012_v29 = vpop.eup %4011 }
 0x545   : > { %v4014_v23 = vpop.eup %4013  ;;  %2962 = vperm.xlu0 %3827, %v4012_v29  }
 0x546   : > { %2967 = vperm.xlu1 %3828, %v4014_v23   ;;  %v2906_v5 = vld [vmem:[#allocation3 + $0xf0] sm:$0xff] }
 0x548   : > { %v4016_v18 = vpop.eup %4015  ;;  %v5434_v10 = vpop.permute.xlu0 %2428 }
 0x549   : > { %v4018_v28 = vpop.eup %4017  ;;  %2992 = vperm.xlu0 %3827, %v4016_v18   ;;  %v2478_v18 = vmul.f32 %v5434_v10, %v2382_v0 }
 0x54a   : > { %v2904_v35 = vld [vmem:[#allocation3 + $0xe0] sm:$0xff]  ;;  %2997 = vperm.xlu1 %3828, %v4018_v28  }
 0x54b   : > { %4023 = vrcp.f32 %v2904_v35 }
 0x54c   : > { %v4020_v20 = vpop.eup %4019  ;;  %v5436_v32 = vpop.permute.xlu0 %2438  ;;  %4025 = vrcp.f32 %v2906_v5 }
 0x54d   : > { %v4022_v36 = vpop.eup %4021  ;;  %2982 = vperm.xlu0 %3827, %v4020_v20   ;;  %4027 = vrcp.f32 %v2676_v9  ;;  %v2383_v9 = vld [vmem:[#allocation4 + $0xc0] sm:$0xff] }
 0x54e   : > { %2987 = vperm.xlu1 %3828, %v4022_v36   ;;  %4029 = vrcp.f32 %v2678_v43  ;;  %v2476_v36 = vmul.f32 %v5402_v31, %v2380_v15  ;;  %v2434_v43 = vpop.permute.xlu1 %2433 }
 0x54f   : > { %4031 = vrcp.f32 %v2680_v17  ;;  %v2293_v17 = vld [vmem:[#allocation3 + $0xf8] sm:$0xff]  ;;  %v2479_v46 = vmul.f32 %v2434_v43, %v2383_v9 }
 0x550   : > { %v5438_v25 = vpop.permute.xlu0 %2448  ;;  %4033 = vrcp.f32 %v2682_v14  ;;  %v2309_v31 = vmul.f32 %v5369_v39, %v2293_v17  ;;  %v2390_v43 = vld [vmem:[#allocation4 + $0xf8] sm:$0xff] }
 0x554   : > { %v5441_v56 = vpop.permute.xlu0 %2458 }
 0x558   : > { %v4024_v16 = vpop.eup %4023  ;;  %v5443_v24 = vpop.permute.xlu0 %2468 }
 0x559   : > { %3002 = vperm.xlu0 %3827, %v4024_v16   ;;  %v4026_v21 = vpop.eup %4025 }
 0x55a   : > { %v4028_v41 = vpop.eup %4027 }
 0x55b   : > { %v4030_v11 = vpop.eup %4029 }
 0x55c   : > { %v2723_v52 = vpop.permute.xlu0 %2722  ;;  %v4032_v37 = vpop.eup %4031 }
 0x55d   : > { %v2796_v26 = vmul.f32 %v2723_v52, %v2700_v63  ;;  %3012 = vperm.xlu0 %3827, %v4026_v21   ;;  %v4034_v20 = vpop.eup %4033  ;;  %v2386_v21 = vld [vmem:[#allocation4 + $0xd8] sm:$0xff]  ;;  %v2384_v63 = vld [vmem:[#allocation4 + $0xc8] sm:$0xff] }
 0x55f   : > { %v3464_v57 = vpack.c.bf16 %v2796_v26, %v2796_v26 }
 0x560   : > { %v2733_v3 = vpop.permute.xlu0 %2732 }
 0x561   : > { %v3752_v34 = vpop.f32.mrf.mxu0  ;;  %2877 = vst.msk [vmem:[%s5448_s13 + $0x4] sm:$0xf] %vm2875_vm2, %v3464_v57  ;;  %v2798_v48 = vmul.f32 %v2733_v3, %v2702_v7  ;;  %2762 = vperm.xlu0 %3827, %v4028_v41   ;;  %v2480_v7 = vmul.f32 %v5436_v32, %v2384_v63  ;;  %v2486_v63 = vmul.f32 %v5443_v24, %v2390_v43 }
 0x562   : > { %v2618_v22 = vadd.f32 %v3752_v34, %v2473_v50  ;;  %v2482_v50 = vmul.f32 %v5438_v25, %v2386_v21  ;;  %v2307_v34 = vmul.f32 %v5366_v8, %v2291_v61  ;;  %v2388_v21 = vld [vmem:[#allocation4 + $0xe8] sm:$0xff] }
 0x563   : > { %v2553_v62 = vpop.f32.mrf.mxu0  ;;  %v3466_v27 = vpack.c.bf16 %v2798_v48, %v2798_v48 }
 0x564   : > { %2634 = vst.msk [vmem:[#allocation4 + $0x90] sm:$0xff] %vm799_vm0, %v2618_v22  ;;  %v2616_v44 = vadd.f32 %v2553_v62, %v2471_v55  ;;  %v2743_v45 = vpop.permute.xlu0 %2742 }
 0x565   : > { %v3753_v47 = vpop.f32.mrf.mxu0  ;;  %2879 = vst.msk [vmem:[%s5448_s13 + $0xc] sm:$0xf] %vm2875_vm2, %v3466_v27  ;;  %v2800_v33 = vmul.f32 %v2743_v45, %v2704_v13  ;;  %2772 = vperm.xlu0 %3827, %v4030_v11   ;;  %v2677_v11 = vld [vmem:[#allocation3 + $0x50] sm:$0xff] }
 0x566   : > { %2632 = vst.msk [vmem:[#allocation4 + $0x80] sm:$0xff] %vm799_vm0, %v2616_v44  ;;  %v2619_v19 = vadd.f32 %v3753_v47, %v2474_v49 }
 0x567   : > { %v2556_v38 = vpop.f32.mrf.mxu0  ;;  %v3468_v4 = vpack.c.bf16 %v2800_v33, %v2800_v33  ;;  %v2701_v33 = vld [vmem:[#allocation4 + $0x10] sm:$0xff] }
 0x568   : > { %2635 = vst.msk [vmem:[#allocation4 + $0x98] sm:$0xff] %vm799_vm0, %v2619_v19  ;;  %v2617_v53 = vadd.f32 %v2556_v38, %v2472_v58  ;;  %v2753_v12 = vpop.permute.xlu0 %2752  ;;  %v2679_v58 = vld [vmem:[#allocation3 + $0x60] sm:$0xff] }
 0x569   : > { %v3756_v42 = vpop.f32.mrf.mxu0  ;;  %2881 = vst.msk [vmem:[%s5448_s13 + $0x14] sm:$0xf] %vm2875_vm2, %v3468_v4  ;;  %v2802_v30 = vmul.f32 %v2753_v12, %v2706_v51  ;;  %2782 = vperm.xlu0 %3827, %v4032_v37   ;;  %v2681_v4 = vld [vmem:[#allocation3 + $0x70] sm:$0xff] }
 0x56a   : > { %2633 = vst.msk [vmem:[#allocation4 + $0x88] sm:$0xff] %vm799_vm0, %v2617_v53  ;;  %v2622_v29 = vadd.f32 %v3756_v42, %v2477_v60  ;;  %v2703_v53 = vld [vmem:[#allocation4 + $0x20] sm:$0xff]  ;;  %v2705_v42 = vld [vmem:[#allocation4 + $0x30] sm:$0xff] }
 0x56b   : > { %v2569_v23 = vpop.f32.mrf.mxu0  ;;  %v3470_v28 = vpack.c.bf16 %v2802_v30, %v2802_v30 }
 0x56c   : > { %2638 = vst.msk [vmem:[#allocation4 + $0xb0] sm:$0xff] %vm799_vm0, %v2622_v29  ;;  %v2620_v35 = vadd.f32 %v2569_v23, %v2475_v1  ;;  %v2707_v23 = vld [vmem:[#allocation4 + $0x40] sm:$0xff] }
 0x56d   : > { %v3757_v5 = vpop.f32.mrf.mxu0  ;;  %2883 = vst.msk [vmem:[%s5448_s13 + $0x1c] sm:$0xf] %vm2875_vm2, %v3470_v28  ;;  %2792 = vperm.xlu0 %3827, %v4034_v20  }
 0x56e   : > { %2636 = vst.msk [vmem:[#allocation4 + $0xa0] sm:$0xff] %vm799_vm0, %v2620_v35  ;;  %v2623_v54 = vadd.f32 %v3757_v5, %v2478_v18 }
 0x56f   : > { %v2572_v16 = vpop.f32.mrf.mxu0 }
 0x570   : > { %2639 = vst.msk [vmem:[#allocation4 + $0xb8] sm:$0xff] %vm799_vm0, %v2623_v54  ;;  %v2621_v10 = vadd.f32 %v2572_v16, %v2476_v36  ;;  %v2389_v36 = vld [vmem:[#allocation4 + $0xf0] sm:$0xff]  ;;  %v2387_v54 = vld [vmem:[#allocation4 + $0xe0] sm:$0xff] }
 0x571   : > { %v3760_v14 = vpop.f32.mrf.mxu0 }
 0x572   : > { %2637 = vst.msk [vmem:[#allocation4 + $0xa8] sm:$0xff] %vm799_vm0, %v2621_v10  ;;  %v2341_v52 = vpop.xlane.xlu1 %2340 }
 0x573   : > { %v2585_v26 = vpop.f32.mrf.mxu0  ;;  %v2357_v57 = vadd.f32 %v2341_v52, %v2309_v31 }
 0x574   : > { %v2624_v41 = vadd.f32 %v2585_v26, %v2479_v46  ;;  %v2926_v46 = vld [vmem:[#allocation4 + $0x90] sm:$0xff] }
 0x575   : > { %v3761_v40 = vpop.f32.mrf.mxu0  ;;  %2373 = vst.msk [vmem:[#allocation3 + $0xf8] sm:$0xff] %vm734_vm1, %v2357_v57 }
 0x576   : > { %2640 = vst.msk [vmem:[#allocation4 + $0xc0] sm:$0xff] %vm799_vm0, %v2624_v41  ;;  %v2627_v3 = vadd.f32 %v3761_v40, %v2482_v50  ;;  %v2337_v55 = vpop.xlane.xlu1 %2336  ;;  %v2484_v50 = vmul.f32 %v5441_v56, %v2388_v21 }
 0x577   : > { %v2588_v39 = vpop.f32.mrf.mxu0  ;;  %v2355_v48 = vadd.f32 %v2337_v55, %v2307_v34 }
 0x578   : > { %2643 = vst.msk [vmem:[#allocation4 + $0xd8] sm:$0xff] %vm799_vm0, %v2627_v3  ;;  %v2625_v22 = vadd.f32 %v2588_v39, %v2480_v7  ;;  %v2924_v7 = vld [vmem:[#allocation4 + $0x80] sm:$0xff] }
 0x579   : > { %2371 = vst.msk [vmem:[#allocation3 + $0xe8] sm:$0xff] %vm734_vm1, %v2355_v48  ;;  %v2927_v48 = vld [vmem:[#allocation4 + $0x98] sm:$0xff] }
 0x57a   : > { %2641 = vst.msk [vmem:[#allocation4 + $0xc8] sm:$0xff] %vm799_vm0, %v2625_v22  ;;  %v2444_v25 = vpop.permute.xlu1 %2443 }
 0x57b   : > { %v2481_v32 = vmul.f32 %v2444_v25, %v2385_v2  ;;  %v2925_v2 = vld [vmem:[#allocation4 + $0x88] sm:$0xff] }
 0x57c   : > { %v2907_v8 = vld [vmem:[#allocation3 + $0xf8] sm:$0xff] }
 0x57d   : > { %v2626_v62 = vadd.f32 %v3760_v14, %v2481_v32 }
 0x57e   : > { %v2454_v49 = vpop.permute.xlu1 %2453 }
 0x57f   : > { %2642 = vst.msk [vmem:[#allocation4 + $0xd0] sm:$0xff] %vm799_vm0, %v2626_v62  ;;  %v2483_v17 = vmul.f32 %v2454_v49, %v2387_v54  ;;  %v2930_v49 = vld [vmem:[#allocation4 + $0xb0] sm:$0xff] }
 0x580   : > { %v2905_v27 = vld [vmem:[#allocation3 + $0xe8] sm:$0xff] }
 0x581   : > { %4035 = vrcp.f32 %v2905_v27 }
 0x582   : > { %v2464_v44 = vpop.permute.xlu1 %2463  ;;  %4037 = vrcp.f32 %v2907_v8 }
 0x583   : > { %4039 = vrcp.f32 %v2677_v11  ;;  %v2485_v9 = vmul.f32 %v2464_v44, %v2389_v36  ;;  %v2931_v11 = vld [vmem:[#allocation4 + $0xb8] sm:$0xff] }
 0x584   : > { %4041 = vrcp.f32 %v2679_v58 }
 0x585   : > { %4043 = vrcp.f32 %v2681_v4 }
 0x586   : > { %v2718_v13 = vpop.permute.xlu1 %2717 }
 0x587   : > { %v2795_v45 = vmul.f32 %v2718_v13, %v2699_v6 }
 0x589   : > { %v3463_v47 = vpack.c.bf16 %v2795_v45, %v2795_v45 }
 0x58a   : > { %v2728_v19 = vpop.permute.xlu1 %2727 }
 0x58b   : > { %2876 = vst.msk [vmem:[%s5448_s13] sm:$0xf] %vm2875_vm2, %v3463_v47  ;;  %v2797_v59 = vmul.f32 %v2728_v19, %v2701_v33  ;;  %v2928_v47 = vld [vmem:[#allocation4 + $0xa0] sm:$0xff]  ;;  %v2929_v19 = vld [vmem:[#allocation4 + $0xa8] sm:$0xff] }
 0x58d   : > { %v3465_v38 = vpack.c.bf16 %v2797_v59, %v2797_v59 }
 0x58e   : > { %v4036_v60 = vpop.eup %4035  ;;  %v2738_v37 = vpop.permute.xlu1 %2737 }
 0x58f   : > { %2878 = vst.msk [vmem:[%s5448_s13 + $0x8] sm:$0xf] %vm2875_vm2, %v3465_v38  ;;  %v2799_v0 = vmul.f32 %v2738_v37, %v2703_v53  ;;  %3007 = vperm.xlu1 %3828, %v4036_v60   ;;  %v4038_v12 = vpop.eup %4037  ;;  %v2934_v53 = vld [vmem:[#allocation4 + $0xd0] sm:$0xff] }
 0x590   : > { %v4040_v15 = vpop.eup %4039 }
 0x591   : > { %v3467_v51 = vpack.c.bf16 %v2799_v0, %v2799_v0  ;;  %v4042_v20 = vpop.eup %4041 }
 0x592   : > { %v2748_v1 = vpop.permute.xlu1 %2747  ;;  %v4044_v5 = vpop.eup %4043 }
 0x593   : > { %2880 = vst.msk [vmem:[%s5448_s13 + $0x10] sm:$0xf] %vm2875_vm2, %v3467_v51  ;;  %v2801_v30 = vmul.f32 %v2748_v1, %v2705_v42  ;;  %3017 = vperm.xlu1 %3828, %v4038_v12   ;;  %v2935_v12 = vld [vmem:[#allocation4 + $0xd8] sm:$0xff] }
 0x595   : > { %v3469_v29 = vpack.c.bf16 %v2801_v30, %v2801_v30 }
 0x596   : > { %v2758_v18 = vpop.permute.xlu1 %2757 }
 0x597   : > { %2882 = vst.msk [vmem:[%s5448_s13 + $0x18] sm:$0xf] %vm2875_vm2, %v3469_v29  ;;  %v2803_v28 = vmul.f32 %v2758_v18, %v2707_v23  ;;  %2767 = vperm.xlu1 %3828, %v4040_v15   ;;  %v2932_v29 = vld [vmem:[#allocation4 + $0xc0] sm:$0xff] }
 0x599   : > { %v3471_v35 = vpack.c.bf16 %v2803_v28, %v2803_v28  ;;  %v2933_v28 = vld [vmem:[#allocation4 + $0xc8] sm:$0xff] }
 0x59b   : > { %2884 = vst.msk [vmem:[%s5448_s13 + $0x20] sm:$0xf] %vm2875_vm2, %v3471_v35  ;;  %2777 = vperm.xlu1 %3828, %v4042_v20  }
 0x59f   : > { %2787 = vperm.xlu1 %3828, %v4044_v5  }
 0x5ab   : > { %v3764_v16 = vpop.f32.mrf.mxu0 }
 0x5ac   : > { %v2630_v10 = vadd.f32 %v3764_v16, %v2485_v9 }
 0x5ad   : > { %v2601_v14 = vpop.f32.mrf.mxu0  ;;  %v2953_v31 = vpop.permute.xlu0 %2952 }
 0x5ae   : > { %2646 = vst.msk [vmem:[#allocation4 + $0xf0] sm:$0xff] %vm799_vm0, %v2630_v10  ;;  %v2628_v52 = vadd.f32 %v2601_v14, %v2483_v17  ;;  %v3022_v26 = vmul.f32 %v2953_v31, %v2926_v46  ;;  %v2708_v14 = vld [vmem:[#allocation4 + $0x48] sm:$0xff] }
 0x5af   : > { %v3765_v61 = vpop.f32.mrf.mxu0 }
 0x5b0   : > { %2644 = vst.msk [vmem:[#allocation4 + $0xe0] sm:$0xff] %vm799_vm0, %v2628_v52  ;;  %v3481_v57 = vpack.c.bf16 %v3022_v26, %v3022_v26  ;;  %v2631_v41 = vadd.f32 %v3765_v61, %v2486_v63  ;;  %v2710_v52 = vld [vmem:[#allocation4 + $0x58] sm:$0xff] }
 0x5b1   : > { %v2604_v40 = vpop.f32.mrf.mxu0  ;;  %v2943_v3 = vpop.permute.xlu0 %2942 }
 0x5b2   : > { %2647 = vst.msk [vmem:[#allocation4 + $0xf8] sm:$0xff] %vm799_vm0, %v2631_v41  ;;  %v2629_v34 = vadd.f32 %v2604_v40, %v2484_v50  ;;  %v3020_v55 = vmul.f32 %v2943_v3, %v2924_v7  ;;  %3088 = vrot.lane.b32.xlu1 %v3481_v57, %s4096_s7  ;;  %v2712_v57 = vld [vmem:[#allocation4 + $0x68] sm:$0xff]  ;;  %v2714_v3 = vld [vmem:[#allocation4 + $0x78] sm:$0xff] }
 0x5b4   : > { %2645 = vst.msk [vmem:[#allocation4 + $0xe8] sm:$0xff] %vm799_vm0, %v2629_v34  ;;  %v3479_v24 = vpack.c.bf16 %v3020_v55, %v3020_v55 }
 0x5b5   : > { %v2958_v39 = vpop.permute.xlu1 %2957  ;;  %v2938_v16 = vld [vmem:[#allocation4 + $0xf0] sm:$0xff] }
 0x5b6   : > { %v3023_v22 = vmul.f32 %v2958_v39, %v2927_v48  ;;  %3084 = vrot.lane.b32.xlu1 %v3479_v24, %s4096_s7 }
 0x5b7   : > { %v2936_v36 = vld [vmem:[#allocation4 + $0xe0] sm:$0xff] }
 0x5b8   : > { %v3482_v56 = vpack.c.bf16 %v3023_v22, %v3023_v22 }
 0x5b9   : > { %v2948_v25 = vpop.permute.xlu1 %2947 }
 0x5ba   : > { %v3021_v32 = vmul.f32 %v2948_v25, %v2925_v2  ;;  %3090 = vrot.lane.b32.xlu0 %v3482_v56, %s4096_s7  ;;  %v2939_v25 = vld [vmem:[#allocation4 + $0xf8] sm:$0xff] }
 0x5bb   : > { %v2937_v48 = vld [vmem:[#allocation4 + $0xe8] sm:$0xff] }
 0x5bc   : > { %v3480_v62 = vpack.c.bf16 %v3021_v32, %v3021_v32  ;;  %v2973_v27 = vpop.permute.xlu0 %2972 }
 0x5bd   : > { %v3026_v8 = vmul.f32 %v2973_v27, %v2930_v49  ;;  %v2978_v44 = vpop.permute.xlu1 %2977  ;;  %v2709_v49 = vld [vmem:[#allocation4 + $0x50] sm:$0xff] }
 0x5be   : > { %v3027_v6 = vmul.f32 %v2978_v44, %v2931_v11  ;;  %3086 = vrot.lane.b32.xlu0 %v3480_v62, %s4096_s7  ;;  %v2711_v11 = vld [vmem:[#allocation4 + $0x60] sm:$0xff] }
 0x5bf   : > { %v3485_v13 = vpack.c.bf16 %v3026_v8, %v3026_v8 }
 0x5c0   : > { %v3486_v45 = vpack.c.bf16 %v3027_v6, %v3027_v6  ;;  %v2963_v58 = vpop.permute.xlu0 %2962 }
 0x5c1   : > { %v3024_v33 = vmul.f32 %v2963_v58, %v2928_v47  ;;  %3096 = vrot.lane.b32.xlu1 %v3485_v13, %s4096_s7  ;;  %v2968_v59 = vpop.permute.xlu1 %2967  ;;  %v2713_v47 = vld [vmem:[#allocation4 + $0x70] sm:$0xff] }
 0x5c2   : > { %v3025_v38 = vmul.f32 %v2968_v59, %v2929_v19  ;;  %3098 = vrot.lane.b32.xlu0 %v3486_v45, %s4096_s7 }
 0x5c3   : > { %v3483_v60 = vpack.c.bf16 %v3024_v33, %v3024_v33 }
 0x5c4   : > { %v3484_v4 = vpack.c.bf16 %v3025_v38, %v3025_v38  ;;  %v2993_v37 = vpop.permute.xlu0 %2992 }
 0x5c5   : > { %v3030_v0 = vmul.f32 %v2993_v37, %v2934_v53  ;;  %3092 = vrot.lane.b32.xlu1 %v3483_v60, %s4096_s7  ;;  %v2998_v51 = vpop.permute.xlu1 %2997 }
 0x5c6   : > { %v3031_v42 = vmul.f32 %v2998_v51, %v2935_v12  ;;  %3094 = vrot.lane.b32.xlu0 %v3484_v4, %s4096_s7 }
 0x5c7   : > { %v3489_v1 = vpack.c.bf16 %v3030_v0, %v3030_v0 }
 0x5c8   : > { %v3490_v30 = vpack.c.bf16 %v3031_v42, %v3031_v42  ;;  %v2983_v15 = vpop.permute.xlu0 %2982 }
 0x5c9   : > { %v3028_v23 = vmul.f32 %v2983_v15, %v2932_v29  ;;  %3104 = vrot.lane.b32.xlu1 %v3489_v1, %s4096_s7  ;;  %v2988_v18 = vpop.permute.xlu1 %2987 }
 0x5ca   : > { %v3029_v35 = vmul.f32 %v2988_v18, %v2933_v28  ;;  %3106 = vrot.lane.b32.xlu0 %v3490_v30, %s4096_s7 }
 0x5cb   : > { %v3487_v20 = vpack.c.bf16 %v3028_v23, %v3028_v23 }
 0x5cc   : > { %v3488_v5 = vpack.c.bf16 %v3029_v35, %v3029_v35 }
 0x5cd   : > { %3100 = vrot.lane.b32.xlu1 %v3487_v20, %s4096_s7 }
 0x5ce   : > { %3102 = vrot.lane.b32.xlu0 %v3488_v5, %s4096_s7 }
 0x5d4   : > { %v3003_v54 = vpop.permute.xlu0 %3002 }
 0x5d5   : > { %v3032_v9 = vmul.f32 %v3003_v54, %v2936_v36 }
 0x5d7   : > { %v3491_v43 = vpack.c.bf16 %v3032_v9, %v3032_v9 }
 0x5d8   : > { %v3013_v17 = vpop.permute.xlu0 %3012 }
 0x5d9   : > { %v3034_v10 = vmul.f32 %v3013_v17, %v2938_v16  ;;  %3108 = vrot.lane.b32.xlu1 %v3491_v43, %s4096_s7 }
 0x5db   : > { %v3493_v21 = vpack.c.bf16 %v3034_v10, %v3034_v10 }
 0x5dc   : > { %v2763_v46 = vpop.permute.xlu0 %2762 }
 0x5dd   : > { %v2804_v31 = vmul.f32 %v2763_v46, %v2708_v14  ;;  %3112 = vrot.lane.b32.xlu1 %v3493_v21, %s4096_s7 }
 0x5df   : > { %v3472_v63 = vpack.c.bf16 %v2804_v31, %v2804_v31 }
 0x5e0   : > { %v2773_v26 = vpop.permute.xlu0 %2772 }
 0x5e1   : > { %2885 = vst.msk [vmem:[%s5448_s13 + $0x24] sm:$0xf] %vm2875_vm2, %v3472_v63  ;;  %v2806_v61 = vmul.f32 %v2773_v26, %v2710_v52 }
 0x5e3   : > { %v3474_v50 = vpack.c.bf16 %v2806_v61, %v2806_v61 }
 0x5e4   : > { %v2783_v41 = vpop.permute.xlu0 %2782 }
 0x5e5   : > { %2887 = vst.msk [vmem:[%s5448_s13 + $0x2c] sm:$0xf] %vm2875_vm2, %v3474_v50  ;;  %v2808_v40 = vmul.f32 %v2783_v41, %v2712_v57 }
 0x5e7   : > { %v3476_v7 = vpack.c.bf16 %v2808_v40, %v2808_v40 }
 0x5e8   : > { %v2793_v34 = vpop.permute.xlu0 %2792 }
 0x5e9   : > { %2889 = vst.msk [vmem:[%s5448_s13 + $0x34] sm:$0xf] %vm2875_vm2, %v3476_v7  ;;  %v2810_v55 = vmul.f32 %v2793_v34, %v2714_v3 }
 0x5eb   : > { %v3478_v24 = vpack.c.bf16 %v2810_v55, %v2810_v55 }
 0x5ed   : > { %2891 = vst.msk [vmem:[%s5448_s13 + $0x3c] sm:$0xf] %vm2875_vm2, %v3478_v24 }
 0x60a   : > { %v3008_v39 = vpop.permute.xlu1 %3007 }
 0x60b   : > { %v3033_v22 = vmul.f32 %v3008_v39, %v2937_v48 }
 0x60d   : > { %v3492_v56 = vpack.c.bf16 %v3033_v22, %v3033_v22 }
 0x60e   : > { %v3018_v2 = vpop.permute.xlu1 %3017 }
 0x60f   : > { %v3035_v32 = vmul.f32 %v3018_v2, %v2939_v25  ;;  %3110 = vrot.lane.b32.xlu0 %v3492_v56, %s4096_s7 }
 0x611   : > { %v3494_v62 = vpack.c.bf16 %v3035_v32, %v3035_v32 }
 0x612   : > { %v2768_v27 = vpop.permute.xlu1 %2767 }
 0x613   : > { %v2805_v8 = vmul.f32 %v2768_v27, %v2709_v49  ;;  %3114 = vrot.lane.b32.xlu0 %v3494_v62, %s4096_s7 }
 0x615   : > { %v3473_v44 = vpack.c.bf16 %v2805_v8, %v2805_v8 }
 0x616   : > { %v2778_v6 = vpop.permute.xlu1 %2777 }
 0x617   : > { %2886 = vst.msk [vmem:[%s5448_s13 + $0x28] sm:$0xf] %vm2875_vm2, %v3473_v44  ;;  %v2807_v13 = vmul.f32 %v2778_v6, %v2711_v11 }
 0x619   : > { %v3475_v45 = vpack.c.bf16 %v2807_v13, %v2807_v13 }
 0x61a   : > { %v2788_v58 = vpop.permute.xlu1 %2787 }
 0x61b   : > { %2888 = vst.msk [vmem:[%s5448_s13 + $0x30] sm:$0xf] %vm2875_vm2, %v3475_v45  ;;  %v2809_v33 = vmul.f32 %v2788_v58, %v2713_v47 }
 0x61d   : > { %v3477_v19 = vpack.c.bf16 %v2809_v33, %v2809_v33 }
 0x61f   : > { %2890 = vst.msk [vmem:[%s5448_s13 + $0x38] sm:$0xf] %vm2875_vm2, %v3477_v19 }
 0x624   : > { %v3089_v59 = vpop.permute.xlu1 %3088 }
 0x625   : > { %3135 = vst.msk [vmem:[%s5448_s13 + $0x8] sm:$0xf] %vm3132_vm3, %v3089_v59 }
 0x628   : > { %v3085_v38 = vpop.permute.xlu1 %3084 }
 0x629   : > { %3133 = vst.msk [vmem:[%s5448_s13] sm:$0xf] %vm3132_vm3, %v3085_v38 }
 0x62c   : > { %v3091_v60 = vpop.permute.xlu0 %3090 }
 0x62d   : > { %3136 = vst.msk [vmem:[%s5448_s13 + $0xc] sm:$0xf] %vm3132_vm3, %v3091_v60 }
 0x630   : > { %v3087_v4 = vpop.permute.xlu0 %3086 }
 0x631   : > { %3134 = vst.msk [vmem:[%s5448_s13 + $0x4] sm:$0xf] %vm3132_vm3, %v3087_v4 }
 0x633   : > { %v3097_v53 = vpop.permute.xlu1 %3096 }
 0x634   : > { %3139 = vst.msk [vmem:[%s5448_s13 + $0x18] sm:$0xf] %vm3132_vm3, %v3097_v53  ;;  %v3099_v37 = vpop.permute.xlu0 %3098 }
 0x635   : > { %3140 = vst.msk [vmem:[%s5448_s13 + $0x1c] sm:$0xf] %vm3132_vm3, %v3099_v37 }
 0x637   : > { %v3093_v0 = vpop.permute.xlu1 %3092 }
 0x638   : > { %3137 = vst.msk [vmem:[%s5448_s13 + $0x10] sm:$0xf] %vm3132_vm3, %v3093_v0  ;;  %v3095_v51 = vpop.permute.xlu0 %3094 }
 0x639   : > { %3138 = vst.msk [vmem:[%s5448_s13 + $0x14] sm:$0xf] %vm3132_vm3, %v3095_v51 }
 0x63b   : > { %v3105_v12 = vpop.permute.xlu1 %3104 }
 0x63c   : > { %3143 = vst.msk [vmem:[%s5448_s13 + $0x28] sm:$0xf] %vm3132_vm3, %v3105_v12  ;;  %v3107_v42 = vpop.permute.xlu0 %3106 }
 0x63d   : > { %3144 = vst.msk [vmem:[%s5448_s13 + $0x2c] sm:$0xf] %vm3132_vm3, %v3107_v42 }
 0x63f   : > { %v3101_v1 = vpop.permute.xlu1 %3100 }
 0x640   : > { %3141 = vst.msk [vmem:[%s5448_s13 + $0x20] sm:$0xf] %vm3132_vm3, %v3101_v1  ;;  %v3103_v30 = vpop.permute.xlu0 %3102 }
 0x641   : > { %3142 = vst.msk [vmem:[%s5448_s13 + $0x24] sm:$0xf] %vm3132_vm3, %v3103_v30 }
 0x64b   : > { %v3109_v29 = vpop.permute.xlu1 %3108 }
 0x64c   : > { %3145 = vst.msk [vmem:[%s5448_s13 + $0x30] sm:$0xf] %vm3132_vm3, %v3109_v29 }
 0x64f   : > { %v3113_v15 = vpop.permute.xlu1 %3112 }
 0x650   : > { %3147 = vst.msk [vmem:[%s5448_s13 + $0x38] sm:$0xf] %vm3132_vm3, %v3113_v15 }
 0x681   : > { %v3111_v23 = vpop.permute.xlu0 %3110 }
 0x682   : > { %3146 = vst.msk [vmem:[%s5448_s13 + $0x34] sm:$0xf] %vm3132_vm3, %v3111_v23 }
 0x685   : > { %v3115_v18 = vpop.permute.xlu0 %3114 }
 0x686   : > { %3148 = vst.msk [vmem:[%s5448_s13 + $0x3c] sm:$0xf] %vm3132_vm3, %v3115_v18 }
 0x687 PF: > { %s15_s22 = sadd.s32 1, %s4091_s22   ;;  %s5599_s18 = smov %s4079_s19 }
 0x688   : > { %p12_p11 = scmp.ge.s32.totalorder %s15_s22, 4   ;;  %s5600_s19 = smov %s4166_s27 }
 0x689   : > { %s5601_s20 = smov %s4087_s21  ;;  %s5602_s21 = smov %s5604_s23 }
 0x68a   :  { %14 = sbr.rel (!%p12_p11) target bundleno = 3 (0x3), region = 232 }

// kernel: mt5_encoder_forward.17
= control target key start
LH: loop header
LB: loop body
LE: loop exit
PB: predicated region body
PF: predicated region fallthrough
CT: control target
= control target key end

     0   :  { %s875_s0 = inlined_call_operand.vmem [shape: bf16[256,128], index: 0, kind: input, shape index: {}]   ;;  %s876_s1 = inlined_call_operand.vmem [shape: f32[1,128], index: 1, kind: input, shape index: {}]   ;;  %s877_s2 = inlined_call_operand.vmem [shape: f32[256,128], index: 2, kind: output, shape index: {}]  }
   0x1   :  { %v440_v0 = vld [vmem:[%s875_s0 + $0x8] sm:$0xff]   ;;  %v377_v1 = vld [vmem:[%s875_s0] sm:$0xff]   ;;  %v441_v6 = vld [vmem:[%s875_s0 + $0x10] sm:$0xff]  }
   0x2   :  { %v540_v2 = vunpack.c.l.bf16 %v440_v0  ;;  %v542_v3 = vunpack.c.l.bf16 %v377_v1  ;;  %v544_v4 = vunpack.c.h.bf16 %v440_v0  ;;  %v546_v5 = vunpack.c.h.bf16 %v377_v1  ;;  %v442_v13 = vld [vmem:[%s875_s0 + $0x18] sm:$0xff]   ;;  %v443_v18 = vld [vmem:[%s875_s0 + $0x20] sm:$0xff]   ;;  %v444_v23 = vld [vmem:[%s875_s0 + $0x28] sm:$0xff]  }
   0x3   :  { %v559_v11 = vunpack.c.h.bf16 %v441_v6  ;;  %v561_v12 = vunpack.c.l.bf16 %v441_v6  ;;  %v570_v16 = vunpack.c.h.bf16 %v442_v13  ;;  %v572_v17 = vunpack.c.l.bf16 %v442_v13  ;;  %v445_v28 = vld [vmem:[%s875_s0 + $0x30] sm:$0xff]   ;;  %v446_v33 = vld [vmem:[%s875_s0 + $0x38] sm:$0xff]   ;;  %v447_v38 = vld [vmem:[%s875_s0 + $0x40] sm:$0xff]  }
   0x4   :  { %v78_v7 = vmul.f32 %v540_v2, %v540_v2  ;;  %v76_v8 = vmul.f32 %v542_v3, %v542_v3  ;;  %v79_v9 = vmul.f32 %v544_v4, %v544_v4  ;;  %v77_v10 = vmul.f32 %v546_v5, %v546_v5  ;;  %v448_v43 = vld [vmem:[%s875_s0 + $0x48] sm:$0xff]   ;;  %v449_v48 = vld [vmem:[%s875_s0 + $0x50] sm:$0xff]   ;;  %v450_v53 = vld [vmem:[%s875_s0 + $0x58] sm:$0xff]  }
   0x5   :  { %v81_v14 = vmul.f32 %v559_v11, %v559_v11  ;;  %v80_v15 = vmul.f32 %v561_v12, %v561_v12  ;;  %v83_v19 = vmul.f32 %v570_v16, %v570_v16  ;;  %v82_v20 = vmul.f32 %v572_v17, %v572_v17  ;;  %v451_v58 = vld [vmem:[%s875_s0 + $0x60] sm:$0xff]   ;;  %v452_v63 = vld [vmem:[%s875_s0 + $0x68] sm:$0xff]  }
   0x6   :  { %112 = vadd.xlane.f32.xlu1 %v78_v7  ;;  %108 = vadd.xlane.f32.xlu0 %v76_v8  ;;  %v581_v21 = vunpack.c.h.bf16 %v443_v18  ;;  %v583_v22 = vunpack.c.l.bf16 %v443_v18  ;;  %v592_v26 = vunpack.c.h.bf16 %v444_v23  ;;  %v594_v27 = vunpack.c.l.bf16 %v444_v23  ;;  %v453_v8 = vld [vmem:[%s875_s0 + $0x70] sm:$0xff]  }
   0x7   :  { %v603_v31 = vunpack.c.h.bf16 %v445_v28  ;;  %v605_v32 = vunpack.c.l.bf16 %v445_v28  ;;  %v614_v36 = vunpack.c.h.bf16 %v446_v33  ;;  %v616_v37 = vunpack.c.l.bf16 %v446_v33 }
   0x8   :  { %v85_v24 = vmul.f32 %v581_v21, %v581_v21  ;;  %v84_v25 = vmul.f32 %v583_v22, %v583_v22  ;;  %v87_v29 = vmul.f32 %v592_v26, %v592_v26  ;;  %v86_v30 = vmul.f32 %v594_v27, %v594_v27 }
   0x9   :  { %v89_v34 = vmul.f32 %v603_v31, %v603_v31  ;;  %v88_v35 = vmul.f32 %v605_v32, %v605_v32  ;;  %v91_v39 = vmul.f32 %v614_v36, %v614_v36  ;;  %v90_v40 = vmul.f32 %v616_v37, %v616_v37 }
   0xa   :  { %114 = vadd.xlane.f32.xlu1 %v79_v9  ;;  %110 = vadd.xlane.f32.xlu0 %v77_v10  ;;  %v625_v41 = vunpack.c.h.bf16 %v447_v38  ;;  %v627_v42 = vunpack.c.l.bf16 %v447_v38  ;;  %v636_v46 = vunpack.c.h.bf16 %v448_v43  ;;  %v638_v47 = vunpack.c.l.bf16 %v448_v43 }
   0xb   :  { %v647_v51 = vunpack.c.h.bf16 %v449_v48  ;;  %v649_v52 = vunpack.c.l.bf16 %v449_v48  ;;  %v658_v56 = vunpack.c.h.bf16 %v450_v53  ;;  %v660_v57 = vunpack.c.l.bf16 %v450_v53 }
   0xc   :  { %v93_v44 = vmul.f32 %v625_v41, %v625_v41  ;;  %v92_v45 = vmul.f32 %v627_v42, %v627_v42  ;;  %v95_v49 = vmul.f32 %v636_v46, %v636_v46  ;;  %v94_v50 = vmul.f32 %v638_v47, %v638_v47 }
   0xd   :  { %v97_v54 = vmul.f32 %v647_v51, %v647_v51  ;;  %v96_v55 = vmul.f32 %v649_v52, %v649_v52  ;;  %v99_v59 = vmul.f32 %v658_v56, %v658_v56  ;;  %v98_v60 = vmul.f32 %v660_v57, %v660_v57 }
   0xe   :  { %118 = vadd.xlane.f32.xlu1 %v81_v14  ;;  %116 = vadd.xlane.f32.xlu0 %v80_v15  ;;  %v669_v61 = vunpack.c.h.bf16 %v451_v58  ;;  %v671_v62 = vunpack.c.l.bf16 %v451_v58  ;;  %v680_v6 = vunpack.c.h.bf16 %v452_v63  ;;  %v682_v7 = vunpack.c.l.bf16 %v452_v63  ;;  %v454_v15 = vld [vmem:[%s875_s0 + $0x78] sm:$0xff]  }
   0xf   :  { %v691_v13 = vunpack.c.h.bf16 %v453_v8  ;;  %v693_v14 = vunpack.c.l.bf16 %v453_v8  ;;  %v704_v23 = vunpack.c.l.bf16 %v454_v15 }
  0x10   :  { %v101_v0 = vmul.f32 %v669_v61, %v669_v61  ;;  %v100_v1 = vmul.f32 %v671_v62, %v671_v62  ;;  %v103_v9 = vmul.f32 %v680_v6, %v680_v6  ;;  %v102_v10 = vmul.f32 %v682_v7, %v682_v7 }
  0x11   :  { %v105_v18 = vmul.f32 %v691_v13, %v691_v13 }
  0x12   :  { %122 = vadd.xlane.f32.xlu1 %v83_v19  ;;  %120 = vadd.xlane.f32.xlu0 %v82_v20  ;;  %v104_v19 = vmul.f32 %v693_v14, %v693_v14  ;;  %v702_v20 = vunpack.c.h.bf16 %v454_v15 }
  0x16   :  { %126 = vadd.xlane.f32.xlu1 %v85_v24  ;;  %124 = vadd.xlane.f32.xlu0 %v84_v25  ;;  %v107_v24 = vmul.f32 %v702_v20, %v702_v20  ;;  %v106_v25 = vmul.f32 %v704_v23, %v704_v23 }
  0x1a   :  { %130 = vadd.xlane.f32.xlu1 %v87_v29  ;;  %128 = vadd.xlane.f32.xlu0 %v86_v30 }
  0x1e   :  { %134 = vadd.xlane.f32.xlu1 %v89_v34  ;;  %132 = vadd.xlane.f32.xlu0 %v88_v35 }
  0x22   :  { %138 = vadd.xlane.f32.xlu1 %v91_v39  ;;  %136 = vadd.xlane.f32.xlu0 %v90_v40 }
  0x26   :  { %142 = vadd.xlane.f32.xlu1 %v93_v44  ;;  %140 = vadd.xlane.f32.xlu0 %v92_v45 }
  0x2a   :  { %146 = vadd.xlane.f32.xlu1 %v95_v49  ;;  %144 = vadd.xlane.f32.xlu0 %v94_v50 }
  0x2e   :  { %150 = vadd.xlane.f32.xlu1 %v97_v54  ;;  %148 = vadd.xlane.f32.xlu0 %v96_v55 }
  0x32   :  { %154 = vadd.xlane.f32.xlu1 %v99_v59  ;;  %152 = vadd.xlane.f32.xlu0 %v98_v60 }
  0x36   :  { %158 = vadd.xlane.f32.xlu1 %v101_v0  ;;  %156 = vadd.xlane.f32.xlu0 %v100_v1 }
  0x3a   :  { %162 = vadd.xlane.f32.xlu1 %v103_v9  ;;  %160 = vadd.xlane.f32.xlu0 %v102_v10 }
  0x3e   :  { %166 = vadd.xlane.f32.xlu1 %v105_v18  ;;  %164 = vadd.xlane.f32.xlu0 %v104_v19  ;;  %v713_v19 = vld [vmem:[%s876_s1] ss:$0 sm:$0xff] }
  0x42   :  { %170 = vadd.xlane.f32.xlu1 %v107_v24  ;;  %168 = vadd.xlane.f32.xlu0 %v106_v25 }
  0x8f   :  { %v113_v28 = vpop.xlane.xlu1 %112  ;;  %v109_v29 = vpop.xlane.xlu0 %108 }
  0x90   :  { %v175_v30 = vmul.f32 0.0078125, %v113_v28  ;;  %v173_v33 = vmul.f32 0.0078125, %v109_v29 }
  0x92   :  { %v207_v34 = vadd.f32 1e-06, %v175_v30  ;;  %v205_v35 = vadd.f32 1e-06, %v173_v33 }
  0x93   :  { %v115_v38 = vpop.xlane.xlu1 %114  ;;  %v111_v39 = vpop.xlane.xlu0 %110 }
  0x94   :  { %455 = vrsqrt.f32 %v207_v34  ;;  %v176_v40 = vmul.f32 0.0078125, %v115_v38  ;;  %v174_v43 = vmul.f32 0.0078125, %v111_v39 }
  0x95   :  { %457 = vrsqrt.f32 %v205_v35 }
  0x96   :  { %v208_v44 = vadd.f32 1e-06, %v176_v40  ;;  %v206_v45 = vadd.f32 1e-06, %v174_v43 }
  0x97   :  { %v119_v48 = vpop.xlane.xlu1 %118  ;;  %v117_v49 = vpop.xlane.xlu0 %116 }
  0x98   :  { %459 = vrsqrt.f32 %v208_v44  ;;  %v178_v50 = vmul.f32 0.0078125, %v119_v48  ;;  %v177_v53 = vmul.f32 0.0078125, %v117_v49 }
  0x99   :  { %461 = vrsqrt.f32 %v206_v45 }
  0x9a   :  { %v210_v54 = vadd.f32 1e-06, %v178_v50  ;;  %v209_v55 = vadd.f32 1e-06, %v177_v53 }
  0x9b   :  { %v123_v58 = vpop.xlane.xlu1 %122  ;;  %v121_v59 = vpop.xlane.xlu0 %120 }
  0x9c   :  { %463 = vrsqrt.f32 %v210_v54  ;;  %v180_v60 = vmul.f32 0.0078125, %v123_v58  ;;  %v179_v63 = vmul.f32 0.0078125, %v121_v59 }
  0x9d   :  { %465 = vrsqrt.f32 %v209_v55 }
  0x9e   :  { %v212_v0 = vadd.f32 1e-06, %v180_v60  ;;  %v211_v1 = vadd.f32 1e-06, %v179_v63 }
  0x9f   :  { %v127_v8 = vpop.xlane.xlu1 %126  ;;  %v125_v9 = vpop.xlane.xlu0 %124 }
  0xa0   :  { %467 = vrsqrt.f32 %v212_v0  ;;  %v182_v10 = vmul.f32 0.0078125, %v127_v8  ;;  %v181_v15 = vmul.f32 0.0078125, %v125_v9 }
  0xa1   :  { %v456_v18 = vpop.eup %455  ;;  %469 = vrsqrt.f32 %v211_v1 }
  0xa2   :  { %v458_v24 = vpop.eup %457  ;;  %v271_v25 = vmul.f32 %v456_v18, %v540_v2  ;;  %v214_v28 = vadd.f32 1e-06, %v182_v10  ;;  %v213_v29 = vadd.f32 1e-06, %v181_v15 }
  0xa3   :  { %v269_v30 = vmul.f32 %v458_v24, %v542_v3  ;;  %v131_v33 = vpop.xlane.xlu1 %130  ;;  %v129_v34 = vpop.xlane.xlu0 %128 }
  0xa4   :  { %v309_v35 = vmul.f32 %v713_v19, %v271_v25  ;;  %471 = vrsqrt.f32 %v214_v28  ;;  %v184_v38 = vmul.f32 0.0078125, %v131_v33  ;;  %v183_v39 = vmul.f32 0.0078125, %v129_v34 }
  0xa5   :  { %v460_v40 = vpop.eup %459  ;;  %v307_v43 = vmul.f32 %v713_v19, %v269_v30  ;;  %473 = vrsqrt.f32 %v213_v29 }
  0xa6   :  { %v462_v44 = vpop.eup %461  ;;  %341 = vst [vmem:[%s877_s2 + $0x10] sm:$0xff] %v309_v35  ;;  %v272_v2 = vmul.f32 %v460_v40, %v544_v4  ;;  %v216_v45 = vadd.f32 1e-06, %v184_v38  ;;  %v215_v3 = vadd.f32 1e-06, %v183_v39 }
  0xa7   :  { %339 = vst [vmem:[%s877_s2] sm:$0xff] %v307_v43  ;;  %v270_v48 = vmul.f32 %v462_v44, %v546_v5  ;;  %v135_v49 = vpop.xlane.xlu1 %134  ;;  %v133_v50 = vpop.xlane.xlu0 %132 }
  0xa8   :  { %v310_v53 = vmul.f32 %v713_v19, %v272_v2  ;;  %475 = vrsqrt.f32 %v216_v45  ;;  %v186_v54 = vmul.f32 0.0078125, %v135_v49  ;;  %v185_v55 = vmul.f32 0.0078125, %v133_v50 }
  0xa9   :  { %v464_v58 = vpop.eup %463  ;;  %v308_v59 = vmul.f32 %v713_v19, %v270_v48  ;;  %477 = vrsqrt.f32 %v215_v3 }
  0xaa   :  { %v466_v4 = vpop.eup %465  ;;  %342 = vst [vmem:[%s877_s2 + $0x18] sm:$0xff] %v310_v53  ;;  %v274_v60 = vmul.f32 %v464_v58, %v559_v11  ;;  %v218_v63 = vadd.f32 1e-06, %v186_v54  ;;  %v217_v5 = vadd.f32 1e-06, %v185_v55 }
  0xab   :  { %340 = vst [vmem:[%s877_s2 + $0x8] sm:$0xff] %v308_v59  ;;  %v273_v0 = vmul.f32 %v466_v4, %v561_v12  ;;  %v139_v1 = vpop.xlane.xlu1 %138  ;;  %v137_v8 = vpop.xlane.xlu0 %136 }
  0xac   :  { %v312_v9 = vmul.f32 %v713_v19, %v274_v60  ;;  %479 = vrsqrt.f32 %v218_v63  ;;  %v188_v10 = vmul.f32 0.0078125, %v139_v1  ;;  %v187_v15 = vmul.f32 0.0078125, %v137_v8 }
  0xad   :  { %v468_v18 = vpop.eup %467  ;;  %v311_v24 = vmul.f32 %v713_v19, %v273_v0  ;;  %481 = vrsqrt.f32 %v217_v5 }
  0xae   :  { %v470_v11 = vpop.eup %469  ;;  %344 = vst [vmem:[%s877_s2 + $0x28] sm:$0xff] %v312_v9  ;;  %v276_v25 = vmul.f32 %v468_v18, %v570_v16  ;;  %v220_v28 = vadd.f32 1e-06, %v188_v10  ;;  %v219_v12 = vadd.f32 1e-06, %v187_v15 }
  0xaf   :  { %343 = vst [vmem:[%s877_s2 + $0x20] sm:$0xff] %v311_v24  ;;  %v275_v29 = vmul.f32 %v470_v11, %v572_v17  ;;  %v143_v30 = vpop.xlane.xlu1 %142  ;;  %v141_v33 = vpop.xlane.xlu0 %140 }
  0xb0   :  { %v314_v34 = vmul.f32 %v713_v19, %v276_v25  ;;  %483 = vrsqrt.f32 %v220_v28  ;;  %v190_v35 = vmul.f32 0.0078125, %v143_v30  ;;  %v189_v38 = vmul.f32 0.0078125, %v141_v33 }
  0xb1   :  { %v472_v39 = vpop.eup %471  ;;  %v313_v40 = vmul.f32 %v713_v19, %v275_v29  ;;  %485 = vrsqrt.f32 %v219_v12 }
  0xb2   :  { %v474_v16 = vpop.eup %473  ;;  %346 = vst [vmem:[%s877_s2 + $0x38] sm:$0xff] %v314_v34  ;;  %v278_v43 = vmul.f32 %v472_v39, %v581_v21  ;;  %v222_v44 = vadd.f32 1e-06, %v190_v35  ;;  %v221_v17 = vadd.f32 1e-06, %v189_v38 }
  0xb3   :  { %345 = vst [vmem:[%s877_s2 + $0x30] sm:$0xff] %v313_v40  ;;  %v277_v2 = vmul.f32 %v474_v16, %v583_v22  ;;  %v147_v45 = vpop.xlane.xlu1 %146  ;;  %v145_v3 = vpop.xlane.xlu0 %144 }
  0xb4   :  { %v316_v48 = vmul.f32 %v713_v19, %v278_v43  ;;  %487 = vrsqrt.f32 %v222_v44  ;;  %v192_v49 = vmul.f32 0.0078125, %v147_v45  ;;  %v191_v50 = vmul.f32 0.0078125, %v145_v3 }
  0xb5   :  { %v476_v53 = vpop.eup %475  ;;  %v315_v54 = vmul.f32 %v713_v19, %v277_v2  ;;  %489 = vrsqrt.f32 %v221_v17 }
  0xb6   :  { %v478_v21 = vpop.eup %477  ;;  %348 = vst [vmem:[%s877_s2 + $0x48] sm:$0xff] %v316_v48  ;;  %v280_v55 = vmul.f32 %v476_v53, %v592_v26  ;;  %v224_v58 = vadd.f32 1e-06, %v192_v49  ;;  %v223_v22 = vadd.f32 1e-06, %v191_v50 }
  0xb7   :  { %347 = vst [vmem:[%s877_s2 + $0x40] sm:$0xff] %v315_v54  ;;  %v279_v59 = vmul.f32 %v478_v21, %v594_v27  ;;  %v151_v4 = vpop.xlane.xlu1 %150  ;;  %v149_v60 = vpop.xlane.xlu0 %148 }
  0xb8   :  { %v318_v63 = vmul.f32 %v713_v19, %v280_v55  ;;  %491 = vrsqrt.f32 %v224_v58  ;;  %v194_v5 = vmul.f32 0.0078125, %v151_v4  ;;  %v193_v0 = vmul.f32 0.0078125, %v149_v60 }
  0xb9   :  { %v480_v1 = vpop.eup %479  ;;  %v317_v8 = vmul.f32 %v713_v19, %v279_v59  ;;  %493 = vrsqrt.f32 %v223_v22 }
  0xba   :  { %v482_v26 = vpop.eup %481  ;;  %350 = vst [vmem:[%s877_s2 + $0x58] sm:$0xff] %v318_v63  ;;  %v282_v9 = vmul.f32 %v480_v1, %v603_v31  ;;  %v226_v10 = vadd.f32 1e-06, %v194_v5  ;;  %v225_v27 = vadd.f32 1e-06, %v193_v0 }
  0xbb   :  { %349 = vst [vmem:[%s877_s2 + $0x50] sm:$0xff] %v317_v8  ;;  %v281_v15 = vmul.f32 %v482_v26, %v605_v32  ;;  %v155_v18 = vpop.xlane.xlu1 %154  ;;  %v153_v24 = vpop.xlane.xlu0 %152 }
  0xbc   :  { %v320_v11 = vmul.f32 %v713_v19, %v282_v9  ;;  %495 = vrsqrt.f32 %v226_v10  ;;  %v196_v25 = vmul.f32 0.0078125, %v155_v18  ;;  %v195_v28 = vmul.f32 0.0078125, %v153_v24 }
  0xbd   :  { %v484_v12 = vpop.eup %483  ;;  %v319_v29 = vmul.f32 %v713_v19, %v281_v15  ;;  %497 = vrsqrt.f32 %v225_v27 }
  0xbe   :  { %v486_v31 = vpop.eup %485  ;;  %352 = vst [vmem:[%s877_s2 + $0x68] sm:$0xff] %v320_v11  ;;  %v284_v30 = vmul.f32 %v484_v12, %v614_v36  ;;  %v228_v33 = vadd.f32 1e-06, %v196_v25  ;;  %v227_v32 = vadd.f32 1e-06, %v195_v28 }
  0xbf   :  { %351 = vst [vmem:[%s877_s2 + $0x60] sm:$0xff] %v319_v29  ;;  %v283_v34 = vmul.f32 %v486_v31, %v616_v37  ;;  %v159_v35 = vpop.xlane.xlu1 %158  ;;  %v157_v38 = vpop.xlane.xlu0 %156 }
  0xc0   :  { %v322_v39 = vmul.f32 %v713_v19, %v284_v30  ;;  %499 = vrsqrt.f32 %v228_v33  ;;  %v198_v40 = vmul.f32 0.0078125, %v159_v35  ;;  %v197_v16 = vmul.f32 0.0078125, %v157_v38 }
  0xc1   :  { %v488_v43 = vpop.eup %487  ;;  %v321_v44 = vmul.f32 %v713_v19, %v283_v34  ;;  %501 = vrsqrt.f32 %v227_v32 }
  0xc2   :  { %v490_v36 = vpop.eup %489  ;;  %354 = vst [vmem:[%s877_s2 + $0x78] sm:$0xff] %v322_v39  ;;  %v286_v17 = vmul.f32 %v488_v43, %v625_v41  ;;  %v230_v2 = vadd.f32 1e-06, %v198_v40  ;;  %v229_v37 = vadd.f32 1e-06, %v197_v16 }
  0xc3   :  { %353 = vst [vmem:[%s877_s2 + $0x70] sm:$0xff] %v321_v44  ;;  %v285_v45 = vmul.f32 %v490_v36, %v627_v42  ;;  %v163_v3 = vpop.xlane.xlu1 %162  ;;  %v161_v48 = vpop.xlane.xlu0 %160 }
  0xc4   :  { %v324_v49 = vmul.f32 %v713_v19, %v286_v17  ;;  %503 = vrsqrt.f32 %v230_v2  ;;  %v200_v50 = vmul.f32 0.0078125, %v163_v3  ;;  %v199_v53 = vmul.f32 0.0078125, %v161_v48 }
  0xc5   :  { %v492_v54 = vpop.eup %491  ;;  %v323_v21 = vmul.f32 %v713_v19, %v285_v45  ;;  %505 = vrsqrt.f32 %v229_v37 }
  0xc6   :  { %v494_v41 = vpop.eup %493  ;;  %356 = vst [vmem:[%s877_s2 + $0x88] sm:$0xff] %v324_v49  ;;  %v288_v55 = vmul.f32 %v492_v54, %v636_v46  ;;  %v232_v58 = vadd.f32 1e-06, %v200_v50  ;;  %v231_v42 = vadd.f32 1e-06, %v199_v53 }
  0xc7   :  { %355 = vst [vmem:[%s877_s2 + $0x80] sm:$0xff] %v323_v21  ;;  %v287_v22 = vmul.f32 %v494_v41, %v638_v47  ;;  %v167_v59 = vpop.xlane.xlu1 %166  ;;  %v165_v4 = vpop.xlane.xlu0 %164 }
  0xc8   :  { %v326_v60 = vmul.f32 %v713_v19, %v288_v55  ;;  %507 = vrsqrt.f32 %v232_v58  ;;  %v202_v63 = vmul.f32 0.0078125, %v167_v59  ;;  %v201_v5 = vmul.f32 0.0078125, %v165_v4 }
  0xc9   :  { %v496_v0 = vpop.eup %495  ;;  %v325_v1 = vmul.f32 %v713_v19, %v287_v22  ;;  %509 = vrsqrt.f32 %v231_v42 }
  0xca   :  { %v498_v46 = vpop.eup %497  ;;  %358 = vst [vmem:[%s877_s2 + $0x98] sm:$0xff] %v326_v60  ;;  %v290_v8 = vmul.f32 %v496_v0, %v647_v51  ;;  %v234_v26 = vadd.f32 1e-06, %v202_v63  ;;  %v233_v47 = vadd.f32 1e-06, %v201_v5 }
  0xcb   :  { %357 = vst [vmem:[%s877_s2 + $0x90] sm:$0xff] %v325_v1  ;;  %v289_v9 = vmul.f32 %v498_v46, %v649_v52  ;;  %v171_v10 = vpop.xlane.xlu1 %170  ;;  %v169_v27 = vpop.xlane.xlu0 %168 }
  0xcc   :  { %v328_v15 = vmul.f32 %v713_v19, %v290_v8  ;;  %511 = vrsqrt.f32 %v234_v26  ;;  %v204_v18 = vmul.f32 0.0078125, %v171_v10  ;;  %v203_v24 = vmul.f32 0.0078125, %v169_v27 }
  0xcd   :  { %v500_v11 = vpop.eup %499  ;;  %v327_v25 = vmul.f32 %v713_v19, %v289_v9  ;;  %513 = vrsqrt.f32 %v233_v47 }
  0xce   :  { %v502_v51 = vpop.eup %501  ;;  %360 = vst [vmem:[%s877_s2 + $0xa8] sm:$0xff] %v328_v15  ;;  %v292_v28 = vmul.f32 %v500_v11, %v658_v56  ;;  %v236_v12 = vadd.f32 1e-06, %v204_v18  ;;  %v235_v52 = vadd.f32 1e-06, %v203_v24 }
  0xcf   :  { %359 = vst [vmem:[%s877_s2 + $0xa0] sm:$0xff] %v327_v25  ;;  %v291_v29 = vmul.f32 %v502_v51, %v660_v57 }
  0xd0   :  { %v330_v31 = vmul.f32 %v713_v19, %v292_v28  ;;  %515 = vrsqrt.f32 %v236_v12 }
  0xd1   :  { %v504_v30 = vpop.eup %503  ;;  %v329_v33 = vmul.f32 %v713_v19, %v291_v29  ;;  %517 = vrsqrt.f32 %v235_v52 }
  0xd2   :  { %v506_v32 = vpop.eup %505  ;;  %362 = vst [vmem:[%s877_s2 + $0xb8] sm:$0xff] %v330_v31  ;;  %v294_v56 = vmul.f32 %v504_v30, %v669_v61 }
  0xd3   :  { %361 = vst [vmem:[%s877_s2 + $0xb0] sm:$0xff] %v329_v33  ;;  %v293_v57 = vmul.f32 %v506_v32, %v671_v62 }
  0xd4   :  { %v332_v34 = vmul.f32 %v713_v19, %v294_v56 }
  0xd5   :  { %v508_v35 = vpop.eup %507  ;;  %v331_v38 = vmul.f32 %v713_v19, %v293_v57 }
  0xd6   :  { %v510_v39 = vpop.eup %509  ;;  %364 = vst [vmem:[%s877_s2 + $0xc8] sm:$0xff] %v332_v34  ;;  %v296_v40 = vmul.f32 %v508_v35, %v680_v6 }
  0xd7   :  { %363 = vst [vmem:[%s877_s2 + $0xc0] sm:$0xff] %v331_v38  ;;  %v295_v61 = vmul.f32 %v510_v39, %v682_v7 }
  0xd8   :  { %v334_v62 = vmul.f32 %v713_v19, %v296_v40 }
  0xd9   :  { %v512_v16 = vpop.eup %511  ;;  %v333_v43 = vmul.f32 %v713_v19, %v295_v61 }
  0xda   :  { %v514_v44 = vpop.eup %513  ;;  %366 = vst [vmem:[%s877_s2 + $0xd8] sm:$0xff] %v334_v62  ;;  %v298_v36 = vmul.f32 %v512_v16, %v691_v13 }
  0xdb   :  { %365 = vst [vmem:[%s877_s2 + $0xd0] sm:$0xff] %v333_v43  ;;  %v297_v6 = vmul.f32 %v514_v44, %v693_v14 }
  0xdc   :  { %v336_v7 = vmul.f32 %v713_v19, %v298_v36 }
  0xdd   :  { %v516_v17 = vpop.eup %515  ;;  %v335_v2 = vmul.f32 %v713_v19, %v297_v6 }
  0xde   :  { %v518_v37 = vpop.eup %517  ;;  %368 = vst [vmem:[%s877_s2 + $0xe8] sm:$0xff] %v336_v7  ;;  %v300_v45 = vmul.f32 %v516_v17, %v702_v20 }
  0xdf   :  { %367 = vst [vmem:[%s877_s2 + $0xe0] sm:$0xff] %v335_v2  ;;  %v299_v13 = vmul.f32 %v518_v37, %v704_v23 }
  0xe0   :  { %v338_v14 = vmul.f32 %v713_v19, %v300_v45 }
  0xe1   :  { %v337_v3 = vmul.f32 %v713_v19, %v299_v13 }
  0xe2   :  { %370 = vst [vmem:[%s877_s2 + $0xf8] sm:$0xff] %v338_v14 }
  0xe3   :  { %369 = vst [vmem:[%s877_s2 + $0xf0] sm:$0xff] %v337_v3 }

// kernel: mt5_encoder_forward.12
= control target key start
LH: loop header
LB: loop body
LE: loop exit
PB: predicated region body
PF: predicated region fallthrough
CT: control target
= control target key end

     0   :  { %s4928_s0 = inlined_call_operand.vmem [shape: bf16[256,128], index: 0, kind: input, shape index: {}, may-alias: {0,4}]   ;;  %s4929_s2 = inlined_call_operand.vmem [shape: bf16[2,128,256], index: 2, kind: input, shape index: {}]   ;;  %s4930_s1 = inlined_call_operand.vmem [shape: f32[1,128], index: 1, kind: input, shape index: {}]   ;;  %s4931_s3 = inlined_call_operand.vmem [shape: bf16[256,128], index: 3, kind: input, shape index: {}]   ;;  %s4932_s4 = inlined_call_operand.vmem [shape: bf16[256,128], index: 4, kind: output, shape index: {}, may-alias: {0,4}]  }
   0x1   :  { %v3106_v0 = vld [vmem:[%s4928_s0 + $0x48] sm:$0xff]   ;;  %v3105_v1 = vld [vmem:[%s4928_s0 + $0x40] sm:$0xff]   ;;  %v3107_v6 = vld [vmem:[%s4928_s0 + $0x50] sm:$0xff]  }
   0x2   :  { %v3591_v2 = vunpack.c.l.bf16 %v3106_v0  ;;  %v3593_v3 = vunpack.c.l.bf16 %v3105_v1  ;;  %v3595_v4 = vunpack.c.h.bf16 %v3106_v0  ;;  %v3597_v5 = vunpack.c.h.bf16 %v3105_v1  ;;  %v3108_v13 = vld [vmem:[%s4928_s0 + $0x58] sm:$0xff]   ;;  %v3109_v18 = vld [vmem:[%s4928_s0 + $0x60] sm:$0xff]   ;;  %v3110_v28 = vld [vmem:[%s4928_s0 + $0x68] sm:$0xff]  }
   0x3   :  { %v3610_v11 = vunpack.c.h.bf16 %v3107_v6  ;;  %v3612_v12 = vunpack.c.l.bf16 %v3107_v6  ;;  %v3621_v16 = vunpack.c.h.bf16 %v3108_v13  ;;  %v3623_v17 = vunpack.c.l.bf16 %v3108_v13  ;;  %v2811_v23 = vld [vmem:[%s4928_s0] sm:$0xff]   ;;  %v3287_v29 = vld [vmem:[%s4929_s2 + $0x74] ss:$8 sps:$4 sm:$0xff]   ;;  %v3098_v30 = vld [vmem:[%s4928_s0 + $0x8] sm:$0xff]  }
   0x4   :  { %v105_v7 = vmul.f32 %v3591_v2, %v3591_v2  ;;  %v103_v8 = vmul.f32 %v3593_v3, %v3593_v3  ;;  %v106_v9 = vmul.f32 %v3595_v4, %v3595_v4  ;;  %v104_v10 = vmul.f32 %v3597_v5, %v3597_v5  ;;  %v3289_v31 = vld [vmem:[%s4929_s2 + $0x70] ss:$8 sps:$4 sm:$0xff]   ;;  %3270 = vmatprep.subr.bf16.mxu1 %v3287_v29  ;;  %v3290_v36 = vld [vmem:[%s4929_s2 + $0x64] ss:$8 sps:$4 sm:$0xff]   ;;  %v3292_v38 = vld [vmem:[%s4929_s2 + $0x60] ss:$8 sps:$4 sm:$0xff]  }
   0x5   :  { %v108_v14 = vmul.f32 %v3610_v11, %v3610_v11  ;;  %v107_v15 = vmul.f32 %v3612_v12, %v3612_v12  ;;  %v110_v19 = vmul.f32 %v3621_v16, %v3621_v16  ;;  %v109_v20 = vmul.f32 %v3623_v17, %v3623_v17  ;;  %766 = vmatprep.subr.bf16.mxu0 %v3287_v29  ;;  %v3111_v37 = vld [vmem:[%s4928_s0 + $0x70] sm:$0xff]   ;;  %v3296_v50 = vld [vmem:[%s4929_s2 + $0x44] ss:$8 sps:$4 sm:$0xff]   ;;  %v3298_v51 = vld [vmem:[%s4929_s2 + $0x40] ss:$8 sps:$4 sm:$0xff]  }
   0x6   :  { %155 = vadd.xlane.f32.xlu1 %v105_v7  ;;  %151 = vadd.xlane.f32.xlu0 %v103_v8  ;;  %v3632_v21 = vunpack.c.h.bf16 %v3109_v18  ;;  %v3634_v22 = vunpack.c.l.bf16 %v3109_v18  ;;  %v3643_v26 = vunpack.c.h.bf16 %v2811_v23  ;;  %v3645_v27 = vunpack.c.l.bf16 %v2811_v23  ;;  %v3293_v43 = vld [vmem:[%s4929_s2 + $0x54] ss:$8 sps:$4 sm:$0xff]   ;;  %v3295_v45 = vld [vmem:[%s4929_s2 + $0x50] ss:$8 sps:$4 sm:$0xff]   ;;  %v3302_v0 = vld [vmem:[%s4929_s2 + $0x24] ss:$8 sps:$4 sm:$0xff]  }
   0x7   :  { %v3663_v34 = vunpack.c.h.bf16 %v3110_v28  ;;  %v3665_v35 = vunpack.c.l.bf16 %v3110_v28  ;;  %3278 = vmatpush1.bf16.msra.mxu1 %v3289_v31  ;;  %767 = vmatpush1.bf16.msra.mxu0 %v3289_v31  ;;  %v3680_v41 = vunpack.c.h.bf16 %v3098_v30  ;;  %v3682_v42 = vunpack.c.l.bf16 %v3098_v30  ;;  %v3099_v44 = vld [vmem:[%s4928_s0 + $0x10] sm:$0xff]   ;;  %v3112_v56 = vld [vmem:[%s4928_s0 + $0x78] sm:$0xff]   ;;  %v3304_v1 = vld [vmem:[%s4929_s2 + $0x20] ss:$8 sps:$4 sm:$0xff]  }
   0x8   :  { %v112_v24 = vmul.f32 %v3632_v21, %v3632_v21  ;;  %v111_v25 = vmul.f32 %v3634_v22, %v3634_v22  ;;  %v88_v32 = vmul.f32 %v3643_v26, %v3643_v26  ;;  %v87_v33 = vmul.f32 %v3645_v27, %v3645_v27  ;;  %3271 = vmatprep.subr.bf16.mxu1 %v3290_v36  ;;  %v3299_v57 = vld [vmem:[%s4929_s2 + $0x34] ss:$8 sps:$4 sm:$0xff]   ;;  %v3301_v58 = vld [vmem:[%s4929_s2 + $0x30] ss:$8 sps:$4 sm:$0xff]   ;;  %v3102_v23 = vld [vmem:[%s4928_s0 + $0x28] sm:$0xff]  }
   0x9   :  { %v114_v39 = vmul.f32 %v3663_v34, %v3663_v34  ;;  %v113_v40 = vmul.f32 %v3665_v35, %v3665_v35  ;;  %768 = vmatprep.subr.bf16.mxu0 %v3290_v36  ;;  %v90_v46 = vmul.f32 %v3680_v41, %v3680_v41  ;;  %v89_v47 = vmul.f32 %v3682_v42, %v3682_v42  ;;  %v3100_v63 = vld [vmem:[%s4928_s0 + $0x18] sm:$0xff]  }
   0xa   :  { %157 = vadd.xlane.f32.xlu1 %v106_v9  ;;  %153 = vadd.xlane.f32.xlu0 %v104_v10  ;;  %v3697_v48 = vunpack.c.h.bf16 %v3111_v37  ;;  %v3699_v49 = vunpack.c.l.bf16 %v3111_v37  ;;  %v3711_v54 = vunpack.c.h.bf16 %v3099_v44  ;;  %v3713_v55 = vunpack.c.l.bf16 %v3099_v44  ;;  %v3101_v10 = vld [vmem:[%s4928_s0 + $0x20] sm:$0xff]   ;;  %v3305_v13 = vld [vmem:[%s4929_s2 + $0x14] ss:$8 sps:$4 sm:$0xff]  }
   0xb   :  { %3279 = vmatpush1.bf16.msra.mxu1 %v3292_v38  ;;  %769 = vmatpush1.bf16.msra.mxu0 %v3292_v38  ;;  %v3728_v61 = vunpack.c.h.bf16 %v3112_v56  ;;  %v3730_v62 = vunpack.c.l.bf16 %v3112_v56  ;;  %v3745_v8 = vunpack.c.h.bf16 %v3100_v63  ;;  %v3747_v9 = vunpack.c.l.bf16 %v3100_v63 }
   0xc   :  { %3272 = vmatprep.subr.bf16.mxu1 %v3293_v43  ;;  %770 = vmatprep.subr.bf16.mxu0 %v3293_v43  ;;  %v116_v52 = vmul.f32 %v3697_v48, %v3697_v48  ;;  %v115_v53 = vmul.f32 %v3699_v49, %v3699_v49  ;;  %v92_v59 = vmul.f32 %v3711_v54, %v3711_v54  ;;  %v3779_v30 = vunpack.c.h.bf16 %v3102_v23 }
   0xd   :  { %v91_v60 = vmul.f32 %v3713_v55, %v3713_v55  ;;  %v118_v6 = vmul.f32 %v3728_v61, %v3728_v61  ;;  %v117_v7 = vmul.f32 %v3730_v62, %v3730_v62  ;;  %v93_v18 = vmul.f32 %v3747_v9, %v3747_v9 }
   0xe   :  { %161 = vadd.xlane.f32.xlu1 %v108_v14  ;;  %159 = vadd.xlane.f32.xlu0 %v107_v15  ;;  %v3307_v14 = vld [vmem:[%s4929_s2 + $0x10] ss:$8 sps:$4 sm:$0xff]   ;;  %v94_v15 = vmul.f32 %v3745_v8, %v3745_v8  ;;  %v3781_v31 = vunpack.c.l.bf16 %v3102_v23  ;;  %v98_v36 = vmul.f32 %v3779_v30, %v3779_v30 }
   0xf   :  { %3280 = vmatpush1.bf16.msra.mxu1 %v3295_v45  ;;  %771 = vmatpush1.bf16.msra.mxu0 %v3295_v45 }
  0x10   :  { %3273 = vmatprep.subr.bf16.mxu1 %v3296_v50  ;;  %772 = vmatprep.subr.bf16.mxu0 %v3296_v50  ;;  %v97_v37 = vmul.f32 %v3781_v31, %v3781_v31 }
  0x12   :  { %165 = vadd.xlane.f32.xlu1 %v110_v19  ;;  %163 = vadd.xlane.f32.xlu0 %v109_v20  ;;  %v3762_v19 = vunpack.c.h.bf16 %v3101_v10  ;;  %v3764_v20 = vunpack.c.l.bf16 %v3101_v10 }
  0x13   :  { %3281 = vmatpush1.bf16.msra.mxu1 %v3298_v51  ;;  %773 = vmatpush1.bf16.msra.mxu0 %v3298_v51  ;;  %v3313_v51 = vld [vmem:[%s4929_s2 + $0xf4] ss:$8 sps:$4 sm:$0xff]  }
  0x14   :  { %3274 = vmatprep.subr.bf16.mxu1 %v3299_v57  ;;  %774 = vmatprep.subr.bf16.mxu0 %v3299_v57  ;;  %v96_v28 = vmul.f32 %v3762_v19, %v3762_v19  ;;  %v95_v29 = vmul.f32 %v3764_v20, %v3764_v20 }
  0x16   :  { %169 = vadd.xlane.f32.xlu1 %v112_v24  ;;  %167 = vadd.xlane.f32.xlu0 %v111_v25  ;;  %v3308_v24 = vld [vmem:[%s4929_s2 + $0x4] ss:$8 sps:$4 sm:$0xff]   ;;  %v3310_v25 = vld [vmem:[%s4929_s2] ss:$8 sps:$4 sm:$0xff]  }
  0x17   :  { %3282 = vmatpush1.bf16.msra.mxu1 %v3301_v58  ;;  %775 = vmatpush1.bf16.msra.mxu0 %v3301_v58 }
  0x18   :  { %3275 = vmatprep.subr.bf16.mxu1 %v3302_v0  ;;  %776 = vmatprep.subr.bf16.mxu0 %v3302_v0 }
  0x1a   :  { %121 = vadd.xlane.f32.xlu1 %v88_v32  ;;  %119 = vadd.xlane.f32.xlu0 %v87_v33  ;;  %v3103_v32 = vld [vmem:[%s4928_s0 + $0x30] sm:$0xff]   ;;  %v3559_v33 = vmov 0  }
  0x1b   :  { %3283 = vmatpush1.bf16.msra.mxu1 %v3304_v1  ;;  %777 = vmatpush1.bf16.msra.mxu0 %v3304_v1  ;;  %v3792_v38 = vunpack.c.h.bf16 %v3103_v32 }
  0x1c   :  { %3276 = vmatprep.subr.bf16.mxu1 %v3305_v13  ;;  %778 = vmatprep.subr.bf16.mxu0 %v3305_v13 }
  0x1d   :  { %878 = vmatprep.mubr.bf16.mxu1 %v3559_v33  ;;  %798 = vmatprep.mubr.bf16.mxu0 %v3559_v33  ;;  %v100_v43 = vmul.f32 %v3792_v38, %v3792_v38 }
  0x1e   :  { %173 = vadd.xlane.f32.xlu1 %v114_v39  ;;  %171 = vadd.xlane.f32.xlu0 %v113_v40  ;;  %v3794_v39 = vunpack.c.l.bf16 %v3103_v32  ;;  %v3104_v40 = vld [vmem:[%s4928_s0 + $0x38] sm:$0xff]  }
  0x1f   :  { %3284 = vmatpush1.bf16.msra.mxu1 %v3307_v14  ;;  %779 = vmatpush1.bf16.msra.mxu0 %v3307_v14  ;;  %v3803_v45 = vunpack.c.h.bf16 %v3104_v40 }
  0x20   :  { %3277 = vmatprep.subr.bf16.mxu1 %v3308_v24  ;;  %780 = vmatprep.subr.bf16.mxu0 %v3308_v24  ;;  %v99_v44 = vmul.f32 %v3794_v39, %v3794_v39 }
  0x22   :  { %125 = vadd.xlane.f32.xlu1 %v90_v46  ;;  %123 = vadd.xlane.f32.xlu0 %v89_v47  ;;  %v3805_v46 = vunpack.c.l.bf16 %v3104_v40  ;;  %v102_v47 = vmul.f32 %v3803_v45, %v3803_v45 }
  0x23   :  { %3285 = vmatpush1.bf16.msra.mxu1 %v3310_v25  ;;  %781 = vmatpush1.bf16.msra.mxu0 %v3310_v25 }
  0x24   :  { %v101_v50 = vmul.f32 %v3805_v46, %v3805_v46  ;;  %1056 = vmatprep.subr.bf16.mxu1 %v3313_v51 }
  0x26   :  { %177 = vadd.xlane.f32.xlu1 %v116_v52  ;;  %175 = vadd.xlane.f32.xlu0 %v115_v53 }
  0x2a   :  { %129 = vadd.xlane.f32.xlu1 %v92_v59  ;;  %127 = vadd.xlane.f32.xlu0 %v91_v60 }
  0x2e   :  { %181 = vadd.xlane.f32.xlu1 %v118_v6  ;;  %179 = vadd.xlane.f32.xlu0 %v117_v7 }
  0x32   :  { %133 = vadd.xlane.f32.xlu1 %v94_v15  ;;  %131 = vadd.xlane.f32.xlu0 %v93_v18 }
  0x36   :  { %137 = vadd.xlane.f32.xlu1 %v96_v28  ;;  %135 = vadd.xlane.f32.xlu0 %v95_v29 }
  0x3a   :  { %141 = vadd.xlane.f32.xlu1 %v98_v36  ;;  %139 = vadd.xlane.f32.xlu0 %v97_v37 }
  0x3e   :  { %145 = vadd.xlane.f32.xlu1 %v100_v43  ;;  %143 = vadd.xlane.f32.xlu0 %v99_v44 }
  0x42   :  { %149 = vadd.xlane.f32.xlu1 %v102_v47  ;;  %147 = vadd.xlane.f32.xlu0 %v101_v50 }
  0x8f   :  { %v156_v52 = vpop.xlane.xlu1 %155  ;;  %v152_v53 = vpop.xlane.xlu0 %151 }
  0x90   :  { %v202_v56 = vmul.f32 0.0078125, %v156_v52  ;;  %v200_v57 = vmul.f32 0.0078125, %v152_v53 }
  0x92   :  { %v234_v58 = vadd.f32 1e-06, %v202_v56  ;;  %v232_v59 = vadd.f32 1e-06, %v200_v57 }
  0x93   :  { %v158_v60 = vpop.xlane.xlu1 %157  ;;  %v154_v63 = vpop.xlane.xlu0 %153 }
  0x94   :  { %3367 = vrsqrt.f32 %v234_v58  ;;  %v203_v0 = vmul.f32 0.0078125, %v158_v60  ;;  %v201_v1 = vmul.f32 0.0078125, %v154_v63  ;;  %v3818_v63 = vld [vmem:[%s4930_s1] ss:$0 sm:$0xff] }
  0x95   :  { %3369 = vrsqrt.f32 %v232_v59 }
  0x96   :  { %v235_v6 = vadd.f32 1e-06, %v203_v0  ;;  %v233_v7 = vadd.f32 1e-06, %v201_v1 }
  0x97   :  { %v162_v10 = vpop.xlane.xlu1 %161  ;;  %v160_v13 = vpop.xlane.xlu0 %159 }
  0x98   :  { %3371 = vrsqrt.f32 %v235_v6  ;;  %v205_v14 = vmul.f32 0.0078125, %v162_v10  ;;  %v204_v15 = vmul.f32 0.0078125, %v160_v13 }
  0x99   :  { %3373 = vrsqrt.f32 %v233_v7 }
  0x9a   :  { %v237_v18 = vadd.f32 1e-06, %v205_v14  ;;  %v236_v23 = vadd.f32 1e-06, %v204_v15 }
  0x9b   :  { %v166_v24 = vpop.xlane.xlu1 %165  ;;  %v164_v25 = vpop.xlane.xlu0 %163 }
  0x9c   :  { %3375 = vrsqrt.f32 %v237_v18  ;;  %v207_v28 = vmul.f32 0.0078125, %v166_v24  ;;  %v206_v29 = vmul.f32 0.0078125, %v164_v25 }
  0x9d   :  { %3377 = vrsqrt.f32 %v236_v23 }
  0x9e   :  { %v239_v32 = vadd.f32 1e-06, %v207_v28  ;;  %v238_v36 = vadd.f32 1e-06, %v206_v29 }
  0x9f   :  { %v170_v37 = vpop.xlane.xlu1 %169  ;;  %v168_v40 = vpop.xlane.xlu0 %167 }
  0xa0   :  { %3379 = vrsqrt.f32 %v239_v32  ;;  %v209_v43 = vmul.f32 0.0078125, %v170_v37  ;;  %v208_v44 = vmul.f32 0.0078125, %v168_v40 }
  0xa1   :  { %v3368_v47 = vpop.eup %3367  ;;  %3381 = vrsqrt.f32 %v238_v36 }
  0xa2   :  { %v3370_v50 = vpop.eup %3369  ;;  %v298_v51 = vmul.f32 %v3368_v47, %v3591_v2  ;;  %v241_v52 = vadd.f32 1e-06, %v209_v43  ;;  %v240_v53 = vadd.f32 1e-06, %v208_v44 }
  0xa3   :  { %v122_v56 = vpop.xlane.xlu1 %121  ;;  %v120_v57 = vpop.xlane.xlu0 %119  ;;  %v296_v0 = vmul.f32 %v3370_v50, %v3593_v3 }
  0xa4   :  { %3383 = vrsqrt.f32 %v241_v52  ;;  %v185_v58 = vmul.f32 0.0078125, %v122_v56  ;;  %v184_v59 = vmul.f32 0.0078125, %v120_v57  ;;  %v336_v6 = vmul.f32 %v3818_v63, %v298_v51 }
  0xa5   :  { %v3372_v60 = vpop.eup %3371  ;;  %3385 = vrsqrt.f32 %v240_v53  ;;  %v334_v3 = vmul.f32 %v3818_v63, %v296_v0 }
  0xa6   :  { %v3374_v1 = vpop.eup %3373  ;;  %v299_v2 = vmul.f32 %v3372_v60, %v3595_v4  ;;  %v217_v7 = vadd.f32 1e-06, %v185_v58  ;;  %v216_v10 = vadd.f32 1e-06, %v184_v59 }
  0xa7   :  { %v297_v13 = vmul.f32 %v3374_v1, %v3597_v5  ;;  %v174_v14 = vpop.xlane.xlu1 %173  ;;  %v172_v15 = vpop.xlane.xlu0 %171 }
  0xa8   :  { %v337_v18 = vmul.f32 %v3818_v63, %v299_v2  ;;  %3387 = vrsqrt.f32 %v217_v7  ;;  %v211_v23 = vmul.f32 0.0078125, %v174_v14  ;;  %v210_v24 = vmul.f32 0.0078125, %v172_v15 }
  0xa9   :  { %v3376_v25 = vpop.eup %3375  ;;  %v335_v28 = vmul.f32 %v3818_v63, %v297_v13  ;;  %3389 = vrsqrt.f32 %v216_v10 }
  0xaa   :  { %v3378_v29 = vpop.eup %3377  ;;  %v2922_v32 = vpack.c.bf16 %v337_v18, %v336_v6  ;;  %v301_v4 = vmul.f32 %v3376_v25, %v3610_v11  ;;  %v243_v36 = vadd.f32 1e-06, %v211_v23  ;;  %v242_v37 = vadd.f32 1e-06, %v210_v24  ;;  %v3311_v25 = vld [vmem:[%s4929_s2 + $0xf0] ss:$8 sps:$4 sm:$0xff]  }
  0xab   :  { %v2917_v5 = vpack.c.bf16 %v335_v28, %v334_v3  ;;  %v300_v40 = vmul.f32 %v3378_v29, %v3612_v12  ;;  %v126_v43 = vpop.xlane.xlu1 %125  ;;  %v124_v44 = vpop.xlane.xlu0 %123 }
  0xac   :  { %3121 = vst [vmem:[#allocation2 + $0x48] sm:$0xff] %v2922_v32   ;;  %v339_v47 = vmul.f32 %v3818_v63, %v301_v4  ;;  %3391 = vrsqrt.f32 %v243_v36  ;;  %v187_v50 = vmul.f32 0.0078125, %v126_v43  ;;  %v186_v51 = vmul.f32 0.0078125, %v124_v44 }
  0xad   :  { %v3380_v52 = vpop.eup %3379  ;;  %3120 = vst [vmem:[#allocation2 + $0x40] sm:$0xff] %v2917_v5   ;;  %v338_v53 = vmul.f32 %v3818_v63, %v300_v40  ;;  %3393 = vrsqrt.f32 %v242_v37 }
  0xae   :  { %v3382_v56 = vpop.eup %3381  ;;  %v303_v11 = vmul.f32 %v3380_v52, %v3621_v16  ;;  %v219_v57 = vadd.f32 1e-06, %v187_v50  ;;  %v218_v58 = vadd.f32 1e-06, %v186_v51  ;;  %v3315_v51 = vld [vmem:[%s4929_s2 + $0xe0] ss:$8 sps:$4 sm:$0xff]  }
  0xaf   :  { %v2927_v59 = vpack.c.bf16 %v339_v47, %v338_v53  ;;  %v302_v12 = vmul.f32 %v3382_v56, %v3623_v17  ;;  %v178_v60 = vpop.xlane.xlu1 %177  ;;  %v176_v0 = vpop.xlane.xlu0 %175 }
  0xb0   :  { %v341_v1 = vmul.f32 %v3818_v63, %v303_v11  ;;  %3395 = vrsqrt.f32 %v219_v57  ;;  %v213_v6 = vmul.f32 0.0078125, %v178_v60  ;;  %v212_v2 = vmul.f32 0.0078125, %v176_v0  ;;  %v3321_v11 = vld [vmem:[%s4929_s2 + $0xd4] ss:$8 sps:$4 sm:$0xff]  }
  0xb1   :  { %v3384_v7 = vpop.eup %3383  ;;  %3122 = vst [vmem:[#allocation2 + $0x50] sm:$0xff] %v2927_v59   ;;  %v340_v10 = vmul.f32 %v3818_v63, %v302_v12  ;;  %3397 = vrsqrt.f32 %v218_v58 }
  0xb2   :  { %v3386_v13 = vpop.eup %3385  ;;  %v305_v16 = vmul.f32 %v3384_v7, %v3632_v21  ;;  %v245_v14 = vadd.f32 1e-06, %v213_v6  ;;  %v244_v15 = vadd.f32 1e-06, %v212_v2  ;;  %v3319_v2 = vld [vmem:[%s4929_s2 + $0xd0] ss:$8 sps:$4 sm:$0xff]  }
  0xb3   :  { %v2932_v18 = vpack.c.bf16 %v341_v1, %v340_v10  ;;  %v304_v17 = vmul.f32 %v3386_v13, %v3634_v22  ;;  %v130_v23 = vpop.xlane.xlu1 %129  ;;  %v128_v24 = vpop.xlane.xlu0 %127  ;;  %v3317_v22 = vld [vmem:[%s4929_s2 + $0xe4] ss:$8 sps:$4 sm:$0xff]  }
  0xb4   :  { %v343_v3 = vmul.f32 %v3818_v63, %v305_v16  ;;  %3399 = vrsqrt.f32 %v245_v14  ;;  %v189_v28 = vmul.f32 0.0078125, %v130_v23  ;;  %v188_v29 = vmul.f32 0.0078125, %v128_v24  ;;  %v3842_v4 = vld [vmem:[#allocation2 + $0x40] sm:$0xff]   ;;  %v3866_v14 = vld [vmem:[#allocation2 + $0x48] sm:$0xff]  }
  0xb5   :  { %v3388_v32 = vpop.eup %3387  ;;  %3123 = vst [vmem:[#allocation2 + $0x58] sm:$0xff] %v2932_v18   ;;  %v342_v21 = vmul.f32 %v3818_v63, %v304_v17  ;;  %3401 = vrsqrt.f32 %v244_v15  ;;  %879 = vmatmul.mubr.bf16.vlgmr.msra.gmra.mxu1 %v3842_v4 }
  0xb6   :  { %v3390_v36 = vpop.eup %3389  ;;  %v281_v37 = vmul.f32 %v3388_v32, %v3643_v26  ;;  %v221_v5 = vadd.f32 1e-06, %v189_v28  ;;  %v220_v40 = vadd.f32 1e-06, %v188_v29  ;;  %1057 = vmatpush1.bf16.msra.mxu1 %v3311_v25  ;;  %888 = vmatprep.mubr.bf16.mxu1 %v3559_v33  ;;  %v3324_v29 = vld [vmem:[%s4929_s2 + $0xc0] ss:$8 sps:$4 sm:$0xff]  }
  0xb7   :  { %v2937_v43 = vpack.c.bf16 %v343_v3, %v342_v21  ;;  %v280_v44 = vmul.f32 %v3390_v36, %v3645_v27  ;;  %v182_v47 = vpop.xlane.xlu1 %181  ;;  %v180_v50 = vpop.xlane.xlu0 %179  ;;  %1058 = vmatprep.subr.bf16.mxu1 %v3317_v22  ;;  %v3331_v36 = vld [vmem:[%s4929_s2 + $0xb4] ss:$8 sps:$4 sm:$0xff]  }
  0xb8   :  { %v319_v52 = vmul.f32 %v3818_v63, %v281_v37  ;;  %3403 = vrsqrt.f32 %v221_v5  ;;  %v215_v53 = vmul.f32 0.0078125, %v182_v47  ;;  %v214_v56 = vmul.f32 0.0078125, %v180_v50  ;;  %v3885_v50 = vld [vmem:[#allocation2 + $0x50] sm:$0xff]  }
  0xb9   :  { %v3392_v26 = vpop.eup %3391  ;;  %3124 = vst [vmem:[#allocation2 + $0x60] sm:$0xff] %v2937_v43   ;;  %v318_v27 = vmul.f32 %v3818_v63, %v280_v44  ;;  %3405 = vrsqrt.f32 %v220_v40 }
  0xba   :  { %v3394_v57 = vpop.eup %3393  ;;  %v307_v58 = vmul.f32 %v3392_v26, %v3663_v34  ;;  %v247_v59 = vadd.f32 1e-06, %v215_v53  ;;  %v246_v12 = vadd.f32 1e-06, %v214_v56  ;;  %1059 = vmatpush1.bf16.msra.mxu1 %v3315_v51  ;;  %v3329_v53 = vld [vmem:[%s4929_s2 + $0xb0] ss:$8 sps:$4 sm:$0xff]  }
  0xbb   :  { %v2877_v60 = vpack.c.bf16 %v319_v52, %v318_v27  ;;  %v306_v0 = vmul.f32 %v3394_v57, %v3665_v35  ;;  %v134_v1 = vpop.xlane.xlu1 %133  ;;  %v132_v6 = vpop.xlane.xlu0 %131  ;;  %1060 = vmatprep.subr.bf16.mxu1 %v3321_v11  ;;  %v3326_v35 = vld [vmem:[%s4929_s2 + $0xc4] ss:$8 sps:$4 sm:$0xff]  }
  0xbc   :  { %v345_v7 = vmul.f32 %v3818_v63, %v307_v58  ;;  %3407 = vrsqrt.f32 %v247_v59  ;;  %v191_v10 = vmul.f32 0.0078125, %v134_v1  ;;  %v190_v13 = vmul.f32 0.0078125, %v132_v6  ;;  %v3336_v57 = vld [vmem:[%s4929_s2 + $0xa4] ss:$8 sps:$4 sm:$0xff]  }
  0xbd   :  { %v3396_v16 = vpop.eup %3395  ;;  %2878 = vst [vmem:[#allocation2] sm:$0xff] %v2877_v60   ;;  %v344_v34 = vmul.f32 %v3818_v63, %v306_v0  ;;  %3409 = vrsqrt.f32 %v246_v12  ;;  %889 = vmatmul.mubr.bf16.gmra.mxu1 %v3866_v14 }
  0xbe   :  { %v3398_v15 = vpop.eup %3397  ;;  %v283_v18 = vmul.f32 %v3396_v16, %v3680_v41  ;;  %v223_v17 = vadd.f32 1e-06, %v191_v10  ;;  %v222_v23 = vadd.f32 1e-06, %v190_v13  ;;  %898 = vmatprep.mubr.bf16.mxu1 %v3559_v33  ;;  %1061 = vmatpush1.bf16.msra.mxu1 %v3319_v2 }
  0xbf   :  { %v2942_v24 = vpack.c.bf16 %v345_v7, %v344_v34  ;;  %v282_v25 = vmul.f32 %v3398_v15, %v3682_v42  ;;  %v138_v3 = vpop.xlane.xlu1 %137  ;;  %v136_v28 = vpop.xlane.xlu0 %135  ;;  %1062 = vmatprep.subr.bf16.mxu1 %v3326_v35  ;;  %v3334_v7 = vld [vmem:[%s4929_s2 + $0xa0] ss:$8 sps:$4 sm:$0xff]   ;;  %v3341_v34 = vld [vmem:[%s4929_s2 + $0x94] ss:$8 sps:$4 sm:$0xff]  }
  0xc0   :  { %v321_v32 = vmul.f32 %v3818_v63, %v283_v18  ;;  %3411 = vrsqrt.f32 %v223_v17  ;;  %v193_v21 = vmul.f32 0.0078125, %v138_v3  ;;  %v192_v22 = vmul.f32 0.0078125, %v136_v28 }
  0xc1   :  { %v3400_v41 = vpop.eup %3399  ;;  %3125 = vst [vmem:[#allocation2 + $0x68] sm:$0xff] %v2942_v24   ;;  %v320_v42 = vmul.f32 %v3818_v63, %v282_v25  ;;  %3413 = vrsqrt.f32 %v222_v23  ;;  %v3913_v25 = vld [vmem:[#allocation2 + $0x58] sm:$0xff]  }
  0xc2   :  { %v3402_v37 = vpop.eup %3401  ;;  %v309_v5 = vmul.f32 %v3400_v41, %v3697_v48  ;;  %v225_v40 = vadd.f32 1e-06, %v193_v21  ;;  %v224_v43 = vadd.f32 1e-06, %v192_v22  ;;  %1063 = vmatpush1.bf16.msra.mxu1 %v3324_v29  ;;  %v3339_v29 = vld [vmem:[%s4929_s2 + $0x90] ss:$8 sps:$4 sm:$0xff]  }
  0xc3   :  { %v2882_v44 = vpack.c.bf16 %v321_v32, %v320_v42  ;;  %v308_v47 = vmul.f32 %v3402_v37, %v3699_v49  ;;  %v142_v51 = vpop.xlane.xlu1 %141  ;;  %v140_v52 = vpop.xlane.xlu0 %139  ;;  %1064 = vmatprep.subr.bf16.mxu1 %v3331_v36  ;;  %v3346_v42 = vld [vmem:[%s4929_s2 + $0x84] ss:$8 sps:$4 sm:$0xff]  }
  0xc4   :  { %v347_v56 = vmul.f32 %v3818_v63, %v309_v5  ;;  %3415 = vrsqrt.f32 %v225_v40  ;;  %v3891_v26 = vld [vmem:[#allocation2] sm:$0xff]   ;;  %v195_v27 = vmul.f32 0.0078125, %v142_v51  ;;  %v194_v49 = vmul.f32 0.0078125, %v140_v52 }
  0xc5   :  { %v3404_v48 = vpop.eup %3403  ;;  %3113 = vst [vmem:[#allocation2 + $0x8] sm:$0xff] %v2882_v44   ;;  %v346_v11 = vmul.f32 %v3818_v63, %v308_v47  ;;  %3417 = vrsqrt.f32 %v224_v43  ;;  %799 = vmatmul.mubr.bf16.vlgmr.msra.gmra.mxu0 %v3891_v26  ;;  %899 = vmatmul.mubr.bf16.gmra.mxu1 %v3885_v50 }
  0xc6   :  { %v3406_v58 = vpop.eup %3405  ;;  %v285_v59 = vmul.f32 %v3404_v48, %v3711_v54  ;;  %v227_v12 = vadd.f32 1e-06, %v195_v27  ;;  %v226_v1 = vadd.f32 1e-06, %v194_v49  ;;  %808 = vmatprep.mubr.bf16.mxu0 %v3559_v33  ;;  %908 = vmatprep.mubr.bf16.mxu1 %v3559_v33  ;;  %v3938_v48 = vld [vmem:[#allocation2 + $0x60] sm:$0xff]  }
  0xc7   :  { %v2947_v60 = vpack.c.bf16 %v347_v56, %v346_v11  ;;  %v284_v0 = vmul.f32 %v3406_v58, %v3713_v55  ;;  %v146_v6 = vpop.xlane.xlu1 %145  ;;  %v144_v2 = vpop.xlane.xlu0 %143  ;;  %1065 = vmatpush1.bf16.msra.mxu1 %v3329_v53 }
  0xc8   :  { %v323_v10 = vmul.f32 %v3818_v63, %v285_v59  ;;  %3419 = vrsqrt.f32 %v227_v12  ;;  %v197_v54 = vmul.f32 0.0078125, %v146_v6  ;;  %v196_v13 = vmul.f32 0.0078125, %v144_v2  ;;  %1066 = vmatprep.subr.bf16.mxu1 %v3336_v57 }
  0xc9   :  { %v3408_v55 = vpop.eup %3407  ;;  %3126 = vst [vmem:[#allocation2 + $0x70] sm:$0xff] %v2947_v60   ;;  %v322_v16 = vmul.f32 %v3818_v63, %v284_v0  ;;  %3421 = vrsqrt.f32 %v226_v1 }
  0xca   :  { %v3410_v35 = vpop.eup %3409  ;;  %v311_v15 = vmul.f32 %v3408_v55, %v3728_v61  ;;  %v229_v18 = vadd.f32 1e-06, %v197_v54  ;;  %v228_v17 = vadd.f32 1e-06, %v196_v13 }
  0xcb   :  { %v2887_v23 = vpack.c.bf16 %v323_v10, %v322_v16  ;;  %v310_v24 = vmul.f32 %v3410_v35, %v3730_v62  ;;  %v150_v3 = vpop.xlane.xlu1 %149  ;;  %v148_v28 = vpop.xlane.xlu0 %147  ;;  %1067 = vmatpush1.bf16.msra.mxu1 %v3334_v7  ;;  %v3951_v10 = vld [vmem:[#allocation2 + $0x68] sm:$0xff]  }
  0xcc   :  { %v349_v32 = vmul.f32 %v3818_v63, %v311_v15  ;;  %v3919_v21 = vld [vmem:[#allocation2 + $0x8] sm:$0xff]   ;;  %3423 = vrsqrt.f32 %v229_v18  ;;  %v199_v22 = vmul.f32 0.0078125, %v150_v3  ;;  %v198_v62 = vmul.f32 0.0078125, %v148_v28  ;;  %1068 = vmatprep.subr.bf16.mxu1 %v3341_v34  ;;  %v3351_v3 = vld [vmem:[%s4931_s3 + $0x78] sm:$0xff]   ;;  %v3353_v28 = vld [vmem:[%s4931_s3 + $0x70] sm:$0xff]  }
  0xcd   :  { %v3412_v61 = vpop.eup %3411  ;;  %3114 = vst [vmem:[#allocation2 + $0x10] sm:$0xff] %v2887_v23   ;;  %v348_v41 = vmul.f32 %v3818_v63, %v310_v24  ;;  %3425 = vrsqrt.f32 %v228_v17  ;;  %809 = vmatmul.mubr.bf16.gmra.mxu0 %v3919_v21  ;;  %909 = vmatmul.mubr.bf16.gmra.mxu1 %v3913_v25 }
  0xce   :  { %v3414_v36 = vpop.eup %3413  ;;  %v287_v37 = vmul.f32 %v3412_v61, %v3745_v8  ;;  %v231_v5 = vadd.f32 1e-06, %v199_v22  ;;  %818 = vmatprep.mubr.bf16.mxu0 %v3559_v33  ;;  %v230_v44 = vadd.f32 1e-06, %v198_v62  ;;  %918 = vmatprep.mubr.bf16.mxu1 %v3559_v33  ;;  %v3344_v8 = vld [vmem:[%s4929_s2 + $0x80] ss:$8 sps:$4 sm:$0xff]  }
  0xcf   :  { %v2952_v40 = vpack.c.bf16 %v349_v32, %v348_v41  ;;  %v286_v43 = vmul.f32 %v3414_v36, %v3747_v9  ;;  %1069 = vmatpush1.bf16.msra.mxu1 %v3339_v29  ;;  %3158 = vmatprep.subr.bf16.mxu0 %v3351_v3  ;;  %v3354_v29 = vld [vmem:[%s4931_s3 + $0x30] sm:$0xff]   ;;  %v3355_v32 = vld [vmem:[%s4931_s3 + $0x68] sm:$0xff]   ;;  %v3357_v22 = vld [vmem:[%s4931_s3 + $0x60] sm:$0xff]  }
  0xd0   :  { %v325_v47 = vmul.f32 %v3818_v63, %v287_v37  ;;  %3427 = vrsqrt.f32 %v231_v5  ;;  %1070 = vmatprep.subr.bf16.mxu1 %v3346_v42  ;;  %v3962_v23 = vld [vmem:[#allocation2 + $0x70] sm:$0xff]   ;;  %v3358_v61 = vld [vmem:[%s4931_s3 + $0x20] sm:$0xff]   ;;  %v3359_v41 = vld [vmem:[%s4931_s3 + $0x58] sm:$0xff]  }
  0xd1   :  { %v3416_v51 = vpop.eup %3415  ;;  %3127 = vst [vmem:[#allocation2 + $0x78] sm:$0xff] %v2952_v40   ;;  %v324_v52 = vmul.f32 %v3818_v63, %v286_v43  ;;  %3429 = vrsqrt.f32 %v230_v44  ;;  %v3360_v62 = vld [vmem:[%s4931_s3 + $0x18] sm:$0xff]   ;;  %v3361_v42 = vld [vmem:[%s4931_s3 + $0x50] sm:$0xff]   ;;  %v3363_v37 = vld [vmem:[%s4931_s3 + $0x48] sm:$0xff]  }
  0xd2   :  { %v3418_v9 = vpop.eup %3417  ;;  %v289_v53 = vmul.f32 %v3416_v51, %v3762_v19  ;;  %v3362_v36 = vld [vmem:[%s4931_s3 + $0x10] sm:$0xff]   ;;  %v3364_v5 = vld [vmem:[%s4931_s3 + $0x8] sm:$0xff]   ;;  %v3366_v40 = vld [vmem:[%s4931_s3] sm:$0xff]  }
  0xd3   :  { %v2892_v56 = vpack.c.bf16 %v325_v47, %v324_v52  ;;  %v288_v27 = vmul.f32 %v3418_v9, %v3764_v20  ;;  %1071 = vmatpush1.bf16.msra.mxu1 %v3344_v8 }
  0xd4   :  { %v327_v11 = vmul.f32 %v3818_v63, %v289_v53  ;;  %v3332_v49 = vld [vmem:[#allocation2 + $0x10] sm:$0xff]  }
  0xd5   :  { %v3420_v57 = vpop.eup %3419  ;;  %3115 = vst [vmem:[#allocation2 + $0x18] sm:$0xff] %v2892_v56   ;;  %v326_v58 = vmul.f32 %v3818_v63, %v288_v27  ;;  %819 = vmatmul.mubr.bf16.gmra.mxu0 %v3332_v49  ;;  %919 = vmatmul.mubr.bf16.gmra.mxu1 %v3938_v48 }
  0xd6   :  { %v3422_v59 = vpop.eup %3421  ;;  %v291_v12 = vmul.f32 %v3420_v57, %v3779_v30  ;;  %828 = vmatprep.mubr.bf16.mxu0 %v3559_v33  ;;  %928 = vmatprep.mubr.bf16.mxu1 %v3559_v33 }
  0xd7   :  { %v2897_v60 = vpack.c.bf16 %v327_v11, %v326_v58  ;;  %v290_v19 = vmul.f32 %v3422_v59, %v3781_v31 }
  0xd8   :  { %v329_v20 = vmul.f32 %v3818_v63, %v291_v12 }
  0xd9   :  { %v3424_v0 = vpop.eup %3423  ;;  %3116 = vst [vmem:[#allocation2 + $0x20] sm:$0xff] %v2897_v60   ;;  %v328_v1 = vmul.f32 %v3818_v63, %v290_v19 }
  0xda   :  { %v3426_v6 = vpop.eup %3425  ;;  %v293_v2 = vmul.f32 %v3424_v0, %v3792_v38 }
  0xdb   :  { %v2902_v30 = vpack.c.bf16 %v329_v20, %v328_v1  ;;  %v292_v7 = vmul.f32 %v3426_v6, %v3794_v39 }
  0xdc   :  { %v331_v31 = vmul.f32 %v3818_v63, %v293_v2  ;;  %v3337_v54 = vld [vmem:[#allocation2 + $0x18] sm:$0xff]  }
  0xdd   :  { %v3428_v13 = vpop.eup %3427  ;;  %3117 = vst [vmem:[#allocation2 + $0x28] sm:$0xff] %v2902_v30   ;;  %v330_v55 = vmul.f32 %v3818_v63, %v292_v7  ;;  %829 = vmatmul.mubr.bf16.gmra.mxu0 %v3337_v54  ;;  %929 = vmatmul.mubr.bf16.gmra.mxu1 %v3951_v10 }
  0xde   :  { %v3430_v16 = vpop.eup %3429  ;;  %v295_v34 = vmul.f32 %v3428_v13, %v3803_v45  ;;  %838 = vmatprep.mubr.bf16.mxu0 %v3559_v33  ;;  %938 = vmatprep.mubr.bf16.mxu1 %v3559_v33 }
  0xdf   :  { %v2907_v35 = vpack.c.bf16 %v331_v31, %v330_v55  ;;  %v294_v15 = vmul.f32 %v3430_v16, %v3805_v46  ;;  %v3967_v46 = vld [vmem:[#allocation2 + $0x78] sm:$0xff]  }
  0xe0   :  { %v333_v38 = vmul.f32 %v3818_v63, %v295_v34  ;;  %v3342_v18 = vld [vmem:[#allocation2 + $0x20] sm:$0xff]  }
  0xe1   :  { %3118 = vst [vmem:[#allocation2 + $0x30] sm:$0xff] %v2907_v35   ;;  %v332_v39 = vmul.f32 %v3818_v63, %v294_v15 }
  0xe3   :  { %v2912_v17 = vpack.c.bf16 %v333_v38, %v332_v39 }
  0xe4   :  { %v3347_v45 = vld [vmem:[#allocation2 + $0x28] sm:$0xff]  }
  0xe5   :  { %3119 = vst [vmem:[#allocation2 + $0x38] sm:$0xff] %v2912_v17   ;;  %839 = vmatmul.mubr.bf16.gmra.mxu0 %v3342_v18  ;;  %939 = vmatmul.mubr.bf16.gmra.mxu1 %v3962_v23 }
  0xe6   :  { %848 = vmatprep.mubr.bf16.mxu0 %v3559_v33  ;;  %948 = vmatprep.mubr.bf16.mxu1 %v3559_v33 }
  0xe8   :  { %v3349_v63 = vld [vmem:[#allocation2 + $0x30] sm:$0xff]  }
  0xec   :  { %v3350_v24 = vld [vmem:[#allocation2 + $0x38] sm:$0xff]  }
  0xed   :  { %849 = vmatmul.mubr.bf16.gmra.mxu0 %v3347_v45  ;;  %949 = vmatmul.mubr.bf16.gmra.mxu1 %v3967_v46 }
  0xee   :  { %858 = vmatprep.mubr.bf16.mxu0 %v3559_v33  ;;  %1088 = vmatprep.mubr.bf16.mxu1 %v3559_v33 }
  0xf5   :  { %859 = vmatmul.mubr.bf16.gmra.mxu0 %v3349_v63  ;;  %1089 = vmatmul.mubr.bf16.vlgmr.msra.gmra.mxu1 %v3891_v26  ;;  %v3352_v26 = vld [vmem:[%s4931_s3 + $0x38] sm:$0xff]  }
  0xf6   :  { %868 = vmatprep.mubr.bf16.mxu0 %v3559_v33  ;;  %1098 = vmatprep.mubr.bf16.mxu1 %v3559_v33 }
  0xf7   :  { %3159 = vmatpush3.bf16.msra.mxu0 %v3352_v26 }
  0xf8   :  { %3160 = vmatprep.subr.bf16.mxu0 %v3353_v28 }
  0xfb   :  { %3161 = vmatpush3.bf16.msra.mxu0 %v3354_v29 }
  0xfc   :  { %3162 = vmatprep.subr.bf16.mxu0 %v3355_v32 }
  0xfd   :  { %869 = vmatmul.mubr.bf16.gmra.mxu0 %v3350_v24  ;;  %1099 = vmatmul.mubr.bf16.gmra.mxu1 %v3919_v21  ;;  %v3356_v21 = vld [vmem:[%s4931_s3 + $0x28] sm:$0xff]  }
  0xfe   :  { %1108 = vmatprep.mubr.bf16.mxu1 %v3559_v33 }
  0xff   :  { %3163 = vmatpush3.bf16.msra.mxu0 %v3356_v21 }
 0x100   :  { %3164 = vmatprep.subr.bf16.mxu0 %v3357_v22 }
 0x103   :  { %3165 = vmatpush3.bf16.msra.mxu0 %v3358_v61 }
 0x104   :  { %3166 = vmatprep.subr.bf16.mxu0 %v3359_v41 }
 0x105   :  { %1109 = vmatmul.mubr.bf16.gmra.mxu1 %v3332_v49 }
 0x106   :  { %1118 = vmatprep.mubr.bf16.mxu1 %v3559_v33 }
 0x107   :  { %3167 = vmatpush3.bf16.msra.mxu0 %v3360_v62 }
 0x108   :  { %3168 = vmatprep.subr.bf16.mxu0 %v3361_v42 }
 0x10b   :  { %3169 = vmatpush3.bf16.msra.mxu0 %v3362_v36 }
 0x10c   :  { %3170 = vmatprep.subr.bf16.mxu0 %v3363_v37 }
 0x10d   :  { %1119 = vmatmul.mubr.bf16.gmra.mxu1 %v3337_v54 }
 0x10e   :  { %1128 = vmatprep.mubr.bf16.mxu1 %v3559_v33 }
 0x10f   :  { %3171 = vmatpush3.bf16.msra.mxu0 %v3364_v5 }
 0x115   :  { %1129 = vmatmul.mubr.bf16.gmra.mxu1 %v3342_v18 }
 0x116   :  { %1138 = vmatprep.mubr.bf16.mxu1 %v3559_v33 }
 0x11d   :  { %1139 = vmatmul.mubr.bf16.gmra.mxu1 %v3347_v45 }
 0x11e   :  { %1148 = vmatprep.mubr.bf16.mxu1 %v3559_v33 }
 0x125   :  { %1149 = vmatmul.mubr.bf16.gmra.mxu1 %v3349_v63 }
 0x126   :  { %1158 = vmatprep.mubr.bf16.mxu1 %v3559_v33 }
 0x12d   :  { %1159 = vmatmul.mubr.bf16.gmra.mxu1 %v3350_v24 }
 0x12e   :  { %1168 = vmatprep.mubr.bf16.mxu1 %v3559_v33 }
 0x135   :  { %1169 = vmatmul.mubr.bf16.gmra.mxu1 %v3842_v4  ;;  %v3365_v4 = vld [vmem:[%s4931_s3 + $0x40] sm:$0xff]  }
 0x136   :  { %1178 = vmatprep.mubr.bf16.mxu1 %v3559_v33  ;;  %3172 = vmatprep.subr.bf16.mxu0 %v3365_v4 }
 0x137   :  { %3173 = vmatpush3.bf16.msra.mxu0 %v3366_v40 }
 0x13d   :  { %1179 = vmatmul.mubr.bf16.gmra.mxu1 %v3866_v14 }
 0x13e   :  { %1188 = vmatprep.mubr.bf16.mxu1 %v3559_v33 }
 0x145   :  { %1189 = vmatmul.mubr.bf16.gmra.mxu1 %v3885_v50 }
 0x146   :  { %1198 = vmatprep.mubr.bf16.mxu1 %v3559_v33 }
 0x14d   :  { %1199 = vmatmul.mubr.bf16.gmra.mxu1 %v3913_v25 }
 0x14e   :  { %1208 = vmatprep.mubr.bf16.mxu1 %v3559_v33 }
 0x155   :  { %1209 = vmatmul.mubr.bf16.gmra.mxu1 %v3938_v48 }
 0x156   :  { %1218 = vmatprep.mubr.bf16.mxu1 %v3559_v33 }
 0x15d   :  { %1219 = vmatmul.mubr.bf16.gmra.mxu1 %v3951_v10 }
 0x15e   :  { %1228 = vmatprep.mubr.bf16.mxu1 %v3559_v33 }
 0x165   :  { %1229 = vmatmul.mubr.bf16.gmra.mxu1 %v3962_v23 }
 0x166   :  { %1238 = vmatprep.mubr.bf16.mxu1 %v3559_v33 }
 0x16d   :  { %1239 = vmatmul.mubr.bf16.gmra.mxu1 %v3967_v46 }
 0x175   :  { %v880_v14 = vpop.f32.mrf.mxu1 }
 0x176   :  { %v1345_v53 = vmul.f32 0.044715, %v880_v14  ;;  %v4098_v24 = vmul.f32 0.5, %v880_v14 }
 0x177   :  { %v882_v50 = vpop.f32.mrf.mxu1 }
 0x178   :  { %v1346_v27 = vmul.f32 0.044715, %v882_v50  ;;  %v1409_v49 = vmul.f32 %v1345_v53, %v880_v14  ;;  %4984 = vst [vmem:[#allocation15_spill] sm:$0xff] %v4098_v24  ;;  %v4100_v3 = vmul.f32 0.5, %v882_v50 }
 0x179   :  { %v884_v25 = vpop.f32.mrf.mxu1 }
 0x17a   :  { %v1410_v59 = vmul.f32 %v1346_v27, %v882_v50  ;;  %v1347_v12 = vmul.f32 0.044715, %v884_v25  ;;  %v1473_v20 = vmul.f32 %v1409_v49, %v880_v14  ;;  %4985 = vst [vmem:[#allocation16_spill] sm:$0xff] %v4100_v3  ;;  %v4104_v32 = vmul.f32 0.5, %v884_v25 }
 0x17b   :  { %v886_v43 = vpop.f32.mrf.mxu1 }
 0x17c   :  { %v1348_v1 = vmul.f32 0.044715, %v886_v43  ;;  %v1474_v2 = vmul.f32 %v1410_v59, %v882_v50  ;;  %v1411_v30 = vmul.f32 %v1347_v12, %v884_v25  ;;  %v1537_v54 = vadd.f32 %v1473_v20, %v880_v14  ;;  %4986 = vst [vmem:[#allocation17_spill] sm:$0xff] %v4104_v32 }
 0x17d   :  { %v4046_v44 = vpop.f32.mrf.mxu1  ;;  %v4106_v21 = vmul.f32 0.5, %v886_v43 }
 0x17e   :  { %v1349_v10 = vmul.f32 0.044715, %v4046_v44  ;;  %v1412_v55 = vmul.f32 %v1348_v1, %v886_v43  ;;  %v1538_v34 = vadd.f32 %v1474_v2, %v882_v50  ;;  %v1475_v35 = vmul.f32 %v1411_v30, %v884_v25 }
 0x17f   :  { %v4048_v47 = vpop.f32.mrf.mxu1  ;;  %v1601_v23 = vmul.f32 0.7978846, %v1537_v54  ;;  %4987 = vst [vmem:[#allocation18_spill] sm:$0xff] %v4106_v21  ;;  %v4113_v62 = vmul.f32 0.5, %v4046_v44 }
 0x180   :  { %v1413_v38 = vmul.f32 %v1349_v10, %v4046_v44  ;;  %v1350_v39 = vmul.f32 0.044715, %v4048_v47  ;;  %v1476_v45 = vmul.f32 %v1412_v55, %v886_v43  ;;  %v1539_v26 = vadd.f32 %v1475_v35, %v884_v25 }
 0x181   :  { %v4050_v8 = vpop.f32.mrf.mxu1  ;;  %v1602_v29 = vmul.f32 0.7978846, %v1538_v34  ;;  %4989 = vst [vmem:[#allocation20_spill] sm:$0xff] %v4113_v62  ;;  %v4116_v42 = vmul.f32 0.5, %v4048_v47  ;;  %3431 = vtanh.f32 %v1601_v23 }
 0x182   :  { %v1351_v46 = vmul.f32 0.044715, %v4050_v8  ;;  %v1477_v22 = vmul.f32 %v1413_v38, %v4046_v44  ;;  %v1414_v61 = vmul.f32 %v1350_v39, %v4048_v47  ;;  %v1540_v40 = vadd.f32 %v1476_v45, %v886_v43 }
 0x183   :  { %v4052_v51 = vpop.f32.mrf.mxu1  ;;  %4990 = vst [vmem:[#allocation21_spill] sm:$0xff] %v4116_v42  ;;  %3433 = vtanh.f32 %v1602_v29  ;;  %v1603_v12 = vmul.f32 0.7978846, %v1539_v26  ;;  %v4140_v30 = vmul.f32 0.5, %v4050_v8 }
 0x184   :  { %4973 = vst [vmem:[#allocation4_spill] sm:$0xff] %v4052_v51  ;;  %v1352_v36 = vmul.f32 0.044715, %v4052_v51  ;;  %v1415_v14 = vmul.f32 %v1351_v46, %v4050_v8  ;;  %v4133_v20 = vadd.f32 %v1477_v22, %v4046_v44  ;;  %v1478_v43 = vmul.f32 %v1414_v61, %v4048_v47 }
 0x185   :  { %v4054_v52 = vpop.f32.mrf.mxu0  ;;  %v4056_v9 = vpop.f32.mrf.mxu1  ;;  %4995 = vst [vmem:[#allocation26_spill] sm:$0xff] %v4140_v30  ;;  %v1604_v45 = vmul.f32 0.7978846, %v1540_v40  ;;  %3435 = vtanh.f32 %v1603_v12 }
 0x186   :  { %4974 = vst [vmem:[#allocation5_spill] sm:$0xff] %v4056_v9  ;;  %v1313_v37 = vmul.f32 0.044715, %v4054_v52  ;;  %v1353_v5 = vmul.f32 0.044715, %v4056_v9  ;;  %4993 = vst [vmem:[#allocation24_spill] sm:$0xff] %v4133_v20  ;;  %v1416_v10 = vmul.f32 %v1352_v36, %v4052_v51  ;;  %v1479_v44 = vmul.f32 %v1415_v14, %v4050_v8 }
 0x187   :  { %v4058_v33 = vpop.f32.mrf.mxu0  ;;  %v4060_v56 = vpop.f32.mrf.mxu1  ;;  %v4159_v61 = vmul.f32 0.5, %v4054_v52  ;;  %v4162_v36 = vadd.f32 %v1478_v43, %v4048_v47  ;;  %3437 = vtanh.f32 %v1604_v45 }
 0x188   :  { %4975 = vst [vmem:[#allocation6_spill] sm:$0xff] %v4060_v56  ;;  %v1314_v50 = vmul.f32 0.044715, %v4058_v33  ;;  %v1354_v25 = vmul.f32 0.044715, %v4060_v56  ;;  %v1377_v54 = vmul.f32 %v1313_v37, %v4054_v52  ;;  %v1417_v55 = vmul.f32 %v1353_v5, %v4056_v9 }
 0x189   :  { %v4062_v48 = vpop.f32.mrf.mxu0  ;;  %v4064_v11 = vpop.f32.mrf.mxu1  ;;  %4998 = vst [vmem:[#allocation29_spill] sm:$0xff] %v4162_v36  ;;  %v4168_v40 = vmul.f32 0.5, %v4058_v33  ;;  %v1480_v14 = vmul.f32 %v1416_v10, %v4052_v51  ;;  %v4177_v47 = vadd.f32 %v1479_v44, %v4050_v8 }
 0x18a   :  { %4976 = vst [vmem:[#allocation7_spill] sm:$0xff] %v4064_v11  ;;  %v1315_v27 = vmul.f32 0.044715, %v4062_v48  ;;  %v1355_v49 = vmul.f32 0.044715, %v4064_v11  ;;  %v1378_v38 = vmul.f32 %v1314_v50, %v4058_v33  ;;  %v1418_v39 = vmul.f32 %v1354_v25, %v4060_v56 }
 0x18b   :  { %v4066_v57 = vpop.f32.mrf.mxu0  ;;  %v4068_v58 = vpop.f32.mrf.mxu1  ;;  %v1441_v50 = vmul.f32 %v1377_v54, %v4054_v52  ;;  %v1481_v25 = vmul.f32 %v1417_v55, %v4056_v9  ;;  %5000 = vst [vmem:[#allocation31_spill] sm:$0xff] %v4177_v47  ;;  %v4195_v45 = vmul.f32 0.5, %v4062_v48 }
 0x18c   :  { %4977 = vst [vmem:[#allocation8_spill] sm:$0xff] %v4068_v58  ;;  %v1316_v1 = vmul.f32 0.044715, %v4066_v57  ;;  %v1356_v34 = vmul.f32 0.044715, %v4068_v58  ;;  %v1379_v46 = vmul.f32 %v1315_v27, %v4062_v48  ;;  %v1419_v26 = vmul.f32 %v1355_v49, %v4064_v11 }
 0x18d   :  { %v4070_v60 = vpop.f32.mrf.mxu0  ;;  %v4072_v19 = vpop.f32.mrf.mxu1  ;;  %v1442_v43 = vmul.f32 %v1378_v38, %v4058_v33 }
 0x18e   :  { %4978 = vst [vmem:[#allocation9_spill] sm:$0xff] %v4072_v19  ;;  %v1317_v29 = vmul.f32 0.044715, %v4070_v60  ;;  %v1380_v37 = vmul.f32 %v1316_v1, %v4066_v57  ;;  %v1420_v27 = vmul.f32 %v1356_v34, %v4068_v58  ;;  %v1482_v1 = vmul.f32 %v1418_v39, %v4060_v56 }
 0x18f   :  { %v4074_v0 = vpop.f32.mrf.mxu0  ;;  %v4076_v6 = vpop.f32.mrf.mxu1  ;;  %v1443_v12 = vmul.f32 %v1379_v46, %v4062_v48  ;;  %v1483_v10 = vmul.f32 %v1419_v26, %v4064_v11  ;;  %v1357_v55 = vmul.f32 0.044715, %v4072_v19  ;;  %v4198_v46 = vadd.f32 %v1480_v14, %v4052_v51 }
 0x190   :  { %4979 = vst [vmem:[#allocation10_spill] sm:$0xff] %v4076_v6  ;;  %v1381_v54 = vmul.f32 %v1317_v29, %v4070_v60  ;;  %v1444_v8 = vmul.f32 %v1380_v37, %v4066_v57  ;;  %v1318_v44 = vmul.f32 0.044715, %v4074_v0  ;;  %v1358_v38 = vmul.f32 0.044715, %v4076_v6 }
 0x191   :  { %v4078_v7 = vpop.f32.mrf.mxu0  ;;  %v4081_v31 = vpop.f32.mrf.mxu1  ;;  %5004 = vst [vmem:[#allocation35_spill] sm:$0xff] %v4198_v46  ;;  %v4201_v26 = vadd.f32 %v1441_v50, %v4054_v52  ;;  %v4204_v29 = vadd.f32 %v1481_v25, %v4056_v9  ;;  %v1484_v37 = vmul.f32 %v1420_v27, %v4068_v58  ;;  %v4222_v25 = vadd.f32 %v1443_v12, %v4062_v48 }
 0x192   :  { %4980 = vst [vmem:[#allocation11_spill] sm:$0xff] %v4081_v31  ;;  %v1319_v14 = vmul.f32 0.044715, %v4078_v7  ;;  %v1359_v52 = vmul.f32 0.044715, %v4081_v31  ;;  %v4225_v27 = vadd.f32 %v1483_v10, %v4064_v11  ;;  %v1445_v9 = vmul.f32 %v1381_v54, %v4070_v60 }
 0x193   :  { %v4083_v13 = vpop.f32.mrf.mxu0  ;;  %v4085_v16 = vpop.f32.mrf.mxu1  ;;  %5005 = vst [vmem:[#allocation36_spill] sm:$0xff] %v4204_v29  ;;  %v1382_v51 = vmul.f32 %v1318_v44, %v4074_v0  ;;  %v4242_v10 = vadd.f32 %v1484_v37, %v4068_v58 }
 0x194   :  { %4981 = vst [vmem:[#allocation12_spill] sm:$0xff] %v4085_v16  ;;  %5009 = vst [vmem:[#allocation40_spill] sm:$0xff] %v4225_v27  ;;  %v1320_v48 = vmul.f32 0.044715, %v4083_v13  ;;  %v1423_v44 = vmul.f32 %v1359_v52, %v4081_v31  ;;  %v4256_v37 = vadd.f32 %v1445_v9, %v4070_v60 }
 0x195   :  { %v4087_v15 = vpop.f32.mrf.mxu0  ;;  %v4091_v18 = vpop.f32.mrf.mxu1  ;;  %5013 = vst [vmem:[#allocation44_spill] sm:$0xff] %v4242_v10 }
 0x196   :  { %4982 = vst [vmem:[#allocation13_spill] sm:$0xff] %v4091_v18  ;;  %v1321_v54 = vmul.f32 0.044715, %v4087_v15 }
 0x197   :  { %v4093_v17 = vpop.f32.mrf.mxu0  ;;  %v4096_v63 = vpop.f32.mrf.mxu1 }
 0x198   :  { %4983 = vst [vmem:[#allocation14_spill] sm:$0xff] %v4096_v63  ;;  %v1385_v10 = vmul.f32 %v1321_v54, %v4087_v15  ;;  %v1361_v54 = vmul.f32 0.044715, %v4091_v18 }
 0x199   :  { %v4102_v28 = vpop.f32.mrf.mxu0  ;;  %v4110_v41 = vpop.f32.mrf.mxu1 }
 0x19a   :  { %4988 = vst [vmem:[#allocation19_spill] sm:$0xff] %v4110_v41  ;;  %v1323_v11 = vmul.f32 0.044715, %v4102_v28 }
 0x19b   :  { %v4121_v4 = vpop.f32.mrf.mxu0  ;;  %v4126_v53 = vpop.f32.mrf.mxu1 }
 0x19c   :  { %4991 = vst [vmem:[#allocation22_spill] sm:$0xff] %v4126_v53  ;;  %v1324_v27 = vmul.f32 0.044715, %v4121_v4  ;;  %v1387_v3 = vmul.f32 %v1323_v11, %v4102_v28 }
 0x19d   :  { %v4130_v59 = vpop.f32.mrf.mxu0  ;;  %v4137_v2 = vpop.f32.mrf.mxu1 }
 0x19e   :  { %4992 = vst [vmem:[#allocation23_spill] sm:$0xff] %v4130_v59  ;;  %4994 = vst [vmem:[#allocation25_spill] sm:$0xff] %v4137_v2  ;;  %v4215_v2 = vadd.f32 %v1482_v1, %v4060_v56  ;;  %v4234_v56 = vadd.f32 %v1444_v8, %v4066_v57  ;;  %v1383_v8 = vmul.f32 %v1319_v14, %v4078_v7 }
 0x19f   :  { %v4146_v35 = vpop.f32.mrf.mxu0  ;;  %v4151_v23 = vpop.f32.mrf.mxu1  ;;  %v1446_v14 = vmul.f32 %v1382_v51, %v4074_v0 }
 0x1a0   :  { %4996 = vst [vmem:[#allocation27_spill] sm:$0xff] %v4151_v23  ;;  %5007 = vst [vmem:[#allocation38_spill] sm:$0xff] %v4215_v2  ;;  %v1325_v23 = vmul.f32 0.044715, %v4130_v59  ;;  %v1326_v30 = vmul.f32 0.044715, %v4146_v35  ;;  %v1447_v51 = vmul.f32 %v1383_v8, %v4078_v7 }
 0x1a1   :  { %v4156_v22 = vpop.f32.mrf.mxu0  ;;  %v4165_v5 = vpop.f32.mrf.mxu1 }
 0x1a2   :  { %4997 = vst [vmem:[#allocation28_spill] sm:$0xff] %v4156_v22  ;;  %4999 = vst [vmem:[#allocation30_spill] sm:$0xff] %v4165_v5  ;;  %v1327_v2 = vmul.f32 0.044715, %v4156_v22  ;;  %v1389_v11 = vmul.f32 %v1325_v23, %v4130_v59  ;;  %v1449_v23 = vmul.f32 %v1385_v10, %v4087_v15  ;;  %v4322_v10 = vmul.f32 %v1361_v54, %v4091_v18 }
 0x1a3   :  { %v4174_v49 = vpop.f32.mrf.mxu0  ;;  %v4181_v42 = vpop.f32.mrf.mxu1 }
 0x1a4   :  { %5001 = vst [vmem:[#allocation32_spill] sm:$0xff] %v4181_v42  ;;  %v4209_v42 = vpop.eup %3431  ;;  %v1328_v41 = vmul.f32 0.044715, %v4174_v49  ;;  %5029 = vst [vmem:[#allocation60_spill] sm:$0xff] %v4322_v10 }
 0x1a5   :  { %v4187_v34 = vpop.f32.mrf.mxu0  ;;  %v4192_v39 = vpop.f32.mrf.mxu1  ;;  %5006 = vst [vmem:[#allocation37_spill] sm:$0xff] %v4209_v42 }
 0x1a6   :  { %5002 = vst [vmem:[#allocation33_spill] sm:$0xff] %v4187_v34  ;;  %5003 = vst [vmem:[#allocation34_spill] sm:$0xff] %v4192_v39  ;;  %v4212_v39 = vadd.f32 %v1442_v43, %v4058_v33  ;;  %v1421_v33 = vmul.f32 %v1357_v55, %v4072_v19  ;;  %v4231_v1 = vpop.eup %3433  ;;  %v1322_v55 = vmul.f32 0.044715, %v4093_v17 }
 0x1a7   :  { %v4207_v5 = vpop.f32.mrf.mxu0  ;;  %v4219_v50 = vpop.f32.mrf.mxu1  ;;  %5011 = vst [vmem:[#allocation42_spill] sm:$0xff] %v4231_v1 }
 0x1a8   :  { %5008 = vst [vmem:[#allocation39_spill] sm:$0xff] %v4219_v50  ;;  %v1422_v50 = vmul.f32 %v1358_v38, %v4076_v6  ;;  %v1360_v38 = vmul.f32 0.044715, %v4085_v16  ;;  %v1485_v58 = vmul.f32 %v1421_v33, %v4072_v19  ;;  %v4269_v9 = vpop.eup %3435  ;;  %v1384_v33 = vmul.f32 %v1320_v48, %v4083_v13 }
 0x1a9   :  { %v4229_v43 = vpop.f32.mrf.mxu0  ;;  %v4239_v12 = vpop.f32.mrf.mxu1  ;;  %5017 = vst [vmem:[#allocation48_spill] sm:$0xff] %v4269_v9  ;;  %v1386_v21 = vmul.f32 %v1322_v55, %v4093_v17  ;;  %v1390_v55 = vmul.f32 %v1326_v30, %v4146_v35  ;;  %v1570_v9 = vmul.f32 0.7978846, %v4212_v39  ;;  %v1571_v39 = vmul.f32 0.7978846, %v4222_v25 }
 0x1aa   :  { %5010 = vst [vmem:[#allocation41_spill] sm:$0xff] %v4229_v43  ;;  %5012 = vst [vmem:[#allocation43_spill] sm:$0xff] %v4239_v12  ;;  %v1486_v52 = vmul.f32 %v1422_v50, %v4076_v6  ;;  %v1487_v50 = vmul.f32 %v1423_v44, %v4081_v31  ;;  %v1424_v24 = vmul.f32 %v1360_v38, %v4085_v16  ;;  %v4283_v1 = vpop.eup %3437 }
 0x1ab   :  { %v4247_v29 = vpop.f32.mrf.mxu0  ;;  %v4253_v12 = vpop.f32.mrf.mxu1  ;;  %5020 = vst [vmem:[#allocation51_spill] sm:$0xff] %v4283_v1  ;;  %v4286_v48 = vadd.f32 %v1485_v58, %v4072_v19  ;;  %v4294_v44 = vadd.f32 %v1446_v14, %v4074_v0  ;;  %v1391_v38 = vmul.f32 %v1327_v2, %v4156_v22  ;;  %v1448_v19 = vmul.f32 %v1384_v33, %v4083_v13 }
 0x1ac   :  { %5014 = vst [vmem:[#allocation45_spill] sm:$0xff] %v4253_v12  ;;  %v1450_v30 = vmul.f32 %v1386_v21, %v4093_v17  ;;  %v4310_v14 = vadd.f32 %v1447_v51, %v4078_v7  ;;  %v1453_v21 = vmul.f32 %v1389_v11, %v4130_v59  ;;  %v1454_v51 = vmul.f32 %v1390_v55, %v4146_v35 }
 0x1ad   :  { %v4261_v62 = vpop.f32.mrf.mxu0  ;;  %v4267_v12 = vpop.f32.mrf.mxu1  ;;  %5021 = vst [vmem:[#allocation52_spill] sm:$0xff] %v4286_v48  ;;  %v1451_v48 = vmul.f32 %v1387_v3, %v4102_v28  ;;  %v4325_v3 = vmul.f32 0.044715, %v4096_v63  ;;  %v1512_v54 = vadd.f32 %v1448_v19, %v4083_v13  ;;  %v1569_v19 = vmul.f32 0.7978846, %v4201_v26 }
 0x1ae   :  { %5015 = vst [vmem:[#allocation46_spill] sm:$0xff] %v4261_v62  ;;  %5016 = vst [vmem:[#allocation47_spill] sm:$0xff] %v4267_v12  ;;  %v1388_v12 = vmul.f32 %v1324_v27, %v4121_v4  ;;  %v4297_v27 = vadd.f32 %v1486_v52, %v4076_v6  ;;  %v4313_v52 = vadd.f32 %v1487_v50, %v4081_v31  ;;  %v1330_v31 = vmul.f32 0.044715, %v4207_v5 }
 0x1af   :  { %v4275_v32 = vpop.f32.mrf.mxu0  ;;  %v4281_v36 = vpop.f32.mrf.mxu1  ;;  %5030 = vst [vmem:[#allocation61_spill] sm:$0xff] %v4325_v3  ;;  %v1455_v50 = vmul.f32 %v1391_v38, %v4156_v22  ;;  %v4342_v11 = vadd.f32 %v1450_v30, %v4093_v17  ;;  %v4345_v55 = vadd.f32 %v1451_v48, %v4102_v28  ;;  %v4361_v30 = vadd.f32 %v1454_v51, %v4146_v35 }
 0x1b0   :  { %5018 = vst [vmem:[#allocation49_spill] sm:$0xff] %v4275_v32  ;;  %5019 = vst [vmem:[#allocation50_spill] sm:$0xff] %v4281_v36  ;;  %v1392_v36 = vmul.f32 %v1328_v41, %v4174_v49  ;;  %v4316_v41 = vmul.f32 %v1424_v24, %v4085_v16  ;;  %v1452_v2 = vmul.f32 %v1388_v12, %v4121_v4  ;;  %v1329_v12 = vmul.f32 0.044715, %v4187_v34 }
 0x1b1   :  { %v4291_v8 = vpop.f32.mrf.mxu0  ;;  %5023 = vst [vmem:[#allocation54_spill] sm:$0xff] %v4297_v27  ;;  %v4301_v58 = vpop.f32.mrf.mxu1  ;;  %5026 = vst [vmem:[#allocation57_spill] sm:$0xff] %v4313_v52  ;;  %v1331_v52 = vmul.f32 0.044715, %v4229_v43  ;;  %v1332_v27 = vmul.f32 0.044715, %v4247_v29  ;;  %v1394_v53 = vmul.f32 %v1330_v31, %v4207_v5  ;;  %3439 = vtanh.f32 %v1570_v9 }
 0x1b2   :  { %5022 = vst [vmem:[#allocation53_spill] sm:$0xff] %v4291_v8  ;;  %5024 = vst [vmem:[#allocation55_spill] sm:$0xff] %v4301_v58  ;;  %v1456_v24 = vmul.f32 %v1392_v36, %v4174_v49  ;;  %v4350_v36 = vadd.f32 %v1452_v2, %v4121_v4  ;;  %v1333_v48 = vmul.f32 0.044715, %v4261_v62  ;;  %v4366_v2 = vadd.f32 %v1455_v50, %v4156_v22 }
 0x1b3   :  { %v4307_v1 = vpop.f32.mrf.mxu0  ;;  %5027 = vst [vmem:[#allocation58_spill] sm:$0xff] %v4316_v41  ;;  %v4319_v33 = vpop.f32.mrf.mxu1  ;;  %v1393_v26 = vmul.f32 %v1329_v12, %v4187_v34  ;;  %v1335_v51 = vmul.f32 0.044715, %v4291_v8  ;;  %v1395_v50 = vmul.f32 %v1331_v52, %v4229_v43  ;;  %3441 = vtanh.f32 %v1569_v19 }
 0x1b4   :  { %5025 = vst [vmem:[#allocation56_spill] sm:$0xff] %v4307_v1  ;;  %5028 = vst [vmem:[#allocation59_spill] sm:$0xff] %v4319_v33  ;;  %v4339_v33 = vadd.f32 %v1449_v23, %v4087_v15  ;;  %v4358_v23 = vadd.f32 %v1453_v21, %v4130_v59  ;;  %v4369_v42 = vadd.f32 %v1456_v24, %v4174_v49  ;;  %v1334_v21 = vmul.f32 0.044715, %v4275_v32 }
 0x1b5   :  { %v4329_v6 = vpop.f32.mrf.mxu0  ;;  %v4335_v58 = vpop.f32.mrf.mxu1  ;;  %v1396_v24 = vmul.f32 %v1332_v27, %v4247_v29  ;;  %v1336_v47 = vmul.f32 0.044715, %v4307_v1  ;;  %v1397_v31 = vmul.f32 %v1333_v48, %v4261_v62  ;;  %3443 = vtanh.f32 %v1571_v39 }
 0x1b6   :  { %5031 = vst [vmem:[#allocation62_spill] sm:$0xff] %v4329_v6  ;;  %v1337_v20 = vmul.f32 0.044715, %v4329_v6  ;;  %v1572_v9 = vmul.f32 0.7978846, %v4234_v56  ;;  %v1457_v10 = vmul.f32 %v1393_v26, %v4187_v34  ;;  %v1458_v25 = vmul.f32 %v1394_v53, %v4207_v5 }
 0x1b7   :  { %v4347_v38 = vpop.f32.mrf.mxu0  ;;  %v4355_v46 = vpop.f32.mrf.mxu1  ;;  %v1573_v27 = vmul.f32 0.7978846, %v4256_v37  ;;  %v1398_v19 = vmul.f32 %v1334_v21, %v4275_v32  ;;  %v1399_v59 = vmul.f32 %v1335_v51, %v4291_v8  ;;  %v1574_v39 = vmul.f32 0.7978846, %v4294_v44 }
 0x1b8   :  { %5032 = vst [vmem:[#allocation63_spill] sm:$0xff] %v4347_v38  ;;  %v1338_v52 = vmul.f32 0.044715, %v4347_v38  ;;  %3445 = vtanh.f32 %v1572_v9  ;;  %v1459_v56 = vmul.f32 %v1395_v50, %v4229_v43  ;;  %v1460_v26 = vmul.f32 %v1396_v24, %v4247_v29 }
 0x1b9   :  { %v4373_v3 = vpop.f32.mrf.mxu1  ;;  %v4377_v63 = vpop.f32.mrf.mxu0  ;;  %v1400_v53 = vmul.f32 %v1336_v47, %v4307_v1  ;;  %v1461_v37 = vmul.f32 %v1397_v31, %v4261_v62  ;;  %v1401_v21 = vmul.f32 %v1337_v20, %v4329_v6  ;;  %3447 = vtanh.f32 %v1574_v39 }
 0x1ba   :  { %5033 = vst [vmem:[#allocation64_spill] sm:$0xff] %v4377_v63  ;;  %v1339_v41 = vmul.f32 0.044715, %v4377_v63  ;;  %v1575_v51 = vmul.f32 0.7978846, %v4310_v14  ;;  %v1402_v9 = vmul.f32 %v1338_v52, %v4347_v38  ;;  %3449 = vtanh.f32 %v1573_v27 }
 0x1bb   :  { %v4383_v12 = vpop.f32.mrf.mxu1  ;;  %v4396_v48 = vpop.f32.mrf.mxu0  ;;  %v1576_v24 = vmul.f32 0.7978846, %v1512_v54  ;;  %v4413_v47 = vadd.f32 %v1457_v10, %v4187_v34  ;;  %v1462_v22 = vmul.f32 %v1398_v19, %v4275_v32  ;;  %v1463_v31 = vmul.f32 %v1399_v59, %v4291_v8 }
 0x1bc   :  { %5034 = vst [vmem:[#allocation65_spill] sm:$0xff] %v4396_v48  ;;  %v1340_v44 = vmul.f32 0.044715, %v4396_v48  ;;  %3451 = vtanh.f32 %v1575_v51  ;;  %v4418_v20 = vadd.f32 %v1458_v25, %v4207_v5  ;;  %v1464_v14 = vmul.f32 %v1400_v53, %v4307_v1 }
 0x1bd   :  { %v4391_v18 = vpop.f32.mrf.mxu1  ;;  %v1403_v52 = vmul.f32 %v1339_v41, %v4377_v63  ;;  %3453 = vtanh.f32 %v1576_v24  ;;  %v4425_v54 = vadd.f32 %v1459_v56, %v4229_v43  ;;  %v4428_v10 = vadd.f32 %v1460_v26, %v4247_v29  ;;  %v4437_v53 = vpop.f32.mrf.mxu0 }
 0x1be   :  { %v1465_v27 = vmul.f32 %v1401_v21, %v4329_v6  ;;  %v1578_v59 = vmul.f32 0.7978846, %v4342_v11  ;;  %v4433_v25 = vadd.f32 %v1461_v37, %v4261_v62  ;;  %v1466_v19 = vmul.f32 %v1402_v9, %v4347_v38  ;;  %v3440_v37 = vpop.eup %3439 }
 0x1bf   :  { %v4403_v16 = vpop.f32.mrf.mxu1  ;;  %v1404_v41 = vmul.f32 %v1340_v44, %v4396_v48  ;;  %v1579_v56 = vmul.f32 0.7978846, %v4345_v55  ;;  %v4443_v26 = vadd.f32 %v1462_v22, %v4275_v32  ;;  %v4446_v21 = vadd.f32 %v1463_v31, %v4291_v8 }
 0x1c0   :  { %v1577_v11 = vmul.f32 0.7978846, %v4339_v33  ;;  %3455 = vtanh.f32 %v1578_v59  ;;  %v4450_v9 = vadd.f32 %v1464_v14, %v4307_v1  ;;  %v1467_v44 = vmul.f32 %v1403_v52, %v4377_v63  ;;  %v3442_v22 = vpop.eup %3441  ;;  %v4468_v52 = vpop.f32.mrf.mxu0 }
 0x1c1   :  { %v4410_v50 = vpop.f32.mrf.mxu1  ;;  %v1252_v24 = vmul.f32 0.5, %v4066_v57  ;;  %v1580_v55 = vmul.f32 0.7978846, %v4350_v36  ;;  %v4458_v32 = vadd.f32 %v1465_v27, %v4329_v6  ;;  %v1341_v31 = vmul.f32 0.044715, %v4437_v53 }
 0x1c2   :  { %v4462_v33 = vmul.f32 0.5, %v4070_v60  ;;  %3457 = vtanh.f32 %v1579_v56  ;;  %v3444_v14 = vpop.eup %3443  ;;  %v4465_v59 = vadd.f32 %v1466_v19, %v4347_v38  ;;  %v1468_v57 = vmul.f32 %v1404_v41, %v4396_v48 }
 0x1c3   :  { %v4422_v39 = vpop.f32.mrf.mxu1  ;;  %5035 = vst [vmem:[#allocation66_spill] sm:$0xff] %v4458_v32  ;;  %3459 = vtanh.f32 %v1580_v55  ;;  %v1582_v36 = vmul.f32 0.7978846, %v4361_v30  ;;  %v1698_v27 = vadd.f32 1.0, %v3440_v37  ;;  %v1699_v6 = vadd.f32 1.0, %v3444_v14 }
 0x1c4   :  { %v1254_v1 = vmul.f32 0.5, %v4074_v0  ;;  %3461 = vtanh.f32 %v1577_v11  ;;  %v1697_v56 = vadd.f32 1.0, %v3442_v22  ;;  %v4475_v34 = vadd.f32 %v1467_v44, %v4377_v63  ;;  %v4489_v44 = vpop.f32.mrf.mxu0 }
 0x1c5   :  { %v4439_v51 = vpop.f32.mrf.mxu1  ;;  %v3446_v60 = vpop.eup %3445  ;;  %v1255_v19 = vmul.f32 0.5, %v4078_v7  ;;  %3463 = vtanh.f32 %v1582_v36  ;;  %v4481_v55 = vmul.f32 %v1341_v31, %v4437_v53  ;;  %v1342_v30 = vmul.f32 0.044715, %v4468_v52 }
 0x1c6   :  { %v1700_v38 = vadd.f32 1.0, %v3446_v60  ;;  %v1584_v37 = vmul.f32 0.7978846, %v4369_v42  ;;  %v3448_v0 = vpop.eup %3447  ;;  %v1763_v11 = vmul.f32 %v1699_v6, %v4195_v45  ;;  %v4487_v22 = vadd.f32 %v1468_v57, %v4396_v48 }
 0x1c7   :  { %v4454_v62 = vpop.f32.mrf.mxu1  ;;  %v1256_v7 = vmul.f32 0.5, %v4083_v13  ;;  %v1583_v36 = vmul.f32 0.7978846, %v4366_v2  ;;  %v3450_v31 = vpop.eup %3449  ;;  %v1762_v60 = vmul.f32 %v1698_v27, %v4168_v40  ;;  %v1702_v43 = vadd.f32 1.0, %v3448_v0 }
 0x1c8   :  { %v1764_v63 = vmul.f32 %v1700_v38, %v1252_v24  ;;  %3465 = vtanh.f32 %v1584_v37  ;;  %v1761_v6 = vmul.f32 %v1697_v56, %v4159_v61  ;;  %v1827_v45 = vmul.f32 %v1763_v11, %v4373_v3  ;;  %v4509_v3 = vpop.f32.mrf.mxu0 }
 0x1c9   :  { %v4470_v8 = vpop.f32.mrf.mxu1  ;;  %v3452_v42 = vpop.eup %3451  ;;  %v1581_v57 = vmul.f32 0.7978846, %v4358_v23  ;;  %v1586_v13 = vmul.f32 0.7978846, %v4418_v20  ;;  %v1826_v2 = vmul.f32 %v1762_v60, %v4355_v46  ;;  %v1406_v40 = vmul.f32 %v1342_v30, %v4468_v52 }
 0x1ca   :  { %v1828_v32 = vmul.f32 %v1764_v63, %v4383_v12  ;;  %v4506_v38 = vmul.f32 0.044715, %v4489_v44  ;;  %v1825_v61 = vmul.f32 %v1761_v6, %v4335_v58  ;;  %v1703_v24 = vadd.f32 1.0, %v3452_v42 }
 0x1cb   :  { %v4478_v41 = vpop.f32.mrf.mxu1  ;;  %3467 = vtanh.f32 %v1583_v36  ;;  %v1701_v56 = vadd.f32 1.0, %v3450_v31  ;;  %v1766_v37 = vmul.f32 %v1702_v43, %v1254_v1  ;;  %v1588_v0 = vmul.f32 0.7978846, %v4428_v10 }
 0x1cc   :  { %v1890_v20 = vpack.c.bf16 %v1828_v32, %v1826_v2  ;;  %3469 = vtanh.f32 %v1586_v13  ;;  %v1889_v63 = vpack.c.bf16 %v1827_v45, %v1825_v61  ;;  %v1344_v11 = vmul.f32 0.044715, %v4509_v3 }
 0x1cd   :  { %v4492_v14 = vpop.f32.mrf.mxu1  ;;  %3471 = vtanh.f32 %v1581_v57  ;;  %v1830_v58 = vmul.f32 %v1766_v37, %v4403_v16  ;;  %v1585_v32 = vmul.f32 0.7978846, %v4413_v47  ;;  %v1767_v43 = vmul.f32 %v1703_v24, %v1255_v19 }
 0x1ce   :  { %5036 = vst [vmem:[#allocation67_spill] sm:$0xff] %v4492_v14  ;;  %v3454_v14 = vpop.eup %3453  ;;  %2113 = vmatprep.mubr.bf16.mxu0 %v1890_v20  ;;  %v1587_v60 = vmul.f32 0.7978846, %v4425_v54  ;;  %v1765_v16 = vmul.f32 %v1701_v56, %v4462_v33  ;;  %v1470_v42 = vmul.f32 %v1406_v40, %v4468_v52  ;;  %v1258_v6 = vmul.f32 0.5, %v4093_v17 }
 0x1cf   :  { %v4499_v48 = vpop.f32.mrf.mxu1  ;;  %v1704_v23 = vadd.f32 1.0, %v3454_v14  ;;  %v3456_v46 = vpop.eup %3455  ;;  %v1257_v14 = vmul.f32 0.5, %v4087_v15  ;;  %2114 = vmatmul.mubr.bf16.vlgmr.msra.gmra.mxu0 %v1889_v63  ;;  %3473 = vtanh.f32 %v1588_v0  ;;  %v1831_v47 = vmul.f32 %v1767_v43, %v4410_v50 }
 0x1d0   :  { %v3458_v36 = vpop.eup %3457  ;;  %v1260_v45 = vmul.f32 0.5, %v4121_v4  ;;  %v1829_v54 = vmul.f32 %v1765_v16, %v4391_v18  ;;  %v1408_v2 = vmul.f32 %v1344_v11, %v4509_v3  ;;  %3475 = vtanh.f32 %v1585_v32 }
 0x1d1   :  { %v4511_v27 = vpop.f32.mrf.mxu1  ;;  %v1768_v12 = vmul.f32 %v1704_v23, %v1256_v7  ;;  %v1706_v7 = vadd.f32 1.0, %v3456_v46  ;;  %v3460_v10 = vpop.eup %3459  ;;  %v1590_v33 = vmul.f32 0.7978846, %v4443_v26  ;;  %v1707_v17 = vadd.f32 1.0, %v3458_v36 }
 0x1d2   :  { %v3462_v15 = vpop.eup %3461  ;;  %3477 = vtanh.f32 %v1587_v60  ;;  %v1259_v4 = vmul.f32 0.5, %v4102_v28  ;;  %v1891_v56 = vpack.c.bf16 %v1831_v47, %v1829_v54  ;;  %v1589_v26 = vmul.f32 0.7978846, %v4433_v25 }
 0x1d3   :  { %v4513_v30 = vpop.f32.mrf.mxu1  ;;  %v1832_v1 = vmul.f32 %v1768_v12, %v4422_v39  ;;  %v1708_v39 = vadd.f32 1.0, %v3460_v10  ;;  %v3464_v13 = vpop.eup %3463  ;;  %v1770_v40 = vmul.f32 %v1706_v7, %v1258_v6  ;;  %v1705_v50 = vadd.f32 1.0, %v3462_v15 }
 0x1d4   :  { %v1710_v23 = vadd.f32 1.0, %v3464_v13  ;;  %3479 = vtanh.f32 %v1590_v33  ;;  %v1262_v63 = vmul.f32 0.5, %v4146_v35  ;;  %v1264_v12 = vmul.f32 0.5, %v4174_v49  ;;  %v5037_v13 = vld [vmem:[#allocation28_spill] sm:$0xff] }
 0x1d5   :  { %v4521_v31 = vpop.f32.mrf.mxu1  ;;  %v1892_v19 = vpack.c.bf16 %v1832_v1, %v1830_v58  ;;  %v1772_v61 = vmul.f32 %v1708_v39, %v1260_v45  ;;  %v3466_v20 = vpop.eup %3465  ;;  %v1834_v18 = vmul.f32 %v1770_v40, %v4454_v62  ;;  %v1592_v58 = vmul.f32 0.7978846, %v4450_v9 }
 0x1d6   :  { %v1712_v0 = vadd.f32 1.0, %v3466_v20  ;;  %v1472_v28 = vmul.f32 %v1408_v2, %v4509_v3  ;;  %v1771_v11 = vmul.f32 %v1707_v17, %v1259_v4  ;;  %v1591_v62 = vmul.f32 0.7978846, %v4446_v21  ;;  %v5038_v17 = vld [vmem:[#allocation12_spill] sm:$0xff]  ;;  %v5040_v4 = vld [vmem:[#allocation23_spill] sm:$0xff] }
 0x1d7   :  { %v4529_v57 = vpop.f32.mrf.mxu1  ;;  %2121 = vmatprep.mubr.bf16.mxu0 %v1892_v19  ;;  %v1836_v37 = vmul.f32 %v1772_v61, %v4478_v41  ;;  %v1469_v25 = vmul.f32 %v4481_v55, %v4437_v53  ;;  %v1774_v43 = vmul.f32 %v1710_v23, %v1262_v63  ;;  %3481 = vtanh.f32 %v1592_v58  ;;  %v5039_v61 = vld [vmem:[#allocation58_spill] sm:$0xff] }
 0x1d8   :  { %2122 = vmatmul.mubr.bf16.gmra.mxu0 %v1891_v56  ;;  %v3468_v41 = vpop.eup %3467  ;;  %v1776_v35 = vmul.f32 %v1712_v0, %v1264_v12  ;;  %v1407_v9 = vmul.f32 %v4506_v38, %v4489_v44  ;;  %v1769_v1 = vmul.f32 %v1705_v50, %v1257_v14  ;;  %v1835_v7 = vmul.f32 %v1771_v11, %v4470_v8 }
 0x1d9   :  { %v4534_v24 = vpop.f32.mrf.mxu1  ;;  %v1894_v32 = vpack.c.bf16 %v1836_v37, %v1834_v18  ;;  %v3470_v49 = vpop.eup %3469  ;;  %3483 = vtanh.f32 %v1589_v26  ;;  %v1534_v21 = vadd.f32 %v1470_v42, %v4468_v52  ;;  %v1838_v16 = vmul.f32 %v1774_v43, %v4499_v48  ;;  %v5041_v18 = vld [vmem:[#allocation13_spill] sm:$0xff] }
 0x1da   :  { %v3472_v10 = vpop.eup %3471  ;;  %v1840_v55 = vmul.f32 %v1776_v35, %v4513_v30  ;;  %v1594_v6 = vmul.f32 0.7978846, %v4465_v59  ;;  %v1536_v15 = vadd.f32 %v1472_v28, %v4509_v3  ;;  %v1833_v38 = vmul.f32 %v1769_v1, %v4439_v51  ;;  %v5043_v28 = vld [vmem:[#allocation66_spill] sm:$0xff] }
 0x1db   :  { %v4539_v46 = vpop.f32.mrf.mxu1  ;;  %2129 = vmatprep.mubr.bf16.mxu0 %v1894_v32  ;;  %v1711_v14 = vadd.f32 1.0, %v3468_v41  ;;  %3485 = vtanh.f32 %v1591_v62  ;;  %v1714_v19 = vadd.f32 1.0, %v3470_v49  ;;  %v1596_v45 = vmul.f32 0.7978846, %v4487_v22 }
 0x1dc   :  { %v1896_v8 = vpack.c.bf16 %v1840_v55, %v1838_v16  ;;  %3487 = vtanh.f32 %v1594_v6  ;;  %v3474_v42 = vpop.eup %3473  ;;  %v1893_v39 = vpack.c.bf16 %v1835_v7, %v1833_v38  ;;  %v1709_v48 = vadd.f32 1.0, %v3472_v10 }
 0x1dd   :  { %v4546_v36 = vpop.f32.mrf.mxu1  ;;  %v1263_v30 = vmul.f32 0.5, %v5037_v13  ;;  %v1266_v59 = vmul.f32 0.5, %v4207_v5  ;;  %v1268_v51 = vmul.f32 0.5, %v4247_v29  ;;  %v1716_v2 = vadd.f32 1.0, %v3474_v42  ;;  %v3476_v40 = vpop.eup %3475  ;;  %v5042_v29 = vld [vmem:[#allocation60_spill] sm:$0xff] }
 0x1de   :  { %v1595_v33 = vmul.f32 0.7978846, %v4475_v34  ;;  %3489 = vtanh.f32 %v1596_v45  ;;  %v4573_v50 = vadd.f32 %v5039_v61, %v5038_v17  ;;  %v1471_v22 = vmul.f32 %v1407_v9, %v4489_v44  ;;  %v5044_v9 = vld [vmem:[#allocation67_spill] sm:$0xff]  ;;  %v5048_v45 = vld [vmem:[#allocation49_spill] sm:$0xff]  ;;  %v5051_v61 = vld [vmem:[#allocation14_spill] sm:$0xff] }
 0x1df   :  { %v4554_v60 = vpop.f32.mrf.mxu1  ;;  %v1261_v23 = vmul.f32 0.5, %v5040_v4  ;;  %v1775_v20 = vmul.f32 %v1711_v14, %v1263_v30  ;;  %v3478_v56 = vpop.eup %3477  ;;  %v4581_v37 = vmul.f32 %v5042_v29, %v5041_v18  ;;  %v1778_v34 = vmul.f32 %v1714_v19, %v1266_v59 }
 0x1e0   :  { %2130 = vmatmul.mubr.bf16.gmra.mxu0 %v1893_v39  ;;  %v1780_v26 = vmul.f32 %v1716_v2, %v1268_v51  ;;  %v1598_v63 = vmul.f32 0.7978846, %v1534_v21  ;;  %v1593_v11 = vmul.f32 0.7978846, %v5043_v28  ;;  %v1600_v62 = vmul.f32 0.7978846, %v1536_v15 }
 0x1e1   :  { %v4562_v47 = vpop.f32.mrf.mxu1  ;;  %2137 = vmatprep.mubr.bf16.mxu0 %v1896_v8  ;;  %v3480_v12 = vpop.eup %3479  ;;  %v1773_v0 = vmul.f32 %v1709_v48, %v1261_v23  ;;  %v1839_v58 = vmul.f32 %v1775_v20, %v4511_v27  ;;  %v1533_v41 = vadd.f32 %v1469_v25, %v4437_v53  ;;  %v1842_v43 = vmul.f32 %v1778_v34, %v4529_v57  ;;  %v5045_v25 = vld [vmem:[#allocation41_spill] sm:$0xff]  ;;  %v5049_v39 = vld [vmem:[#allocation56_spill] sm:$0xff]  ;;  %v5050_v2 = vld [vmem:[#allocation31_spill] sm:$0xff] }
 0x1e2   :  { %v1844_v35 = vmul.f32 %v1780_v26, %v4539_v46  ;;  %3491 = vtanh.f32 %v1595_v33  ;;  %v1535_v49 = vadd.f32 %v1471_v22, %v4489_v44  ;;  %v1715_v7 = vadd.f32 1.0, %v3478_v56  ;;  %v5046_v46 = vld [vmem:[#allocation24_spill] sm:$0xff]  ;;  %v5047_v8 = vld [vmem:[#allocation33_spill] sm:$0xff]  ;;  %v5054_v28 = vld [vmem:[#allocation46_spill] sm:$0xff] }
 0x1e3   :  { %v4567_v54 = vpop.f32.mrf.mxu1  ;;  %v1837_v1 = vmul.f32 %v1773_v0, %v5044_v9  ;;  %3493 = vtanh.f32 %v1600_v62  ;;  %v1713_v27 = vadd.f32 1.0, %v3476_v40  ;;  %v1718_v16 = vadd.f32 1.0, %v3480_v12  ;;  %v5052_v22 = vld [vmem:[#allocation61_spill] sm:$0xff]  ;;  %v5053_v0 = vld [vmem:[#allocation22_spill] sm:$0xff] }
 0x1e4   :  { %v1898_v21 = vpack.c.bf16 %v1844_v35, %v1842_v43  ;;  %3495 = vtanh.f32 %v1598_v63  ;;  %v3482_v55 = vpop.eup %3481  ;;  %v1267_v15 = vmul.f32 0.5, %v5045_v25  ;;  %v1605_v38 = vmul.f32 0.7978846, %v5046_v46  ;;  %v5055_v9 = vld [vmem:[#allocation53_spill] sm:$0xff] }
 0x1e5   :  { %v4577_v5 = vpop.f32.mrf.mxu1  ;;  %v1895_v6 = vpack.c.bf16 %v1839_v58, %v1837_v1  ;;  %3497 = vtanh.f32 %v1593_v11  ;;  %v1265_v19 = vmul.f32 0.5, %v5047_v8  ;;  %v1270_v42 = vmul.f32 0.5, %v5048_v45 }
 0x1e6   :  { %v3484_v14 = vpop.eup %3483  ;;  %v1272_v48 = vmul.f32 0.5, %v5049_v39  ;;  %v1720_v13 = vadd.f32 1.0, %v3482_v55  ;;  %v1779_v30 = vmul.f32 %v1715_v7, %v1267_v15  ;;  %v1599_v51 = vmul.f32 0.7978846, %v1535_v49  ;;  %v5057_v15 = vld [vmem:[#allocation63_spill] sm:$0xff] }
 0x1e7   :  { %v4585_v32 = vpop.f32.mrf.mxu1  ;;  %3499 = vtanh.f32 %v1605_v38  ;;  %v1607_v33 = vmul.f32 0.7978846, %v5050_v2  ;;  %v4604_v4 = vmul.f32 %v5052_v22, %v5051_v61  ;;  %v1777_v23 = vmul.f32 %v1713_v27, %v1265_v19  ;;  %v5058_v38 = vld [vmem:[#allocation37_spill] sm:$0xff]  ;;  %v5060_v19 = vld [vmem:[#allocation35_spill] sm:$0xff] }
 0x1e8   :  { %2138 = vmatmul.mubr.bf16.gmra.mxu0 %v1895_v6  ;;  %v3486_v40 = vpop.eup %3485  ;;  %v1782_v20 = vmul.f32 %v1718_v16, %v1270_v42  ;;  %v1784_v56 = vmul.f32 %v1720_v13, %v1272_v48  ;;  %v1843_v34 = vmul.f32 %v1779_v30, %v4534_v24  ;;  %v1717_v26 = vadd.f32 1.0, %v3484_v14  ;;  %v5059_v14 = vld [vmem:[#allocation48_spill] sm:$0xff]  ;;  %v5061_v13 = vld [vmem:[#allocation42_spill] sm:$0xff] }
 0x1e9   :  { %v4592_v10 = vpop.f32.mrf.mxu1  ;;  %2145 = vmatprep.mubr.bf16.mxu0 %v1898_v21  ;;  %v3488_v29 = vpop.eup %3487  ;;  %v1597_v63 = vmul.f32 0.7978846, %v1533_v41  ;;  %3501 = vtanh.f32 %v1607_v33  ;;  %v4610_v58 = vmul.f32 0.044715, %v5053_v0  ;;  %v1269_v11 = vmul.f32 0.5, %v5054_v28  ;;  %v5056_v21 = vld [vmem:[#allocation65_spill] sm:$0xff] }
 0x1ea   :  { %v1846_v62 = vmul.f32 %v1782_v20, %v4554_v60  ;;  %v1848_v43 = vmul.f32 %v1784_v56, %v4567_v54  ;;  %v1841_v49 = vmul.f32 %v1777_v23, %v4521_v31  ;;  %v1271_v1 = vmul.f32 0.5, %v5055_v9  ;;  %v5063_v33 = vld [vmem:[#allocation29_spill] sm:$0xff]  ;;  %v5064_v20 = vld [vmem:[#allocation64_spill] sm:$0xff]  ;;  %v5065_v9 = vld [vmem:[#allocation15_spill] sm:$0xff] }
 0x1eb   :  { %v1156_v57 = vpop.f32.mrf.mxu1  ;;  %v3490_v35 = vpop.eup %3489  ;;  %v1719_v24 = vadd.f32 1.0, %v3486_v40  ;;  %3503 = vtanh.f32 %v1599_v51  ;;  %v1722_v27 = vadd.f32 1.0, %v3488_v29  ;;  %v1276_v16 = vmul.f32 0.5, %v5056_v21  ;;  %v5062_v51 = vld [vmem:[#allocation51_spill] sm:$0xff] }
 0x1ec   :  { %v1900_v41 = vpack.c.bf16 %v1848_v43, %v1846_v62  ;;  %v1724_v55 = vadd.f32 1.0, %v3490_v35  ;;  %v1897_v6 = vpack.c.bf16 %v1843_v34, %v1841_v49  ;;  %v1781_v25 = vmul.f32 %v1717_v26, %v1269_v11 }
 0x1ed   :  { %v4599_v59 = vpop.f32.mrf.mxu1  ;;  %v1274_v60 = vmul.f32 0.5, %v5057_v15  ;;  %3505 = vtanh.f32 %v1597_v63  ;;  %v1729_v31 = vadd.f32 1.0, %v5058_v38  ;;  %v1731_v8 = vadd.f32 1.0, %v5059_v14 }
 0x1ee   :  { %v1788_v46 = vmul.f32 %v1724_v55, %v1276_v16  ;;  %v1608_v45 = vmul.f32 0.7978846, %v5060_v19  ;;  %v1783_v39 = vmul.f32 %v1719_v24, %v1271_v1  ;;  %v1730_v30 = vadd.f32 1.0, %v5061_v13  ;;  %v5066_v24 = vld [vmem:[#allocation17_spill] sm:$0xff]  ;;  %v5068_v16 = vld [vmem:[#allocation18_spill] sm:$0xff] }
 0x1ef   :  { %v4607_v12 = vpop.f32.mrf.mxu1  ;;  %v3492_v42 = vpop.eup %3491  ;;  %v1732_v2 = vadd.f32 1.0, %v5062_v51  ;;  %v1606_v40 = vmul.f32 0.7978846, %v5063_v33  ;;  %v1786_v23 = vmul.f32 %v1722_v27, %v1274_v60  ;;  %v1275_v56 = vmul.f32 0.5, %v5064_v20  ;;  %v5067_v27 = vld [vmem:[#allocation16_spill] sm:$0xff]  ;;  %v5071_v13 = vld [vmem:[#allocation62_spill] sm:$0xff] }
 0x1f0   :  { %2146 = vmatmul.mubr.bf16.gmra.mxu0 %v1897_v6  ;;  %v3494_v22 = vpop.eup %3493  ;;  %v1852_v29 = vmul.f32 %v1788_v46, %v1156_v57  ;;  %v1278_v34 = vmul.f32 0.5, %v4468_v52  ;;  %v1845_v63 = vmul.f32 %v1781_v25, %v4546_v36  ;;  %v1847_v28 = vmul.f32 %v1783_v39, %v4562_v47  ;;  %v5070_v39 = vld [vmem:[#allocation19_spill] sm:$0xff] }
 0x1f1   :  { %v4617_v7 = vpop.f32.mrf.mxu1  ;;  %2153 = vmatprep.mubr.bf16.mxu0 %v1900_v41  ;;  %v3496_v26 = vpop.eup %3495  ;;  %v1280_v11 = vmul.f32 0.5, %v4509_v3  ;;  %v1728_v62 = vadd.f32 1.0, %v3494_v22  ;;  %v1850_v49 = vmul.f32 %v1786_v23, %v4585_v32  ;;  %v1793_v1 = vmul.f32 %v1729_v31, %v5065_v9 }
 0x1f2   :  { %v3498_v35 = vpop.eup %3497  ;;  %v1795_v41 = vmul.f32 %v1731_v8, %v5066_v24  ;;  %3507 = vtanh.f32 %v1608_v45  ;;  %v1723_v57 = vadd.f32 1.0, %v3492_v42  ;;  %v1794_v52 = vmul.f32 %v1730_v30, %v5067_v27  ;;  %v5069_v45 = vld [vmem:[#allocation44_spill] sm:$0xff]  ;;  %v5075_v24 = vld [vmem:[#allocation27_spill] sm:$0xff] }
 0x1f3   :  { %v1166_v54 = vpop.f32.mrf.mxu1  ;;  %v1796_v36 = vmul.f32 %v1732_v2, %v5068_v16  ;;  %3509 = vtanh.f32 %v1606_v40  ;;  %v1902_v55 = vpack.c.bf16 %v1852_v29, %v1850_v49  ;;  %v1726_v3 = vadd.f32 1.0, %v3496_v26  ;;  %v5072_v29 = vld [vmem:[#allocation38_spill] sm:$0xff] }
 0x1f4   :  { %v3500_v47 = vpop.eup %3499  ;;  %v1899_v32 = vpack.c.bf16 %v1847_v28, %v1845_v63  ;;  %v1721_v15 = vadd.f32 1.0, %v3498_v35  ;;  %v1792_v60 = vmul.f32 %v1728_v62, %v1280_v11  ;;  %v1612_v42 = vmul.f32 0.7978846, %v5069_v45  ;;  %v5074_v49 = vld [vmem:[#allocation26_spill] sm:$0xff] }
 0x1f5   :  { %v1170_v48 = vpop.f32.mrf.mxu1  ;;  %v1733_v19 = vadd.f32 1.0, %v3500_v47  ;;  %v1273_v30 = vmul.f32 0.5, %v5071_v13  ;;  %v1787_v51 = vmul.f32 %v1723_v57, %v1275_v56  ;;  %v1790_v22 = vmul.f32 %v1726_v3, %v1278_v34 }
 0x1f6   :  { %v4637_v6 = vmul.f32 %v1793_v1, %v1170_v48  ;;  %v3502_v31 = vpop.eup %3501  ;;  %v1363_v48 = vmul.f32 0.044715, %v5070_v39  ;;  %v1856_v23 = vmul.f32 %v1792_v60, %v1166_v54  ;;  %v1610_v26 = vmul.f32 0.7978846, %v5072_v29  ;;  %v5073_v54 = vld [vmem:[#allocation20_spill] sm:$0xff] }
 0x1f7   :  { %v1172_v43 = vpop.f32.mrf.mxu1  ;;  %v1735_v33 = vadd.f32 1.0, %v3502_v31  ;;  %v1490_v63 = vmul.f32 %v4604_v4, %v5051_v61  ;;  %v1428_v28 = vmul.f32 %v4610_v58, %v5053_v0  ;;  %v1785_v11 = vmul.f32 %v1721_v15, %v1273_v30 }
 0x1f8   :  { %v4641_v46 = vmul.f32 %v1794_v52, %v1172_v43  ;;  %2154 = vmatmul.mubr.bf16.gmra.mxu0 %v1899_v32  ;;  %v3504_v40 = vpop.eup %3503  ;;  %v1851_v56 = vmul.f32 %v1787_v51, %v4592_v10  ;;  %v1854_v34 = vmul.f32 %v1790_v22, %v4607_v12  ;;  %v1797_v35 = vmul.f32 %v1733_v19, %v5073_v54  ;;  %v5076_v12 = vld [vmem:[#allocation25_spill] sm:$0xff]  ;;  %v5077_v32 = vld [vmem:[#allocation32_spill] sm:$0xff] }
 0x1f9   :  { %v1174_v21 = vpop.f32.mrf.mxu1  ;;  %2161 = vmatprep.mubr.bf16.mxu0 %v1902_v55  ;;  %v1799_v9 = vmul.f32 %v1735_v33, %v5074_v49  ;;  %3511 = vtanh.f32 %v1612_v42  ;;  %v1427_v1 = vmul.f32 %v1363_v48, %v5070_v39  ;;  %v1366_v4 = vmul.f32 0.044715, %v5075_v24  ;;  %v5078_v42 = vld [vmem:[#allocation40_spill] sm:$0xff] }
 0x1fa   :  { %v4639_v25 = vmul.f32 %v1795_v41, %v1174_v21  ;;  %v3506_v43 = vpop.eup %3505  ;;  %v1849_v41 = vmul.f32 %v1785_v11, %v4577_v5  ;;  %v1727_v58 = vadd.f32 1.0, %v3504_v40  ;;  %v1904_v27 = vpack.c.bf16 %v1856_v23, %v1854_v34  ;;  %v5080_v22 = vld [vmem:[#allocation36_spill] sm:$0xff]  ;;  %v5081_v11 = vld [vmem:[#allocation30_spill] sm:$0xff] }
 0x1fb   :  { %v1176_v38 = vpop.f32.mrf.mxu1  ;;  %3513 = vtanh.f32 %v1610_v26  ;;  %v1365_v21 = vmul.f32 0.044715, %v5076_v12  ;;  %v1279_v47 = vmul.f32 0.5, %v4489_v44  ;;  %v1492_v3 = vmul.f32 %v1428_v28, %v5053_v0 }
 0x1fc   :  { %v1905_v14 = vpack.c.bf16 %v4639_v25, %v4637_v6  ;;  %v4645_v8 = vmul.f32 %v1796_v36, %v1176_v38  ;;  %v1901_v16 = vpack.c.bf16 %v1851_v56, %v1849_v41  ;;  %v1725_v36 = vadd.f32 1.0, %v3506_v43  ;;  %v5082_v43 = vld [vmem:[#allocation34_spill] sm:$0xff] }
 0x1fd   :  { %v1180_v2 = vpop.f32.mrf.mxu1  ;;  %v1368_v15 = vmul.f32 0.044715, %v5077_v32  ;;  %v1616_v60 = vmul.f32 0.7978846, %v4573_v50  ;;  %v4679_v31 = vadd.f32 %v4581_v37, %v5041_v18  ;;  %v1277_v19 = vmul.f32 0.5, %v4437_v53 }
 0x1fe   :  { %v1906_v20 = vpack.c.bf16 %v4645_v8, %v4641_v46  ;;  %v4666_v10 = vmul.f32 %v1797_v35, %v1180_v2  ;;  %v1791_v45 = vmul.f32 %v1727_v58, %v1279_v47  ;;  %v1611_v48 = vmul.f32 0.7978846, %v5078_v42  ;;  %v5079_v2 = vld [vmem:[#allocation54_spill] sm:$0xff]  ;;  %v5085_v58 = vld [vmem:[#allocation45_spill] sm:$0xff] }
 0x1ff   :  { %v4658_v62 = vpop.f32.mrf.mxu1  ;;  %v3508_v38 = vpop.eup %3507  ;;  %v1554_v30 = vadd.f32 %v1490_v63, %v5051_v61  ;;  %v1491_v51 = vmul.f32 %v1427_v1, %v5070_v39  ;;  %v1430_v50 = vmul.f32 %v1366_v4, %v5075_v24  ;;  %v1614_v33 = vmul.f32 0.7978846, %v5079_v2  ;;  %v5084_v4 = vld [vmem:[#allocation39_spill] sm:$0xff]  ;;  %v5087_v42 = vld [vmem:[#allocation57_spill] sm:$0xff] }
 0x200   :  { %2162 = vmatmul.mubr.bf16.gmra.mxu0 %v1901_v16  ;;  %v3510_v13 = vpop.eup %3509  ;;  %v1429_v37 = vmul.f32 %v1365_v21, %v5076_v12  ;;  %v1789_v40 = vmul.f32 %v1725_v36, %v1277_v19  ;;  %v1855_v53 = vmul.f32 %v1791_v45, %v4617_v7  ;;  %v1609_v23 = vmul.f32 0.7978846, %v5080_v22 }
 0x201   :  { %v1184_v57 = vpop.f32.mrf.mxu1  ;;  %2169 = vmatprep.mubr.bf16.mxu0 %v1904_v27  ;;  %v1556_v26 = vadd.f32 %v1492_v3, %v5053_v0  ;;  %v1432_v63 = vmul.f32 %v1368_v15, %v5077_v32  ;;  %v1736_v28 = vadd.f32 1.0, %v3508_v38  ;;  %3515 = vtanh.f32 %v1616_v60  ;;  %v5086_v38 = vld [vmem:[#allocation43_spill] sm:$0xff] }
 0x202   :  { %v4668_v52 = vmul.f32 %v1799_v9, %v1184_v57  ;;  %v1367_v56 = vmul.f32 0.044715, %v5081_v11  ;;  %v1369_v34 = vmul.f32 0.044715, %v5082_v43  ;;  %v1853_v54 = vmul.f32 %v1789_v40, %v4599_v59  ;;  %v5083_v9 = vld [vmem:[#allocation4_spill] sm:$0xff] }
 0x203   :  { %v1186_v55 = vpop.f32.mrf.mxu1  ;;  %3517 = vtanh.f32 %v1611_v48  ;;  %v1494_v7 = vmul.f32 %v1430_v50, %v5075_v24  ;;  %v1734_v49 = vadd.f32 1.0, %v3510_v13  ;;  %v1288_v1 = vmul.f32 0.5, %v5083_v9  ;;  %v5088_v50 = vld [vmem:[#allocation21_spill] sm:$0xff] }
 0x204   :  { %v1907_v5 = vpack.c.bf16 %v4668_v52, %v4666_v10  ;;  %3519 = vtanh.f32 %v1614_v33  ;;  %v1370_v41 = vmul.f32 0.044715, %v5084_v4  ;;  %v1372_v57 = vmul.f32 0.044715, %v5085_v58 }
 0x205   :  { %v4682_v44 = vpop.f32.mrf.mxu1  ;;  %v1903_v27 = vpack.c.bf16 %v1855_v53, %v1853_v54  ;;  %3521 = vtanh.f32 %v1609_v23  ;;  %v1555_v16 = vadd.f32 %v1491_v51, %v5070_v39  ;;  %v1496_v59 = vmul.f32 %v1432_v63, %v5077_v32 }
 0x206   :  { %v1800_v36 = vmul.f32 %v1736_v28, %v1288_v1  ;;  %v1620_v47 = vmul.f32 0.7978846, %v1556_v26  ;;  %v3512_v3 = vpop.eup %3511  ;;  %v1431_v15 = vmul.f32 %v1367_v56, %v5081_v11  ;;  %v1433_v60 = vmul.f32 %v1369_v34, %v5082_v43  ;;  %v5089_v26 = vld [vmem:[#allocation52_spill] sm:$0xff] }
 0x207   :  { %v4692_v29 = vpop.f32.mrf.mxu1  ;;  %v1371_v19 = vmul.f32 0.044715, %v5086_v38  ;;  %v1615_v48 = vmul.f32 0.7978846, %v5087_v42  ;;  %v1493_v13 = vmul.f32 %v1429_v37, %v5076_v12  ;;  %v1798_v51 = vmul.f32 %v1734_v49, %v5088_v50  ;;  %v5093_v42 = vld [vmem:[#allocation50_spill] sm:$0xff] }
 0x208   :  { %2170 = vmatmul.mubr.bf16.gmra.mxu0 %v1903_v27  ;;  %v1864_v2 = vmul.f32 %v1800_v36, %v1186_v55  ;;  %v1618_v33 = vmul.f32 0.7978846, %v1554_v30  ;;  %v3514_v40 = vpop.eup %3513  ;;  %v1558_v53 = vadd.f32 %v1494_v7, %v5075_v24  ;;  %v1434_v22 = vmul.f32 %v1370_v41, %v5084_v4  ;;  %v5090_v7 = vld [vmem:[#allocation8_spill] sm:$0xff] }
 0x209   :  { %v4699_v35 = vpop.f32.mrf.mxu1  ;;  %2177 = vmatprep.mubr.bf16.mxu0 %v1906_v20  ;;  %v1436_v23 = vmul.f32 %v1372_v57, %v5085_v58  ;;  %v1613_v63 = vmul.f32 0.7978846, %v5089_v26  ;;  %v1560_v37 = vadd.f32 %v1496_v59, %v5077_v32  ;;  %v1862_v56 = vmul.f32 %v1798_v51, %v4658_v62  ;;  %v5091_v57 = vld [vmem:[#allocation59_spill] sm:$0xff]  ;;  %v5092_v59 = vld [vmem:[#allocation6_spill] sm:$0xff] }
 0x20a   :  { %v1740_v34 = vadd.f32 1.0, %v3512_v3  ;;  %3523 = vtanh.f32 %v1620_v47  ;;  %v1495_v46 = vmul.f32 %v1431_v15, %v5081_v11  ;;  %v1497_v8 = vmul.f32 %v1433_v60, %v5082_v43 }
 0x20b   :  { %v1196_v21 = vpop.f32.mrf.mxu1  ;;  %v1435_v20 = vmul.f32 %v1371_v19, %v5086_v38  ;;  %3525 = vtanh.f32 %v1615_v48  ;;  %v1908_v30 = vpack.c.bf16 %v1864_v2, %v1862_v56  ;;  %v1738_v54 = vadd.f32 1.0, %v3514_v40 }
 0x20c   :  { %v1292_v49 = vmul.f32 0.5, %v5090_v7  ;;  %3527 = vtanh.f32 %v1618_v33  ;;  %v4733_v9 = vadd.f32 %v1493_v13, %v5076_v12  ;;  %v1498_v62 = vmul.f32 %v1434_v22, %v5084_v4  ;;  %v5095_v7 = vld [vmem:[#allocation55_spill] sm:$0xff] }
 0x20d   :  { %v4710_v45 = vpop.f32.mrf.mxu1  ;;  %v1500_v1 = vmul.f32 %v1436_v23, %v5085_v58  ;;  %3529 = vtanh.f32 %v1613_v63  ;;  %v1376_v27 = vmul.f32 0.044715, %v5091_v57  ;;  %v1290_v36 = vmul.f32 0.5, %v5092_v59 }
 0x20e   :  { %v1804_v47 = vmul.f32 %v1740_v34, %v1292_v49  ;;  %v1624_v3 = vmul.f32 0.7978846, %v1560_v37  ;;  %v3516_v15 = vpop.eup %3515  ;;  %v1559_v60 = vadd.f32 %v1495_v46, %v5081_v11  ;;  %v1499_v19 = vmul.f32 %v1435_v20, %v5086_v38  ;;  %v5094_v37 = vld [vmem:[#allocation47_spill] sm:$0xff] }
 0x20f   :  { %v4722_v28 = vpop.f32.mrf.mxu1  ;;  %v1374_v48 = vmul.f32 0.044715, %v5093_v42  ;;  %v1619_v50 = vmul.f32 0.7978846, %v1555_v16  ;;  %v4748_v2 = vadd.f32 %v1497_v8, %v5082_v43  ;;  %v1802_v33 = vmul.f32 %v1738_v54, %v1290_v36  ;;  %v5097_v36 = vld [vmem:[#allocation10_spill] sm:$0xff] }
 0x210   :  { %2178 = vmatmul.mubr.bf16.gmra.mxu0 %v1905_v14  ;;  %v3518_v51 = vpop.eup %3517  ;;  %v1868_v40 = vmul.f32 %v1804_v47, %v1196_v21  ;;  %v1622_v22 = vmul.f32 0.7978846, %v1558_v53  ;;  %v1562_v26 = vadd.f32 %v1498_v62, %v5084_v4  ;;  %v1564_v63 = vadd.f32 %v1500_v1, %v5085_v58 }
 0x211   :  { %v4729_v55 = vpop.f32.mrf.mxu1  ;;  %2185 = vmatprep.mubr.bf16.mxu0 %v1908_v30  ;;  %v3520_v23 = vpop.eup %3519  ;;  %v1373_v56 = vmul.f32 0.044715, %v5094_v37  ;;  %v1617_v6 = vmul.f32 0.7978846, %v4679_v31  ;;  %v1440_v16 = vmul.f32 %v1376_v27, %v5091_v57  ;;  %v1866_v34 = vmul.f32 %v1802_v33, %v4692_v29  ;;  %v5096_v29 = vld [vmem:[#allocation7_spill] sm:$0xff] }
 0x212   :  { %v3522_v14 = vpop.eup %3521  ;;  %v1744_v46 = vadd.f32 1.0, %v3516_v15  ;;  %3531 = vtanh.f32 %v1624_v3  ;;  %v4759_v21 = vadd.f32 %v1499_v19, %v5086_v38  ;;  %v1438_v53 = vmul.f32 %v1374_v48, %v5093_v42 }
 0x213   :  { %v1206_v41 = vpop.f32.mrf.mxu1  ;;  %v1739_v8 = vadd.f32 1.0, %v3518_v51  ;;  %3533 = vtanh.f32 %v1619_v50  ;;  %v1910_v30 = vpack.c.bf16 %v1868_v40, %v1866_v34  ;;  %v1742_v31 = vadd.f32 1.0, %v3520_v23  ;;  %v5098_v50 = vld [vmem:[#allocation5_spill] sm:$0xff] }
 0x214   :  { %v1296_v54 = vmul.f32 0.5, %v5038_v17  ;;  %3535 = vtanh.f32 %v1622_v22  ;;  %v1375_v49 = vmul.f32 0.044715, %v5095_v7  ;;  %v1737_v62 = vadd.f32 1.0, %v3522_v14 }
 0x215   :  { %v4745_v13 = vpop.f32.mrf.mxu1  ;;  %v1291_v1 = vmul.f32 0.5, %v5096_v29  ;;  %3537 = vtanh.f32 %v1617_v6  ;;  %v1504_v59 = vmul.f32 %v1440_v16, %v5091_v57  ;;  %v1294_v47 = vmul.f32 0.5, %v5097_v36  ;;  %v5099_v29 = vld [vmem:[#allocation11_spill] sm:$0xff] }
 0x216   :  { %v1808_v3 = vmul.f32 %v1744_v46, %v1296_v54  ;;  %v1628_v15 = vmul.f32 0.7978846, %v1564_v63  ;;  %v1502_v48 = vmul.f32 %v1438_v53, %v5093_v42  ;;  %v1289_v51 = vmul.f32 0.5, %v5098_v50 }
 0x217   :  { %v4754_v25 = vpop.f32.mrf.mxu1  ;;  %v3524_v19 = vpop.eup %3523  ;;  %v1803_v17 = vmul.f32 %v1739_v8, %v1291_v1  ;;  %v1623_v40 = vmul.f32 0.7978846, %v1559_v60  ;;  %v1437_v23 = vmul.f32 %v1373_v56, %v5094_v37  ;;  %v1806_v6 = vmul.f32 %v1742_v31, %v1294_v47 }
 0x218   :  { %2186 = vmatmul.mubr.bf16.gmra.mxu0 %v1907_v5  ;;  %v3526_v22 = vpop.eup %3525  ;;  %v1872_v14 = vmul.f32 %v1808_v3, %v1206_v41  ;;  %v1626_v63 = vmul.f32 0.7978846, %v1562_v26  ;;  %v1439_v34 = vmul.f32 %v1375_v49, %v5095_v7  ;;  %v1801_v46 = vmul.f32 %v1737_v62, %v1289_v51 }
 0x219   :  { %v4762_v20 = vpop.f32.mrf.mxu1  ;;  %2193 = vmatprep.mubr.bf16.mxu0 %v1910_v30  ;;  %v3528_v16 = vpop.eup %3527  ;;  %v1867_v53 = vmul.f32 %v1803_v17, %v4699_v35  ;;  %v1621_v8 = vmul.f32 0.7978846, %v4733_v9  ;;  %v1568_v5 = vadd.f32 %v1504_v59, %v5091_v57  ;;  %v1870_v60 = vmul.f32 %v1806_v6, %v4722_v28 }
 0x21a   :  { %v3530_v52 = vpop.eup %3529  ;;  %v1748_v56 = vadd.f32 1.0, %v3524_v19  ;;  %3539 = vtanh.f32 %v1628_v15  ;;  %v1566_v41 = vadd.f32 %v1502_v48, %v5093_v42  ;;  %v1865_v26 = vmul.f32 %v1801_v46, %v4682_v44  ;;  %v5100_v19 = vld [vmem:[#allocation9_spill] sm:$0xff] }
 0x21b   :  { %v1216_v27 = vpop.f32.mrf.mxu1  ;;  %v1743_v30 = vadd.f32 1.0, %v3526_v22  ;;  %3541 = vtanh.f32 %v1623_v40  ;;  %v1912_v35 = vpack.c.bf16 %v1872_v14, %v1870_v60  ;;  %v1746_v54 = vadd.f32 1.0, %v3528_v16 }
 0x21c   :  { %v1300_v9 = vmul.f32 0.5, %v5053_v0  ;;  %3543 = vtanh.f32 %v1626_v63  ;;  %v1909_v49 = vpack.c.bf16 %v1867_v53, %v1865_v26  ;;  %v1741_v62 = vadd.f32 1.0, %v3530_v52 }
 0x21d   :  { %v4774_v33 = vpop.f32.mrf.mxu1  ;;  %v1295_v1 = vmul.f32 0.5, %v5099_v29  ;;  %3545 = vtanh.f32 %v1621_v8  ;;  %v1501_v59 = vmul.f32 %v1437_v23, %v5094_v37  ;;  %v1298_v36 = vmul.f32 0.5, %v5051_v61 }
 0x21e   :  { %v1812_v44 = vmul.f32 %v1748_v56, %v1300_v9  ;;  %v1632_v47 = vmul.f32 0.7978846, %v1568_v5  ;;  %v1503_v15 = vmul.f32 %v1439_v34, %v5095_v7  ;;  %v1293_v48 = vmul.f32 0.5, %v5100_v19 }
 0x21f   :  { %v4780_v10 = vpop.f32.mrf.mxu1  ;;  %v3532_v3 = vpop.eup %3531  ;;  %v1807_v50 = vmul.f32 %v1743_v30, %v1295_v1  ;;  %v1627_v51 = vmul.f32 0.7978846, %v4759_v21  ;;  %v1810_v40 = vmul.f32 %v1746_v54, %v1298_v36  ;;  %v1630_v23 = vmul.f32 0.7978846, %v1566_v41 }
 0x220   :  { %2194 = vmatmul.mubr.bf16.gmra.mxu0 %v1909_v49  ;;  %v3534_v17 = vpop.eup %3533  ;;  %v1876_v22 = vmul.f32 %v1812_v44, %v1216_v27  ;;  %v1805_v61 = vmul.f32 %v1741_v62, %v1293_v48  ;;  %v1625_v63 = vmul.f32 0.7978846, %v4748_v2  ;;  %v1565_v46 = vadd.f32 %v1501_v59, %v5094_v37 }
 0x221   :  { %v4786_v31 = vpop.f32.mrf.mxu1  ;;  %2201 = vmatprep.mubr.bf16.mxu0 %v1912_v35  ;;  %v3536_v6 = vpop.eup %3535  ;;  %v1871_v14 = vmul.f32 %v1807_v50, %v4729_v55  ;;  %v1874_v53 = vmul.f32 %v1810_v40, %v4754_v25  ;;  %v1752_v8 = vadd.f32 1.0, %v3532_v3  ;;  %3547 = vtanh.f32 %v1632_v47 }
 0x222   :  { %v3538_v34 = vpop.eup %3537  ;;  %v1567_v21 = vadd.f32 %v1503_v15, %v5095_v7  ;;  %v1869_v27 = vmul.f32 %v1805_v61, %v4710_v45  ;;  %v1747_v52 = vadd.f32 1.0, %v3534_v17  ;;  %3549 = vtanh.f32 %v1627_v51 }
 0x223   :  { %v1226_v28 = vpop.f32.mrf.mxu1  ;;  %v1914_v55 = vpack.c.bf16 %v1876_v22, %v1874_v53  ;;  %v1750_v60 = vadd.f32 1.0, %v3536_v6  ;;  %v1304_v2 = vmul.f32 0.5, %v5077_v32  ;;  %3551 = vtanh.f32 %v1630_v23 }
 0x224   :  { %v1911_v56 = vpack.c.bf16 %v1871_v14, %v1869_v27  ;;  %v1745_v41 = vadd.f32 1.0, %v3538_v34  ;;  %v1299_v26 = vmul.f32 0.5, %v5070_v39  ;;  %3553 = vtanh.f32 %v1625_v63 }
 0x225   :  { %v4794_v0 = vpop.f32.mrf.mxu1  ;;  %v1302_v30 = vmul.f32 0.5, %v5075_v24  ;;  %v1816_v35 = vmul.f32 %v1752_v8, %v1304_v2  ;;  %v1297_v45 = vmul.f32 0.5, %v5041_v18  ;;  %v1631_v49 = vmul.f32 0.7978846, %v1567_v21 }
 0x226   :  { %v1811_v9 = vmul.f32 %v1747_v52, %v1299_v26  ;;  %v1629_v44 = vmul.f32 0.7978846, %v1565_v46  ;;  %v1308_v50 = vmul.f32 0.5, %v5085_v58  ;;  %v1303_v17 = vmul.f32 0.5, %v5081_v11 }
 0x227   :  { %v4799_v16 = vpop.f32.mrf.mxu1  ;;  %v3540_v54 = vpop.eup %3539  ;;  %v1814_v29 = vmul.f32 %v1750_v60, %v1302_v30  ;;  %v1880_v32 = vmul.f32 %v1816_v35, %v1226_v28  ;;  %v1809_v59 = vmul.f32 %v1745_v41, %v1297_v45  ;;  %3555 = vtanh.f32 %v1631_v49 }
 0x228   :  { %2202 = vmatmul.mubr.bf16.gmra.mxu0 %v1911_v56  ;;  %v3542_v62 = vpop.eup %3541  ;;  %v1875_v36 = vmul.f32 %v1811_v9, %v4762_v20  ;;  %v1756_v3 = vadd.f32 1.0, %v3540_v54  ;;  %3557 = vtanh.f32 %v1629_v44  ;;  %v1306_v40 = vmul.f32 0.5, %v5084_v4 }
 0x229   :  { %v4805_v5 = vpop.f32.mrf.mxu1  ;;  %2209 = vmatprep.mubr.bf16.mxu0 %v1914_v55  ;;  %v3544_v1 = vpop.eup %3543  ;;  %v1878_v24 = vmul.f32 %v1814_v29, %v4780_v10  ;;  %v1873_v18 = vmul.f32 %v1809_v59, %v4745_v13  ;;  %v1751_v15 = vadd.f32 1.0, %v3542_v62  ;;  %v1301_v10 = vmul.f32 0.5, %v5076_v12 }
 0x22a   :  { %v3546_v47 = vpop.eup %3545  ;;  %v1754_v48 = vadd.f32 1.0, %v3544_v1  ;;  %v1820_v22 = vmul.f32 %v1756_v3, %v1308_v50  ;;  %v1312_v52 = vmul.f32 0.5, %v5091_v57  ;;  %v1307_v2 = vmul.f32 0.5, %v5086_v38 }
 0x22b   :  { %v1236_v25 = vpop.f32.mrf.mxu1  ;;  %v1916_v19 = vpack.c.bf16 %v1880_v32, %v1878_v24  ;;  %v1913_v28 = vpack.c.bf16 %v1875_v36, %v1873_v18  ;;  %v1749_v51 = vadd.f32 1.0, %v3546_v47  ;;  %v1815_v6 = vmul.f32 %v1751_v15, %v1303_v17 }
 0x22c   :  { %v1818_v61 = vmul.f32 %v1754_v48, %v1306_v40  ;;  %v1884_v14 = vmul.f32 %v1820_v22, %v1236_v25  ;;  %v1310_v41 = vmul.f32 0.5, %v5093_v42  ;;  %v1305_v26 = vmul.f32 0.5, %v5082_v43 }
 0x22d   :  { %v4812_v39 = vpop.f32.mrf.mxu1  ;;  %v1813_v58 = vmul.f32 %v1749_v51, %v1301_v10  ;;  %v1879_v34 = vmul.f32 %v1815_v6, %v4786_v31  ;;  %v1311_v29 = vmul.f32 0.5, %v5095_v7  ;;  %v1309_v43 = vmul.f32 0.5, %v5094_v37 }
 0x22e   :  { %v3548_v23 = vpop.eup %3547  ;;  %v1882_v53 = vmul.f32 %v1818_v61, %v4799_v16 }
 0x22f   :  { %v1242_v20 = vpop.f32.mrf.mxu1  ;;  %v3550_v13 = vpop.eup %3549  ;;  %v1760_v8 = vadd.f32 1.0, %v3548_v23  ;;  %v1877_v4 = vmul.f32 %v1813_v58, %v4774_v33 }
 0x230   :  { %2210 = vmatmul.mubr.bf16.gmra.mxu0 %v1913_v28  ;;  %v3552_v63 = vpop.eup %3551  ;;  %v1755_v21 = vadd.f32 1.0, %v3550_v13  ;;  %v1918_v27 = vpack.c.bf16 %v1884_v14, %v1882_v53 }
 0x231   :  { %2217 = vmatprep.mubr.bf16.mxu0 %v1916_v19  ;;  %v1244_v46 = vpop.f32.mrf.mxu1  ;;  %v3554_v11 = vpop.eup %3553  ;;  %v1758_v12 = vadd.f32 1.0, %v3552_v63  ;;  %v1915_v55 = vpack.c.bf16 %v1879_v34, %v1877_v4  ;;  %v1824_v31 = vmul.f32 %v1760_v8, %v1312_v52 }
 0x232   :  { %v1753_v60 = vadd.f32 1.0, %v3554_v11  ;;  %v1819_v25 = vmul.f32 %v1755_v21, %v1307_v2 }
 0x233   :  { %v1246_v56 = vpop.f32.mrf.mxu1  ;;  %v1822_v30 = vmul.f32 %v1758_v12, %v1310_v41 }
 0x234   :  { %v3556_v16 = vpop.eup %3555  ;;  %v1888_v33 = vmul.f32 %v1824_v31, %v1246_v56  ;;  %v1817_v35 = vmul.f32 %v1753_v60, %v1305_v26  ;;  %v1883_v54 = vmul.f32 %v1819_v25, %v4805_v5 }
 0x235   :  { %v3558_v57 = vpop.eup %3557  ;;  %v1886_v45 = vmul.f32 %v1822_v30, %v1242_v20  ;;  %v1759_v38 = vadd.f32 1.0, %v3556_v16 }
 0x236   :  { %v1881_v9 = vmul.f32 %v1817_v35, %v4794_v0  ;;  %v1757_v42 = vadd.f32 1.0, %v3558_v57  ;;  %v2955_v0 = vld [vmem:[%s4928_s0] sm:$0xff]  }
 0x237   :  { %v1920_v49 = vpack.c.bf16 %v1888_v33, %v1886_v45  ;;  %v1823_v32 = vmul.f32 %v1759_v38, %v1311_v29  ;;  %v2956_v7 = vunpack.c.l.bf16 %v2955_v0  ;;  %v2957_v18 = vunpack.c.h.bf16 %v2955_v0 }
 0x238   :  { %2218 = vmatmul.mubr.bf16.gmra.mxu0 %v1915_v55  ;;  %v1917_v62 = vpack.c.bf16 %v1883_v54, %v1881_v9  ;;  %v1821_v1 = vmul.f32 %v1757_v42, %v1309_v43 }
 0x239   :  { %2225 = vmatprep.mubr.bf16.mxu0 %v1918_v27  ;;  %v1887_v59 = vmul.f32 %v1823_v32, %v1244_v46 }
 0x23a   :  { %v1885_v36 = vmul.f32 %v1821_v1, %v4812_v39  ;;  %v3128_v39 = vld [vmem:[%s4928_s0 + $0x8] sm:$0xff]  }
 0x23b   :  { %v2960_v40 = vunpack.c.l.bf16 %v3128_v39  ;;  %v2961_v22 = vunpack.c.h.bf16 %v3128_v39 }
 0x23c   :  { %v1919_v5 = vpack.c.bf16 %v1887_v59, %v1885_v36 }
 0x240   :  { %2226 = vmatmul.mubr.bf16.gmra.mxu0 %v1917_v62 }
 0x241   :  { %2233 = vmatprep.mubr.bf16.mxu0 %v1920_v49 }
 0x248   :  { %2234 = vmatmul.mubr.bf16.gmra.mxu0 %v1919_v5 }
 0x28f   :  { %v3174_v44 = vpop.f32.mrf.mxu0 }
 0x291   :  { %v3175_v47 = vpop.f32.mrf.mxu0 }
 0x292   :  { %v3176_v3 = vadd.f32 %v3175_v47, %v3174_v44 }
 0x293   :  { %v3177_v24 = vpop.f32.mrf.mxu0 }
 0x294   :  { %v2405_v48 = vadd.f32 %v3176_v3, %v2956_v7 }
 0x295   :  { %v3178_v37 = vpop.f32.mrf.mxu0 }
 0x296   :  { %v3179_v15 = vadd.f32 %v3178_v37, %v3177_v24 }
 0x298   :  { %v3180_v19 = vpop.f32.mrf.mxu0  ;;  %v2406_v50 = vadd.f32 %v3179_v15, %v2957_v18 }
 0x29a   :  { %v3181_v28 = vpop.f32.mrf.mxu0  ;;  %v3021_v51 = vpack.c.bf16 %v2406_v50, %v2405_v48 }
 0x29b   :  { %v3182_v20 = vadd.f32 %v3181_v28, %v3180_v19 }
 0x29c   :  { %v3183_v17 = vpop.f32.mrf.mxu0  ;;  %3022 = vst [vmem:[%s4932_s4] sm:$0xff] %v3021_v51  }
 0x29d   :  { %v2407_v13 = vadd.f32 %v3182_v20, %v2960_v40 }
 0x29e   :  { %v3184_v23 = vpop.f32.mrf.mxu0 }
 0x29f   :  { %v3185_v10 = vadd.f32 %v3184_v23, %v3183_v17 }
 0x2a0   :  { %v3186_v6 = vpop.f32.mrf.mxu0 }
 0x2a1   :  { %v2408_v61 = vadd.f32 %v3185_v10, %v2961_v22 }
 0x2a2   :  { %v3187_v14 = vpop.f32.mrf.mxu0 }
 0x2a3   :  { %v3129_v63 = vld [vmem:[%s4928_s0 + $0x10] sm:$0xff]   ;;  %v3026_v58 = vpack.c.bf16 %v2408_v61, %v2407_v13  ;;  %v3188_v46 = vadd.f32 %v3187_v14, %v3186_v6 }
 0x2a4   :  { %v3189_v34 = vpop.f32.mrf.mxu0  ;;  %v2964_v11 = vunpack.c.l.bf16 %v3129_v63  ;;  %v2965_v53 = vunpack.c.h.bf16 %v3129_v63 }
 0x2a5   :  { %3143 = vst [vmem:[%s4932_s4 + $0x8] sm:$0xff] %v3026_v58  }
 0x2a6   :  { %v3190_v8 = vpop.f32.mrf.mxu0  ;;  %v2409_v27 = vadd.f32 %v3188_v46, %v2964_v11 }
 0x2a7   :  { %v3191_v4 = vadd.f32 %v3190_v8, %v3189_v34 }
 0x2a8   :  { %v3192_v21 = vpop.f32.mrf.mxu0 }
 0x2a9   :  { %v2410_v12 = vadd.f32 %v3191_v4, %v2965_v53 }
 0x2aa   :  { %v3193_v52 = vpop.f32.mrf.mxu0 }
 0x2ab   :  { %v3031_v60 = vpack.c.bf16 %v2410_v12, %v2409_v27  ;;  %v3194_v56 = vadd.f32 %v3193_v52, %v3192_v21 }
 0x2ac   :  { %v3130_v55 = vld [vmem:[%s4928_s0 + $0x18] sm:$0xff]   ;;  %v3195_v2 = vpop.f32.mrf.mxu0 }
 0x2ad   :  { %3144 = vst [vmem:[%s4932_s4 + $0x10] sm:$0xff] %v3031_v60   ;;  %v2968_v41 = vunpack.c.l.bf16 %v3130_v55  ;;  %v2969_v31 = vunpack.c.h.bf16 %v3130_v55 }
 0x2ae   :  { %v3196_v26 = vpop.f32.mrf.mxu0 }
 0x2af   :  { %v3197_v25 = vadd.f32 %v3196_v26, %v3195_v2  ;;  %v2411_v30 = vadd.f32 %v3194_v56, %v2968_v41 }
 0x2b0   :  { %v3198_v16 = vpop.f32.mrf.mxu0 }
 0x2b1   :  { %v2412_v33 = vadd.f32 %v3197_v25, %v2969_v31 }
 0x2b2   :  { %v3199_v35 = vpop.f32.mrf.mxu0 }
 0x2b3   :  { %v3036_v57 = vpack.c.bf16 %v2412_v33, %v2411_v30  ;;  %v3200_v9 = vadd.f32 %v3199_v35, %v3198_v16 }
 0x2b4   :  { %v3131_v54 = vld [vmem:[%s4928_s0 + $0x20] sm:$0xff]   ;;  %v3201_v45 = vpop.f32.mrf.mxu0 }
 0x2b5   :  { %3145 = vst [vmem:[%s4932_s4 + $0x18] sm:$0xff] %v3036_v57   ;;  %v2972_v38 = vunpack.c.l.bf16 %v3131_v54  ;;  %v2973_v49 = vunpack.c.h.bf16 %v3131_v54 }
 0x2b6   :  { %v3202_v62 = vpop.f32.mrf.mxu0 }
 0x2b7   :  { %v3203_v42 = vadd.f32 %v3202_v62, %v3201_v45  ;;  %v2413_v43 = vadd.f32 %v3200_v9, %v2972_v38 }
 0x2b8   :  { %v3204_v29 = vpop.f32.mrf.mxu0 }
 0x2b9   :  { %v2414_v32 = vadd.f32 %v3203_v42, %v2973_v49 }
 0x2ba   :  { %v3205_v1 = vpop.f32.mrf.mxu0 }
 0x2bb   :  { %v3041_v36 = vpack.c.bf16 %v2414_v32, %v2413_v43  ;;  %v3206_v44 = vadd.f32 %v3205_v1, %v3204_v29 }
 0x2bc   :  { %v3132_v59 = vld [vmem:[%s4928_s0 + $0x28] sm:$0xff]   ;;  %v3207_v5 = vpop.f32.mrf.mxu0 }
 0x2bd   :  { %3146 = vst [vmem:[%s4932_s4 + $0x20] sm:$0xff] %v3041_v36   ;;  %v2976_v47 = vunpack.c.l.bf16 %v3132_v59  ;;  %v2977_v0 = vunpack.c.h.bf16 %v3132_v59 }
 0x2be   :  { %v3208_v24 = vpop.f32.mrf.mxu0 }
 0x2bf   :  { %v3209_v3 = vadd.f32 %v3208_v24, %v3207_v5  ;;  %v2415_v18 = vadd.f32 %v3206_v44, %v2976_v47 }
 0x2c0   :  { %v3210_v7 = vpop.f32.mrf.mxu0 }
 0x2c1   :  { %v2416_v37 = vadd.f32 %v3209_v3, %v2977_v0 }
 0x2c2   :  { %v3211_v15 = vpop.f32.mrf.mxu0 }
 0x2c3   :  { %v3046_v48 = vpack.c.bf16 %v2416_v37, %v2415_v18  ;;  %v3212_v28 = vadd.f32 %v3211_v15, %v3210_v7 }
 0x2c4   :  { %v3133_v19 = vld [vmem:[%s4928_s0 + $0x30] sm:$0xff]   ;;  %v3213_v50 = vpop.f32.mrf.mxu0 }
 0x2c5   :  { %3147 = vst [vmem:[%s4932_s4 + $0x28] sm:$0xff] %v3046_v48   ;;  %v2980_v39 = vunpack.c.l.bf16 %v3133_v19  ;;  %v2981_v51 = vunpack.c.h.bf16 %v3133_v19 }
 0x2c6   :  { %v3214_v17 = vpop.f32.mrf.mxu0 }
 0x2c7   :  { %v3215_v20 = vadd.f32 %v3214_v17, %v3213_v50  ;;  %v2417_v22 = vadd.f32 %v3212_v28, %v2980_v39 }
 0x2c8   :  { %v3216_v40 = vpop.f32.mrf.mxu0 }
 0x2c9   :  { %v2418_v23 = vadd.f32 %v3215_v20, %v2981_v51 }
 0x2ca   :  { %v3217_v10 = vpop.f32.mrf.mxu0 }
 0x2cb   :  { %v3051_v13 = vpack.c.bf16 %v2418_v23, %v2417_v22  ;;  %v3218_v14 = vadd.f32 %v3217_v10, %v3216_v40 }
 0x2cc   :  { %v3134_v6 = vld [vmem:[%s4928_s0 + $0x38] sm:$0xff]   ;;  %v3219_v61 = vpop.f32.mrf.mxu0 }
 0x2cd   :  { %3148 = vst [vmem:[%s4932_s4 + $0x30] sm:$0xff] %v3051_v13   ;;  %v2984_v63 = vunpack.c.l.bf16 %v3134_v6  ;;  %v2985_v58 = vunpack.c.h.bf16 %v3134_v6 }
 0x2ce   :  { %v3220_v34 = vpop.f32.mrf.mxu0 }
 0x2cf   :  { %v3221_v46 = vadd.f32 %v3220_v34, %v3219_v61  ;;  %v2419_v53 = vadd.f32 %v3218_v14, %v2984_v63 }
 0x2d0   :  { %v3222_v11 = vpop.f32.mrf.mxu0 }
 0x2d1   :  { %v2420_v8 = vadd.f32 %v3221_v46, %v2985_v58 }
 0x2d2   :  { %v3223_v4 = vpop.f32.mrf.mxu0 }
 0x2d3   :  { %v3056_v27 = vpack.c.bf16 %v2420_v8, %v2419_v53  ;;  %v3224_v52 = vadd.f32 %v3223_v4, %v3222_v11 }
 0x2d4   :  { %v3135_v21 = vld [vmem:[%s4928_s0 + $0x40] sm:$0xff]   ;;  %v3225_v12 = vpop.f32.mrf.mxu0 }
 0x2d5   :  { %3149 = vst [vmem:[%s4932_s4 + $0x38] sm:$0xff] %v3056_v27   ;;  %v2988_v55 = vunpack.c.l.bf16 %v3135_v21  ;;  %v2989_v60 = vunpack.c.h.bf16 %v3135_v21 }
 0x2d6   :  { %v3226_v2 = vpop.f32.mrf.mxu0 }
 0x2d7   :  { %v3227_v56 = vadd.f32 %v3226_v2, %v3225_v12  ;;  %v2421_v31 = vadd.f32 %v3224_v52, %v2988_v55 }
 0x2d8   :  { %v3228_v41 = vpop.f32.mrf.mxu0 }
 0x2d9   :  { %v2422_v26 = vadd.f32 %v3227_v56, %v2989_v60 }
 0x2da   :  { %v3229_v25 = vpop.f32.mrf.mxu0 }
 0x2db   :  { %v3061_v30 = vpack.c.bf16 %v2422_v26, %v2421_v31  ;;  %v3230_v35 = vadd.f32 %v3229_v25, %v3228_v41 }
 0x2dc   :  { %v3136_v16 = vld [vmem:[%s4928_s0 + $0x48] sm:$0xff]   ;;  %v3231_v33 = vpop.f32.mrf.mxu0 }
 0x2dd   :  { %3150 = vst [vmem:[%s4932_s4 + $0x40] sm:$0xff] %v3061_v30   ;;  %v2992_v54 = vunpack.c.l.bf16 %v3136_v16  ;;  %v2993_v57 = vunpack.c.h.bf16 %v3136_v16 }
 0x2de   :  { %v3232_v45 = vpop.f32.mrf.mxu0 }
 0x2df   :  { %v3233_v9 = vadd.f32 %v3232_v45, %v3231_v33  ;;  %v2423_v49 = vadd.f32 %v3230_v35, %v2992_v54 }
 0x2e0   :  { %v3234_v38 = vpop.f32.mrf.mxu0 }
 0x2e1   :  { %v2424_v62 = vadd.f32 %v3233_v9, %v2993_v57 }
 0x2e2   :  { %v3235_v42 = vpop.f32.mrf.mxu0 }
 0x2e3   :  { %v3066_v43 = vpack.c.bf16 %v2424_v62, %v2423_v49  ;;  %v3236_v1 = vadd.f32 %v3235_v42, %v3234_v38 }
 0x2e4   :  { %v3137_v29 = vld [vmem:[%s4928_s0 + $0x50] sm:$0xff]   ;;  %v3237_v32 = vpop.f32.mrf.mxu0 }
 0x2e5   :  { %3151 = vst [vmem:[%s4932_s4 + $0x48] sm:$0xff] %v3066_v43   ;;  %v2996_v59 = vunpack.c.l.bf16 %v3137_v29  ;;  %v2997_v36 = vunpack.c.h.bf16 %v3137_v29 }
 0x2e6   :  { %v3238_v5 = vpop.f32.mrf.mxu0 }
 0x2e7   :  { %v3239_v44 = vadd.f32 %v3238_v5, %v3237_v32  ;;  %v2425_v0 = vadd.f32 %v3236_v1, %v2996_v59 }
 0x2e8   :  { %v3240_v47 = vpop.f32.mrf.mxu0 }
 0x2e9   :  { %v2426_v24 = vadd.f32 %v3239_v44, %v2997_v36 }
 0x2ea   :  { %v3241_v3 = vpop.f32.mrf.mxu0 }
 0x2eb   :  { %v3071_v18 = vpack.c.bf16 %v2426_v24, %v2425_v0  ;;  %v3242_v15 = vadd.f32 %v3241_v3, %v3240_v47 }
 0x2ec   :  { %v3138_v7 = vld [vmem:[%s4928_s0 + $0x58] sm:$0xff]   ;;  %v3243_v37 = vpop.f32.mrf.mxu0 }
 0x2ed   :  { %3152 = vst [vmem:[%s4932_s4 + $0x50] sm:$0xff] %v3071_v18   ;;  %v3000_v19 = vunpack.c.l.bf16 %v3138_v7  ;;  %v3001_v48 = vunpack.c.h.bf16 %v3138_v7 }
 0x2ee   :  { %v3244_v50 = vpop.f32.mrf.mxu0 }
 0x2ef   :  { %v3245_v28 = vadd.f32 %v3244_v50, %v3243_v37  ;;  %v2427_v51 = vadd.f32 %v3242_v15, %v3000_v19 }
 0x2f0   :  { %v3246_v39 = vpop.f32.mrf.mxu0 }
 0x2f1   :  { %v2428_v17 = vadd.f32 %v3245_v28, %v3001_v48 }
 0x2f2   :  { %v3247_v20 = vpop.f32.mrf.mxu0 }
 0x2f3   :  { %v3076_v22 = vpack.c.bf16 %v2428_v17, %v2427_v51  ;;  %v3248_v10 = vadd.f32 %v3247_v20, %v3246_v39 }
 0x2f4   :  { %v3139_v40 = vld [vmem:[%s4928_s0 + $0x60] sm:$0xff]   ;;  %v3249_v23 = vpop.f32.mrf.mxu0 }
 0x2f5   :  { %3153 = vst [vmem:[%s4932_s4 + $0x58] sm:$0xff] %v3076_v22   ;;  %v3004_v6 = vunpack.c.l.bf16 %v3139_v40  ;;  %v3005_v13 = vunpack.c.h.bf16 %v3139_v40 }
 0x2f6   :  { %v3250_v61 = vpop.f32.mrf.mxu0 }
 0x2f7   :  { %v3251_v14 = vadd.f32 %v3250_v61, %v3249_v23  ;;  %v2429_v58 = vadd.f32 %v3248_v10, %v3004_v6 }
 0x2f8   :  { %v3252_v63 = vpop.f32.mrf.mxu0 }
 0x2f9   :  { %v2430_v34 = vadd.f32 %v3251_v14, %v3005_v13 }
 0x2fa   :  { %v3253_v46 = vpop.f32.mrf.mxu0 }
 0x2fb   :  { %v3081_v53 = vpack.c.bf16 %v2430_v34, %v2429_v58  ;;  %v3254_v4 = vadd.f32 %v3253_v46, %v3252_v63 }
 0x2fc   :  { %v3140_v11 = vld [vmem:[%s4928_s0 + $0x68] sm:$0xff]   ;;  %v3255_v8 = vpop.f32.mrf.mxu0 }
 0x2fd   :  { %3154 = vst [vmem:[%s4932_s4 + $0x60] sm:$0xff] %v3081_v53   ;;  %v3008_v21 = vunpack.c.l.bf16 %v3140_v11  ;;  %v3009_v27 = vunpack.c.h.bf16 %v3140_v11 }
 0x2fe   :  { %v3256_v12 = vpop.f32.mrf.mxu0 }
 0x2ff   :  { %v3257_v52 = vadd.f32 %v3256_v12, %v3255_v8  ;;  %v2431_v60 = vadd.f32 %v3254_v4, %v3008_v21 }
 0x300   :  { %v3258_v55 = vpop.f32.mrf.mxu0 }
 0x301   :  { %v2432_v2 = vadd.f32 %v3257_v52, %v3009_v27 }
 0x302   :  { %v3259_v56 = vpop.f32.mrf.mxu0 }
 0x303   :  { %v3086_v31 = vpack.c.bf16 %v2432_v2, %v2431_v60  ;;  %v3260_v25 = vadd.f32 %v3259_v56, %v3258_v55 }
 0x304   :  { %v3141_v41 = vld [vmem:[%s4928_s0 + $0x70] sm:$0xff]   ;;  %v3261_v26 = vpop.f32.mrf.mxu0 }
 0x305   :  { %3155 = vst [vmem:[%s4932_s4 + $0x68] sm:$0xff] %v3086_v31   ;;  %v3012_v16 = vunpack.c.l.bf16 %v3141_v41  ;;  %v3013_v30 = vunpack.c.h.bf16 %v3141_v41 }
 0x306   :  { %v3262_v33 = vpop.f32.mrf.mxu0 }
 0x307   :  { %v3263_v35 = vadd.f32 %v3262_v33, %v3261_v26  ;;  %v2433_v57 = vadd.f32 %v3260_v25, %v3012_v16 }
 0x308   :  { %v3264_v54 = vpop.f32.mrf.mxu0 }
 0x309   :  { %v2434_v45 = vadd.f32 %v3263_v35, %v3013_v30 }
 0x30a   :  { %v3265_v9 = vpop.f32.mrf.mxu0 }
 0x30b   :  { %v3091_v49 = vpack.c.bf16 %v2434_v45, %v2433_v57  ;;  %v3266_v42 = vadd.f32 %v3265_v9, %v3264_v54 }
 0x30c   :  { %v3142_v38 = vld [vmem:[%s4928_s0 + $0x78] sm:$0xff]   ;;  %v3267_v62 = vpop.f32.mrf.mxu0 }
 0x30d   :  { %3156 = vst [vmem:[%s4932_s4 + $0x70] sm:$0xff] %v3091_v49   ;;  %v3016_v29 = vunpack.c.l.bf16 %v3142_v38  ;;  %v3017_v43 = vunpack.c.h.bf16 %v3142_v38 }
 0x30e   :  { %v3268_v32 = vpop.f32.mrf.mxu0 }
 0x30f   :  { %v3269_v1 = vadd.f32 %v3268_v32, %v3267_v62  ;;  %v2435_v59 = vadd.f32 %v3266_v42, %v3016_v29 }
 0x311   :  { %v2436_v36 = vadd.f32 %v3269_v1, %v3017_v43 }
 0x313   :  { %v3096_v5 = vpack.c.bf16 %v2436_v36, %v2435_v59 }
 0x315   :  { %3157 = vst [vmem:[%s4932_s4 + $0x78] sm:$0xff] %v3096_v5  }

</bundles_post_ra>
